<compile_context>
chip_gen: v7x
topology: tpu7x:2x2x1
jax: 0.10.0
libtpu: 0.0.40
codegen_flags: <defaults>
</compile_context>

<pallas_src>
import jax
import jax.numpy as jnp
from jax import lax
from jax.experimental import pallas as pl
from jax.experimental.pallas import tpu as pltpu


def _default_vmem_limit():
    cap = None
    try:
        cap = getattr(pltpu.get_tpu_info(), "vmem_capacity_bytes", None)
    except Exception:
        cap = None
    if not cap:
        cap = 64 * 1024 * 1024                     # conservative (v7x physical)
    return int(min(96 * 1024 * 1024, (cap * 3) // 4))


_VMEM_LIMIT = _default_vmem_limit()


def _mosaic_params(*sem):
    return pltpu.CompilerParams(dimension_semantics=tuple(sem),
                                vmem_limit_bytes=_VMEM_LIMIT)


# ---------------------------------------------------------------------------
# (1,3,3) conv body (pad=1) on a VMEM value: H-only slices, matmul over the
# padded W width, kw shift folded into the f32 accumulator.
# ---------------------------------------------------------------------------

def _spatial_3x3_body(xv, w_ref, b_ref, out_dtype):
    """xv: (bt, h, w, cin) bf16; w_ref: (9, cin, cout); b_ref: (1, cout) f32."""
    bt, hh, ww, cin = xv.shape
    cout = w_ref.shape[-1]
    wp = -(-(ww + 2) // 8) * 8            # pad W to a sublane multiple so the
                                          # (rows, cin) reshapes stay aligned
    zl = jnp.zeros((bt, hh, 1, cin), xv.dtype)
    zr = jnp.zeros((bt, hh, wp - ww - 1, cin), xv.dtype)
    xw = jnp.concatenate([zl, xv, zr], axis=2)            # (bt, hh, wp, cin)
    zh = jnp.zeros((bt, 1, wp, cin), xv.dtype)
    xp = jnp.concatenate([zh, xw, zh], axis=1)            # (bt, hh+2, wp, cin)

    rows_p = bt * hh * wp
    # Three contiguous H-slabs (major-dim slices, full trailing dims).
    xs = [xp[:, kh:kh + hh, :, :].reshape(rows_p, cin) for kh in range(3)]

    acc = None
    for kw in range(3):
        a = None
        for kh in range(3):
            d = jnp.dot(xs[kh], w_ref[kh * 3 + kw],
                        preferred_element_type=jnp.float32)
            a = d if a is None else a + d
        a = a.reshape(bt, hh, wp, cout)[:, :, kw:kw + ww, :]
        acc = a if acc is None else acc + a

    y = jnp.maximum(acc + b_ref[...], 0.0)
    return y.astype(out_dtype)


# ---------------------------------------------------------------------------
# Kernel 1: fused [1x1 stem + BN + ReLU] + [(1,3,3) conv + BN + ReLU] for
# branches 1 and 2, sharing one read of the 192-ch input block.
# ---------------------------------------------------------------------------

def _stem_spatial_kernel(x_ref, w1s_ref, b1s_ref, w1_ref, b1_ref,
                         w2s_ref, b2s_ref, w2_ref, b2_ref, o1_ref, o2_ref):
    bt, hh, ww, cin = x_ref.shape
    rows = bt * hh * ww
    x2d = x_ref[...].reshape(rows, cin)

    def stem(ws_ref, bs_ref):
        a = jnp.dot(x2d, ws_ref[...], preferred_element_type=jnp.float32)
        y = jnp.maximum(a + bs_ref[...], 0.0).astype(jnp.bfloat16)
        return y.reshape(bt, hh, ww, -1)

    o1_ref[...] = _spatial_3x3_body(stem(w1s_ref, b1s_ref), w1_ref, b1_ref,
                                    o1_ref.dtype)
    o2_ref[...] = _spatial_3x3_body(stem(w2s_ref, b2s_ref), w2_ref, b2_ref,
                                    o2_ref.dtype)


def stem_spatial_conv(x4, br1, br2, out_dtype=jnp.bfloat16):
    """x4: (n*t, h, w, 192) bf16.  br = (w_stem, b_stem, w_sep9, b_sep)."""
    nt, h, w, cin = x4.shape
    w1s, b1s, w1, b1 = br1
    w2s, b2s, w2, b2 = br2
    co1, co2 = int(w1.shape[-1]), int(w2.shape[-1])

    bt = max(1, min(nt, 8192 // max(1, h * w)))     # ~8K output rows per block
    if bt >= nt and nt > 1:
        bt = (nt + 1) // 2                          # >=2 parallel steps (v7x)
    grid = (pl.cdiv(nt, bt),)

    def xmap(i):
        return (i, 0, 0, 0)

    def wmap2(i):
        return (0, 0)

    def wmap3(i):
        return (0, 0, 0)

    return pl.pallas_call(
        _stem_spatial_kernel,
        out_shape=(jax.ShapeDtypeStruct((nt, h, w, co1), out_dtype),
                   jax.ShapeDtypeStruct((nt, h, w, co2), out_dtype)),
        grid=grid,
        in_specs=[
            pl.BlockSpec((bt, h, w, cin), xmap),
            pl.BlockSpec(w1s.shape, wmap2), pl.BlockSpec(b1s.shape, wmap2),
            pl.BlockSpec(w1.shape, wmap3), pl.BlockSpec(b1.shape, wmap2),
            pl.BlockSpec(w2s.shape, wmap2), pl.BlockSpec(b2s.shape, wmap2),
            pl.BlockSpec(w2.shape, wmap3), pl.BlockSpec(b2.shape, wmap2),
        ],
        out_specs=(pl.BlockSpec((bt, h, w, co1), xmap),
                   pl.BlockSpec((bt, h, w, co2), xmap)),
        compiler_params=_mosaic_params("parallel"),
    )(x4, w1s, b1s, w1, b1, w2s, b2s, w2, b2)


# ---------------------------------------------------------------------------
# Kernel 2: (3,1,1) conv + BN + ReLU, T-halo built in-register (no jnp.pad).
# ---------------------------------------------------------------------------

def _temporal_conv_kernel(x_ref, w_ref, b_ref, o_ref):
    t, hb, wd, cin = x_ref.shape
    cout = o_ref.shape[-1]
    xv = x_ref[...]
    z = jnp.zeros((1, hb, wd, cin), xv.dtype)
    xt = jnp.concatenate([z, xv, z], axis=0)               # pad T (major dim)
    rows = t * hb * wd
    acc = None
    for kt in range(3):
        d = jnp.dot(xt[kt:kt + t].reshape(rows, cin), w_ref[kt],
                    preferred_element_type=jnp.float32)
        acc = d if acc is None else acc + d
    y = jnp.maximum(acc + b_ref[...], 0.0)
    o_ref[...] = y.reshape(t, hb, wd, cout).astype(o_ref.dtype)


def sep_conv_temporal(x, w3, b, out_dtype=jnp.bfloat16):
    """x: (n, t, h, w, cin) bf16; w3: (3, cin, cout) bf16; b: (1, cout) f32."""
    n, t, h, wd, cin = x.shape
    cout = int(w3.shape[-1])
    hb = max(1, min(h, 8192 // max(1, t * wd)))
    return pl.pallas_call(
        _temporal_conv_kernel,
        out_shape=jax.ShapeDtypeStruct((n, t, h, wd, cout), out_dtype),
        grid=(n, pl.cdiv(h, hb)),
        in_specs=[
            pl.BlockSpec((None, t, hb, wd, cin), lambda i, j: (i, 0, j, 0, 0)),
            pl.BlockSpec((3, cin, cout), lambda i, j: (0, 0, 0)),
            pl.BlockSpec((1, cout), lambda i, j: (0, 0)),
        ],
        out_specs=pl.BlockSpec((None, t, hb, wd, cout),
                               lambda i, j: (i, 0, j, 0, 0)),
        compiler_params=_mosaic_params("parallel", "parallel"),
    )(x, w3, b)


# ---------------------------------------------------------------------------
# Kernel 3: branch-0 1x1 conv + branch-3 [MaxPool3d(3,1,1) + 1x1 conv], fused
# over a single read of the (T,H,W,192) slab per batch element.
# ---------------------------------------------------------------------------

def _pool_stem_kernel(x_ref, w0_ref, b0_ref, w3_ref, b3_ref, o0_ref, o3_ref):
    t, hh, ww, cin = x_ref.shape
    rows = t * hh * ww
    xv = x_ref[...]
    x2d = xv.reshape(rows, cin)

    # Branch 0: plain 1x1 conv + BN + ReLU on the raw input.
    a0 = jnp.dot(x2d, w0_ref[...], preferred_element_type=jnp.float32)
    o0_ref[...] = (jnp.maximum(a0 + b0_ref[...], 0.0)
                   .reshape(t, hh, ww, -1).astype(o0_ref.dtype))

    # Branch 3: MaxPool3d(3, stride 1, pad 1) as separable 3-tap maxima with
    # edge clamping (clamp == -inf padding for max), then 1x1 conv.
    v = xv
    for axis in (2, 1, 0):
        sz = v.shape[axis]
        if sz == 1:
            continue
        lo = lax.slice_in_dim(v, 0, 1, axis=axis)
        hi = lax.slice_in_dim(v, sz - 1, sz, axis=axis)
        up = jnp.concatenate([lax.slice_in_dim(v, 1, sz, axis=axis), hi],
                             axis=axis)
        dn = jnp.concatenate([lo, lax.slice_in_dim(v, 0, sz - 1, axis=axis)],
                             axis=axis)
        v = jnp.maximum(v, jnp.maximum(up, dn))
    a3 = jnp.dot(v.reshape(rows, cin), w3_ref[...],
                 preferred_element_type=jnp.float32)
    o3_ref[...] = (jnp.maximum(a3 + b3_ref[...], 0.0)
                   .reshape(t, hh, ww, -1).astype(o3_ref.dtype))


def pool_stem_conv(x, w0, b0, w3, b3, out_dtype=jnp.bfloat16):
    """x: (n, t, h, w, 192) bf16."""
    n, t, h, wd, cin = x.shape
    co0, co3 = int(w0.shape[-1]), int(w3.shape[-1])
    # TODO(synk): for very long T, chunk T with +-1 frame halos to stay well
    # inside the 64 MiB v7x VMEM.
    fmap = lambda i: (i, 0, 0, 0, 0)
    wmap = lambda i: (0, 0)
    return pl.pallas_call(
        _pool_stem_kernel,
        out_shape=(jax.ShapeDtypeStruct((n, t, h, wd, co0), out_dtype),
                   jax.ShapeDtypeStruct((n, t, h, wd, co3), out_dtype)),
        grid=(n,),
        in_specs=[
            pl.BlockSpec((None, t, h, wd, cin), fmap),
            pl.BlockSpec(w0.shape, wmap), pl.BlockSpec(b0.shape, wmap),
            pl.BlockSpec(w3.shape, wmap), pl.BlockSpec(b3.shape, wmap),
        ],
        out_specs=(pl.BlockSpec((None, t, h, wd, co0), fmap),
                   pl.BlockSpec((None, t, h, wd, co3), fmap)),
        compiler_params=_mosaic_params("parallel"),
    )(x, w0, b0, w3, b3)


# --------------------------- weight / BN folding ---------------------------

def _fold_1x1(pr):
    w2d = jnp.transpose(pr["w"][:, :, 0, 0, 0], (1, 0)) * pr["scale"][None, :]
    return w2d.astype(jnp.bfloat16), pr["bias"].reshape(1, -1).astype(jnp.float32)


def _fold_spatial(pr):
    cout, cin = int(pr["w"].shape[0]), int(pr["w"].shape[1])
    we = pr["w"][:, :, 0, :, :] * pr["scale"][:, None, None, None]   # (Co,Ci,3,3)
    we = jnp.transpose(we, (2, 3, 1, 0)).reshape(9, cin, cout)
    return we.astype(jnp.bfloat16), pr["bias"].reshape(1, -1).astype(jnp.float32)


def _fold_temporal(pr):
    we = pr["w"][:, :, :, 0, 0] * pr["scale"][:, None, None]         # (Co,Ci,3)
    we = jnp.transpose(we, (2, 1, 0))                                # (3,Ci,Co)
    return we.astype(jnp.bfloat16), pr["bias"].reshape(1, -1).astype(jnp.float32)


# ------------------------------ Mixed_3b model -----------------------------

def init_basic(key, cin, cout, ksize, eps=1e-3):
    """Conv3d weight (PyTorch OIDHW layout) + folded inference-mode BN."""
    kw, kb = jax.random.split(key)
    fan_in = cin * ksize[0] * ksize[1] * ksize[2]
    w = jax.random.normal(kw, (cout, cin) + ksize, jnp.float32) / jnp.sqrt(fan_in)
    k1, k2, k3, k4 = jax.random.split(kb, 4)
    gamma = 1.0 + 0.1 * jax.random.normal(k1, (cout,), jnp.float32)
    beta = 0.1 * jax.random.normal(k2, (cout,), jnp.float32)
    mean = 0.1 * jax.random.normal(k3, (cout,), jnp.float32)
    var = 0.5 + jnp.abs(jax.random.normal(k4, (cout,), jnp.float32))
    scale = gamma / jnp.sqrt(var + eps)
    bias = beta - mean * scale
    return {"w": w, "scale": scale, "bias": bias}


def init_params(key):
    keys = jax.random.split(key, 8)
    return {
        "b0":   init_basic(keys[0], 192, 64, (1, 1, 1)),
        "b1_0": init_basic(keys[1], 192, 96, (1, 1, 1)),
        "b1_s": init_basic(keys[2], 96, 128, (1, 3, 3)),
        "b1_t": init_basic(keys[3], 128, 128, (3, 1, 1)),
        "b2_0": init_basic(keys[4], 192, 16, (1, 1, 1)),
        "b2_s": init_basic(keys[5], 16, 32, (1, 3, 3)),
        "b2_t": init_basic(keys[6], 32, 32, (3, 1, 1)),
        "b3_1": init_basic(keys[7], 192, 32, (1, 1, 1)),
    }


def mixed_3b_pallas(x_ncdhw, p):
    x = jnp.transpose(x_ncdhw, (0, 2, 3, 4, 1)).astype(jnp.bfloat16)  # NDHWC
    n, t, h, wd, cin = x.shape

    br1 = _fold_1x1(p["b1_0"]) + _fold_spatial(p["b1_s"])
    br2 = _fold_1x1(p["b2_0"]) + _fold_spatial(p["b2_s"])
    w1t, b1t = _fold_temporal(p["b1_t"])
    w2t, b2t = _fold_temporal(p["b2_t"])
    w0, b0 = _fold_1x1(p["b0"])
    w3, b3 = _fold_1x1(p["b3_1"])

    # Branches 1 & 2: fused 1x1 stem + (1,3,3) conv over one read of x, then
    # the (3,1,1) temporal conv.
    s1, s2 = stem_spatial_conv(x.reshape(n * t, h, wd, cin), br1, br2)
    x1 = sep_conv_temporal(s1.reshape(n, t, h, wd, -1), w1t, b1t)
    x2 = sep_conv_temporal(s2.reshape(n, t, h, wd, -1), w2t, b2t)

    # Branches 0 & 3: fused 1x1 and maxpool+1x1 over one read of x per batch.
    x0, x3 = pool_stem_conv(x, w0, b0, w3, b3)

    out = jnp.concatenate([x0, x1, x2, x3], axis=-1)                  # 256 ch
    return jnp.transpose(out, (0, 4, 1, 2, 3)).astype(jnp.float32)    # NCDHW


# ------------------------- pure-JAX reference (NCDHW) ----------------------

def _conv3d_ref(x, w, pad):
    return lax.conv_general_dilated(
        x, w, window_strides=(1, 1, 1), padding=pad,
        dimension_numbers=("NCDHW", "OIDHW", "NCDHW"))


def _basic_ref(x, pr, pad=((0, 0), (0, 0), (0, 0))):
    y = _conv3d_ref(x, pr["w"], pad)
    s = pr["scale"].reshape(1, -1, 1, 1, 1)
    b = pr["bias"].reshape(1, -1, 1, 1, 1)
    return jnp.maximum(y * s + b, 0.0)


def mixed_3b_ref(x, p):
    x0 = _basic_ref(x, p["b0"])
    y = _basic_ref(x, p["b1_0"])
    y = _basic_ref(y, p["b1_s"], ((0, 0), (1, 1), (1, 1)))
    x1 = _basic_ref(y, p["b1_t"], ((1, 1), (0, 0), (0, 0)))
    y = _basic_ref(x, p["b2_0"])
    y = _basic_ref(y, p["b2_s"], ((0, 0), (1, 1), (1, 1)))
    x2 = _basic_ref(y, p["b2_t"], ((1, 1), (0, 0), (0, 0)))
    mp = lax.reduce_window(x, -jnp.inf, lax.max,
                           window_dimensions=(1, 1, 3, 3, 3),
                           window_strides=(1, 1, 1, 1, 1),
                           padding=((0, 0), (0, 0), (1, 1), (1, 1), (1, 1)))
    x3 = _basic_ref(mp, p["b3_1"])
    return jnp.concatenate([x0, x1, x2, x3], axis=1)


# ---------------------------------- main -----------------------------------

if __name__ == "__main__":
    key = jax.random.PRNGKey(0)
    kx, kp = jax.random.split(key)

    # Small shapes consistent with Mixed_3b (C_in must be 192).
    N, C, T, H, W = 2, 192, 4, 8, 8
    x = jax.random.normal(kx, (N, C, T, H, W), jnp.float32)
    params = init_params(kp)

    fwd = jax.jit(mixed_3b_pallas)
    out = jax.block_until_ready(fwd(x, params))
    assert out.shape == (N, 64 + 128 + 32 + 32, T, H, W), out.shape

    ref = mixed_3b_ref(x, params)
    # bf16 matmuls / bf16 branch outputs with f32 accumulation: relative check.
    err = float(jnp.max(jnp.abs(out - ref) / (jnp.abs(ref) + 1.0)))
    assert err < 4e-2, f"mismatch vs reference: {err}"

    print("KERNEL_OK")
</pallas_src>

<mosaic_0001>
module attributes {stable_mosaic.version = 11 : i64} {
  func.func @_stem_spatial_kernel(%arg0: i32, %arg1: memref<4x8x8x192xbf16, #tpu.memory_space<vmem>>, %arg2: memref<192x96xbf16, #tpu.memory_space<vmem>>, %arg3: memref<1x96xf32, #tpu.memory_space<vmem>>, %arg4: memref<9x96x128xbf16, #tpu.memory_space<vmem>>, %arg5: memref<1x128xf32, #tpu.memory_space<vmem>>, %arg6: memref<192x16xbf16, #tpu.memory_space<vmem>>, %arg7: memref<1x16xf32, #tpu.memory_space<vmem>>, %arg8: memref<9x16x32xbf16, #tpu.memory_space<vmem>>, %arg9: memref<1x32xf32, #tpu.memory_space<vmem>>, %arg10: memref<4x8x8x128xbf16, #tpu.memory_space<vmem>>, %arg11: memref<4x8x8x32xbf16, #tpu.memory_space<vmem>>) attributes {dimension_semantics = [#tpu.dimension_semantics<parallel>], iteration_bounds = array<i64: 2>, scalar_prefetch = 0 : i64, scratch_operands = 0 : i64, tpu.core_type = #tpu.core_type<tc>, window_params = [{transform_indices = @transform_0, window_bounds = array<i64: 4, 8, 8, 192>}, {pipeline_mode = #tpu.pipeline_mode<synchronous>, transform_indices = @transform_1, window_bounds = array<i64: 192, 96>}, {pipeline_mode = #tpu.pipeline_mode<synchronous>, transform_indices = @transform_2, window_bounds = array<i64: 1, 96>}, {pipeline_mode = #tpu.pipeline_mode<synchronous>, transform_indices = @transform_3, window_bounds = array<i64: 9, 96, 128>}, {pipeline_mode = #tpu.pipeline_mode<synchronous>, transform_indices = @transform_4, window_bounds = array<i64: 1, 128>}, {pipeline_mode = #tpu.pipeline_mode<synchronous>, transform_indices = @transform_5, window_bounds = array<i64: 192, 16>}, {pipeline_mode = #tpu.pipeline_mode<synchronous>, transform_indices = @transform_6, window_bounds = array<i64: 1, 16>}, {pipeline_mode = #tpu.pipeline_mode<synchronous>, transform_indices = @transform_7, window_bounds = array<i64: 9, 16, 32>}, {pipeline_mode = #tpu.pipeline_mode<synchronous>, transform_indices = @transform_8, window_bounds = array<i64: 1, 32>}, {transform_indices = @transform_9, window_bounds = array<i64: 4, 8, 8, 128>}, {transform_indices = @transform_10, window_bounds = array<i64: 4, 8, 8, 32>}]} {
    %c0 = arith.constant 0 : index
    %c0_0 = arith.constant 0 : index
    %c0_1 = arith.constant 0 : index
    %c0_2 = arith.constant 0 : index
    %0 = vector.load %arg1[%c0, %c0_0, %c0_1, %c0_2] : memref<4x8x8x192xbf16, #tpu.memory_space<vmem>>, vector<4x8x8x192xbf16>
    %1 = vector.shape_cast %0 : vector<4x8x8x192xbf16> to vector<256x192xbf16>
    %c0_3 = arith.constant 0 : index
    %c0_4 = arith.constant 0 : index
    %2 = vector.load %arg2[%c0_3, %c0_4] : memref<192x96xbf16, #tpu.memory_space<vmem>>, vector<192x96xbf16>
    %cst = arith.constant dense<0.000000e+00> : vector<256x96xf32>
    %3 = tpu.matmul %1, %2, %cst {dimension_numbers = #tpu.dot_dimension_numbers<[1], [0], [0], [1], [0, 0, 1, 1], [], []>} : vector<256x192xbf16>, vector<192x96xbf16>, vector<256x96xf32> -> vector<256x96xf32>
    %c0_5 = arith.constant 0 : index
    %c0_6 = arith.constant 0 : index
    %4 = vector.load %arg3[%c0_5, %c0_6] : memref<1x96xf32, #tpu.memory_space<vmem>>, vector<1x96xf32>
    %5 = vector.broadcast %4 : vector<1x96xf32> to vector<256x96xf32>
    %6 = arith.addf %3, %5 : vector<256x96xf32>
    %cst_7 = arith.constant 0.000000e+00 : f32
    %7 = vector.broadcast %cst_7 : f32 to vector<256x96xf32>
    %8 = arith.maximumf %6, %7 : vector<256x96xf32>
    %9 = arith.truncf %8 : vector<256x96xf32> to vector<256x96xbf16>
    %10 = vector.shape_cast %9 : vector<256x96xbf16> to vector<4x8x8x96xbf16>
    %cst_8 = arith.constant 0.000000e+00 : bf16
    %11 = vector.broadcast %cst_8 : bf16 to vector<4x8x1x96xbf16>
    %cst_9 = arith.constant 0.000000e+00 : bf16
    %12 = vector.broadcast %cst_9 : bf16 to vector<4x8x7x96xbf16>
    %13 = tpu.concatenate %11, %10, %12 in 2 : vector<4x8x1x96xbf16>, vector<4x8x8x96xbf16>, vector<4x8x7x96xbf16> -> vector<4x8x16x96xbf16>
    %cst_10 = arith.constant 0.000000e+00 : bf16
    %14 = vector.broadcast %cst_10 : bf16 to vector<4x1x16x96xbf16>
    %15 = tpu.concatenate %14, %13, %14 in 1 : vector<4x1x16x96xbf16>, vector<4x8x16x96xbf16>, vector<4x1x16x96xbf16> -> vector<4x10x16x96xbf16>
    %16 = vector.extract_strided_slice %15 {offsets = [0, 0, 0, 0], sizes = [4, 8, 16, 96], strides = [1, 1, 1, 1]} : vector<4x10x16x96xbf16> to vector<4x8x16x96xbf16>
    %17 = vector.shape_cast %16 : vector<4x8x16x96xbf16> to vector<512x96xbf16>
    %18 = vector.extract_strided_slice %15 {offsets = [0, 1, 0, 0], sizes = [4, 8, 16, 96], strides = [1, 1, 1, 1]} : vector<4x10x16x96xbf16> to vector<4x8x16x96xbf16>
    %19 = vector.shape_cast %18 : vector<4x8x16x96xbf16> to vector<512x96xbf16>
    %20 = vector.extract_strided_slice %15 {offsets = [0, 2, 0, 0], sizes = [4, 8, 16, 96], strides = [1, 1, 1, 1]} : vector<4x10x16x96xbf16> to vector<4x8x16x96xbf16>
    %21 = vector.shape_cast %20 : vector<4x8x16x96xbf16> to vector<512x96xbf16>
    %c0_11 = arith.constant 0 : index
    %c0_12 = arith.constant 0 : index
    %c0_13 = arith.constant 0 : index
    %22 = vector.load %arg4[%c0_11, %c0_12, %c0_13] : memref<9x96x128xbf16, #tpu.memory_space<vmem>>, vector<1x96x128xbf16>
    %23 = vector.shape_cast %22 : vector<1x96x128xbf16> to vector<96x128xbf16>
    %cst_14 = arith.constant dense<0.000000e+00> : vector<512x128xf32>
    %24 = tpu.matmul %17, %23, %cst_14 {dimension_numbers = #tpu.dot_dimension_numbers<[1], [0], [0], [1], [0, 0, 1, 1], [], []>} : vector<512x96xbf16>, vector<96x128xbf16>, vector<512x128xf32> -> vector<512x128xf32>
    %c3 = arith.constant 3 : index
    %c0_15 = arith.constant 0 : index
    %c0_16 = arith.constant 0 : index
    %25 = vector.load %arg4[%c3, %c0_15, %c0_16] : memref<9x96x128xbf16, #tpu.memory_space<vmem>>, vector<1x96x128xbf16>
    %26 = vector.shape_cast %25 : vector<1x96x128xbf16> to vector<96x128xbf16>
    %cst_17 = arith.constant dense<0.000000e+00> : vector<512x128xf32>
    %27 = tpu.matmul %19, %26, %cst_17 {dimension_numbers = #tpu.dot_dimension_numbers<[1], [0], [0], [1], [0, 0, 1, 1], [], []>} : vector<512x96xbf16>, vector<96x128xbf16>, vector<512x128xf32> -> vector<512x128xf32>
    %28 = arith.addf %24, %27 : vector<512x128xf32>
    %c6 = arith.constant 6 : index
    %c0_18 = arith.constant 0 : index
    %c0_19 = arith.constant 0 : index
    %29 = vector.load %arg4[%c6, %c0_18, %c0_19] : memref<9x96x128xbf16, #tpu.memory_space<vmem>>, vector<1x96x128xbf16>
    %30 = vector.shape_cast %29 : vector<1x96x128xbf16> to vector<96x128xbf16>
    %cst_20 = arith.constant dense<0.000000e+00> : vector<512x128xf32>
    %31 = tpu.matmul %21, %30, %cst_20 {dimension_numbers = #tpu.dot_dimension_numbers<[1], [0], [0], [1], [0, 0, 1, 1], [], []>} : vector<512x96xbf16>, vector<96x128xbf16>, vector<512x128xf32> -> vector<512x128xf32>
    %32 = arith.addf %28, %31 : vector<512x128xf32>
    %33 = vector.shape_cast %32 : vector<512x128xf32> to vector<4x8x16x128xf32>
    %34 = vector.extract_strided_slice %33 {offsets = [0, 0, 0, 0], sizes = [4, 8, 8, 128], strides = [1, 1, 1, 1]} : vector<4x8x16x128xf32> to vector<4x8x8x128xf32>
    %c1 = arith.constant 1 : index
    %c0_21 = arith.constant 0 : index
    %c0_22 = arith.constant 0 : index
    %35 = vector.load %arg4[%c1, %c0_21, %c0_22] : memref<9x96x128xbf16, #tpu.memory_space<vmem>>, vector<1x96x128xbf16>
    %36 = vector.shape_cast %35 : vector<1x96x128xbf16> to vector<96x128xbf16>
    %cst_23 = arith.constant dense<0.000000e+00> : vector<512x128xf32>
    %37 = tpu.matmul %17, %36, %cst_23 {dimension_numbers = #tpu.dot_dimension_numbers<[1], [0], [0], [1], [0, 0, 1, 1], [], []>} : vector<512x96xbf16>, vector<96x128xbf16>, vector<512x128xf32> -> vector<512x128xf32>
    %c4 = arith.constant 4 : index
    %c0_24 = arith.constant 0 : index
    %c0_25 = arith.constant 0 : index
    %38 = vector.load %arg4[%c4, %c0_24, %c0_25] : memref<9x96x128xbf16, #tpu.memory_space<vmem>>, vector<1x96x128xbf16>
    %39 = vector.shape_cast %38 : vector<1x96x128xbf16> to vector<96x128xbf16>
    %cst_26 = arith.constant dense<0.000000e+00> : vector<512x128xf32>
    %40 = tpu.matmul %19, %39, %cst_26 {dimension_numbers = #tpu.dot_dimension_numbers<[1], [0], [0], [1], [0, 0, 1, 1], [], []>} : vector<512x96xbf16>, vector<96x128xbf16>, vector<512x128xf32> -> vector<512x128xf32>
    %41 = arith.addf %37, %40 : vector<512x128xf32>
    %c7 = arith.constant 7 : index
    %c0_27 = arith.constant 0 : index
    %c0_28 = arith.constant 0 : index
    %42 = vector.load %arg4[%c7, %c0_27, %c0_28] : memref<9x96x128xbf16, #tpu.memory_space<vmem>>, vector<1x96x128xbf16>
    %43 = vector.shape_cast %42 : vector<1x96x128xbf16> to vector<96x128xbf16>
    %cst_29 = arith.constant dense<0.000000e+00> : vector<512x128xf32>
    %44 = tpu.matmul %21, %43, %cst_29 {dimension_numbers = #tpu.dot_dimension_numbers<[1], [0], [0], [1], [0, 0, 1, 1], [], []>} : vector<512x96xbf16>, vector<96x128xbf16>, vector<512x128xf32> -> vector<512x128xf32>
    %45 = arith.addf %41, %44 : vector<512x128xf32>
    %46 = vector.shape_cast %45 : vector<512x128xf32> to vector<4x8x16x128xf32>
    %47 = vector.extract_strided_slice %46 {offsets = [0, 0, 1, 0], sizes = [4, 8, 8, 128], strides = [1, 1, 1, 1]} : vector<4x8x16x128xf32> to vector<4x8x8x128xf32>
    %48 = arith.addf %34, %47 : vector<4x8x8x128xf32>
    %c2 = arith.constant 2 : index
    %c0_30 = arith.constant 0 : index
    %c0_31 = arith.constant 0 : index
    %49 = vector.load %arg4[%c2, %c0_30, %c0_31] : memref<9x96x128xbf16, #tpu.memory_space<vmem>>, vector<1x96x128xbf16>
    %50 = vector.shape_cast %49 : vector<1x96x128xbf16> to vector<96x128xbf16>
    %cst_32 = arith.constant dense<0.000000e+00> : vector<512x128xf32>
    %51 = tpu.matmul %17, %50, %cst_32 {dimension_numbers = #tpu.dot_dimension_numbers<[1], [0], [0], [1], [0, 0, 1, 1], [], []>} : vector<512x96xbf16>, vector<96x128xbf16>, vector<512x128xf32> -> vector<512x128xf32>
    %c5 = arith.constant 5 : index
    %c0_33 = arith.constant 0 : index
    %c0_34 = arith.constant 0 : index
    %52 = vector.load %arg4[%c5, %c0_33, %c0_34] : memref<9x96x128xbf16, #tpu.memory_space<vmem>>, vector<1x96x128xbf16>
    %53 = vector.shape_cast %52 : vector<1x96x128xbf16> to vector<96x128xbf16>
    %cst_35 = arith.constant dense<0.000000e+00> : vector<512x128xf32>
    %54 = tpu.matmul %19, %53, %cst_35 {dimension_numbers = #tpu.dot_dimension_numbers<[1], [0], [0], [1], [0, 0, 1, 1], [], []>} : vector<512x96xbf16>, vector<96x128xbf16>, vector<512x128xf32> -> vector<512x128xf32>
    %55 = arith.addf %51, %54 : vector<512x128xf32>
    %c8 = arith.constant 8 : index
    %c0_36 = arith.constant 0 : index
    %c0_37 = arith.constant 0 : index
    %56 = vector.load %arg4[%c8, %c0_36, %c0_37] : memref<9x96x128xbf16, #tpu.memory_space<vmem>>, vector<1x96x128xbf16>
    %57 = vector.shape_cast %56 : vector<1x96x128xbf16> to vector<96x128xbf16>
    %cst_38 = arith.constant dense<0.000000e+00> : vector<512x128xf32>
    %58 = tpu.matmul %21, %57, %cst_38 {dimension_numbers = #tpu.dot_dimension_numbers<[1], [0], [0], [1], [0, 0, 1, 1], [], []>} : vector<512x96xbf16>, vector<96x128xbf16>, vector<512x128xf32> -> vector<512x128xf32>
    %59 = arith.addf %55, %58 : vector<512x128xf32>
    %60 = vector.shape_cast %59 : vector<512x128xf32> to vector<4x8x16x128xf32>
    %61 = vector.extract_strided_slice %60 {offsets = [0, 0, 2, 0], sizes = [4, 8, 8, 128], strides = [1, 1, 1, 1]} : vector<4x8x16x128xf32> to vector<4x8x8x128xf32>
    %62 = arith.addf %48, %61 : vector<4x8x8x128xf32>
    %c0_39 = arith.constant 0 : index
    %c0_40 = arith.constant 0 : index
    %63 = vector.load %arg5[%c0_39, %c0_40] : memref<1x128xf32, #tpu.memory_space<vmem>>, vector<1x128xf32>
    %64 = vector.shape_cast %63 : vector<1x128xf32> to vector<1x1x1x128xf32>
    %65 = vector.broadcast %64 : vector<1x1x1x128xf32> to vector<4x8x8x128xf32>
    %66 = arith.addf %62, %65 : vector<4x8x8x128xf32>
    %cst_41 = arith.constant 0.000000e+00 : f32
    %67 = vector.broadcast %cst_41 : f32 to vector<4x8x8x128xf32>
    %68 = arith.maximumf %66, %67 : vector<4x8x8x128xf32>
    %69 = arith.truncf %68 : vector<4x8x8x128xf32> to vector<4x8x8x128xbf16>
    %c0_42 = arith.constant 0 : index
    %c0_43 = arith.constant 0 : index
    %c0_44 = arith.constant 0 : index
    %c0_45 = arith.constant 0 : index
    %70 = vector.load %arg10[%c0_42, %c0_43, %c0_44, %c0_45] : memref<4x8x8x128xbf16, #tpu.memory_space<vmem>>, vector<4x8x8x128xbf16>
    tpu.vector_store %arg10[%c0_42, %c0_43, %c0_44, %c0_45], %69 {strides = array<i32>} : memref<4x8x8x128xbf16, #tpu.memory_space<vmem>>, vector<4x8x8x128xbf16>,
    %c0_46 = arith.constant 0 : index
    %c0_47 = arith.constant 0 : index
    %71 = vector.load %arg6[%c0_46, %c0_47] : memref<192x16xbf16, #tpu.memory_space<vmem>>, vector<192x16xbf16>
    %cst_48 = arith.constant dense<0.000000e+00> : vector<256x16xf32>
    %72 = tpu.matmul %1, %71, %cst_48 {dimension_numbers = #tpu.dot_dimension_numbers<[1], [0], [0], [1], [0, 0, 1, 1], [], []>} : vector<256x192xbf16>, vector<192x16xbf16>, vector<256x16xf32> -> vector<256x16xf32>
    %c0_49 = arith.constant 0 : index
    %c0_50 = arith.constant 0 : index
    %73 = vector.load %arg7[%c0_49, %c0_50] : memref<1x16xf32, #tpu.memory_space<vmem>>, vector<1x16xf32>
    %74 = vector.broadcast %73 : vector<1x16xf32> to vector<256x16xf32>
    %75 = arith.addf %72, %74 : vector<256x16xf32>
    %cst_51 = arith.constant 0.000000e+00 : f32
    %76 = vector.broadcast %cst_51 : f32 to vector<256x16xf32>
    %77 = arith.maximumf %75, %76 : vector<256x16xf32>
    %78 = arith.truncf %77 : vector<256x16xf32> to vector<256x16xbf16>
    %79 = vector.shape_cast %78 : vector<256x16xbf16> to vector<4x8x8x16xbf16>
    %cst_52 = arith.constant 0.000000e+00 : bf16
    %80 = vector.broadcast %cst_52 : bf16 to vector<4x8x1x16xbf16>
    %cst_53 = arith.constant 0.000000e+00 : bf16
    %81 = vector.broadcast %cst_53 : bf16 to vector<4x8x7x16xbf16>
    %82 = tpu.concatenate %80, %79, %81 in 2 : vector<4x8x1x16xbf16>, vector<4x8x8x16xbf16>, vector<4x8x7x16xbf16> -> vector<4x8x16x16xbf16>
    %cst_54 = arith.constant 0.000000e+00 : bf16
    %83 = vector.broadcast %cst_54 : bf16 to vector<4x1x16x16xbf16>
    %84 = tpu.concatenate %83, %82, %83 in 1 : vector<4x1x16x16xbf16>, vector<4x8x16x16xbf16>, vector<4x1x16x16xbf16> -> vector<4x10x16x16xbf16>
    %85 = vector.extract_strided_slice %84 {offsets = [0, 0, 0, 0], sizes = [4, 8, 16, 16], strides = [1, 1, 1, 1]} : vector<4x10x16x16xbf16> to vector<4x8x16x16xbf16>
    %86 = vector.shape_cast %85 : vector<4x8x16x16xbf16> to vector<512x16xbf16>
    %87 = vector.extract_strided_slice %84 {offsets = [0, 1, 0, 0], sizes = [4, 8, 16, 16], strides = [1, 1, 1, 1]} : vector<4x10x16x16xbf16> to vector<4x8x16x16xbf16>
    %88 = vector.shape_cast %87 : vector<4x8x16x16xbf16> to vector<512x16xbf16>
    %89 = vector.extract_strided_slice %84 {offsets = [0, 2, 0, 0], sizes = [4, 8, 16, 16], strides = [1, 1, 1, 1]} : vector<4x10x16x16xbf16> to vector<4x8x16x16xbf16>
    %90 = vector.shape_cast %89 : vector<4x8x16x16xbf16> to vector<512x16xbf16>
    %c0_55 = arith.constant 0 : index
    %c0_56 = arith.constant 0 : index
    %c0_57 = arith.constant 0 : index
    %91 = vector.load %arg8[%c0_55, %c0_56, %c0_57] : memref<9x16x32xbf16, #tpu.memory_space<vmem>>, vector<1x16x32xbf16>
    %92 = vector.shape_cast %91 : vector<1x16x32xbf16> to vector<16x32xbf16>
    %cst_58 = arith.constant dense<0.000000e+00> : vector<512x32xf32>
    %93 = tpu.matmul %86, %92, %cst_58 {dimension_numbers = #tpu.dot_dimension_numbers<[1], [0], [0], [1], [0, 0, 1, 1], [], []>} : vector<512x16xbf16>, vector<16x32xbf16>, vector<512x32xf32> -> vector<512x32xf32>
    %c3_59 = arith.constant 3 : index
    %c0_60 = arith.constant 0 : index
    %c0_61 = arith.constant 0 : index
    %94 = vector.load %arg8[%c3_59, %c0_60, %c0_61] : memref<9x16x32xbf16, #tpu.memory_space<vmem>>, vector<1x16x32xbf16>
    %95 = vector.shape_cast %94 : vector<1x16x32xbf16> to vector<16x32xbf16>
    %cst_62 = arith.constant dense<0.000000e+00> : vector<512x32xf32>
    %96 = tpu.matmul %88, %95, %cst_62 {dimension_numbers = #tpu.dot_dimension_numbers<[1], [0], [0], [1], [0, 0, 1, 1], [], []>} : vector<512x16xbf16>, vector<16x32xbf16>, vector<512x32xf32> -> vector<512x32xf32>
    %97 = arith.addf %93, %96 : vector<512x32xf32>
    %c6_63 = arith.constant 6 : index
    %c0_64 = arith.constant 0 : index
    %c0_65 = arith.constant 0 : index
    %98 = vector.load %arg8[%c6_63, %c0_64, %c0_65] : memref<9x16x32xbf16, #tpu.memory_space<vmem>>, vector<1x16x32xbf16>
    %99 = vector.shape_cast %98 : vector<1x16x32xbf16> to vector<16x32xbf16>
    %cst_66 = arith.constant dense<0.000000e+00> : vector<512x32xf32>
    %100 = tpu.matmul %90, %99, %cst_66 {dimension_numbers = #tpu.dot_dimension_numbers<[1], [0], [0], [1], [0, 0, 1, 1], [], []>} : vector<512x16xbf16>, vector<16x32xbf16>, vector<512x32xf32> -> vector<512x32xf32>
    %101 = arith.addf %97, %100 : vector<512x32xf32>
    %102 = vector.shape_cast %101 : vector<512x32xf32> to vector<4x8x16x32xf32>
    %103 = vector.extract_strided_slice %102 {offsets = [0, 0, 0, 0], sizes = [4, 8, 8, 32], strides = [1, 1, 1, 1]} : vector<4x8x16x32xf32> to vector<4x8x8x32xf32>
    %c1_67 = arith.constant 1 : index
    %c0_68 = arith.constant 0 : index
    %c0_69 = arith.constant 0 : index
    %104 = vector.load %arg8[%c1_67, %c0_68, %c0_69] : memref<9x16x32xbf16, #tpu.memory_space<vmem>>, vector<1x16x32xbf16>
    %105 = vector.shape_cast %104 : vector<1x16x32xbf16> to vector<16x32xbf16>
    %cst_70 = arith.constant dense<0.000000e+00> : vector<512x32xf32>
    %106 = tpu.matmul %86, %105, %cst_70 {dimension_numbers = #tpu.dot_dimension_numbers<[1], [0], [0], [1], [0, 0, 1, 1], [], []>} : vector<512x16xbf16>, vector<16x32xbf16>, vector<512x32xf32> -> vector<512x32xf32>
    %c4_71 = arith.constant 4 : index
    %c0_72 = arith.constant 0 : index
    %c0_73 = arith.constant 0 : index
    %107 = vector.load %arg8[%c4_71, %c0_72, %c0_73] : memref<9x16x32xbf16, #tpu.memory_space<vmem>>, vector<1x16x32xbf16>
    %108 = vector.shape_cast %107 : vector<1x16x32xbf16> to vector<16x32xbf16>
    %cst_74 = arith.constant dense<0.000000e+00> : vector<512x32xf32>
    %109 = tpu.matmul %88, %108, %cst_74 {dimension_numbers = #tpu.dot_dimension_numbers<[1], [0], [0], [1], [0, 0, 1, 1], [], []>} : vector<512x16xbf16>, vector<16x32xbf16>, vector<512x32xf32> -> vector<512x32xf32>
    %110 = arith.addf %106, %109 : vector<512x32xf32>
    %c7_75 = arith.constant 7 : index
    %c0_76 = arith.constant 0 : index
    %c0_77 = arith.constant 0 : index
    %111 = vector.load %arg8[%c7_75, %c0_76, %c0_77] : memref<9x16x32xbf16, #tpu.memory_space<vmem>>, vector<1x16x32xbf16>
    %112 = vector.shape_cast %111 : vector<1x16x32xbf16> to vector<16x32xbf16>
    %cst_78 = arith.constant dense<0.000000e+00> : vector<512x32xf32>
    %113 = tpu.matmul %90, %112, %cst_78 {dimension_numbers = #tpu.dot_dimension_numbers<[1], [0], [0], [1], [0, 0, 1, 1], [], []>} : vector<512x16xbf16>, vector<16x32xbf16>, vector<512x32xf32> -> vector<512x32xf32>
    %114 = arith.addf %110, %113 : vector<512x32xf32>
    %115 = vector.shape_cast %114 : vector<512x32xf32> to vector<4x8x16x32xf32>
    %116 = vector.extract_strided_slice %115 {offsets = [0, 0, 1, 0], sizes = [4, 8, 8, 32], strides = [1, 1, 1, 1]} : vector<4x8x16x32xf32> to vector<4x8x8x32xf32>
    %117 = arith.addf %103, %116 : vector<4x8x8x32xf32>
    %c2_79 = arith.constant 2 : index
    %c0_80 = arith.constant 0 : index
    %c0_81 = arith.constant 0 : index
    %118 = vector.load %arg8[%c2_79, %c0_80, %c0_81] : memref<9x16x32xbf16, #tpu.memory_space<vmem>>, vector<1x16x32xbf16>
    %119 = vector.shape_cast %118 : vector<1x16x32xbf16> to vector<16x32xbf16>
    %cst_82 = arith.constant dense<0.000000e+00> : vector<512x32xf32>
    %120 = tpu.matmul %86, %119, %cst_82 {dimension_numbers = #tpu.dot_dimension_numbers<[1], [0], [0], [1], [0, 0, 1, 1], [], []>} : vector<512x16xbf16>, vector<16x32xbf16>, vector<512x32xf32> -> vector<512x32xf32>
    %c5_83 = arith.constant 5 : index
    %c0_84 = arith.constant 0 : index
    %c0_85 = arith.constant 0 : index
    %121 = vector.load %arg8[%c5_83, %c0_84, %c0_85] : memref<9x16x32xbf16, #tpu.memory_space<vmem>>, vector<1x16x32xbf16>
    %122 = vector.shape_cast %121 : vector<1x16x32xbf16> to vector<16x32xbf16>
    %cst_86 = arith.constant dense<0.000000e+00> : vector<512x32xf32>
    %123 = tpu.matmul %88, %122, %cst_86 {dimension_numbers = #tpu.dot_dimension_numbers<[1], [0], [0], [1], [0, 0, 1, 1], [], []>} : vector<512x16xbf16>, vector<16x32xbf16>, vector<512x32xf32> -> vector<512x32xf32>
    %124 = arith.addf %120, %123 : vector<512x32xf32>
    %c8_87 = arith.constant 8 : index
    %c0_88 = arith.constant 0 : index
    %c0_89 = arith.constant 0 : index
    %125 = vector.load %arg8[%c8_87, %c0_88, %c0_89] : memref<9x16x32xbf16, #tpu.memory_space<vmem>>, vector<1x16x32xbf16>
    %126 = vector.shape_cast %125 : vector<1x16x32xbf16> to vector<16x32xbf16>
    %cst_90 = arith.constant dense<0.000000e+00> : vector<512x32xf32>
    %127 = tpu.matmul %90, %126, %cst_90 {dimension_numbers = #tpu.dot_dimension_numbers<[1], [0], [0], [1], [0, 0, 1, 1], [], []>} : vector<512x16xbf16>, vector<16x32xbf16>, vector<512x32xf32> -> vector<512x32xf32>
    %128 = arith.addf %124, %127 : vector<512x32xf32>
    %129 = vector.shape_cast %128 : vector<512x32xf32> to vector<4x8x16x32xf32>
    %130 = vector.extract_strided_slice %129 {offsets = [0, 0, 2, 0], sizes = [4, 8, 8, 32], strides = [1, 1, 1, 1]} : vector<4x8x16x32xf32> to vector<4x8x8x32xf32>
    %131 = arith.addf %117, %130 : vector<4x8x8x32xf32>
    %c0_91 = arith.constant 0 : index
    %c0_92 = arith.constant 0 : index
    %132 = vector.load %arg9[%c0_91, %c0_92] : memref<1x32xf32, #tpu.memory_space<vmem>>, vector<1x32xf32>
    %133 = vector.shape_cast %132 : vector<1x32xf32> to vector<1x1x1x32xf32>
    %134 = vector.broadcast %133 : vector<1x1x1x32xf32> to vector<4x8x8x32xf32>
    %135 = arith.addf %131, %134 : vector<4x8x8x32xf32>
    %cst_93 = arith.constant 0.000000e+00 : f32
    %136 = vector.broadcast %cst_93 : f32 to vector<4x8x8x32xf32>
    %137 = arith.maximumf %135, %136 : vector<4x8x8x32xf32>
    %138 = arith.truncf %137 : vector<4x8x8x32xf32> to vector<4x8x8x32xbf16>
    %c0_94 = arith.constant 0 : index
    %c0_95 = arith.constant 0 : index
    %c0_96 = arith.constant 0 : index
    %c0_97 = arith.constant 0 : index
    %139 = vector.load %arg11[%c0_94, %c0_95, %c0_96, %c0_97] : memref<4x8x8x32xbf16, #tpu.memory_space<vmem>>, vector<4x8x8x32xbf16>
    tpu.vector_store %arg11[%c0_94, %c0_95, %c0_96, %c0_97], %138 {strides = array<i32>} : memref<4x8x8x32xbf16, #tpu.memory_space<vmem>>, vector<4x8x8x32xbf16>,
    return
  }
  func.func @transform_0(%arg0: i32) -> (i32, i32, i32, i32) {
    %c0_i32 = arith.constant 0 : i32
    %c0_i32_0 = arith.constant 0 : i32
    %c0_i32_1 = arith.constant 0 : i32
    %c0_i32_2 = arith.constant 0 : i32
    return %arg0, %c0_i32, %c0_i32_0, %c0_i32_1 : i32, i32, i32, i32
  }
  func.func @transform_1(%arg0: i32) -> (i32, i32) {
    %c0_i32 = arith.constant 0 : i32
    %c0_i32_0 = arith.constant 0 : i32
    %c0_i32_1 = arith.constant 0 : i32
    return %c0_i32, %c0_i32_0 : i32, i32
  }
  func.func @transform_2(%arg0: i32) -> (i32, i32) {
    %c0_i32 = arith.constant 0 : i32
    %c0_i32_0 = arith.constant 0 : i32
    %c0_i32_1 = arith.constant 0 : i32
    return %c0_i32, %c0_i32_0 : i32, i32
  }
  func.func @transform_3(%arg0: i32) -> (i32, i32, i32) {
    %c0_i32 = arith.constant 0 : i32
    %c0_i32_0 = arith.constant 0 : i32
    %c0_i32_1 = arith.constant 0 : i32
    %c0_i32_2 = arith.constant 0 : i32
    return %c0_i32, %c0_i32_0, %c0_i32_1 : i32, i32, i32
  }
  func.func @transform_4(%arg0: i32) -> (i32, i32) {
    %c0_i32 = arith.constant 0 : i32
    %c0_i32_0 = arith.constant 0 : i32
    %c0_i32_1 = arith.constant 0 : i32
    return %c0_i32, %c0_i32_0 : i32, i32
  }
  func.func @transform_5(%arg0: i32) -> (i32, i32) {
    %c0_i32 = arith.constant 0 : i32
    %c0_i32_0 = arith.constant 0 : i32
    %c0_i32_1 = arith.constant 0 : i32
    return %c0_i32, %c0_i32_0 : i32, i32
  }
  func.func @transform_6(%arg0: i32) -> (i32, i32) {
    %c0_i32 = arith.constant 0 : i32
    %c0_i32_0 = arith.constant 0 : i32
    %c0_i32_1 = arith.constant 0 : i32
    return %c0_i32, %c0_i32_0 : i32, i32
  }
  func.func @transform_7(%arg0: i32) -> (i32, i32, i32) {
    %c0_i32 = arith.constant 0 : i32
    %c0_i32_0 = arith.constant 0 : i32
    %c0_i32_1 = arith.constant 0 : i32
    %c0_i32_2 = arith.constant 0 : i32
    return %c0_i32, %c0_i32_0, %c0_i32_1 : i32, i32, i32
  }
  func.func @transform_8(%arg0: i32) -> (i32, i32) {
    %c0_i32 = arith.constant 0 : i32
    %c0_i32_0 = arith.constant 0 : i32
    %c0_i32_1 = arith.constant 0 : i32
    return %c0_i32, %c0_i32_0 : i32, i32
  }
  func.func @transform_9(%arg0: i32) -> (i32, i32, i32, i32) {
    %c0_i32 = arith.constant 0 : i32
    %c0_i32_0 = arith.constant 0 : i32
    %c0_i32_1 = arith.constant 0 : i32
    %c0_i32_2 = arith.constant 0 : i32
    return %arg0, %c0_i32, %c0_i32_0, %c0_i32_1 : i32, i32, i32, i32
  }
  func.func @transform_10(%arg0: i32) -> (i32, i32, i32, i32) {
    %c0_i32 = arith.constant 0 : i32
    %c0_i32_0 = arith.constant 0 : i32
    %c0_i32_1 = arith.constant 0 : i32
    %c0_i32_2 = arith.constant 0 : i32
    return %arg0, %c0_i32, %c0_i32_0, %c0_i32_1 : i32, i32, i32, i32
  }
}

module attributes {stable_mosaic.version = 11 : i64} {
  func.func @_temporal_conv_kernel(%arg0: i32, %arg1: i32, %arg2: memref<1x4x8x8x128xbf16, #tpu.memory_space<vmem>>, %arg3: memref<3x128x128xbf16, #tpu.memory_space<vmem>>, %arg4: memref<1x128xf32, #tpu.memory_space<vmem>>, %arg5: memref<1x4x8x8x128xbf16, #tpu.memory_space<vmem>>) attributes {dimension_semantics = [#tpu.dimension_semantics<parallel>, #tpu.dimension_semantics<parallel>], iteration_bounds = array<i64: 2, 1>, scalar_prefetch = 0 : i64, scratch_operands = 0 : i64, tpu.core_type = #tpu.core_type<tc>, window_params = [{transform_indices = @transform_0, window_bounds = array<i64: 1, 4, 8, 8, 128>}, {pipeline_mode = #tpu.pipeline_mode<synchronous>, transform_indices = @transform_1, window_bounds = array<i64: 3, 128, 128>}, {pipeline_mode = #tpu.pipeline_mode<synchronous>, transform_indices = @transform_2, window_bounds = array<i64: 1, 128>}, {transform_indices = @transform_3, window_bounds = array<i64: 1, 4, 8, 8, 128>}]} {
    %c0 = arith.constant 0 : index
    %c0_0 = arith.constant 0 : index
    %c0_1 = arith.constant 0 : index
    %c0_2 = arith.constant 0 : index
    %c0_3 = arith.constant 0 : index
    %0 = vector.load %arg2[%c0, %c0_0, %c0_1, %c0_2, %c0_3] : memref<1x4x8x8x128xbf16, #tpu.memory_space<vmem>>, vector<1x4x8x8x128xbf16>
    %1 = vector.shape_cast %0 : vector<1x4x8x8x128xbf16> to vector<4x8x8x128xbf16>
    %cst = arith.constant 0.000000e+00 : bf16
    %2 = vector.broadcast %cst : bf16 to vector<1x8x8x128xbf16>
    %3 = tpu.concatenate %2, %1, %2 in 0 : vector<1x8x8x128xbf16>, vector<4x8x8x128xbf16>, vector<1x8x8x128xbf16> -> vector<6x8x8x128xbf16>
    %4 = vector.extract_strided_slice %3 {offsets = [0, 0, 0, 0], sizes = [4, 8, 8, 128], strides = [1, 1, 1, 1]} : vector<6x8x8x128xbf16> to vector<4x8x8x128xbf16>
    %5 = vector.shape_cast %4 : vector<4x8x8x128xbf16> to vector<256x128xbf16>
    %c0_4 = arith.constant 0 : index
    %c0_5 = arith.constant 0 : index
    %c0_6 = arith.constant 0 : index
    %6 = vector.load %arg3[%c0_4, %c0_5, %c0_6] : memref<3x128x128xbf16, #tpu.memory_space<vmem>>, vector<1x128x128xbf16>
    %7 = vector.shape_cast %6 : vector<1x128x128xbf16> to vector<128x128xbf16>
    %cst_7 = arith.constant dense<0.000000e+00> : vector<256x128xf32>
    %8 = tpu.matmul %5, %7, %cst_7 {dimension_numbers = #tpu.dot_dimension_numbers<[1], [0], [0], [1], [0, 0, 1, 1], [], []>} : vector<256x128xbf16>, vector<128x128xbf16>, vector<256x128xf32> -> vector<256x128xf32>
    %9 = vector.extract_strided_slice %3 {offsets = [1, 0, 0, 0], sizes = [4, 8, 8, 128], strides = [1, 1, 1, 1]} : vector<6x8x8x128xbf16> to vector<4x8x8x128xbf16>
    %10 = vector.shape_cast %9 : vector<4x8x8x128xbf16> to vector<256x128xbf16>
    %c1 = arith.constant 1 : index
    %c0_8 = arith.constant 0 : index
    %c0_9 = arith.constant 0 : index
    %11 = vector.load %arg3[%c1, %c0_8, %c0_9] : memref<3x128x128xbf16, #tpu.memory_space<vmem>>, vector<1x128x128xbf16>
    %12 = vector.shape_cast %11 : vector<1x128x128xbf16> to vector<128x128xbf16>
    %cst_10 = arith.constant dense<0.000000e+00> : vector<256x128xf32>
    %13 = tpu.matmul %10, %12, %cst_10 {dimension_numbers = #tpu.dot_dimension_numbers<[1], [0], [0], [1], [0, 0, 1, 1], [], []>} : vector<256x128xbf16>, vector<128x128xbf16>, vector<256x128xf32> -> vector<256x128xf32>
    %14 = arith.addf %8, %13 : vector<256x128xf32>
    %15 = vector.extract_strided_slice %3 {offsets = [2, 0, 0, 0], sizes = [4, 8, 8, 128], strides = [1, 1, 1, 1]} : vector<6x8x8x128xbf16> to vector<4x8x8x128xbf16>
    %16 = vector.shape_cast %15 : vector<4x8x8x128xbf16> to vector<256x128xbf16>
    %c2 = arith.constant 2 : index
    %c0_11 = arith.constant 0 : index
    %c0_12 = arith.constant 0 : index
    %17 = vector.load %arg3[%c2, %c0_11, %c0_12] : memref<3x128x128xbf16, #tpu.memory_space<vmem>>, vector<1x128x128xbf16>
    %18 = vector.shape_cast %17 : vector<1x128x128xbf16> to vector<128x128xbf16>
    %cst_13 = arith.constant dense<0.000000e+00> : vector<256x128xf32>
    %19 = tpu.matmul %16, %18, %cst_13 {dimension_numbers = #tpu.dot_dimension_numbers<[1], [0], [0], [1], [0, 0, 1, 1], [], []>} : vector<256x128xbf16>, vector<128x128xbf16>, vector<256x128xf32> -> vector<256x128xf32>
    %20 = arith.addf %14, %19 : vector<256x128xf32>
    %c0_14 = arith.constant 0 : index
    %c0_15 = arith.constant 0 : index
    %21 = vector.load %arg4[%c0_14, %c0_15] : memref<1x128xf32, #tpu.memory_space<vmem>>, vector<1x128xf32>
    %22 = vector.broadcast %21 : vector<1x128xf32> to vector<256x128xf32>
    %23 = arith.addf %20, %22 : vector<256x128xf32>
    %cst_16 = arith.constant 0.000000e+00 : f32
    %24 = vector.broadcast %cst_16 : f32 to vector<256x128xf32>
    %25 = arith.maximumf %23, %24 : vector<256x128xf32>
    %26 = vector.shape_cast %25 : vector<256x128xf32> to vector<4x8x8x128xf32>
    %27 = arith.truncf %26 : vector<4x8x8x128xf32> to vector<4x8x8x128xbf16>
    %c0_17 = arith.constant 0 : index
    %c0_18 = arith.constant 0 : index
    %c0_19 = arith.constant 0 : index
    %c0_20 = arith.constant 0 : index
    %c0_21 = arith.constant 0 : index
    %28 = vector.load %arg5[%c0_17, %c0_18, %c0_19, %c0_20, %c0_21] : memref<1x4x8x8x128xbf16, #tpu.memory_space<vmem>>, vector<1x4x8x8x128xbf16>
    %29 = vector.shape_cast %28 : vector<1x4x8x8x128xbf16> to vector<4x8x8x128xbf16>
    %30 = vector.shape_cast %27 : vector<4x8x8x128xbf16> to vector<1x4x8x8x128xbf16>
    tpu.vector_store %arg5[%c0_17, %c0_18, %c0_19, %c0_20, %c0_21], %30 {strides = array<i32>} : memref<1x4x8x8x128xbf16, #tpu.memory_space<vmem>>, vector<1x4x8x8x128xbf16>,
    return
  }
  func.func @transform_0(%arg0: i32, %arg1: i32) -> (i32, i32, i32, i32, i32) {
    %c0_i32 = arith.constant 0 : i32
    %c0_i32_0 = arith.constant 0 : i32
    %c0_i32_1 = arith.constant 0 : i32
    %c0_i32_2 = arith.constant 0 : i32
    return %arg0, %c0_i32, %arg1, %c0_i32_0, %c0_i32_1 : i32, i32, i32, i32, i32
  }
  func.func @transform_1(%arg0: i32, %arg1: i32) -> (i32, i32, i32) {
    %c0_i32 = arith.constant 0 : i32
    %c0_i32_0 = arith.constant 0 : i32
    %c0_i32_1 = arith.constant 0 : i32
    %c0_i32_2 = arith.constant 0 : i32
    return %c0_i32, %c0_i32_0, %c0_i32_1 : i32, i32, i32
  }
  func.func @transform_2(%arg0: i32, %arg1: i32) -> (i32, i32) {
    %c0_i32 = arith.constant 0 : i32
    %c0_i32_0 = arith.constant 0 : i32
    %c0_i32_1 = arith.constant 0 : i32
    return %c0_i32, %c0_i32_0 : i32, i32
  }
  func.func @transform_3(%arg0: i32, %arg1: i32) -> (i32, i32, i32, i32, i32) {
    %c0_i32 = arith.constant 0 : i32
    %c0_i32_0 = arith.constant 0 : i32
    %c0_i32_1 = arith.constant 0 : i32
    %c0_i32_2 = arith.constant 0 : i32
    return %arg0, %c0_i32, %arg1, %c0_i32_0, %c0_i32_1 : i32, i32, i32, i32, i32
  }
}

module attributes {stable_mosaic.version = 11 : i64} {
  func.func @_temporal_conv_kernel(%arg0: i32, %arg1: i32, %arg2: memref<1x4x8x8x32xbf16, #tpu.memory_space<vmem>>, %arg3: memref<3x32x32xbf16, #tpu.memory_space<vmem>>, %arg4: memref<1x32xf32, #tpu.memory_space<vmem>>, %arg5: memref<1x4x8x8x32xbf16, #tpu.memory_space<vmem>>) attributes {dimension_semantics = [#tpu.dimension_semantics<parallel>, #tpu.dimension_semantics<parallel>], iteration_bounds = array<i64: 2, 1>, scalar_prefetch = 0 : i64, scratch_operands = 0 : i64, tpu.core_type = #tpu.core_type<tc>, window_params = [{transform_indices = @transform_0, window_bounds = array<i64: 1, 4, 8, 8, 32>}, {pipeline_mode = #tpu.pipeline_mode<synchronous>, transform_indices = @transform_1, window_bounds = array<i64: 3, 32, 32>}, {pipeline_mode = #tpu.pipeline_mode<synchronous>, transform_indices = @transform_2, window_bounds = array<i64: 1, 32>}, {transform_indices = @transform_3, window_bounds = array<i64: 1, 4, 8, 8, 32>}]} {
    %c0 = arith.constant 0 : index
    %c0_0 = arith.constant 0 : index
    %c0_1 = arith.constant 0 : index
    %c0_2 = arith.constant 0 : index
    %c0_3 = arith.constant 0 : index
    %0 = vector.load %arg2[%c0, %c0_0, %c0_1, %c0_2, %c0_3] : memref<1x4x8x8x32xbf16, #tpu.memory_space<vmem>>, vector<1x4x8x8x32xbf16>
    %1 = vector.shape_cast %0 : vector<1x4x8x8x32xbf16> to vector<4x8x8x32xbf16>
    %cst = arith.constant 0.000000e+00 : bf16
    %2 = vector.broadcast %cst : bf16 to vector<1x8x8x32xbf16>
    %3 = tpu.concatenate %2, %1, %2 in 0 : vector<1x8x8x32xbf16>, vector<4x8x8x32xbf16>, vector<1x8x8x32xbf16> -> vector<6x8x8x32xbf16>
    %4 = vector.extract_strided_slice %3 {offsets = [0, 0, 0, 0], sizes = [4, 8, 8, 32], strides = [1, 1, 1, 1]} : vector<6x8x8x32xbf16> to vector<4x8x8x32xbf16>
    %5 = vector.shape_cast %4 : vector<4x8x8x32xbf16> to vector<256x32xbf16>
    %c0_4 = arith.constant 0 : index
    %c0_5 = arith.constant 0 : index
    %c0_6 = arith.constant 0 : index
    %6 = vector.load %arg3[%c0_4, %c0_5, %c0_6] : memref<3x32x32xbf16, #tpu.memory_space<vmem>>, vector<1x32x32xbf16>
    %7 = vector.shape_cast %6 : vector<1x32x32xbf16> to vector<32x32xbf16>
    %cst_7 = arith.constant dense<0.000000e+00> : vector<256x32xf32>
    %8 = tpu.matmul %5, %7, %cst_7 {dimension_numbers = #tpu.dot_dimension_numbers<[1], [0], [0], [1], [0, 0, 1, 1], [], []>} : vector<256x32xbf16>, vector<32x32xbf16>, vector<256x32xf32> -> vector<256x32xf32>
    %9 = vector.extract_strided_slice %3 {offsets = [1, 0, 0, 0], sizes = [4, 8, 8, 32], strides = [1, 1, 1, 1]} : vector<6x8x8x32xbf16> to vector<4x8x8x32xbf16>
    %10 = vector.shape_cast %9 : vector<4x8x8x32xbf16> to vector<256x32xbf16>
    %c1 = arith.constant 1 : index
    %c0_8 = arith.constant 0 : index
    %c0_9 = arith.constant 0 : index
    %11 = vector.load %arg3[%c1, %c0_8, %c0_9] : memref<3x32x32xbf16, #tpu.memory_space<vmem>>, vector<1x32x32xbf16>
    %12 = vector.shape_cast %11 : vector<1x32x32xbf16> to vector<32x32xbf16>
    %cst_10 = arith.constant dense<0.000000e+00> : vector<256x32xf32>
    %13 = tpu.matmul %10, %12, %cst_10 {dimension_numbers = #tpu.dot_dimension_numbers<[1], [0], [0], [1], [0, 0, 1, 1], [], []>} : vector<256x32xbf16>, vector<32x32xbf16>, vector<256x32xf32> -> vector<256x32xf32>
    %14 = arith.addf %8, %13 : vector<256x32xf32>
    %15 = vector.extract_strided_slice %3 {offsets = [2, 0, 0, 0], sizes = [4, 8, 8, 32], strides = [1, 1, 1, 1]} : vector<6x8x8x32xbf16> to vector<4x8x8x32xbf16>
    %16 = vector.shape_cast %15 : vector<4x8x8x32xbf16> to vector<256x32xbf16>
    %c2 = arith.constant 2 : index
    %c0_11 = arith.constant 0 : index
    %c0_12 = arith.constant 0 : index
    %17 = vector.load %arg3[%c2, %c0_11, %c0_12] : memref<3x32x32xbf16, #tpu.memory_space<vmem>>, vector<1x32x32xbf16>
    %18 = vector.shape_cast %17 : vector<1x32x32xbf16> to vector<32x32xbf16>
    %cst_13 = arith.constant dense<0.000000e+00> : vector<256x32xf32>
    %19 = tpu.matmul %16, %18, %cst_13 {dimension_numbers = #tpu.dot_dimension_numbers<[1], [0], [0], [1], [0, 0, 1, 1], [], []>} : vector<256x32xbf16>, vector<32x32xbf16>, vector<256x32xf32> -> vector<256x32xf32>
    %20 = arith.addf %14, %19 : vector<256x32xf32>
    %c0_14 = arith.constant 0 : index
    %c0_15 = arith.constant 0 : index
    %21 = vector.load %arg4[%c0_14, %c0_15] : memref<1x32xf32, #tpu.memory_space<vmem>>, vector<1x32xf32>
    %22 = vector.broadcast %21 : vector<1x32xf32> to vector<256x32xf32>
    %23 = arith.addf %20, %22 : vector<256x32xf32>
    %cst_16 = arith.constant 0.000000e+00 : f32
    %24 = vector.broadcast %cst_16 : f32 to vector<256x32xf32>
    %25 = arith.maximumf %23, %24 : vector<256x32xf32>
    %26 = vector.shape_cast %25 : vector<256x32xf32> to vector<4x8x8x32xf32>
    %27 = arith.truncf %26 : vector<4x8x8x32xf32> to vector<4x8x8x32xbf16>
    %c0_17 = arith.constant 0 : index
    %c0_18 = arith.constant 0 : index
    %c0_19 = arith.constant 0 : index
    %c0_20 = arith.constant 0 : index
    %c0_21 = arith.constant 0 : index
    %28 = vector.load %arg5[%c0_17, %c0_18, %c0_19, %c0_20, %c0_21] : memref<1x4x8x8x32xbf16, #tpu.memory_space<vmem>>, vector<1x4x8x8x32xbf16>
    %29 = vector.shape_cast %28 : vector<1x4x8x8x32xbf16> to vector<4x8x8x32xbf16>
    %30 = vector.shape_cast %27 : vector<4x8x8x32xbf16> to vector<1x4x8x8x32xbf16>
    tpu.vector_store %arg5[%c0_17, %c0_18, %c0_19, %c0_20, %c0_21], %30 {strides = array<i32>} : memref<1x4x8x8x32xbf16, #tpu.memory_space<vmem>>, vector<1x4x8x8x32xbf16>,
    return
  }
  func.func @transform_0(%arg0: i32, %arg1: i32) -> (i32, i32, i32, i32, i32) {
    %c0_i32 = arith.constant 0 : i32
    %c0_i32_0 = arith.constant 0 : i32
    %c0_i32_1 = arith.constant 0 : i32
    %c0_i32_2 = arith.constant 0 : i32
    return %arg0, %c0_i32, %arg1, %c0_i32_0, %c0_i32_1 : i32, i32, i32, i32, i32
  }
  func.func @transform_1(%arg0: i32, %arg1: i32) -> (i32, i32, i32) {
    %c0_i32 = arith.constant 0 : i32
    %c0_i32_0 = arith.constant 0 : i32
    %c0_i32_1 = arith.constant 0 : i32
    %c0_i32_2 = arith.constant 0 : i32
    return %c0_i32, %c0_i32_0, %c0_i32_1 : i32, i32, i32
  }
  func.func @transform_2(%arg0: i32, %arg1: i32) -> (i32, i32) {
    %c0_i32 = arith.constant 0 : i32
    %c0_i32_0 = arith.constant 0 : i32
    %c0_i32_1 = arith.constant 0 : i32
    return %c0_i32, %c0_i32_0 : i32, i32
  }
  func.func @transform_3(%arg0: i32, %arg1: i32) -> (i32, i32, i32, i32, i32) {
    %c0_i32 = arith.constant 0 : i32
    %c0_i32_0 = arith.constant 0 : i32
    %c0_i32_1 = arith.constant 0 : i32
    %c0_i32_2 = arith.constant 0 : i32
    return %arg0, %c0_i32, %arg1, %c0_i32_0, %c0_i32_1 : i32, i32, i32, i32, i32
  }
}

module attributes {stable_mosaic.version = 11 : i64} {
  func.func @_pool_stem_kernel(%arg0: i32, %arg1: memref<1x4x8x8x192xbf16, #tpu.memory_space<vmem>>, %arg2: memref<192x64xbf16, #tpu.memory_space<vmem>>, %arg3: memref<1x64xf32, #tpu.memory_space<vmem>>, %arg4: memref<192x32xbf16, #tpu.memory_space<vmem>>, %arg5: memref<1x32xf32, #tpu.memory_space<vmem>>, %arg6: memref<1x4x8x8x64xbf16, #tpu.memory_space<vmem>>, %arg7: memref<1x4x8x8x32xbf16, #tpu.memory_space<vmem>>) attributes {dimension_semantics = [#tpu.dimension_semantics<parallel>], iteration_bounds = array<i64: 2>, scalar_prefetch = 0 : i64, scratch_operands = 0 : i64, tpu.core_type = #tpu.core_type<tc>, window_params = [{transform_indices = @transform_0, window_bounds = array<i64: 1, 4, 8, 8, 192>}, {pipeline_mode = #tpu.pipeline_mode<synchronous>, transform_indices = @transform_1, window_bounds = array<i64: 192, 64>}, {pipeline_mode = #tpu.pipeline_mode<synchronous>, transform_indices = @transform_2, window_bounds = array<i64: 1, 64>}, {pipeline_mode = #tpu.pipeline_mode<synchronous>, transform_indices = @transform_3, window_bounds = array<i64: 192, 32>}, {pipeline_mode = #tpu.pipeline_mode<synchronous>, transform_indices = @transform_4, window_bounds = array<i64: 1, 32>}, {transform_indices = @transform_5, window_bounds = array<i64: 1, 4, 8, 8, 64>}, {transform_indices = @transform_6, window_bounds = array<i64: 1, 4, 8, 8, 32>}]} {
    %c0 = arith.constant 0 : index
    %c0_0 = arith.constant 0 : index
    %c0_1 = arith.constant 0 : index
    %c0_2 = arith.constant 0 : index
    %c0_3 = arith.constant 0 : index
    %0 = vector.load %arg1[%c0, %c0_0, %c0_1, %c0_2, %c0_3] : memref<1x4x8x8x192xbf16, #tpu.memory_space<vmem>>, vector<1x4x8x8x192xbf16>
    %1 = vector.shape_cast %0 : vector<1x4x8x8x192xbf16> to vector<4x8x8x192xbf16>
    %2 = vector.shape_cast %1 : vector<4x8x8x192xbf16> to vector<256x192xbf16>
    %c0_4 = arith.constant 0 : index
    %c0_5 = arith.constant 0 : index
    %3 = vector.load %arg2[%c0_4, %c0_5] : memref<192x64xbf16, #tpu.memory_space<vmem>>, vector<192x64xbf16>
    %cst = arith.constant dense<0.000000e+00> : vector<256x64xf32>
    %4 = tpu.matmul %2, %3, %cst {dimension_numbers = #tpu.dot_dimension_numbers<[1], [0], [0], [1], [0, 0, 1, 1], [], []>} : vector<256x192xbf16>, vector<192x64xbf16>, vector<256x64xf32> -> vector<256x64xf32>
    %c0_6 = arith.constant 0 : index
    %c0_7 = arith.constant 0 : index
    %5 = vector.load %arg3[%c0_6, %c0_7] : memref<1x64xf32, #tpu.memory_space<vmem>>, vector<1x64xf32>
    %6 = vector.broadcast %5 : vector<1x64xf32> to vector<256x64xf32>
    %7 = arith.addf %4, %6 : vector<256x64xf32>
    %cst_8 = arith.constant 0.000000e+00 : f32
    %8 = vector.broadcast %cst_8 : f32 to vector<256x64xf32>
    %9 = arith.maximumf %7, %8 : vector<256x64xf32>
    %10 = vector.shape_cast %9 : vector<256x64xf32> to vector<4x8x8x64xf32>
    %11 = arith.truncf %10 : vector<4x8x8x64xf32> to vector<4x8x8x64xbf16>
    %c0_9 = arith.constant 0 : index
    %c0_10 = arith.constant 0 : index
    %c0_11 = arith.constant 0 : index
    %c0_12 = arith.constant 0 : index
    %c0_13 = arith.constant 0 : index
    %12 = vector.load %arg6[%c0_9, %c0_10, %c0_11, %c0_12, %c0_13] : memref<1x4x8x8x64xbf16, #tpu.memory_space<vmem>>, vector<1x4x8x8x64xbf16>
    %13 = vector.shape_cast %12 : vector<1x4x8x8x64xbf16> to vector<4x8x8x64xbf16>
    %14 = vector.shape_cast %11 : vector<4x8x8x64xbf16> to vector<1x4x8x8x64xbf16>
    tpu.vector_store %arg6[%c0_9, %c0_10, %c0_11, %c0_12, %c0_13], %14 {strides = array<i32>} : memref<1x4x8x8x64xbf16, #tpu.memory_space<vmem>>, vector<1x4x8x8x64xbf16>,
    %15 = vector.extract_strided_slice %1 {offsets = [0, 0, 0, 0], sizes = [4, 8, 1, 192], strides = [1, 1, 1, 1]} : vector<4x8x8x192xbf16> to vector<4x8x1x192xbf16>
    %16 = vector.extract_strided_slice %1 {offsets = [0, 0, 7, 0], sizes = [4, 8, 1, 192], strides = [1, 1, 1, 1]} : vector<4x8x8x192xbf16> to vector<4x8x1x192xbf16>
    %17 = vector.extract_strided_slice %1 {offsets = [0, 0, 1, 0], sizes = [4, 8, 7, 192], strides = [1, 1, 1, 1]} : vector<4x8x8x192xbf16> to vector<4x8x7x192xbf16>
    %18 = tpu.concatenate %17, %16 in 2 : vector<4x8x7x192xbf16>, vector<4x8x1x192xbf16> -> vector<4x8x8x192xbf16>
    %19 = vector.extract_strided_slice %1 {offsets = [0, 0, 0, 0], sizes = [4, 8, 7, 192], strides = [1, 1, 1, 1]} : vector<4x8x8x192xbf16> to vector<4x8x7x192xbf16>
    %20 = tpu.concatenate %15, %19 in 2 : vector<4x8x1x192xbf16>, vector<4x8x7x192xbf16> -> vector<4x8x8x192xbf16>
    %21 = arith.maximumf %18, %20 : vector<4x8x8x192xbf16>
    %22 = arith.maximumf %1, %21 : vector<4x8x8x192xbf16>
    %23 = vector.extract_strided_slice %22 {offsets = [0, 0, 0, 0], sizes = [4, 1, 8, 192], strides = [1, 1, 1, 1]} : vector<4x8x8x192xbf16> to vector<4x1x8x192xbf16>
    %24 = vector.extract_strided_slice %22 {offsets = [0, 7, 0, 0], sizes = [4, 1, 8, 192], strides = [1, 1, 1, 1]} : vector<4x8x8x192xbf16> to vector<4x1x8x192xbf16>
    %25 = vector.extract_strided_slice %22 {offsets = [0, 1, 0, 0], sizes = [4, 7, 8, 192], strides = [1, 1, 1, 1]} : vector<4x8x8x192xbf16> to vector<4x7x8x192xbf16>
    %26 = tpu.concatenate %25, %24 in 1 : vector<4x7x8x192xbf16>, vector<4x1x8x192xbf16> -> vector<4x8x8x192xbf16>
    %27 = vector.extract_strided_slice %22 {offsets = [0, 0, 0, 0], sizes = [4, 7, 8, 192], strides = [1, 1, 1, 1]} : vector<4x8x8x192xbf16> to vector<4x7x8x192xbf16>
    %28 = tpu.concatenate %23, %27 in 1 : vector<4x1x8x192xbf16>, vector<4x7x8x192xbf16> -> vector<4x8x8x192xbf16>
    %29 = arith.maximumf %26, %28 : vector<4x8x8x192xbf16>
    %30 = arith.maximumf %22, %29 : vector<4x8x8x192xbf16>
    %31 = vector.extract_strided_slice %30 {offsets = [0, 0, 0, 0], sizes = [1, 8, 8, 192], strides = [1, 1, 1, 1]} : vector<4x8x8x192xbf16> to vector<1x8x8x192xbf16>
    %32 = vector.extract_strided_slice %30 {offsets = [3, 0, 0, 0], sizes = [1, 8, 8, 192], strides = [1, 1, 1, 1]} : vector<4x8x8x192xbf16> to vector<1x8x8x192xbf16>
    %33 = vector.extract_strided_slice %30 {offsets = [1, 0, 0, 0], sizes = [3, 8, 8, 192], strides = [1, 1, 1, 1]} : vector<4x8x8x192xbf16> to vector<3x8x8x192xbf16>
    %34 = tpu.concatenate %33, %32 in 0 : vector<3x8x8x192xbf16>, vector<1x8x8x192xbf16> -> vector<4x8x8x192xbf16>
    %35 = vector.extract_strided_slice %30 {offsets = [0, 0, 0, 0], sizes = [3, 8, 8, 192], strides = [1, 1, 1, 1]} : vector<4x8x8x192xbf16> to vector<3x8x8x192xbf16>
    %36 = tpu.concatenate %31, %35 in 0 : vector<1x8x8x192xbf16>, vector<3x8x8x192xbf16> -> vector<4x8x8x192xbf16>
    %37 = arith.maximumf %34, %36 : vector<4x8x8x192xbf16>
    %38 = arith.maximumf %30, %37 : vector<4x8x8x192xbf16>
    %39 = vector.shape_cast %38 : vector<4x8x8x192xbf16> to vector<256x192xbf16>
    %c0_14 = arith.constant 0 : index
    %c0_15 = arith.constant 0 : index
    %40 = vector.load %arg4[%c0_14, %c0_15] : memref<192x32xbf16, #tpu.memory_space<vmem>>, vector<192x32xbf16>
    %cst_16 = arith.constant dense<0.000000e+00> : vector<256x32xf32>
    %41 = tpu.matmul %39, %40, %cst_16 {dimension_numbers = #tpu.dot_dimension_numbers<[1], [0], [0], [1], [0, 0, 1, 1], [], []>} : vector<256x192xbf16>, vector<192x32xbf16>, vector<256x32xf32> -> vector<256x32xf32>
    %c0_17 = arith.constant 0 : index
    %c0_18 = arith.constant 0 : index
    %42 = vector.load %arg5[%c0_17, %c0_18] : memref<1x32xf32, #tpu.memory_space<vmem>>, vector<1x32xf32>
    %43 = vector.broadcast %42 : vector<1x32xf32> to vector<256x32xf32>
    %44 = arith.addf %41, %43 : vector<256x32xf32>
    %cst_19 = arith.constant 0.000000e+00 : f32
    %45 = vector.broadcast %cst_19 : f32 to vector<256x32xf32>
    %46 = arith.maximumf %44, %45 : vector<256x32xf32>
    %47 = vector.shape_cast %46 : vector<256x32xf32> to vector<4x8x8x32xf32>
    %48 = arith.truncf %47 : vector<4x8x8x32xf32> to vector<4x8x8x32xbf16>
    %c0_20 = arith.constant 0 : index
    %c0_21 = arith.constant 0 : index
    %c0_22 = arith.constant 0 : index
    %c0_23 = arith.constant 0 : index
    %c0_24 = arith.constant 0 : index
    %49 = vector.load %arg7[%c0_20, %c0_21, %c0_22, %c0_23, %c0_24] : memref<1x4x8x8x32xbf16, #tpu.memory_space<vmem>>, vector<1x4x8x8x32xbf16>
    %50 = vector.shape_cast %49 : vector<1x4x8x8x32xbf16> to vector<4x8x8x32xbf16>
    %51 = vector.shape_cast %48 : vector<4x8x8x32xbf16> to vector<1x4x8x8x32xbf16>
    tpu.vector_store %arg7[%c0_20, %c0_21, %c0_22, %c0_23, %c0_24], %51 {strides = array<i32>} : memref<1x4x8x8x32xbf16, #tpu.memory_space<vmem>>, vector<1x4x8x8x32xbf16>,
    return
  }
  func.func @transform_0(%arg0: i32) -> (i32, i32, i32, i32, i32) {
    %c0_i32 = arith.constant 0 : i32
    %c0_i32_0 = arith.constant 0 : i32
    %c0_i32_1 = arith.constant 0 : i32
    %c0_i32_2 = arith.constant 0 : i32
    %c0_i32_3 = arith.constant 0 : i32
    return %arg0, %c0_i32, %c0_i32_0, %c0_i32_1, %c0_i32_2 : i32, i32, i32, i32, i32
  }
  func.func @transform_1(%arg0: i32) -> (i32, i32) {
    %c0_i32 = arith.constant 0 : i32
    %c0_i32_0 = arith.constant 0 : i32
    %c0_i32_1 = arith.constant 0 : i32
    return %c0_i32, %c0_i32_0 : i32, i32
  }
  func.func @transform_2(%arg0: i32) -> (i32, i32) {
    %c0_i32 = arith.constant 0 : i32
    %c0_i32_0 = arith.constant 0 : i32
    %c0_i32_1 = arith.constant 0 : i32
    return %c0_i32, %c0_i32_0 : i32, i32
  }
  func.func @transform_3(%arg0: i32) -> (i32, i32) {
    %c0_i32 = arith.constant 0 : i32
    %c0_i32_0 = arith.constant 0 : i32
    %c0_i32_1 = arith.constant 0 : i32
    return %c0_i32, %c0_i32_0 : i32, i32
  }
  func.func @transform_4(%arg0: i32) -> (i32, i32) {
    %c0_i32 = arith.constant 0 : i32
    %c0_i32_0 = arith.constant 0 : i32
    %c0_i32_1 = arith.constant 0 : i32
    return %c0_i32, %c0_i32_0 : i32, i32
  }
  func.func @transform_5(%arg0: i32) -> (i32, i32, i32, i32, i32) {
    %c0_i32 = arith.constant 0 : i32
    %c0_i32_0 = arith.constant 0 : i32
    %c0_i32_1 = arith.constant 0 : i32
    %c0_i32_2 = arith.constant 0 : i32
    %c0_i32_3 = arith.constant 0 : i32
    return %arg0, %c0_i32, %c0_i32_0, %c0_i32_1, %c0_i32_2 : i32, i32, i32, i32, i32
  }
  func.func @transform_6(%arg0: i32) -> (i32, i32, i32, i32, i32) {
    %c0_i32 = arith.constant 0 : i32
    %c0_i32_0 = arith.constant 0 : i32
    %c0_i32_1 = arith.constant 0 : i32
    %c0_i32_2 = arith.constant 0 : i32
    %c0_i32_3 = arith.constant 0 : i32
    return %arg0, %c0_i32, %c0_i32_0, %c0_i32_1, %c0_i32_2 : i32, i32, i32, i32, i32
  }
}

</mosaic_0001>

<bundles_post_ra>
// kernel: mixed_3b_pallas.6
= control target key start
LH: loop header
LB: loop body
LE: loop exit
PB: predicated region body
PF: predicated region fallthrough
CT: control target
= control target key end

     0   :  { %s1581_s12 = smov 0   ;;  %s1583_s13 = smov 0   ;;  %s1833_s0 = inlined_call_operand.vmem [shape: bf16[2,4,8,8,32], index: 0, kind: input, shape index: {}]   ;;  %s1834_s1 = inlined_call_operand.vmem [shape: bf16[3,32,32], index: 1, kind: input, shape index: {}]   ;;  %s1835_s2 = inlined_call_operand.vmem [shape: f32[1,32], index: 2, kind: input, shape index: {}]   ;;  %s1836_s3 = inlined_call_operand.vmem [shape: bf16[2,4,8,8,32], index: 3, kind: output, shape index: {}]  }
   0x1   :  { %s1585_s14 = smov 0  }
   0x2 LB: > { %s25_s15 = sadd.s32 1, %s1554_s13  ;;  %p1170_p0 = scmp.ge.s32.totalorder %s1558_s14, 1  ;;  %s1558_s14 = sphi %s1585_s14, %s13_s14   ;;  %s1554_s13 = sphi %s1583_s13, %s1838_s13   ;;  %s1550_s12 = sphi %s1581_s12, %s1837_s12  }
   0x3   : > { %p27_p1 = scmp.ge.s32.totalorder %s25_s15, 2  ;;  %p158_p2 = scmp.lt.s32.totalorder %s1558_s14, 3 }
   0x5   : > { %s1840_s15 = smov (%p27_p1, %s25_s15), 0  ;;  %p159_p3 = pnand %p1170_p0, %p158_p2 }
   0x6   : > { %v1514_v0 = vld [vmem:[%s1834_s1 + $0x10] sm:$0xff] (!%p159_p3)   ;;  %p191_p4 = scmp.lt.s32.totalorder (!%p159_p3), %s1550_s12, 1  ;;  %v1515_v1 = vld [vmem:[%s1834_s1] sm:$0xff] (!%p159_p3)   ;;  %vm344_vm0 = vcmask (!%p159_p3), 261120   ;;  %v1516_v2 = vld [vmem:[%s1834_s1 + $0x18] sm:$0xff] (!%p159_p3)   ;;  %v1560_v4 = vmov (!%p159_p3), 0  }
   0x7   : > { %162 = sbr.rel (%p159_p3) target bundleno = 331 (0x14b), region = 32  ;;  %1313 = vmatprep.subr.bf16.mxu1 (!%p159_p3), %v1514_v0  ;;  %1349 = vmatprep.subr.bf16.mxu0 (!%p159_p3), %v1515_v1  ;;  %v1517_v3 = vld [vmem:[%s1834_s1 + $0x8] sm:$0xff] (!%p159_p3)   ;;  %v1614_v5 = vcombine.low (!%p159_p3), %v1560_v4, %v1560_v4  ;;  %v1520_v6 = vld [vmem:[%s1834_s1 + $0x20] sm:$0xff] (!%p159_p3)   ;;  %vm1046_vm1 = vcmask (!%p159_p3), 257024  }
   0x8   : > { %1314 = vmatpush3.bf16.msra.mxu1 (!%p159_p3), %v1514_v0  ;;  %1350 = vmatpush3.bf16.msra.mxu0 (!%p159_p3), %v1515_v1  ;;  %v1525_v10 = vld [vmem:[%s1834_s1 + $0x28] sm:$0xff] (!%p159_p3)   ;;  %v1714_v41 = vld [vmem:[%s1835_s2] ss:$0 sm:$0xff] (!%p159_p3) }
   0x9   : > { %1315 = vmatprep.subr.bf16.mxu1 (!%p159_p3), %v1516_v2  ;;  %1351 = vmatprep.subr.bf16.mxu0 (!%p159_p3), %v1517_v3 }
   0xa   : > { %1353 = vmatprep.mubr.msk.bf16.mxu0 (!%p159_p3), %vm344_vm0, %v1614_v5 }
   0xc   : > { %1316 = vmatpush3.bf16.msra.mxu1 (!%p159_p3), %v1516_v2  ;;  %1352 = vmatpush3.bf16.msra.mxu0 (!%p159_p3), %v1517_v3 }
   0xd   : > { %1421 = vmatprep.subr.bf16.mxu1 (!%p159_p3), %v1515_v1  ;;  %1385 = vmatprep.subr.bf16.mxu0 (!%p159_p3), %v1520_v6 }
   0xe   : > { %s1842_s12 = smov (!%p191_p4, %s1550_s12), 1 }
   0xf   : > { %s1257_s24 = sshll.u32 %s1842_s12, 7  ;;  %1354 = vmatmul.mubr.msk.bf16.vlgmr.msra.gmra.mrb[0].mxu0 %vm344_vm0, %v1614_v5 }
  0x10   : > { %s1621_s27 = scalar_lea.vmem %s1833_s0, %s1257_s24  ;;  %1386 = vmatpush3.bf16.msra.mxu0 %v1520_v6  ;;  %1357 = vmatprep.mubr.msk.bf16.mxu0 %vm344_vm0, %v1614_v5  ;;  %s1724_s9 = scalar_lea.vmem %s1836_s3, %s1257_s24 }
  0x11   : > { %v1518_v7 = vld [vmem:[%s1621_s27] sm:$0xff]   ;;  %v1519_v8 = vld [vmem:[%s1621_s27 + $0x8] sm:$0xff]   ;;  %v1521_v9 = vld [vmem:[%s1621_s27 + $0x10] sm:$0xff]   ;;  %1387 = vmatprep.subr.bf16.mxu0 %v1525_v10 }
  0x12   : > { %1317 = vmatprep.mubr.msk.bf16.mxu1 %vm344_vm0, %v1518_v7  ;;  %v1522_v11 = vld [vmem:[%s1621_s27 + $0x18] sm:$0xff]   ;;  %v1523_v12 = vld [vmem:[%s1621_s27 + $0x20] sm:$0xff]   ;;  %v1524_v13 = vld [vmem:[%s1621_s27 + $0x28] sm:$0xff]  }
  0x13   : > { %1318 = vmatmul.mubr.msk.bf16.vlgmr.msra.gmra.mrb[0].mxu1 %vm344_vm0, %v1519_v8  ;;  %v1526_v14 = vld [vmem:[%s1621_s27 + $0x30] sm:$0xff]   ;;  %v1527_v15 = vld [vmem:[%s1621_s27 + $0x38] sm:$0xff]   ;;  %v1528_v16 = vld [vmem:[%s1621_s27 + $0x40] sm:$0xff]  }
  0x14   : > { %1423 = vmatpush3.bf16.msra.mxu1 %v1515_v1  ;;  %1321 = vmatprep.mubr.msk.bf16.mxu1 %vm344_vm0, %v1521_v9  ;;  %v1529_v17 = vld [vmem:[%s1621_s27 + $0x48] sm:$0xff]   ;;  %v1530_v18 = vld [vmem:[%s1621_s27 + $0x50] sm:$0xff]   ;;  %v1531_v19 = vld [vmem:[%s1621_s27 + $0x58] sm:$0xff]  }
  0x15   : > { %1422 = vmatprep.subr.bf16.mxu1 %v1517_v3  ;;  %1388 = vmatpush3.bf16.msra.mxu0 %v1525_v10  ;;  %v1532_v20 = vld [vmem:[%s1621_s27 + $0x60] sm:$0xff]   ;;  %v1533_v21 = vld [vmem:[%s1621_s27 + $0x68] sm:$0xff]   ;;  %v1534_v22 = vld [vmem:[%s1621_s27 + $0x70] sm:$0xff]  }
  0x16   : > { %v1535_v23 = vld [vmem:[%s1621_s27 + $0x78] sm:$0xff]  }
  0x17   : > { %1358 = vmatmul.mubr.msk.bf16.gmra.mrb[4].mxu0 %vm344_vm0, %v1614_v5 }
  0x18   : > { %1424 = vmatpush3.bf16.msra.mxu1 %v1517_v3  ;;  %1361 = vmatprep.mubr.msk.bf16.mxu0 %vm344_vm0, %v1518_v7 }
  0x1b   : > { %1322 = vmatmul.mubr.msk.bf16.gmra.mrb[4].mxu1 %vm344_vm0, %v1522_v11 }
  0x1c   : > { %1325 = vmatprep.mubr.msk.bf16.mxu1 %vm344_vm0, %v1523_v12 }
  0x1f   : > { %1362 = vmatmul.mubr.msk.bf16.gmra.mrb[8].mxu0 %vm344_vm0, %v1519_v8 }
  0x20   : > { %1365 = vmatprep.mubr.msk.bf16.mxu0 %vm344_vm0, %v1521_v9 }
  0x23   : > { %1326 = vmatmul.mubr.msk.bf16.gmra.mrb[8].mxu1 %vm344_vm0, %v1524_v13 }
  0x24   : > { %1329 = vmatprep.mubr.msk.bf16.mxu1 %vm344_vm0, %v1526_v14 }
  0x27   : > { %1366 = vmatmul.mubr.msk.bf16.gmra.mrb[12].mxu0 %vm344_vm0, %v1522_v11 }
  0x28   : > { %1389 = vmatprep.mubr.msk.bf16.mxu0 %vm344_vm0, %v1523_v12 }
  0x2b   : > { %1330 = vmatmul.mubr.msk.bf16.gmra.mrb[12].mxu1 %vm344_vm0, %v1527_v15 }
  0x2c   : > { %1333 = vmatprep.mubr.msk.bf16.mxu1 %vm344_vm0, %v1528_v16 }
  0x2f   : > { %1390 = vmatmul.mubr.msk.bf16.vlgmr.msra.gmra.mrb[0].mxu0 %vm344_vm0, %v1524_v13 }
  0x30   : > { %1393 = vmatprep.mubr.msk.bf16.mxu0 %vm344_vm0, %v1526_v14 }
  0x33   : > { %1334 = vmatmul.mubr.msk.bf16.gmra.mrb[16].mxu1 %vm344_vm0, %v1529_v17 }
  0x34   : > { %1337 = vmatprep.mubr.msk.bf16.mxu1 %vm344_vm0, %v1530_v18 }
  0x37   : > { %1394 = vmatmul.mubr.msk.bf16.gmra.mrb[4].mxu0 %vm344_vm0, %v1527_v15 }
  0x38   : > { %1397 = vmatprep.mubr.msk.bf16.mxu0 %vm344_vm0, %v1528_v16 }
  0x3b   : > { %1338 = vmatmul.mubr.msk.bf16.gmra.mrb[20].mxu1 %vm344_vm0, %v1531_v19 }
  0x3c   : > { %1341 = vmatprep.mubr.msk.bf16.mxu1 %vm344_vm0, %v1532_v20 }
  0x3f   : > { %1398 = vmatmul.mubr.msk.bf16.gmra.mrb[8].mxu0 %vm344_vm0, %v1529_v17 }
  0x40   : > { %1401 = vmatprep.mubr.msk.bf16.mxu0 %vm344_vm0, %v1530_v18 }
  0x43   : > { %1342 = vmatmul.mubr.msk.bf16.gmra.mrb[24].mxu1 %vm344_vm0, %v1533_v21 }
  0x44   : > { %1345 = vmatprep.mubr.msk.bf16.mxu1 %vm344_vm0, %v1534_v22 }
  0x47   : > { %1402 = vmatmul.mubr.msk.bf16.gmra.mrb[12].mxu0 %vm344_vm0, %v1531_v19 }
  0x48   : > { %1405 = vmatprep.mubr.msk.bf16.mxu0 %vm344_vm0, %v1532_v20 }
  0x4b   : > { %1346 = vmatmul.mubr.msk.bf16.gmra.mrb[28].mxu1 %vm344_vm0, %v1535_v23 }
  0x4c   : > { %1369 = vmatprep.mubr.msk.bf16.mxu1 %vm344_vm0, %v1523_v12 }
  0x4f   : > { %1406 = vmatmul.mubr.msk.bf16.gmra.mrb[16].mxu0 %vm344_vm0, %v1533_v21 }
  0x50   : > { %1409 = vmatprep.mubr.msk.bf16.mxu0 %vm344_vm0, %v1534_v22 }
  0x53   : > { %1370 = vmatmul.mubr.msk.bf16.vlgmr.msra.gmra.mrb[16].mxu1 %vm344_vm0, %v1524_v13 }
  0x54   : > { %1373 = vmatprep.mubr.msk.bf16.mxu1 %vm344_vm0, %v1526_v14 }
  0x57   : > { %1410 = vmatmul.mubr.msk.bf16.gmra.mrb[20].mxu0 %vm344_vm0, %v1535_v23 }
  0x58   : > { %1413 = vmatprep.mubr.msk.bf16.mxu0 %vm344_vm0, %v1614_v5 }
  0x5b   : > { %1374 = vmatmul.mubr.msk.bf16.gmra.mrb[20].mxu1 %vm344_vm0, %v1527_v15 }
  0x5c   : > { %1377 = vmatprep.mubr.msk.bf16.mxu1 %vm344_vm0, %v1528_v16 }
  0x5f   : > { %1414 = vmatmul.mubr.msk.bf16.gmra.mrb[24].mxu0 %vm344_vm0, %v1614_v5 }
  0x60   : > { %1417 = vmatprep.mubr.msk.bf16.mxu0 %vm344_vm0, %v1614_v5 }
  0x63   : > { %1378 = vmatmul.mubr.msk.bf16.gmra.mrb[24].mxu1 %vm344_vm0, %v1529_v17 }
  0x64   : > { %1381 = vmatprep.mubr.msk.bf16.mxu1 %vm344_vm0, %v1530_v18 }
  0x67   : > { %1418 = vmatmul.mubr.msk.bf16.gmra.mrb[28].mxu0 %vm344_vm0, %v1614_v5 }
  0x6b   : > { %1382 = vmatmul.mubr.msk.bf16.gmra.mrb[28].mxu1 %vm344_vm0, %v1531_v19 }
  0xe6   : > { %v1319_v24 = vpop.f32.mrb[0].mxu1 }
  0xe7   : > { %v427_v25 = vpop.f32.mrb[1].mxu1 }
  0xe8   : > { %v1320_v26 = vpop.f32.mrb[2].mxu1 }
  0xe9   : > { %v430_v27 = vpop.f32.mrb[3].mxu1 }
  0xee   : > { %v1323_v28 = vpop.f32.mrb[4].mxu1 }
  0xef   : > { %v443_v29 = vpop.f32.mrb[5].mxu1 }
  0xf0   : > { %v1324_v30 = vpop.f32.mrb[6].mxu1 }
  0xf1   : > { %v446_v31 = vpop.f32.mrb[7].mxu1 }
  0xf6   : > { %v1327_v32 = vpop.f32.mrb[8].mxu1 }
  0xf7   : > { %v459_v33 = vpop.f32.mrb[9].mxu1 }
  0xf8   : > { %v1328_v34 = vpop.f32.mrb[10].mxu1 }
  0xf9   : > { %v1701_v35 = vpop.f32.mrb[11].mxu1 }
  0xfe   : > { %v1703_v36 = vpop.f32.mrb[12].mxu1 }
  0xff   : > { %v1705_v37 = vpop.f32.mrb[13].mxu1 }
 0x100   : > { %v1707_v38 = vpop.f32.mrb[14].mxu1 }
 0x101   : > { %v1709_v39 = vpop.f32.mrb[15].mxu1 }
 0x102   : > { %v1391_v40 = vpop.f32.mrb[0].mxu0 }
 0x103   : > { %v1425_v42 = vadd.f32 %v1391_v40, %v1319_v24  ;;  %v784_v43 = vpop.f32.mrb[1].mxu0 }
 0x104   : > { %v1426_v44 = vadd.f32 %v784_v43, %v427_v25  ;;  %v1392_v45 = vpop.f32.mrb[2].mxu0 }
 0x105   : > { %v952_v46 = vadd.f32 %v1425_v42, %v1714_v41  ;;  %v1427_v47 = vadd.f32 %v1392_v45, %v1320_v26  ;;  %v787_v48 = vpop.f32.mrb[3].mxu0 }
 0x106   : > { %v950_v49 = vadd.f32 %v1426_v44, %v1714_v41  ;;  %v1428_v50 = vadd.f32 %v787_v48, %v430_v27 }
 0x107   : > { %v984_v51 = vmax.f32 %v952_v46, 0.0  ;;  %v953_v52 = vadd.f32 %v1427_v47, %v1714_v41 }
 0x108   : > { %v982_v53 = vmax.f32 %v950_v49, 0.0  ;;  %v951_v54 = vadd.f32 %v1428_v50, %v1714_v41 }
 0x109   : > { %v1016_v55 = vpack.c.bf16 %v984_v51, %v984_v51  ;;  %v985_v56 = vmax.f32 %v953_v52, 0.0 }
 0x10a   : > { %v1014_v57 = vpack.c.bf16 %v982_v53, %v982_v53  ;;  %v983_v58 = vmax.f32 %v951_v54, 0.0  ;;  %v1395_v59 = vpop.f32.mrb[4].mxu0 }
 0x10b   : > { %1049 = vst.msk [vmem:[%s1724_s9 + $0x8] sm:$0xf] %vm1046_vm1, %v1016_v55  ;;  %v1017_v60 = vpack.c.bf16 %v985_v56, %v985_v56  ;;  %v1429_v61 = vadd.f32 %v1395_v59, %v1323_v28  ;;  %v800_v62 = vpop.f32.mrb[5].mxu0 }
 0x10c   : > { %1047 = vst.msk [vmem:[%s1724_s9] sm:$0xf] %vm1046_vm1, %v1014_v57  ;;  %v1015_v63 = vpack.c.bf16 %v983_v58, %v983_v58  ;;  %v1430_v0 = vadd.f32 %v800_v62, %v443_v29  ;;  %v1396_v1 = vpop.f32.mrb[6].mxu0 }
 0x10d   : > { %1050 = vst.msk [vmem:[%s1724_s9 + $0xc] sm:$0xf] %vm1046_vm1, %v1017_v60  ;;  %v956_v2 = vadd.f32 %v1429_v61, %v1714_v41  ;;  %v1431_v3 = vadd.f32 %v1396_v1, %v1324_v30  ;;  %v803_v4 = vpop.f32.mrb[7].mxu0 }
 0x10e   : > { %1048 = vst.msk [vmem:[%s1724_s9 + $0x4] sm:$0xf] %vm1046_vm1, %v1015_v63  ;;  %v954_v5 = vadd.f32 %v1430_v0, %v1714_v41  ;;  %v1432_v6 = vadd.f32 %v803_v4, %v446_v31 }
 0x10f   : > { %v988_v7 = vmax.f32 %v956_v2, 0.0  ;;  %v957_v8 = vadd.f32 %v1431_v3, %v1714_v41 }
 0x110   : > { %v986_v9 = vmax.f32 %v954_v5, 0.0  ;;  %v955_v10 = vadd.f32 %v1432_v6, %v1714_v41 }
 0x111   : > { %v1020_v11 = vpack.c.bf16 %v988_v7, %v988_v7  ;;  %v989_v12 = vmax.f32 %v957_v8, 0.0 }
 0x112   : > { %v1018_v13 = vpack.c.bf16 %v986_v9, %v986_v9  ;;  %v987_v14 = vmax.f32 %v955_v10, 0.0  ;;  %v1399_v15 = vpop.f32.mrb[8].mxu0 }
 0x113   : > { %1053 = vst.msk [vmem:[%s1724_s9 + $0x18] sm:$0xf] %vm1046_vm1, %v1020_v11  ;;  %v1021_v16 = vpack.c.bf16 %v989_v12, %v989_v12  ;;  %v1433_v17 = vadd.f32 %v1399_v15, %v1327_v32  ;;  %v816_v18 = vpop.f32.mrb[9].mxu0 }
 0x114   : > { %1051 = vst.msk [vmem:[%s1724_s9 + $0x10] sm:$0xf] %vm1046_vm1, %v1018_v13  ;;  %v1019_v19 = vpack.c.bf16 %v987_v14, %v987_v14  ;;  %v1434_v20 = vadd.f32 %v816_v18, %v459_v33  ;;  %v1400_v21 = vpop.f32.mrb[10].mxu0 }
 0x115   : > { %1054 = vst.msk [vmem:[%s1724_s9 + $0x1c] sm:$0xf] %vm1046_vm1, %v1021_v16  ;;  %v960_v22 = vadd.f32 %v1433_v17, %v1714_v41  ;;  %v1435_v23 = vadd.f32 %v1400_v21, %v1328_v34  ;;  %v819_v24 = vpop.f32.mrb[11].mxu0 }
 0x116   : > { %1052 = vst.msk [vmem:[%s1724_s9 + $0x14] sm:$0xf] %vm1046_vm1, %v1019_v19  ;;  %v958_v25 = vadd.f32 %v1434_v20, %v1714_v41  ;;  %v1436_v26 = vadd.f32 %v819_v24, %v1701_v35 }
 0x117   : > { %v992_v27 = vmax.f32 %v960_v22, 0.0  ;;  %v961_v28 = vadd.f32 %v1435_v23, %v1714_v41 }
 0x118   : > { %v990_v29 = vmax.f32 %v958_v25, 0.0  ;;  %v959_v30 = vadd.f32 %v1436_v26, %v1714_v41 }
 0x119   : > { %v1024_v31 = vpack.c.bf16 %v992_v27, %v992_v27  ;;  %v993_v32 = vmax.f32 %v961_v28, 0.0 }
 0x11a   : > { %v1022_v33 = vpack.c.bf16 %v990_v29, %v990_v29  ;;  %v991_v34 = vmax.f32 %v959_v30, 0.0  ;;  %v1403_v40 = vpop.f32.mrb[12].mxu0 }
 0x11b   : > { %1057 = vst.msk [vmem:[%s1724_s9 + $0x28] sm:$0xf] %vm1046_vm1, %v1024_v31  ;;  %v1025_v42 = vpack.c.bf16 %v993_v32, %v993_v32  ;;  %v1437_v43 = vadd.f32 %v1403_v40, %v1703_v36  ;;  %v832_v44 = vpop.f32.mrb[13].mxu0 }
 0x11c   : > { %1055 = vst.msk [vmem:[%s1724_s9 + $0x20] sm:$0xf] %vm1046_vm1, %v1022_v33  ;;  %v1023_v35 = vpack.c.bf16 %v991_v34, %v991_v34  ;;  %v1438_v45 = vadd.f32 %v832_v44, %v1705_v37  ;;  %v1404_v46 = vpop.f32.mrb[14].mxu0 }
 0x11d   : > { %1058 = vst.msk [vmem:[%s1724_s9 + $0x2c] sm:$0xf] %vm1046_vm1, %v1025_v42  ;;  %v964_v47 = vadd.f32 %v1437_v43, %v1714_v41  ;;  %v1439_v48 = vadd.f32 %v1404_v46, %v1707_v38  ;;  %v835_v49 = vpop.f32.mrb[15].mxu0 }
 0x11e   : > { %1056 = vst.msk [vmem:[%s1724_s9 + $0x24] sm:$0xf] %vm1046_vm1, %v1023_v35  ;;  %v962_v50 = vadd.f32 %v1438_v45, %v1714_v41  ;;  %v1440_v36 = vadd.f32 %v835_v49, %v1709_v39 }
 0x11f   : > { %v996_v51 = vmax.f32 %v964_v47, 0.0  ;;  %v965_v52 = vadd.f32 %v1439_v48, %v1714_v41 }
 0x120   : > { %v994_v37 = vmax.f32 %v962_v50, 0.0  ;;  %v963_v53 = vadd.f32 %v1440_v36, %v1714_v41 }
 0x121   : > { %v1028_v54 = vpack.c.bf16 %v996_v51, %v996_v51  ;;  %v997_v55 = vmax.f32 %v965_v52, 0.0 }
 0x122   : > { %v1026_v38 = vpack.c.bf16 %v994_v37, %v994_v37  ;;  %v995_v57 = vmax.f32 %v963_v53, 0.0  ;;  %v1407_v58 = vpop.f32.mrb[16].mxu0 }
 0x123   : > { %1061 = vst.msk [vmem:[%s1724_s9 + $0x38] sm:$0xf] %vm1046_vm1, %v1028_v54  ;;  %v1029_v60 = vpack.c.bf16 %v997_v55, %v997_v55  ;;  %v848_v61 = vpop.f32.mrb[17].mxu0 }
 0x124   : > { %1059 = vst.msk [vmem:[%s1724_s9 + $0x30] sm:$0xf] %vm1046_vm1, %v1026_v38  ;;  %v1027_v63 = vpack.c.bf16 %v995_v57, %v995_v57  ;;  %v1408_v1 = vpop.f32.mrb[18].mxu0 }
 0x125   : > { %1062 = vst.msk [vmem:[%s1724_s9 + $0x3c] sm:$0xf] %vm1046_vm1, %v1029_v60  ;;  %v851_v5 = vpop.f32.mrb[19].mxu0 }
 0x126   : > { %v1371_v56 = vpop.f32.mrb[16].mxu1  ;;  %1060 = vst.msk [vmem:[%s1724_s9 + $0x34] sm:$0xf] %vm1046_vm1, %v1027_v63 }
 0x127   : > { %v670_v59 = vpop.f32.mrb[17].mxu1  ;;  %v1441_v39 = vadd.f32 %v1407_v58, %v1371_v56 }
 0x128   : > { %v1372_v62 = vpop.f32.mrb[18].mxu1  ;;  %v1442_v0 = vadd.f32 %v848_v61, %v670_v59 }
 0x129   : > { %v673_v2 = vpop.f32.mrb[19].mxu1  ;;  %v968_v3 = vadd.f32 %v1441_v39, %v1714_v41  ;;  %v1443_v4 = vadd.f32 %v1408_v1, %v1372_v62 }
 0x12a   : > { %v966_v6 = vadd.f32 %v1442_v0, %v1714_v41  ;;  %v1444_v7 = vadd.f32 %v851_v5, %v673_v2  ;;  %v1411_v17 = vpop.f32.mrb[20].mxu0 }
 0x12b   : > { %v1000_v8 = vmax.f32 %v968_v3, 0.0  ;;  %v969_v9 = vadd.f32 %v1443_v4, %v1714_v41  ;;  %v864_v21 = vpop.f32.mrb[21].mxu0 }
 0x12c   : > { %v998_v10 = vmax.f32 %v966_v6, 0.0  ;;  %v967_v11 = vadd.f32 %v1444_v7, %v1714_v41  ;;  %v1412_v25 = vpop.f32.mrb[22].mxu0 }
 0x12d   : > { %v1032_v12 = vpack.c.bf16 %v1000_v8, %v1000_v8  ;;  %v1001_v13 = vmax.f32 %v969_v9, 0.0  ;;  %v867_v29 = vpop.f32.mrb[23].mxu0 }
 0x12e   : > { %v1375_v14 = vpop.f32.mrb[20].mxu1  ;;  %v1030_v15 = vpack.c.bf16 %v998_v10, %v998_v10  ;;  %v999_v16 = vmax.f32 %v967_v11, 0.0 }
 0x12f   : > { %v686_v18 = vpop.f32.mrb[21].mxu1  ;;  %1065 = vst.msk [vmem:[%s1724_s9 + $0x48] sm:$0xf] %vm1046_vm1, %v1032_v12  ;;  %v1033_v19 = vpack.c.bf16 %v1001_v13, %v1001_v13  ;;  %v1445_v20 = vadd.f32 %v1411_v17, %v1375_v14 }
 0x130   : > { %v1376_v22 = vpop.f32.mrb[22].mxu1  ;;  %1063 = vst.msk [vmem:[%s1724_s9 + $0x40] sm:$0xf] %vm1046_vm1, %v1030_v15  ;;  %v1031_v23 = vpack.c.bf16 %v999_v16, %v999_v16  ;;  %v1446_v24 = vadd.f32 %v864_v21, %v686_v18 }
 0x131   : > { %v689_v26 = vpop.f32.mrb[23].mxu1  ;;  %1066 = vst.msk [vmem:[%s1724_s9 + $0x4c] sm:$0xf] %vm1046_vm1, %v1033_v19  ;;  %v972_v27 = vadd.f32 %v1445_v20, %v1714_v41  ;;  %v1447_v28 = vadd.f32 %v1412_v25, %v1376_v22 }
 0x132   : > { %1064 = vst.msk [vmem:[%s1724_s9 + $0x44] sm:$0xf] %vm1046_vm1, %v1031_v23  ;;  %v970_v30 = vadd.f32 %v1446_v24, %v1714_v41  ;;  %v1448_v31 = vadd.f32 %v867_v29, %v689_v26  ;;  %v1415_v46 = vpop.f32.mrb[24].mxu0 }
 0x133   : > { %v1004_v32 = vmax.f32 %v972_v27, 0.0  ;;  %v973_v33 = vadd.f32 %v1447_v28, %v1714_v41  ;;  %v880_v50 = vpop.f32.mrb[25].mxu0 }
 0x134   : > { %v1002_v34 = vmax.f32 %v970_v30, 0.0  ;;  %v971_v40 = vadd.f32 %v1448_v31, %v1714_v41  ;;  %v1416_v37 = vpop.f32.mrb[26].mxu0 }
 0x135   : > { %v1036_v42 = vpack.c.bf16 %v1004_v32, %v1004_v32  ;;  %v1005_v43 = vmax.f32 %v973_v33, 0.0  ;;  %v883_v56 = vpop.f32.mrb[27].mxu0 }
 0x136   : > { %v1379_v44 = vpop.f32.mrb[24].mxu1  ;;  %v1034_v35 = vpack.c.bf16 %v1002_v34, %v1002_v34  ;;  %v1003_v45 = vmax.f32 %v971_v40, 0.0 }
 0x137   : > { %v702_v47 = vpop.f32.mrb[25].mxu1  ;;  %1069 = vst.msk [vmem:[%s1724_s9 + $0x58] sm:$0xf] %vm1046_vm1, %v1036_v42  ;;  %v1037_v48 = vpack.c.bf16 %v1005_v43, %v1005_v43  ;;  %v1449_v49 = vadd.f32 %v1415_v46, %v1379_v44 }
 0x138   : > { %v1380_v36 = vpop.f32.mrb[26].mxu1  ;;  %1067 = vst.msk [vmem:[%s1724_s9 + $0x50] sm:$0xf] %vm1046_vm1, %v1034_v35  ;;  %v1035_v51 = vpack.c.bf16 %v1003_v45, %v1003_v45  ;;  %v1450_v52 = vadd.f32 %v880_v50, %v702_v47 }
 0x139   : > { %v705_v53 = vpop.f32.mrb[27].mxu1  ;;  %1070 = vst.msk [vmem:[%s1724_s9 + $0x5c] sm:$0xf] %vm1046_vm1, %v1037_v48  ;;  %v976_v54 = vadd.f32 %v1449_v49, %v1714_v41  ;;  %v1451_v55 = vadd.f32 %v1416_v37, %v1380_v36 }
 0x13a   : > { %1068 = vst.msk [vmem:[%s1724_s9 + $0x54] sm:$0xf] %vm1046_vm1, %v1035_v51  ;;  %v974_v38 = vadd.f32 %v1450_v52, %v1714_v41  ;;  %v1452_v57 = vadd.f32 %v883_v56, %v705_v53  ;;  %v1419_v2 = vpop.f32.mrb[28].mxu0 }
 0x13b   : > { %v1008_v58 = vmax.f32 %v976_v54, 0.0  ;;  %v977_v59 = vadd.f32 %v1451_v55, %v1714_v41  ;;  %v896_v6 = vpop.f32.mrb[29].mxu0 }
 0x13c   : > { %v1006_v60 = vmax.f32 %v974_v38, 0.0  ;;  %v975_v39 = vadd.f32 %v1452_v57, %v1714_v41  ;;  %v1420_v10 = vpop.f32.mrb[30].mxu0 }
 0x13d   : > { %v1040_v61 = vpack.c.bf16 %v1008_v58, %v1008_v58  ;;  %v1009_v62 = vmax.f32 %v977_v59, 0.0  ;;  %v899_v14 = vpop.f32.mrb[31].mxu0 }
 0x13e   : > { %v1383_v63 = vpop.f32.mrb[28].mxu1  ;;  %v1038_v0 = vpack.c.bf16 %v1006_v60, %v1006_v60  ;;  %v1007_v1 = vmax.f32 %v975_v39, 0.0 }
 0x13f   : > { %v718_v3 = vpop.f32.mrb[29].mxu1  ;;  %1073 = vst.msk [vmem:[%s1724_s9 + $0x68] sm:$0xf] %vm1046_vm1, %v1040_v61  ;;  %v1041_v4 = vpack.c.bf16 %v1009_v62, %v1009_v62  ;;  %v1453_v5 = vadd.f32 %v1419_v2, %v1383_v63 }
 0x140   : > { %v1384_v7 = vpop.f32.mrb[30].mxu1  ;;  %1071 = vst.msk [vmem:[%s1724_s9 + $0x60] sm:$0xf] %vm1046_vm1, %v1038_v0  ;;  %v1039_v8 = vpack.c.bf16 %v1007_v1, %v1007_v1  ;;  %v1454_v9 = vadd.f32 %v896_v6, %v718_v3 }
 0x141   : > { %v721_v11 = vpop.f32.mrb[31].mxu1  ;;  %1074 = vst.msk [vmem:[%s1724_s9 + $0x6c] sm:$0xf] %vm1046_vm1, %v1041_v4  ;;  %v980_v12 = vadd.f32 %v1453_v5, %v1714_v41  ;;  %v1455_v13 = vadd.f32 %v1420_v10, %v1384_v7 }
 0x142   : > { %1072 = vst.msk [vmem:[%s1724_s9 + $0x64] sm:$0xf] %vm1046_vm1, %v1039_v8  ;;  %v978_v15 = vadd.f32 %v1454_v9, %v1714_v41  ;;  %v1456_v16 = vadd.f32 %v899_v14, %v721_v11 }
 0x143   : > { %v1012_v17 = vmax.f32 %v980_v12, 0.0  ;;  %v981_v18 = vadd.f32 %v1455_v13, %v1714_v41 }
 0x144   : > { %v1010_v19 = vmax.f32 %v978_v15, 0.0  ;;  %v979_v20 = vadd.f32 %v1456_v16, %v1714_v41 }
 0x145   : > { %v1044_v21 = vpack.c.bf16 %v1012_v17, %v1012_v17  ;;  %v1013_v22 = vmax.f32 %v981_v18, 0.0 }
 0x146   : > { %v1042_v23 = vpack.c.bf16 %v1010_v19, %v1010_v19  ;;  %v1011_v24 = vmax.f32 %v979_v20, 0.0 }
 0x147   : > { %1077 = vst.msk [vmem:[%s1724_s9 + $0x78] sm:$0xf] %vm1046_vm1, %v1044_v21  ;;  %v1045_v25 = vpack.c.bf16 %v1013_v22, %v1013_v22 }
 0x148   : > { %1075 = vst.msk [vmem:[%s1724_s9 + $0x70] sm:$0xf] %vm1046_vm1, %v1042_v23  ;;  %v1043_v26 = vpack.c.bf16 %v1011_v24, %v1011_v24 }
 0x149   : > { %1078 = vst.msk [vmem:[%s1724_s9 + $0x7c] sm:$0xf] %vm1046_vm1, %v1045_v25 }
 0x14a   : > { %1076 = vst.msk [vmem:[%s1724_s9 + $0x74] sm:$0xf] %vm1046_vm1, %v1043_v26 }
 0x14b PF: > { %s13_s14 = sadd.s32 1, %s1558_s14   ;;  %s1837_s12 = smov %s1554_s13 }
 0x14c   : > { %p10_p5 = scmp.ge.s32.totalorder %s13_s14, 4   ;;  %s1838_s13 = smov %s1840_s15 }
 0x14e   :  { %12 = sbr.rel (!%p10_p5) target bundleno = 2 (0x2), region = 64 }

// kernel: mixed_3b_pallas.5
= control target key start
LH: loop header
LB: loop body
LE: loop exit
PB: predicated region body
PF: predicated region fallthrough
CT: control target
= control target key end

     0   :  { %s1862_s12 = smov 0   ;;  %s1864_s13 = smov 0   ;;  %s2122_s0 = inlined_call_operand.vmem [shape: bf16[2,4,8,8,128], index: 0, kind: input, shape index: {}]   ;;  %s2123_s1 = inlined_call_operand.vmem [shape: bf16[3,128,128], index: 1, kind: input, shape index: {}]   ;;  %s2124_s2 = inlined_call_operand.vmem [shape: f32[1,128], index: 2, kind: input, shape index: {}]   ;;  %s2125_s3 = inlined_call_operand.vmem [shape: bf16[2,4,8,8,128], index: 3, kind: output, shape index: {}]  }
   0x1   :  { %s1866_s14 = smov 0  }
   0x2 LB: > { %s25_s15 = sadd.s32 1, %s1835_s13  ;;  %p1278_p0 = scmp.ge.s32.totalorder %s1839_s14, 1  ;;  %s1839_s14 = sphi %s1866_s14, %s13_s14   ;;  %s1835_s13 = sphi %s1864_s13, %s2127_s13   ;;  %s1831_s12 = sphi %s1862_s12, %s2126_s12  }
   0x3   : > { %p27_p1 = scmp.ge.s32.totalorder %s25_s15, 2  ;;  %p158_p2 = scmp.lt.s32.totalorder %s1839_s14, 3 }
   0x5   : > { %s2129_s15 = smov (%p27_p1, %s25_s15), 0  ;;  %p159_p3 = pnand %p1278_p0, %p158_p2 }
   0x6   : > { %v1777_v0 = vld [vmem:[%s2123_s1 + $0x40] sm:$0xff] (!%p159_p3)   ;;  %v1779_v2 = vld [vmem:[%s2123_s1 + $0x48] sm:$0xff] (!%p159_p3)   ;;  %p191_p4 = scmp.lt.s32.totalorder (!%p159_p3), %s1831_s12, 1  ;;  %v1841_v3 = vmov (!%p159_p3), 0   ;;  %v1781_v6 = vld [vmem:[%s2123_s1 + $0x50] sm:$0xff] (!%p159_p3)  }
   0x7   : > { %162 = sbr.rel (%p159_p3) target bundleno = 352 (0x160), region = 32  ;;  %v1886_v1 = vld [vmem:[%s2123_s1] sm:$0xff] (!%p159_p3)   ;;  %1528 = vmatprep.subr.bf16.mxu1 (!%p159_p3), %v1777_v0  ;;  %v1891_v4 = vcombine.low (!%p159_p3), %v1841_v3, %v1841_v3  ;;  %v1897_v5 = vld [vmem:[%s2123_s1 + $0x8] sm:$0xff] (!%p159_p3)   ;;  %v1907_v7 = vld [vmem:[%s2123_s1 + $0x10] sm:$0xff] (!%p159_p3)  }
   0x8   : > { %1576 = vmatprep.subr.bf16.mxu0 (!%p159_p3), %v1886_v1  ;;  %1529 = vmatpush3.bf16.msra.mxu1 (!%p159_p3), %v1777_v0  ;;  %v1783_v8 = vld [vmem:[%s2123_s1 + $0x58] sm:$0xff] (!%p159_p3)   ;;  %v1785_v10 = vld [vmem:[%s2123_s1 + $0x60] sm:$0xff] (!%p159_p3)   ;;  %v1787_v12 = vld [vmem:[%s2123_s1 + $0x68] sm:$0xff] (!%p159_p3)  }
   0x9   : > { %1577 = vmatpush3.bf16.msra.mxu0 (!%p159_p3), %v1886_v1  ;;  %1530 = vmatprep.subr.bf16.mxu1 (!%p159_p3), %v1779_v2  ;;  %v1920_v9 = vld [vmem:[%s2123_s1 + $0x18] sm:$0xff] (!%p159_p3)   ;;  %v1931_v11 = vld [vmem:[%s2123_s1 + $0x20] sm:$0xff] (!%p159_p3)   ;;  %v1949_v14 = vld [vmem:[%s2123_s1 + $0x28] sm:$0xff] (!%p159_p3)  }
   0xa   : > { %1578 = vmatprep.subr.bf16.mxu0 (!%p159_p3), %v1897_v5  ;;  %1592 = vmatprep.mubr.bf16.mxu0 (!%p159_p3), %v1891_v4  ;;  %v1789_v15 = vld [vmem:[%s2123_s1 + $0x70] sm:$0xff] (!%p159_p3)   ;;  %v1791_v17 = vld [vmem:[%s2123_s1 + $0x78] sm:$0xff] (!%p159_p3)   ;;  %v1795_v19 = vld [vmem:[%s2123_s1 + $0x80] sm:$0xff] (!%p159_p3)  }
   0xb   : > { %v1959_v16 = vld [vmem:[%s2123_s1 + $0x30] sm:$0xff] (!%p159_p3)   ;;  %v1969_v18 = vld [vmem:[%s2123_s1 + $0x38] sm:$0xff] (!%p159_p3)   ;;  %v1796_v22 = vld [vmem:[%s2123_s1 + $0x88] sm:$0xff] (!%p159_p3)  }
   0xc   : > { %1531 = vmatpush3.bf16.msra.mxu1 (!%p159_p3), %v1779_v2  ;;  %v1799_v23 = vld [vmem:[%s2123_s1 + $0x90] sm:$0xff] (!%p159_p3)   ;;  %v1800_v26 = vld [vmem:[%s2123_s1 + $0x98] sm:$0xff] (!%p159_p3)   ;;  %v1803_v27 = vld [vmem:[%s2123_s1 + $0xa0] sm:$0xff] (!%p159_p3)  }
   0xd   : > { %1579 = vmatpush3.bf16.msra.mxu0 (!%p159_p3), %v1897_v5  ;;  %1532 = vmatprep.subr.bf16.mxu1 (!%p159_p3), %v1781_v6  ;;  %v1804_v30 = vld [vmem:[%s2123_s1 + $0xa8] sm:$0xff] (!%p159_p3)   ;;  %v1807_v31 = vld [vmem:[%s2123_s1 + $0xb0] sm:$0xff] (!%p159_p3)   ;;  %v1808_v34 = vld [vmem:[%s2123_s1 + $0xb8] sm:$0xff] (!%p159_p3)  }
   0xe   : > { %s2131_s12 = smov (!%p191_p4, %s1831_s12), 1  ;;  %1580 = vmatprep.subr.bf16.mxu0 %v1907_v7  ;;  %v2052_v59 = vld [vmem:[%s2124_s2] ss:$0 sm:$0xff] }
   0xf   : > { %s1359_s5 = sshll.u32 %s2131_s12, 7 }
  0x10   : > { %1533 = vmatpush3.bf16.msra.mxu1 %v1781_v6  ;;  %s1938_s16 = scalar_lea.vmem %s2122_s0, %s1359_s5  ;;  %s2063_s27 = scalar_lea.vmem %s2125_s3, %s1359_s5 }
  0x11   : > { %1581 = vmatpush3.bf16.msra.mxu0 %v1907_v7  ;;  %1534 = vmatprep.subr.bf16.mxu1 %v1783_v8  ;;  %v1793_v13 = vld [vmem:[%s1938_s16] sm:$0xff]   ;;  %v1794_v20 = vld [vmem:[%s1938_s16 + $0x8] sm:$0xff]   ;;  %v1797_v21 = vld [vmem:[%s1938_s16 + $0x10] sm:$0xff]  }
  0x12   : > { %1582 = vmatprep.subr.bf16.mxu0 %v1920_v9  ;;  %1544 = vmatprep.mubr.bf16.mxu1 %v1793_v13  ;;  %v1798_v24 = vld [vmem:[%s1938_s16 + $0x18] sm:$0xff]   ;;  %v1993_v25 = vld [vmem:[%s1938_s16 + $0x20] sm:$0xff]   ;;  %v1802_v28 = vld [vmem:[%s1938_s16 + $0x28] sm:$0xff]  }
  0x13   : > { %v1805_v29 = vld [vmem:[%s1938_s16 + $0x30] sm:$0xff]   ;;  %v1806_v32 = vld [vmem:[%s1938_s16 + $0x38] sm:$0xff]   ;;  %v1809_v33 = vld [vmem:[%s1938_s16 + $0x40] sm:$0xff]  }
  0x14   : > { %1535 = vmatpush3.bf16.msra.mxu1 %v1783_v8  ;;  %v1810_v35 = vld [vmem:[%s1938_s16 + $0x48] sm:$0xff]   ;;  %v1811_v36 = vld [vmem:[%s1938_s16 + $0x50] sm:$0xff]   ;;  %v1812_v37 = vld [vmem:[%s1938_s16 + $0x58] sm:$0xff]  }
  0x15   : > { %1583 = vmatpush3.bf16.msra.mxu0 %v1920_v9  ;;  %1536 = vmatprep.subr.bf16.mxu1 %v1785_v10  ;;  %v1813_v38 = vld [vmem:[%s1938_s16 + $0x60] sm:$0xff]   ;;  %v1814_v39 = vld [vmem:[%s1938_s16 + $0x68] sm:$0xff]   ;;  %v1815_v40 = vld [vmem:[%s1938_s16 + $0x70] sm:$0xff]  }
  0x16   : > { %1584 = vmatprep.subr.bf16.mxu0 %v1931_v11  ;;  %v1816_v41 = vld [vmem:[%s1938_s16 + $0x78] sm:$0xff]  }
  0x18   : > { %1537 = vmatpush3.bf16.msra.mxu1 %v1785_v10 }
  0x19   : > { %1585 = vmatpush3.bf16.msra.mxu0 %v1931_v11  ;;  %1538 = vmatprep.subr.bf16.mxu1 %v1787_v12 }
  0x1a   : > { %1586 = vmatprep.subr.bf16.mxu0 %v1949_v14 }
  0x1c   : > { %1539 = vmatpush3.bf16.msra.mxu1 %v1787_v12 }
  0x1d   : > { %1587 = vmatpush3.bf16.msra.mxu0 %v1949_v14  ;;  %1540 = vmatprep.subr.bf16.mxu1 %v1789_v15 }
  0x1e   : > { %1588 = vmatprep.subr.bf16.mxu0 %v1959_v16 }
  0x20   : > { %1541 = vmatpush3.bf16.msra.mxu1 %v1789_v15 }
  0x21   : > { %1589 = vmatpush3.bf16.msra.mxu0 %v1959_v16  ;;  %1542 = vmatprep.subr.bf16.mxu1 %v1791_v17 }
  0x22   : > { %1590 = vmatprep.subr.bf16.mxu0 %v1969_v18 }
  0x24   : > { %1543 = vmatpush3.bf16.msra.mxu1 %v1791_v17 }
  0x25   : > { %1591 = vmatpush3.bf16.msra.mxu0 %v1969_v18  ;;  %1672 = vmatprep.subr.bf16.mxu1 %v1886_v1 }
  0x26   : > { %1624 = vmatprep.subr.bf16.mxu0 %v1795_v19 }
  0x27   : > { %1545 = vmatmul.mubr.bf16.vlgmr.msra.gmra.mrb[0].mxu1 %v1794_v20 }
  0x28   : > { %1593 = vmatmul.mubr.bf16.vlgmr.msra.gmra.mrb[0].mxu0 %v1891_v4  ;;  %1680 = vmatpush3.bf16.msra.mxu1 %v1886_v1 }
  0x29   : > { %1625 = vmatpush3.bf16.msra.mxu0 %v1795_v19  ;;  %1548 = vmatprep.mubr.bf16.mxu1 %v1797_v21 }
  0x2a   : > { %1626 = vmatprep.subr.bf16.mxu0 %v1796_v22  ;;  %1596 = vmatprep.mubr.bf16.mxu0 %v1891_v4 }
  0x2b   : > { %1673 = vmatprep.subr.bf16.mxu1 %v1897_v5 }
  0x2c   : > { %1681 = vmatpush3.bf16.msra.mxu1 %v1897_v5 }
  0x2d   : > { %1627 = vmatpush3.bf16.msra.mxu0 %v1796_v22  ;;  %1674 = vmatprep.subr.bf16.mxu1 %v1907_v7 }
  0x2e   : > { %1628 = vmatprep.subr.bf16.mxu0 %v1799_v23 }
  0x2f   : > { %1549 = vmatmul.mubr.bf16.gmra.mrb[4].mxu1 %v1798_v24 }
  0x30   : > { %1597 = vmatmul.mubr.bf16.gmra.mrb[4].mxu0 %v1891_v4  ;;  %1552 = vmatprep.mubr.bf16.mxu1 %v1993_v25 }
  0x31   : > { %1629 = vmatpush3.bf16.msra.mxu0 %v1799_v23  ;;  %1600 = vmatprep.mubr.bf16.mxu0 %v1793_v13 }
  0x32   : > { %1630 = vmatprep.subr.bf16.mxu0 %v1800_v26  ;;  %1682 = vmatpush3.bf16.msra.mxu1 %v1907_v7 }
  0x33   : > { %1675 = vmatprep.subr.bf16.mxu1 %v1920_v9 }
  0x35   : > { %1631 = vmatpush3.bf16.msra.mxu0 %v1800_v26 }
  0x36   : > { %1632 = vmatprep.subr.bf16.mxu0 %v1803_v27  ;;  %1683 = vmatpush3.bf16.msra.mxu1 %v1920_v9 }
  0x37   : > { %1553 = vmatmul.mubr.bf16.gmra.mrb[8].mxu1 %v1802_v28  ;;  %1676 = vmatprep.subr.bf16.mxu1 %v1931_v11 }
  0x38   : > { %1601 = vmatmul.mubr.bf16.gmra.mrb[8].mxu0 %v1794_v20  ;;  %1556 = vmatprep.mubr.bf16.mxu1 %v1805_v29 }
  0x39   : > { %1633 = vmatpush3.bf16.msra.mxu0 %v1803_v27  ;;  %1604 = vmatprep.mubr.bf16.mxu0 %v1797_v21 }
  0x3a   : > { %1634 = vmatprep.subr.bf16.mxu0 %v1804_v30  ;;  %1684 = vmatpush3.bf16.msra.mxu1 %v1931_v11 }
  0x3b   : > { %1677 = vmatprep.subr.bf16.mxu1 %v1949_v14 }
  0x3d   : > { %1635 = vmatpush3.bf16.msra.mxu0 %v1804_v30 }
  0x3e   : > { %1636 = vmatprep.subr.bf16.mxu0 %v1807_v31  ;;  %1685 = vmatpush3.bf16.msra.mxu1 %v1949_v14 }
  0x3f   : > { %1557 = vmatmul.mubr.bf16.gmra.mrb[12].mxu1 %v1806_v32  ;;  %1678 = vmatprep.subr.bf16.mxu1 %v1959_v16 }
  0x40   : > { %1605 = vmatmul.mubr.bf16.gmra.mrb[12].mxu0 %v1798_v24  ;;  %1560 = vmatprep.mubr.bf16.mxu1 %v1809_v33 }
  0x41   : > { %1637 = vmatpush3.bf16.msra.mxu0 %v1807_v31  ;;  %1640 = vmatprep.mubr.bf16.mxu0 %v1993_v25 }
  0x42   : > { %1638 = vmatprep.subr.bf16.mxu0 %v1808_v34  ;;  %1686 = vmatpush3.bf16.msra.mxu1 %v1959_v16 }
  0x43   : > { %1679 = vmatprep.subr.bf16.mxu1 %v1969_v18 }
  0x45   : > { %1639 = vmatpush3.bf16.msra.mxu0 %v1808_v34 }
  0x46   : > { %1687 = vmatpush3.bf16.msra.mxu1 %v1969_v18 }
  0x47   : > { %1561 = vmatmul.mubr.bf16.gmra.mrb[16].mxu1 %v1810_v35 }
  0x48   : > { %1641 = vmatmul.mubr.bf16.vlgmr.msra.gmra.mrb[0].mxu0 %v1802_v28  ;;  %1564 = vmatprep.mubr.bf16.mxu1 %v1811_v36 }
  0x49   : > { %1644 = vmatprep.mubr.bf16.mxu0 %v1805_v29 }
  0x4f   : > { %1565 = vmatmul.mubr.bf16.gmra.mrb[20].mxu1 %v1812_v37 }
  0x50   : > { %1645 = vmatmul.mubr.bf16.gmra.mrb[4].mxu0 %v1806_v32  ;;  %1568 = vmatprep.mubr.bf16.mxu1 %v1813_v38 }
  0x51   : > { %1648 = vmatprep.mubr.bf16.mxu0 %v1809_v33 }
  0x57   : > { %1569 = vmatmul.mubr.bf16.gmra.mrb[24].mxu1 %v1814_v39 }
  0x58   : > { %1649 = vmatmul.mubr.bf16.gmra.mrb[8].mxu0 %v1810_v35  ;;  %1572 = vmatprep.mubr.bf16.mxu1 %v1815_v40 }
  0x59   : > { %1652 = vmatprep.mubr.bf16.mxu0 %v1811_v36 }
  0x5f   : > { %1573 = vmatmul.mubr.bf16.gmra.mrb[28].mxu1 %v1816_v41 }
  0x60   : > { %1653 = vmatmul.mubr.bf16.gmra.mrb[12].mxu0 %v1812_v37  ;;  %1608 = vmatprep.mubr.bf16.mxu1 %v1993_v25 }
  0x61   : > { %1656 = vmatprep.mubr.bf16.mxu0 %v1813_v38 }
  0x67   : > { %1609 = vmatmul.mubr.bf16.vlgmr.msra.gmra.mrb[16].mxu1 %v1802_v28 }
  0x68   : > { %1657 = vmatmul.mubr.bf16.gmra.mrb[16].mxu0 %v1814_v39  ;;  %1612 = vmatprep.mubr.bf16.mxu1 %v1805_v29 }
  0x69   : > { %1660 = vmatprep.mubr.bf16.mxu0 %v1815_v40 }
  0x6f   : > { %1613 = vmatmul.mubr.bf16.gmra.mrb[20].mxu1 %v1806_v32 }
  0x70   : > { %1661 = vmatmul.mubr.bf16.gmra.mrb[20].mxu0 %v1816_v41  ;;  %1616 = vmatprep.mubr.bf16.mxu1 %v1809_v33 }
  0x71   : > { %1664 = vmatprep.mubr.bf16.mxu0 %v1891_v4 }
  0x77   : > { %1617 = vmatmul.mubr.bf16.gmra.mrb[24].mxu1 %v1810_v35 }
  0x78   : > { %1665 = vmatmul.mubr.bf16.gmra.mrb[24].mxu0 %v1891_v4  ;;  %1620 = vmatprep.mubr.bf16.mxu1 %v1811_v36 }
  0x79   : > { %1668 = vmatprep.mubr.bf16.mxu0 %v1891_v4 }
  0x7f   : > { %1621 = vmatmul.mubr.bf16.gmra.mrb[28].mxu1 %v1812_v37 }
  0x80   : > { %1669 = vmatmul.mubr.bf16.gmra.mrb[28].mxu0 %v1891_v4 }
  0xfa   : > { %v1546_v42 = vpop.f32.mrb[0].mxu1 }
  0xfb   : > { %v454_v43 = vpop.f32.mrb[1].mxu1 }
  0xfc   : > { %v1547_v44 = vpop.f32.mrb[2].mxu1 }
  0xfd   : > { %v457_v45 = vpop.f32.mrb[3].mxu1 }
 0x102   : > { %v1550_v46 = vpop.f32.mrb[4].mxu1 }
 0x103   : > { %v470_v47 = vpop.f32.mrb[5].mxu1 }
 0x104   : > { %v1551_v48 = vpop.f32.mrb[6].mxu1 }
 0x105   : > { %v473_v49 = vpop.f32.mrb[7].mxu1 }
 0x10a   : > { %v1554_v50 = vpop.f32.mrb[8].mxu1 }
 0x10b   : > { %v486_v51 = vpop.f32.mrb[9].mxu1 }
 0x10c   : > { %v1555_v52 = vpop.f32.mrb[10].mxu1 }
 0x10d   : > { %v489_v53 = vpop.f32.mrb[11].mxu1 }
 0x112   : > { %v2041_v54 = vpop.f32.mrb[12].mxu1 }
 0x113   : > { %v2043_v55 = vpop.f32.mrb[13].mxu1 }
 0x114   : > { %v2045_v56 = vpop.f32.mrb[14].mxu1 }
 0x115   : > { %v2047_v57 = vpop.f32.mrb[15].mxu1 }
 0x11b   : > { %v1642_v58 = vpop.f32.mrb[0].mxu0 }
 0x11c   : > { %v1688_v60 = vadd.f32 %v1642_v58, %v1546_v42  ;;  %v893_v61 = vpop.f32.mrb[1].mxu0 }
 0x11d   : > { %v1689_v62 = vadd.f32 %v893_v61, %v454_v43  ;;  %v1643_v63 = vpop.f32.mrb[2].mxu0 }
 0x11e   : > { %v1061_v0 = vadd.f32 %v1688_v60, %v2052_v59  ;;  %v1690_v1 = vadd.f32 %v1643_v63, %v1547_v44  ;;  %v896_v2 = vpop.f32.mrb[3].mxu0 }
 0x11f   : > { %v1059_v3 = vadd.f32 %v1689_v62, %v2052_v59  ;;  %v1691_v4 = vadd.f32 %v896_v2, %v457_v45 }
 0x120   : > { %v1062_v5 = vadd.f32 %v1690_v1, %v2052_v59  ;;  %v1093_v7 = vmax.f32 %v1061_v0, 0.0 }
 0x121   : > { %v1060_v6 = vadd.f32 %v1691_v4, %v2052_v59  ;;  %v1091_v9 = vmax.f32 %v1059_v3, 0.0 }
 0x122   : > { %v1094_v8 = vmax.f32 %v1062_v5, 0.0 }
 0x123   : > { %v1092_v10 = vmax.f32 %v1060_v6, 0.0  ;;  %v1646_v11 = vpop.f32.mrb[4].mxu0 }
 0x124   : > { %v1369_v12 = vpack.c.bf16 %v1094_v8, %v1093_v7  ;;  %v1692_v13 = vadd.f32 %v1646_v11, %v1550_v46  ;;  %v909_v14 = vpop.f32.mrb[5].mxu0 }
 0x125   : > { %v1364_v15 = vpack.c.bf16 %v1092_v10, %v1091_v9  ;;  %v1693_v16 = vadd.f32 %v909_v14, %v470_v47  ;;  %v1647_v17 = vpop.f32.mrb[6].mxu0 }
 0x126   : > { %1441 = vst [vmem:[%s2063_s27 + $0x8] sm:$0xff] %v1369_v12   ;;  %v1065_v18 = vadd.f32 %v1692_v13, %v2052_v59  ;;  %v1694_v19 = vadd.f32 %v1647_v17, %v1551_v48  ;;  %v912_v20 = vpop.f32.mrb[7].mxu0 }
 0x127   : > { %1365 = vst [vmem:[%s2063_s27] sm:$0xff] %v1364_v15   ;;  %v1063_v21 = vadd.f32 %v1693_v16, %v2052_v59  ;;  %v1695_v22 = vadd.f32 %v912_v20, %v473_v49 }
 0x128   : > { %v1066_v23 = vadd.f32 %v1694_v19, %v2052_v59  ;;  %v1097_v25 = vmax.f32 %v1065_v18, 0.0 }
 0x129   : > { %v1064_v24 = vadd.f32 %v1695_v22, %v2052_v59  ;;  %v1095_v27 = vmax.f32 %v1063_v21, 0.0 }
 0x12a   : > { %v1098_v26 = vmax.f32 %v1066_v23, 0.0 }
 0x12b   : > { %v1096_v28 = vmax.f32 %v1064_v24, 0.0  ;;  %v1650_v29 = vpop.f32.mrb[8].mxu0 }
 0x12c   : > { %v1379_v30 = vpack.c.bf16 %v1098_v26, %v1097_v25  ;;  %v1696_v31 = vadd.f32 %v1650_v29, %v1554_v50  ;;  %v925_v32 = vpop.f32.mrb[9].mxu0 }
 0x12d   : > { %v1374_v33 = vpack.c.bf16 %v1096_v28, %v1095_v27  ;;  %v1697_v34 = vadd.f32 %v925_v32, %v486_v51  ;;  %v1651_v35 = vpop.f32.mrb[10].mxu0 }
 0x12e   : > { %1443 = vst [vmem:[%s2063_s27 + $0x18] sm:$0xff] %v1379_v30   ;;  %v1069_v36 = vadd.f32 %v1696_v31, %v2052_v59  ;;  %v1698_v37 = vadd.f32 %v1651_v35, %v1555_v52  ;;  %v928_v38 = vpop.f32.mrb[11].mxu0 }
 0x12f   : > { %1442 = vst [vmem:[%s2063_s27 + $0x10] sm:$0xff] %v1374_v33   ;;  %v1067_v39 = vadd.f32 %v1697_v34, %v2052_v59  ;;  %v1699_v40 = vadd.f32 %v928_v38, %v489_v53 }
 0x130   : > { %v1070_v41 = vadd.f32 %v1698_v37, %v2052_v59  ;;  %v1101_v43 = vmax.f32 %v1069_v36, 0.0 }
 0x131   : > { %v1068_v42 = vadd.f32 %v1699_v40, %v2052_v59  ;;  %v1099_v45 = vmax.f32 %v1067_v39, 0.0 }
 0x132   : > { %v1102_v44 = vmax.f32 %v1070_v41, 0.0 }
 0x133   : > { %v1100_v46 = vmax.f32 %v1068_v42, 0.0  ;;  %v1654_v47 = vpop.f32.mrb[12].mxu0 }
 0x134   : > { %v1389_v48 = vpack.c.bf16 %v1102_v44, %v1101_v43  ;;  %v1700_v49 = vadd.f32 %v1654_v47, %v2041_v54  ;;  %v941_v50 = vpop.f32.mrb[13].mxu0 }
 0x135   : > { %v1384_v51 = vpack.c.bf16 %v1100_v46, %v1099_v45  ;;  %v1701_v52 = vadd.f32 %v941_v50, %v2043_v55  ;;  %v1655_v58 = vpop.f32.mrb[14].mxu0 }
 0x136   : > { %1445 = vst [vmem:[%s2063_s27 + $0x28] sm:$0xff] %v1389_v48   ;;  %v1073_v53 = vadd.f32 %v1700_v49, %v2052_v59  ;;  %v1702_v60 = vadd.f32 %v1655_v58, %v2045_v56  ;;  %v944_v61 = vpop.f32.mrb[15].mxu0 }
 0x137   : > { %1444 = vst [vmem:[%s2063_s27 + $0x20] sm:$0xff] %v1384_v51   ;;  %v1071_v62 = vadd.f32 %v1701_v52, %v2052_v59  ;;  %v1703_v63 = vadd.f32 %v944_v61, %v2047_v57 }
 0x138   : > { %v1074_v0 = vadd.f32 %v1702_v60, %v2052_v59  ;;  %v1105_v1 = vmax.f32 %v1073_v53, 0.0 }
 0x139   : > { %v1072_v54 = vadd.f32 %v1703_v63, %v2052_v59  ;;  %v1103_v3 = vmax.f32 %v1071_v62, 0.0 }
 0x13a   : > { %v1106_v2 = vmax.f32 %v1074_v0, 0.0  ;;  %v1610_v55 = vpop.f32.mrb[16].mxu1 }
 0x13b   : > { %v1104_v4 = vmax.f32 %v1072_v54, 0.0  ;;  %v1658_v5 = vpop.f32.mrb[16].mxu0  ;;  %v731_v6 = vpop.f32.mrb[17].mxu1 }
 0x13c   : > { %v1399_v56 = vpack.c.bf16 %v1106_v2, %v1105_v1  ;;  %v1704_v7 = vadd.f32 %v1658_v5, %v1610_v55  ;;  %v957_v8 = vpop.f32.mrb[17].mxu0  ;;  %v1611_v9 = vpop.f32.mrb[18].mxu1 }
 0x13d   : > { %v1394_v10 = vpack.c.bf16 %v1104_v4, %v1103_v3  ;;  %v1705_v11 = vadd.f32 %v957_v8, %v731_v6  ;;  %v1659_v57 = vpop.f32.mrb[18].mxu0  ;;  %v734_v12 = vpop.f32.mrb[19].mxu1 }
 0x13e   : > { %1447 = vst [vmem:[%s2063_s27 + $0x38] sm:$0xff] %v1399_v56   ;;  %v1077_v13 = vadd.f32 %v1704_v7, %v2052_v59  ;;  %v1706_v14 = vadd.f32 %v1659_v57, %v1611_v9  ;;  %v960_v15 = vpop.f32.mrb[19].mxu0 }
 0x13f   : > { %1446 = vst [vmem:[%s2063_s27 + $0x30] sm:$0xff] %v1394_v10   ;;  %v1075_v16 = vadd.f32 %v1705_v11, %v2052_v59  ;;  %v1707_v17 = vadd.f32 %v960_v15, %v734_v12 }
 0x140   : > { %v1078_v18 = vadd.f32 %v1706_v14, %v2052_v59  ;;  %v1109_v20 = vmax.f32 %v1077_v13, 0.0 }
 0x141   : > { %v1076_v19 = vadd.f32 %v1707_v17, %v2052_v59  ;;  %v1107_v23 = vmax.f32 %v1075_v16, 0.0 }
 0x142   : > { %v1110_v21 = vmax.f32 %v1078_v18, 0.0  ;;  %v1614_v22 = vpop.f32.mrb[20].mxu1 }
 0x143   : > { %v1108_v24 = vmax.f32 %v1076_v19, 0.0  ;;  %v1662_v25 = vpop.f32.mrb[20].mxu0  ;;  %v747_v26 = vpop.f32.mrb[21].mxu1 }
 0x144   : > { %v1409_v27 = vpack.c.bf16 %v1110_v21, %v1109_v20  ;;  %v1708_v28 = vadd.f32 %v1662_v25, %v1614_v22  ;;  %v973_v29 = vpop.f32.mrb[21].mxu0  ;;  %v1615_v30 = vpop.f32.mrb[22].mxu1 }
 0x145   : > { %v1404_v31 = vpack.c.bf16 %v1108_v24, %v1107_v23  ;;  %v1709_v32 = vadd.f32 %v973_v29, %v747_v26  ;;  %v1663_v33 = vpop.f32.mrb[22].mxu0  ;;  %v750_v34 = vpop.f32.mrb[23].mxu1 }
 0x146   : > { %1449 = vst [vmem:[%s2063_s27 + $0x48] sm:$0xff] %v1409_v27   ;;  %v1081_v35 = vadd.f32 %v1708_v28, %v2052_v59  ;;  %v1710_v36 = vadd.f32 %v1663_v33, %v1615_v30  ;;  %v976_v37 = vpop.f32.mrb[23].mxu0 }
 0x147   : > { %1448 = vst [vmem:[%s2063_s27 + $0x40] sm:$0xff] %v1404_v31   ;;  %v1079_v38 = vadd.f32 %v1709_v32, %v2052_v59  ;;  %v1711_v39 = vadd.f32 %v976_v37, %v750_v34 }
 0x148   : > { %v1082_v40 = vadd.f32 %v1710_v36, %v2052_v59  ;;  %v1113_v42 = vmax.f32 %v1081_v35, 0.0 }
 0x149   : > { %v1080_v41 = vadd.f32 %v1711_v39, %v2052_v59  ;;  %v1111_v45 = vmax.f32 %v1079_v38, 0.0 }
 0x14a   : > { %v1114_v43 = vmax.f32 %v1082_v40, 0.0  ;;  %v1618_v44 = vpop.f32.mrb[24].mxu1 }
 0x14b   : > { %v1112_v46 = vmax.f32 %v1080_v41, 0.0  ;;  %v1666_v47 = vpop.f32.mrb[24].mxu0  ;;  %v763_v48 = vpop.f32.mrb[25].mxu1 }
 0x14c   : > { %v1419_v49 = vpack.c.bf16 %v1114_v43, %v1113_v42  ;;  %v1712_v50 = vadd.f32 %v1666_v47, %v1618_v44  ;;  %v989_v51 = vpop.f32.mrb[25].mxu0  ;;  %v1619_v52 = vpop.f32.mrb[26].mxu1 }
 0x14d   : > { %v1414_v58 = vpack.c.bf16 %v1112_v46, %v1111_v45  ;;  %v1713_v53 = vadd.f32 %v989_v51, %v763_v48  ;;  %v1667_v60 = vpop.f32.mrb[26].mxu0  ;;  %v766_v61 = vpop.f32.mrb[27].mxu1 }
 0x14e   : > { %1451 = vst [vmem:[%s2063_s27 + $0x58] sm:$0xff] %v1419_v49   ;;  %v1085_v62 = vadd.f32 %v1712_v50, %v2052_v59  ;;  %v1714_v63 = vadd.f32 %v1667_v60, %v1619_v52  ;;  %v992_v0 = vpop.f32.mrb[27].mxu0 }
 0x14f   : > { %1450 = vst [vmem:[%s2063_s27 + $0x50] sm:$0xff] %v1414_v58   ;;  %v1083_v54 = vadd.f32 %v1713_v53, %v2052_v59  ;;  %v1715_v1 = vadd.f32 %v992_v0, %v766_v61 }
 0x150   : > { %v1086_v2 = vadd.f32 %v1714_v63, %v2052_v59  ;;  %v1117_v3 = vmax.f32 %v1085_v62, 0.0 }
 0x151   : > { %v1084_v55 = vadd.f32 %v1715_v1, %v2052_v59  ;;  %v1115_v6 = vmax.f32 %v1083_v54, 0.0 }
 0x152   : > { %v1118_v4 = vmax.f32 %v1086_v2, 0.0  ;;  %v1622_v5 = vpop.f32.mrb[28].mxu1 }
 0x153   : > { %v1116_v56 = vmax.f32 %v1084_v55, 0.0  ;;  %v1670_v7 = vpop.f32.mrb[28].mxu0  ;;  %v779_v8 = vpop.f32.mrb[29].mxu1 }
 0x154   : > { %v1429_v9 = vpack.c.bf16 %v1118_v4, %v1117_v3  ;;  %v1716_v10 = vadd.f32 %v1670_v7, %v1622_v5  ;;  %v1005_v11 = vpop.f32.mrb[29].mxu0  ;;  %v1623_v57 = vpop.f32.mrb[30].mxu1 }
 0x155   : > { %v1424_v12 = vpack.c.bf16 %v1116_v56, %v1115_v6  ;;  %v1717_v13 = vadd.f32 %v1005_v11, %v779_v8  ;;  %v1671_v14 = vpop.f32.mrb[30].mxu0  ;;  %v782_v15 = vpop.f32.mrb[31].mxu1 }
 0x156   : > { %1453 = vst [vmem:[%s2063_s27 + $0x68] sm:$0xff] %v1429_v9   ;;  %v1089_v16 = vadd.f32 %v1716_v10, %v2052_v59  ;;  %v1718_v17 = vadd.f32 %v1671_v14, %v1623_v57  ;;  %v1008_v18 = vpop.f32.mrb[31].mxu0 }
 0x157   : > { %1452 = vst [vmem:[%s2063_s27 + $0x60] sm:$0xff] %v1424_v12   ;;  %v1087_v19 = vadd.f32 %v1717_v13, %v2052_v59  ;;  %v1719_v20 = vadd.f32 %v1008_v18, %v782_v15 }
 0x158   : > { %v1090_v21 = vadd.f32 %v1718_v17, %v2052_v59  ;;  %v1121_v23 = vmax.f32 %v1089_v16, 0.0 }
 0x159   : > { %v1088_v22 = vadd.f32 %v1719_v20, %v2052_v59  ;;  %v1119_v25 = vmax.f32 %v1087_v19, 0.0 }
 0x15a   : > { %v1122_v24 = vmax.f32 %v1090_v21, 0.0 }
 0x15b   : > { %v1120_v26 = vmax.f32 %v1088_v22, 0.0 }
 0x15c   : > { %v1439_v27 = vpack.c.bf16 %v1122_v24, %v1121_v23 }
 0x15d   : > { %v1434_v28 = vpack.c.bf16 %v1120_v26, %v1119_v25 }
 0x15e   : > { %1455 = vst [vmem:[%s2063_s27 + $0x78] sm:$0xff] %v1439_v27  }
 0x15f   : > { %1454 = vst [vmem:[%s2063_s27 + $0x70] sm:$0xff] %v1434_v28  }
 0x160 PF: > { %s13_s14 = sadd.s32 1, %s1839_s14   ;;  %s2126_s12 = smov %s1835_s13 }
 0x161   : > { %p10_p5 = scmp.ge.s32.totalorder %s13_s14, 4   ;;  %s2127_s13 = smov %s2129_s15 }
 0x163   :  { %12 = sbr.rel (!%p10_p5) target bundleno = 2 (0x2), region = 64 }

// kernel: mixed_3b_pallas.7
= control target key start
LH: loop header
LB: loop body
LE: loop exit
PB: predicated region body
PF: predicated region fallthrough
CT: control target
= control target key end

     0   :  { %s3285_s21 = smov 0   ;;  %s4904_s0 = inlined_call_operand.vmem [shape: bf16[2,4,8,8,192], index: 0, kind: input, shape index: {}]   ;;  %s4905_s1 = inlined_call_operand.vmem [shape: bf16[192,64], index: 1, kind: input, shape index: {}]   ;;  %s4906_s2 = inlined_call_operand.vmem [shape: f32[1,64], index: 2, kind: input, shape index: {}]   ;;  %s4907_s3 = inlined_call_operand.vmem [shape: bf16[192,32], index: 3, kind: input, shape index: {}]   ;;  %s4908_s4 = inlined_call_operand.vmem [shape: f32[1,32], index: 4, kind: input, shape index: {}]   ;;  %s4909_s5 = inlined_call_operand.vmem [shape: bf16[2,4,8,8,64], index: 5, kind: output, shape index: {0}]   ;;  %s4910_s6 = inlined_call_operand.vmem [shape: bf16[2,4,8,8,32], index: 6, kind: output, shape index: {1}]  }
   0x1 LB: > { %s2875_s22 = sadd.s32 4294967295, %s3247_s21   ;;  %p2879_p0 = scmp.ge.s32.totalorder %s3247_s21, 1  ;;  %s3247_s21 = sphi %s3285_s21, %s17_s21  }
   0x2   : > { %p215_p1 = scmp.lt.s32.totalorder %s3247_s21, 3 }
   0x4   : > { %p216_p2 = pnand %p2879_p0, %p215_p1 }
   0x6   : > { %219 = sbr.rel (%p216_p2) target bundleno = 519 (0x207), region = 40 }
   0xd   : > { %v3118_v0 = vld [vmem:[%s4905_s1] sm:$0xff]   ;;  %v3249_v1 = vmov 0   ;;  %v3120_v3 = vld [vmem:[%s4905_s1 + $0x8] sm:$0xff]   ;;  %v3122_v5 = vld [vmem:[%s4905_s1 + $0x10] sm:$0xff]   ;;  %p250_p3 = scmp.lt.s32.totalorder %s2875_s22, 1  ;;  %vm545_vm0 = vcmask 523264  }
   0xe   : > { %594 = vmatprep.subr.bf16.mxu0 %v3249_v1  ;;  %2529 = vmatprep.subr.bf16.mxu1 %v3249_v1  ;;  %v3119_v2 = vld [vmem:[%s4907_s3] sm:$0xff]   ;;  %v3121_v4 = vld [vmem:[%s4907_s3 + $0x8] sm:$0xff]   ;;  %v3123_v6 = vld [vmem:[%s4907_s3 + $0x10] sm:$0xff]   ;;  %vm1492_vm1 = vcmask 1043456   ;;  %vm1493_vm2 = vsmask.f32 3328 }
   0xf   : > { %595 = vmatpush1.bf16.msra.mxu0 %v3118_v0  ;;  %2530 = vmatpush1.bf16.msra.mxu1 %v3119_v2  ;;  %v3124_v7 = vld [vmem:[%s4905_s1 + $0x18] sm:$0xff]   ;;  %v3126_v9 = vld [vmem:[%s4905_s1 + $0x20] sm:$0xff]   ;;  %s4956_s22 = smov (!%p250_p3, %s2875_s22), 1  ;;  %v3128_v11 = vld [vmem:[%s4905_s1 + $0x28] sm:$0xff]   ;;  %vm1751_vm4 = vcmask 1040384   ;;  %vm819_vm7 = vcmask 519168  }
  0x10   : > { %596 = vmatprep.subr.bf16.mxu0 %v3249_v1  ;;  %2531 = vmatprep.subr.bf16.mxu1 %v3249_v1  ;;  %v3125_v8 = vld [vmem:[%s4907_s3 + $0x18] sm:$0xff]   ;;  %v3127_v10 = vld [vmem:[%s4907_s3 + $0x20] sm:$0xff]   ;;  %s3106_s23 = sshll.u32 %s4956_s22, 8  ;;  %v3129_v12 = vld [vmem:[%s4907_s3 + $0x28] sm:$0xff]   ;;  %vm1752_vm5 = vsmask.f32 256 }
  0x11   : > { %s3351_s28 = scalar_lea.vmem %s4904_s0, %s3106_s23  ;;  %v3130_v13 = vld [vmem:[%s4905_s1 + $0x30] sm:$0xff]   ;;  %v3132_v23 = vld [vmem:[%s4905_s1 + $0x38] sm:$0xff]   ;;  %v3134_v43 = vld [vmem:[%s4905_s1 + $0x40] sm:$0xff]   ;;  %s3107_s9 = sshll.u32 %s4956_s22, 7  ;;  %vm2754_vm8 = vcmask 257024  }
  0x12   : > { %v3131_v14 = vld [vmem:[%s4907_s3 + $0x30] sm:$0xff]   ;;  %v3362_v15 = vld [vmem:[%s3351_s28] sm:$0xff]  ;;  %v3365_v16 = vld [vmem:[%s3351_s28 + $0x8] sm:$0xff]  ;;  %s4695_s12 = scalar_lea.vmem %s4909_s5, %s3107_s9  ;;  %s4715_s17 = scalar_lea.vmem %s4910_s6, %s3107_s9 }
  0x13   : > { %597 = vmatpush1.bf16.msra.mxu0 %v3120_v3  ;;  %2532 = vmatpush1.bf16.msra.mxu1 %v3121_v4  ;;  %v3368_v17 = vld [vmem:[%s3351_s28 + $0x10] sm:$0xff]  ;;  %v2888_v18 = vcombine.high %v3362_v15, %v3365_v16  ;;  %v3374_v19 = vcombine.low %v3362_v15, %v3362_v15  ;;  %v3378_v20 = vcombine.high %v3362_v15, %v3362_v15  ;;  %v3385_v22 = vld [vmem:[%s3351_s28 + $0x40] sm:$0xff]  ;;  %v3395_v25 = vld [vmem:[%s3351_s28 + $0x48] sm:$0xff] }
  0x14   : > { %598 = vmatprep.subr.bf16.mxu0 %v3249_v1  ;;  %2533 = vmatprep.subr.bf16.mxu1 %v3249_v1  ;;  %v3382_v21 = vcombine.low %v3365_v16, %v3365_v16  ;;  %v3392_v24 = vcombine.high %v3365_v16, %v3365_v16  ;;  %v3398_v26 = vld [vmem:[%s3351_s28 + $0x50] sm:$0xff]  ;;  %v3402_v27 = vcombine.low %v3368_v17, %v3368_v17  ;;  %v3133_v30 = vld [vmem:[%s4907_s3 + $0x38] sm:$0xff]   ;;  %v3135_v48 = vld [vmem:[%s4907_s3 + $0x40] sm:$0xff]  }
  0x15   : > { %v3406_v28 = vcombine.high %v3368_v17, %v3368_v17  ;;  %v3410_v29 = vcombine.low %v3385_v22, %v3385_v22  ;;  %v917_v31 = vshrl.u32 %v3374_v19, 16  ;;  %v919_v32 = vshll.u32 %v3374_v19, 16  ;;  %2931 = vmatprep.mubr.msk.bf16.mxu0 %vm545_vm0, %v2888_v18  ;;  %v3136_v61 = vld [vmem:[%s4905_s1 + $0x48] sm:$0xff]   ;;  %vm3508_vm3 = vmand %vm1492_vm1, %vm1493_vm2 }
  0x16   : > { %v924_v33 = vshrl.u32 %v3378_v20, 16  ;;  %v926_v34 = vshll.u32 %v3378_v20, 16  ;;  %v931_v35 = vshrl.u32 %v3382_v21, 16  ;;  %v933_v36 = vshll.u32 %v3382_v21, 16  ;;  %v3137_v3 = vld [vmem:[%s4907_s3 + $0x48] sm:$0xff]   ;;  %vm3662_vm6 = vmand %vm1751_vm4, %vm1752_vm5 }
  0x17   : > { %599 = vmatpush1.bf16.msra.mxu0 %v3122_v5  ;;  %2534 = vmatpush1.bf16.msra.mxu1 %v3123_v6  ;;  %v938_v37 = vshrl.u32 %v3392_v24, 16  ;;  %v940_v38 = vshll.u32 %v3392_v24, 16  ;;  %v3428_v39 = vcombine.high %v3385_v22, %v3385_v22  ;;  %v3432_v40 = vcombine.low %v3395_v25, %v3395_v25 }
  0x18   : > { %600 = vmatprep.subr.bf16.mxu0 %v3249_v1  ;;  %2535 = vmatprep.subr.bf16.mxu1 %v3249_v1  ;;  %v3436_v41 = vcombine.high %v3395_v25, %v3395_v25  ;;  %v3440_v42 = vcombine.low %v3398_v26, %v3398_v26  ;;  %v3447_v44 = vcombine.high %v3398_v26, %v3398_v26  ;;  %v921_v45 = vrot.slane %v919_v32, 1 }
  0x19   : > { %v928_v46 = vrot.slane %v926_v34, 1  ;;  %v935_v47 = vrot.slane %v933_v36, 1  ;;  %v942_v49 = vrot.slane %v940_v38, 1  ;;  %v945_v50 = vshrl.u32 %v3402_v27, 16 }
  0x1a   : > { %v947_v51 = vshll.u32 %v3402_v27, 16  ;;  %v952_v52 = vshrl.u32 %v3406_v28, 16  ;;  %v3467_v53 = vor.u32 %v921_v45, %v917_v31  ;;  %v954_v56 = vshll.u32 %v3406_v28, 16 }
  0x1b   : > { %601 = vmatpush1.bf16.msra.mxu0 %v3124_v7  ;;  %2536 = vmatpush1.bf16.msra.mxu1 %v3125_v8  ;;  %v3471_v54 = vor.u32 %v928_v46, %v924_v33  ;;  %v3475_v55 = vor.u32 %v935_v47, %v931_v35  ;;  %v3480_v57 = vor.u32 %v942_v49, %v938_v37  ;;  %v1029_v59 = vshrl.u32 %v3410_v29, 16 }
  0x1c   : > { %602 = vmatprep.subr.bf16.mxu0 %v3249_v1  ;;  %2537 = vmatprep.subr.bf16.mxu1 %v3249_v1  ;;  %v949_v58 = vrot.slane %v947_v51, 1  ;;  %v1031_v60 = vshll.u32 %v3410_v29, 16  ;;  %v956_v62 = vrot.slane %v954_v56, 1  ;;  %v1036_v63 = vshrl.u32 %v3428_v39, 16 }
  0x1d   : > { %v1038_v0 = vshll.u32 %v3428_v39, 16  ;;  %v1043_v2 = vshrl.u32 %v3432_v40, 16  ;;  %v1045_v6 = vshll.u32 %v3432_v40, 16  ;;  %v1050_v7 = vshrl.u32 %v3436_v41, 16 }
  0x1e   : > { %v3500_v4 = vor.u32 %v949_v58, %v945_v50  ;;  %v1033_v5 = vrot.slane %v1031_v60, 1  ;;  %v1059_v18 = vshll.u32 %v3440_v42, 16  ;;  %v1066_v46 = vshll.u32 %v3447_v44, 16 }
  0x1f   : > { %603 = vmatpush1.bf16.msra.mxu0 %v3126_v9  ;;  %2538 = vmatpush1.bf16.msra.mxu1 %v3127_v10  ;;  %v3515_v9 = vor.u32 %v956_v62, %v952_v52  ;;  %v1040_v10 = vrot.slane %v1038_v0, 1 }
  0x20   : > { %604 = vmatprep.subr.bf16.mxu0 %v3249_v1  ;;  %2539 = vmatprep.subr.bf16.mxu1 %v3249_v1  ;;  %v1061_v58 = vrot.slane %v1059_v18, 1 }
  0x23   : > { %605 = vmatpush1.bf16.msra.mxu0 %v3128_v11  ;;  %2540 = vmatpush1.bf16.msra.mxu1 %v3129_v12  ;;  %v1052_v11 = vshll.u32 %v3436_v41, 16  ;;  %v1057_v12 = vshrl.u32 %v3440_v42, 16 }
  0x24   : > { %606 = vmatprep.subr.bf16.mxu0 %v3249_v1  ;;  %2541 = vmatprep.subr.bf16.mxu1 %v3249_v1 }
  0x25   : > { %v1054_v45 = vrot.slane %v1052_v11, 1 }
  0x27   : > { %607 = vmatpush1.bf16.msra.mxu0 %v3130_v13  ;;  %2542 = vmatpush1.bf16.msra.mxu1 %v3131_v14  ;;  %v3523_v13 = vor.u32 %v1033_v5, %v1029_v59  ;;  %v1047_v14 = vrot.slane %v1045_v6, 1  ;;  %v1068_v5 = vrot.slane %v1066_v46, 1 }
  0x28   : > { %608 = vmatprep.subr.bf16.mxu0 %v3249_v1  ;;  %2543 = vmatprep.subr.bf16.mxu1 %v3249_v1 }
  0x29   : > { %v3549_v49 = vor.u32 %v1047_v14, %v1043_v2 }
  0x2b   : > { %609 = vmatpush1.bf16.msra.mxu0 %v3132_v23  ;;  %2544 = vmatpush1.bf16.msra.mxu1 %v3133_v30  ;;  %v1064_v23 = vshrl.u32 %v3447_v44, 16  ;;  %v3138_v30 = vld [vmem:[%s4905_s1 + $0x50] sm:$0xff]   ;;  %v1513_v62 = vsel %vm3508_vm3, %v3549_v49, %v3432_v40 }
  0x2c   : > { %610 = vmatprep.subr.bf16.mxu0 %v3249_v1  ;;  %2545 = vmatprep.subr.bf16.mxu1 %v3249_v1 }
  0x2d   : > { %v3591_v14 = vor.u32 %v1068_v5, %v1064_v23  ;;  %v1561_v5 = vrot.slane %v924_v33, 7  ;;  %v1569_v33 = vrot.slane %v952_v52, 7  ;;  %v1597_v52 = vrot.slane %v1050_v7, 7 }
  0x2f   : > { %611 = vmatpush1.bf16.msra.mxu0 %v3134_v43  ;;  %2546 = vmatpush1.bf16.msra.mxu1 %v3135_v48  ;;  %v3534_v43 = vor.u32 %v1040_v10, %v1036_v63  ;;  %v3139_v48 = vld [vmem:[%s4907_s3 + $0x50] sm:$0xff]   ;;  %v1559_v10 = vrot.slane %v917_v31, 7  ;;  %v1565_v31 = vrot.slane %v938_v37, 7 }
  0x30   : > { %612 = vmatprep.subr.bf16.mxu0 %v3249_v1  ;;  %2547 = vmatprep.subr.bf16.mxu1 %v3249_v1 }
  0x31   : > { %v1560_v47 = vor.u32 %v1559_v10, %v919_v32  ;;  %v1566_v37 = vor.u32 %v1565_v31, %v940_v38  ;;  %v1601_v10 = vrot.slane %v1064_v23, 7 }
  0x33   : > { %613 = vmatpush1.bf16.msra.mxu0 %v3136_v61  ;;  %2548 = vmatpush1.bf16.msra.mxu1 %v3137_v3  ;;  %v3564_v3 = vor.u32 %v1054_v45, %v1050_v7  ;;  %v3574_v61 = vor.u32 %v1061_v58, %v1057_v12  ;;  %v3140_v58 = vld [vmem:[%s4905_s1 + $0x58] sm:$0xff]  }
  0x34   : > { %614 = vmatprep.subr.bf16.mxu0 %v3249_v1  ;;  %2549 = vmatprep.subr.bf16.mxu1 %v3249_v1 }
  0x35   : > { %v1514_v45 = vsel %vm3508_vm3, %v3564_v3, %v3436_v41  ;;  %v1515_v49 = vsel %vm3508_vm3, %v3574_v61, %v3440_v42  ;;  %v1563_v3 = vrot.slane %v931_v35, 7  ;;  %v1567_v61 = vrot.slane %v945_v50, 7 }
  0x36   : > { %v1562_v35 = vor.u32 %v1561_v5, %v926_v34  ;;  %v1570_v50 = vor.u32 %v1569_v33, %v954_v56  ;;  %v1593_v34 = vrot.slane %v1036_v63, 7  ;;  %v2887_v63 = vcombine.low %v3362_v15, %v3365_v16 }
  0x37   : > { %615 = vmatpush1.bf16.msra.mxu0 %v3138_v30  ;;  %2550 = vmatpush1.bf16.msra.mxu1 %v3139_v48  ;;  %v3141_v30 = vld [vmem:[%s4907_s3 + $0x58] sm:$0xff]   ;;  %v1516_v48 = vsel %vm3508_vm3, %v3591_v14, %v3447_v44  ;;  %v1591_v14 = vrot.slane %v1029_v59, 7  ;;  %v1568_v32 = vor.u32 %v1567_v61, %v947_v51  ;;  %v1599_v59 = vrot.slane %v1057_v12, 7 }
  0x38   : > { %616 = vmatprep.subr.bf16.mxu0 %v3249_v1  ;;  %2551 = vmatprep.subr.bf16.mxu1 %v3249_v1  ;;  %v1564_v1 = vor.u32 %v1563_v3, %v933_v36  ;;  %v1595_v36 = vrot.slane %v1043_v2, 7  ;;  %v1594_v51 = vor.u32 %v1593_v34, %v1038_v0  ;;  %v3655_v2 = vld [vmem:[%s3351_s28 + $0x18] sm:$0xff]  ;;  %v1602_v12 = vor.u32 %v1601_v10, %v1066_v46 }
  0x39   : > { %v1592_v38 = vor.u32 %v1591_v14, %v1031_v60  ;;  %v1598_v60 = vor.u32 %v1597_v52, %v1052_v11  ;;  %v1600_v7 = vor.u32 %v1599_v59, %v1059_v18  ;;  %v2890_v0 = vcombine.high %v3368_v17, %v3655_v2 }
  0x3a   : > { %v1596_v56 = vor.u32 %v1595_v36, %v1045_v6  ;;  %v1754_v6 = vsel %vm3662_vm6, %v3374_v19, %v1560_v47  ;;  %v1755_v11 = vsel %vm3662_vm6, %v3378_v20, %v1562_v35  ;;  %v1756_v18 = vsel %vm3662_vm6, %v3382_v21, %v1564_v1 }
  0x3b   : > { %617 = vmatpush1.bf16.msra.mxu0 %v3140_v58  ;;  %2552 = vmatpush1.bf16.msra.mxu1 %v3141_v30  ;;  %v1757_v46 = vsel %vm3662_vm6, %v3392_v24, %v1566_v37  ;;  %v1758_v58 = vsel %vm3662_vm6, %v3402_v27, %v1568_v32  ;;  %v1759_v47 = vsel %vm3662_vm6, %v3406_v28, %v1570_v50 }
  0x3c   : > { %v1770_v30 = vsel %vm3662_vm6, %v3410_v29, %v1592_v38  ;;  %v1771_v5 = vsel %vm3662_vm6, %v3428_v39, %v1594_v51  ;;  %v1772_v3 = vsel %vm3662_vm6, %v3432_v40, %v1596_v56  ;;  %v1773_v31 = vsel %vm3662_vm6, %v3436_v41, %v1598_v60  ;;  %v3773_v51 = vld [vmem:[%s3351_s28 + $0x58] sm:$0xff] }
  0x3d   : > { %v1774_v61 = vsel %vm3662_vm6, %v3440_v42, %v1600_v7  ;;  %v1775_v33 = vsel %vm3662_vm6, %v3447_v44, %v1602_v12  ;;  %v4930_v35 = vsel %vm3508_vm3, %v3467_v53, %v3374_v19  ;;  %v4931_v40 = vsel %vm3508_vm3, %v3471_v54, %v3378_v20  ;;  %v3780_v7 = vld [vmem:[%s3351_s28 + $0x60] sm:$0xff] }
  0x3e   : > { %627 = vmatmul.mubr.bf16.vlgmr.msra.gmra.mrb[0].mxu0 %v2887_v63  ;;  %v1818_v1 = vmax.bf16 %v1754_v6, %v4930_v35  ;;  %v1819_v41 = vmax.bf16 %v1755_v11, %v4931_v40  ;;  %v4932_v42 = vsel %vm3508_vm3, %v3475_v55, %v3382_v21  ;;  %v4933_v44 = vsel %vm3508_vm3, %v3480_v57, %v3392_v24 }
  0x3f   : > { %2932 = vmatprep.mubr.msk.bf16.mxu0 %vm545_vm0, %v2890_v0  ;;  %v1820_v37 = vmax.bf16 %v1756_v18, %v4932_v42  ;;  %v1821_v14 = vmax.bf16 %v1757_v46, %v4933_v44  ;;  %v4934_v19 = vsel %vm3508_vm3, %v3500_v4, %v3402_v27  ;;  %v4935_v20 = vsel %vm3508_vm3, %v3515_v9, %v3406_v28 }
  0x40   : > { %v1822_v53 = vmax.bf16 %v1758_v58, %v4934_v19  ;;  %v1823_v54 = vmax.bf16 %v1759_v47, %v4935_v20  ;;  %v4936_v21 = vsel %vm3508_vm3, %v3523_v13, %v3410_v29  ;;  %v4937_v24 = vsel %vm3508_vm3, %v3534_v43, %v3428_v39 }
  0x41   : > { %v1834_v55 = vmax.bf16 %v1770_v30, %v4936_v21  ;;  %v1835_v57 = vmax.bf16 %v1771_v5, %v4937_v24  ;;  %v1836_v27 = vmax.bf16 %v1772_v3, %v1513_v62  ;;  %v1837_v4 = vmax.bf16 %v1773_v31, %v1514_v45 }
  0x42   : > { %v1838_v32 = vmax.bf16 %v1774_v61, %v1515_v49  ;;  %v1839_v50 = vmax.bf16 %v1775_v33, %v1516_v48  ;;  %v3011_v34 = vcombine.low %v1818_v1, %v1819_v41  ;;  %v3012_v28 = vcombine.low %v1820_v37, %v1821_v14  ;;  %v3762_v49 = vld [vmem:[%s3351_s28 + $0x20] sm:$0xff] }
  0x43   : > { %v3013_v9 = vcombine.low %v1822_v53, %v1823_v54  ;;  %v3019_v36 = vcombine.low %v1834_v55, %v1835_v57  ;;  %v3020_v38 = vcombine.low %v1836_v27, %v1837_v4  ;;  %v3747_v29 = vcombine.low %v3655_v2, %v3655_v2 }
  0x44   : > { %v3021_v52 = vcombine.low %v1838_v32, %v1839_v50  ;;  %v3751_v39 = vcombine.high %v3655_v2, %v3655_v2  ;;  %v2074_v13 = vmax.bf16 %v3011_v34, %v3362_v15  ;;  %v3755_v43 = vmax.bf16 %v3012_v28, %v3365_v16 }
  0x45   : > { %v3758_v62 = vmax.bf16 %v3013_v9, %v3368_v17  ;;  %v2082_v45 = vmax.bf16 %v3019_v36, %v3385_v22  ;;  %v3765_v48 = vmax.bf16 %v3020_v38, %v3395_v25  ;;  %v959_v10 = vshrl.u32 %v3747_v29, 16 }
  0x46   : > { %v3768_v59 = vmax.bf16 %v3021_v52, %v3398_v26  ;;  %v961_v15 = vshll.u32 %v3747_v29, 16  ;;  %v2106_v16 = vmax.bf16 %v3755_v43, %v2074_v13  ;;  %v966_v63 = vshrl.u32 %v3751_v39, 16 }
  0x47   : > { %v2107_v56 = vmax.bf16 %v3758_v62, %v2074_v13  ;;  %v968_v60 = vshll.u32 %v3751_v39, 16  ;;  %v2114_v12 = vmax.bf16 %v3765_v48, %v2082_v45  ;;  %v3786_v0 = vcombine.low %v3762_v49, %v3762_v49 }
  0x48   : > { %v2115_v26 = vmax.bf16 %v3768_v59, %v2082_v45  ;;  %v3790_v6 = vcombine.high %v3762_v49, %v3762_v49  ;;  %v3792_v11 = vmax.bf16 %v2106_v16, %v2074_v13  ;;  %v3799_v46 = vcombine.low %v3773_v51, %v3773_v51 }
  0x49   : > { %v3795_v18 = vmax.bf16 %v2107_v56, %v3755_v43  ;;  %v3803_v58 = vcombine.high %v3773_v51, %v3773_v51  ;;  %v3805_v47 = vmax.bf16 %v2114_v12, %v2082_v45  ;;  %v3812_v5 = vcombine.low %v3780_v7, %v3780_v7 }
  0x4a   : > { %v3808_v30 = vmax.bf16 %v2115_v26, %v3765_v48  ;;  %v3816_v3 = vcombine.high %v3780_v7, %v3780_v7  ;;  %v963_v31 = vrot.slane %v961_v15, 1  ;;  %v970_v61 = vrot.slane %v968_v60, 1 }
  0x4b   : > { %v973_v33 = vshrl.u32 %v3786_v0, 16  ;;  %v975_v35 = vshll.u32 %v3786_v0, 16  ;;  %v2170_v1 = vmax.bf16 %v3805_v47, %v3792_v11  ;;  %v980_v41 = vshrl.u32 %v3790_v6, 16 }
  0x4c   : > { %v2171_v40 = vmax.bf16 %v3808_v30, %v3795_v18  ;;  %v982_v42 = vshll.u32 %v3790_v6, 16  ;;  %v964_v37 = vor.u32 %v963_v31, %v959_v10  ;;  %v971_v44 = vor.u32 %v970_v61, %v966_v63 }
  0x4d   : > { %v977_v14 = vrot.slane %v975_v35, 1  ;;  %v1071_v19 = vshrl.u32 %v3799_v46, 16  ;;  %v2202_v53 = vmax.bf16 %v2170_v1, %v3792_v11  ;;  %v1073_v21 = vshll.u32 %v3799_v46, 16 }
  0x4e   : > { %v2203_v20 = vmax.bf16 %v2171_v40, %v3795_v18  ;;  %v984_v54 = vrot.slane %v982_v42, 1  ;;  %v1078_v24 = vshrl.u32 %v3803_v58, 16  ;;  %v1080_v57 = vshll.u32 %v3803_v58, 16 }
  0x4f   : > { %v978_v55 = vor.u32 %v977_v14, %v973_v33  ;;  %v1085_v27 = vshrl.u32 %v3812_v5, 16  ;;  %v1075_v34 = vrot.slane %v1073_v21, 1  ;;  %v1087_v9 = vshll.u32 %v3812_v5, 16 }
  0x50   : > { %v3045_v4 = vcombine.high %v2202_v53, %v2203_v20  ;;  %v3044_v32 = vcombine.low %v2202_v53, %v2203_v20  ;;  %v985_v50 = vor.u32 %v984_v54, %v980_v41  ;;  %v1082_v28 = vrot.slane %v1080_v57, 1 }
  0x51   : > { %v1092_v36 = vshrl.u32 %v3816_v3, 16  ;;  %v1094_v38 = vshll.u32 %v3816_v3, 16  ;;  %v1076_v52 = vor.u32 %v1075_v34, %v1071_v19  ;;  %v1501_v13 = vsel %vm3508_vm3, %v964_v37, %v3747_v29 }
  0x52   : > { %3088 = vmatprep.mubr.msk.bf16.mxu1 %vm545_vm0, %v3045_v4  ;;  %v1502_v45 = vsel %vm3508_vm3, %v971_v44, %v3751_v39  ;;  %v1503_v16 = vsel %vm3508_vm3, %v978_v55, %v3786_v0  ;;  %v1083_v56 = vor.u32 %v1082_v28, %v1078_v24  ;;  %v1089_v12 = vrot.slane %v1087_v9, 1 }
  0x53   : > { %2562 = vmatmul.mubr.bf16.vlgmr.msra.gmra.mrb[0].mxu1 %v3044_v32  ;;  %v1096_v26 = vrot.slane %v1094_v38, 1  ;;  %v1504_v31 = vsel %vm3508_vm3, %v985_v50, %v3790_v6  ;;  %v1517_v61 = vsel %vm3508_vm3, %v1076_v52, %v3799_v46  ;;  %v1571_v1 = vrot.slane %v959_v10, 7 }
  0x54   : > { %v1573_v40 = vrot.slane %v966_v63, 7  ;;  %v1575_v37 = vrot.slane %v973_v33, 7  ;;  %v1090_v44 = vor.u32 %v1089_v12, %v1085_v27  ;;  %v1518_v53 = vsel %vm3508_vm3, %v1083_v56, %v3803_v58 }
  0x55   : > { %v1097_v14 = vor.u32 %v1096_v26, %v1092_v36  ;;  %v1577_v20 = vrot.slane %v980_v41, 7  ;;  %v1572_v54 = vor.u32 %v1571_v1, %v961_v15  ;;  %v1603_v32 = vrot.slane %v1071_v19, 7 }
  0x56   : > { %v1574_v55 = vor.u32 %v1573_v40, %v968_v60  ;;  %v1576_v4 = vor.u32 %v1575_v37, %v975_v35  ;;  %v1519_v50 = vsel %vm3508_vm3, %v1090_v44, %v3812_v5  ;;  %v1605_v33 = vrot.slane %v1078_v24, 7 }
  0x57   : > { %v1520_v10 = vsel %vm3508_vm3, %v1097_v14, %v3816_v3  ;;  %v1578_v63 = vor.u32 %v1577_v20, %v982_v42  ;;  %v1604_v34 = vor.u32 %v1603_v32, %v1073_v21  ;;  %v1607_v28 = vrot.slane %v1085_v27, 7 }
  0x58   : > { %v1609_v41 = vrot.slane %v1092_v36, 7  ;;  %v1760_v15 = vsel %vm3662_vm6, %v3747_v29, %v1572_v54  ;;  %v1606_v60 = vor.u32 %v1605_v33, %v1080_v57  ;;  %v1761_v35 = vsel %vm3662_vm6, %v3751_v39, %v1574_v55 }
  0x59   : > { %v1762_v19 = vsel %vm3662_vm6, %v3786_v0, %v1576_v4  ;;  %v1763_v42 = vsel %vm3662_vm6, %v3790_v6, %v1578_v63  ;;  %v1608_v21 = vor.u32 %v1607_v28, %v1087_v9  ;;  %v1776_v29 = vsel %vm3662_vm6, %v3799_v46, %v1604_v34  ;;  %v3884_v0 = vld [vmem:[%s3351_s28 + $0x28] sm:$0xff]  ;;  %v3935_v4 = vld [vmem:[%s3351_s28 + $0x70] sm:$0xff] }
  0x5a   : > { %v1610_v24 = vor.u32 %v1609_v41, %v1094_v38  ;;  %v1824_v57 = vmax.bf16 %v1760_v15, %v1501_v13  ;;  %v1777_v39 = vsel %vm3662_vm6, %v3803_v58, %v1606_v60  ;;  %v1825_v27 = vmax.bf16 %v1761_v35, %v1502_v45  ;;  %v3893_v45 = vld [vmem:[%s3351_s28 + $0x30] sm:$0xff] }
  0x5b   : > { %v1826_v36 = vmax.bf16 %v1762_v19, %v1503_v16  ;;  %v1827_v52 = vmax.bf16 %v1763_v42, %v1504_v31  ;;  %v1778_v6 = vsel %vm3662_vm6, %v3812_v5, %v1608_v21  ;;  %v1840_v46 = vmax.bf16 %v1776_v29, %v1517_v61 }
  0x5c   : > { %v1779_v9 = vsel %vm3662_vm6, %v3816_v3, %v1610_v24  ;;  %v1841_v38 = vmax.bf16 %v1777_v39, %v1518_v53  ;;  %v1842_v13 = vmax.bf16 %v1778_v6, %v1519_v50  ;;  %v3014_v12 = vcombine.low %v1824_v57, %v1825_v27 }
  0x5d   : > { %v1843_v56 = vmax.bf16 %v1779_v9, %v1520_v10  ;;  %v3015_v58 = vcombine.low %v1826_v36, %v1827_v52  ;;  %v2889_v26 = vcombine.low %v3368_v17, %v3655_v2  ;;  %v2892_v5 = vcombine.high %v3762_v49, %v3884_v0  ;;  %v3914_v17 = vld [vmem:[%s3351_s28 + $0x68] sm:$0xff] }
  0x5e   : > { %v3022_v16 = vcombine.low %v1840_v46, %v1841_v38  ;;  %v3901_v31 = vcombine.low %v3884_v0, %v3884_v0  ;;  %v3904_v61 = vmax.bf16 %v3014_v12, %v3655_v2  ;;  %v3911_v40 = vcombine.high %v3884_v0, %v3884_v0 }
  0x5f   : > { %v3023_v3 = vcombine.low %v1842_v13, %v1843_v56  ;;  %v3907_v1 = vmax.bf16 %v3015_v58, %v3762_v49  ;;  %635 = vmatmul.mubr.bf16.gmra.mrb[4].mxu0 %v2889_v26  ;;  %v3923_v2 = vcombine.low %v3893_v45, %v3893_v45  ;;  %v3942_v10 = vcombine.high %v3893_v45, %v3893_v45 }
  0x60   : > { %v3917_v37 = vmax.bf16 %v3022_v16, %v3773_v51  ;;  %v987_v44 = vshrl.u32 %v3901_v31, 16  ;;  %v4911_v14 = vshll.u32 %v3901_v31, 16  ;;  %v2108_v20 = vmax.bf16 %v3904_v61, %v3755_v43  ;;  %2933 = vmatprep.mubr.msk.bf16.mxu0 %vm545_vm0, %v2892_v5 }
  0x61   : > { %v3926_v53 = vmax.bf16 %v3023_v3, %v3780_v7  ;;  %v2109_v54 = vmax.bf16 %v3907_v1, %v3758_v62  ;;  %v994_v55 = vshrl.u32 %v3911_v40, 16  ;;  %v996_v50 = vshll.u32 %v3911_v40, 16 }
  0x62   : > { %v2116_v32 = vmax.bf16 %v3917_v37, %v3765_v48  ;;  %v3946_v43 = vcombine.low %v3914_v17, %v3914_v17  ;;  %v3951_v33 = vmax.bf16 %v2108_v20, %v3758_v62  ;;  %v3958_v48 = vcombine.high %v3914_v17, %v3914_v17 }
  0x63   : > { %v2117_v63 = vmax.bf16 %v3926_v53, %v3768_v59  ;;  %v3954_v34 = vmax.bf16 %v2109_v54, %v3904_v61  ;;  %v3965_v41 = vcombine.low %v3935_v4, %v3935_v4  ;;  %v3969_v15 = vcombine.high %v3935_v4, %v3935_v4 }
  0x64   : > { %v3961_v28 = vmax.bf16 %v2116_v32, %v3768_v59  ;;  %v991_v62 = vrot.slane %v4911_v14, 1  ;;  %v998_v35 = vrot.slane %v996_v50, 1  ;;  %v1001_v19 = vshrl.u32 %v3923_v2, 16 }
  0x65   : > { %4938 = vst [vmem:[#allocation2_spill] sm:$0xff] %v3954_v34  ;;  %v3974_v60 = vmax.bf16 %v2117_v63, %v3917_v37  ;;  %v1003_v59 = vshll.u32 %v3923_v2, 16  ;;  %v1008_v24 = vshrl.u32 %v3942_v10, 16  ;;  %v1010_v29 = vshll.u32 %v3942_v10, 16 }
  0x66   : > { %4939 = vst [vmem:[#allocation3_spill] sm:$0xff] %v3961_v28  ;;  %v2172_v42 = vmax.bf16 %v3961_v28, %v3951_v33  ;;  %v992_v21 = vor.u32 %v991_v62, %v987_v44  ;;  %v999_v39 = vor.u32 %v998_v35, %v994_v55  ;;  %v1099_v36 = vshrl.u32 %v3946_v43, 16 }
  0x67   : > { %4940 = vst [vmem:[#allocation4_spill] sm:$0xff] %v3974_v60  ;;  %v2173_v57 = vmax.bf16 %v3974_v60, %v3954_v34  ;;  %v1005_v27 = vrot.slane %v1003_v59, 1  ;;  %v1012_v6 = vrot.slane %v1010_v29, 1  ;;  %v1101_v9 = vshll.u32 %v3946_v43, 16 }
  0x68   : > { %v2204_v52 = vmax.bf16 %v2172_v42, %v3951_v33  ;;  %v1106_v46 = vshrl.u32 %v3958_v48, 16  ;;  %v1108_v56 = vshll.u32 %v3958_v48, 16  ;;  %v1113_v12 = vshrl.u32 %v3965_v41, 16 }
  0x69   : > { %v2205_v38 = vmax.bf16 %v2173_v57, %v3954_v34  ;;  %v1006_v13 = vor.u32 %v1005_v27, %v1001_v19  ;;  %v1013_v58 = vor.u32 %v1012_v6, %v1008_v24  ;;  %v1103_v16 = vrot.slane %v1101_v9, 1 }
  0x6a   : > { %v1115_v26 = vshll.u32 %v3965_v41, 16  ;;  %v1120_v5 = vshrl.u32 %v3969_v15, 16  ;;  %v1110_v54 = vrot.slane %v1108_v56, 1  ;;  %v1122_v32 = vshll.u32 %v3969_v15, 16 }
  0x6b   : > { %v3047_v3 = vcombine.high %v2204_v52, %v2205_v38  ;;  %v3046_v20 = vcombine.low %v2204_v52, %v2205_v38  ;;  %v1104_v63 = vor.u32 %v1103_v16, %v1099_v36  ;;  %v1505_v35 = vsel %vm3508_vm3, %v992_v21, %v3901_v31 }
  0x6c   : > { %v1117_v62 = vrot.slane %v1115_v26, 1  ;;  %v1506_v42 = vsel %vm3508_vm3, %v999_v39, %v3911_v40  ;;  %v1111_v57 = vor.u32 %v1110_v54, %v1106_v46  ;;  %v1124_v27 = vrot.slane %v1122_v32, 1 }
  0x6d   : > { %3089 = vmatprep.mubr.msk.bf16.mxu1 %vm545_vm0, %v3047_v3  ;;  %v1507_v52 = vsel %vm3508_vm3, %v1006_v13, %v3923_v2  ;;  %v1508_v6 = vsel %vm3508_vm3, %v1013_v58, %v3942_v10  ;;  %v1521_v21 = vsel %vm3508_vm3, %v1104_v63, %v3946_v43  ;;  %v1579_v16 = vrot.slane %v987_v44, 7 }
  0x6e   : > { %2570 = vmatmul.mubr.bf16.gmra.mrb[4].mxu1 %v3046_v20  ;;  %v1118_v38 = vor.u32 %v1117_v62, %v1113_v12  ;;  %v1581_v39 = vrot.slane %v994_v55, 7  ;;  %v1125_v14 = vor.u32 %v1124_v27, %v1120_v5  ;;  %v1522_v3 = vsel %vm3508_vm3, %v1111_v57, %v3958_v48 }
  0x6f   : > { %v1583_v54 = vrot.slane %v1001_v19, 7  ;;  %v1585_v60 = vrot.slane %v1008_v24, 7  ;;  %v4941_v58 = vshll.u32 %v3901_v31, 16  ;;  %v1611_v34 = vrot.slane %v1099_v36, 7 }
  0x70   : > { %v1523_v13 = vsel %vm3508_vm3, %v1118_v38, %v3965_v41  ;;  %v1582_v62 = vor.u32 %v1581_v39, %v996_v50  ;;  %v1524_v44 = vsel %vm3508_vm3, %v1125_v14, %v3969_v15  ;;  %v1613_v27 = vrot.slane %v1106_v46, 7 }
  0x71   : > { %v1580_v20 = vor.u32 %v1579_v16, %v4941_v58  ;;  %v1584_v55 = vor.u32 %v1583_v54, %v1003_v59  ;;  %v1586_v63 = vor.u32 %v1585_v60, %v1010_v29  ;;  %v1612_v28 = vor.u32 %v1611_v34, %v1101_v9 }
  0x72   : > { %v1615_v19 = vrot.slane %v1113_v12, 7  ;;  %v1617_v24 = vrot.slane %v1120_v5, 7  ;;  %v1614_v38 = vor.u32 %v1613_v27, %v1108_v56  ;;  %v1765_v50 = vsel %vm3662_vm6, %v3911_v40, %v1582_v62 }
  0x73   : > { %v1764_v57 = vsel %vm3662_vm6, %v3901_v31, %v1580_v20  ;;  %v1766_v14 = vsel %vm3662_vm6, %v3923_v2, %v1584_v55  ;;  %v1767_v34 = vsel %vm3662_vm6, %v3942_v10, %v1586_v63  ;;  %v1780_v31 = vsel %vm3662_vm6, %v3946_v43, %v1612_v28  ;;  %v4040_v2 = vld [vmem:[%s3351_s28 + $0x38] sm:$0xff] }
  0x74   : > { %v1616_v60 = vor.u32 %v1615_v19, %v1115_v26  ;;  %v1618_v59 = vor.u32 %v1617_v24, %v1122_v32  ;;  %v1828_v29 = vmax.bf16 %v1764_v57, %v1505_v35  ;;  %v1781_v40 = vsel %vm3662_vm6, %v3958_v48, %v1614_v38  ;;  %v4049_v48 = vld [vmem:[%s3351_s28 + $0x78] sm:$0xff] }
  0x75   : > { %v1829_v36 = vmax.bf16 %v1765_v50, %v1506_v42  ;;  %v1830_v9 = vmax.bf16 %v1766_v14, %v1507_v52  ;;  %v1831_v46 = vmax.bf16 %v1767_v34, %v1508_v6  ;;  %v1844_v12 = vmax.bf16 %v1780_v31, %v1521_v21 }
  0x76   : > { %v1782_v10 = vsel %vm3662_vm6, %v3965_v41, %v1616_v60  ;;  %v1783_v56 = vsel %vm3662_vm6, %v3969_v15, %v1618_v59  ;;  %v1845_v43 = vmax.bf16 %v1781_v40, %v1522_v3  ;;  %v2891_v42 = vcombine.low %v3762_v49, %v3884_v0 }
  0x77   : > { %v1846_v28 = vmax.bf16 %v1782_v10, %v1523_v13  ;;  %v1847_v26 = vmax.bf16 %v1783_v56, %v1524_v44  ;;  %v3016_v5 = vcombine.low %v1828_v29, %v1829_v36  ;;  %v3017_v32 = vcombine.low %v1830_v9, %v1831_v46 }
  0x78   : > { %v3024_v35 = vcombine.low %v1844_v12, %v1845_v43  ;;  %v2894_v52 = vcombine.high %v3893_v45, %v4040_v2  ;;  %v2961_v41 = vcombine.low %v4040_v2, %v4040_v2  ;;  %v2962_v16 = vcombine.high %v4040_v2, %v4040_v2  ;;  %643 = vmatmul.mubr.bf16.gmra.mrb[8].mxu0 %v2891_v42 }
  0x79   : > { %v3025_v6 = vcombine.low %v1846_v28, %v1847_v26  ;;  %v4058_v15 = vmax.bf16 %v3016_v5, %v3884_v0  ;;  %v4061_v21 = vmax.bf16 %v3017_v32, %v3893_v45  ;;  %v2977_v54 = vcombine.low %v4049_v48, %v4049_v48 }
  0x7a   : > { %v4066_v39 = vmax.bf16 %v3024_v35, %v3914_v17  ;;  %v1015_v49 = vshrl.u32 %v2961_v41, 16  ;;  %v1017_v3 = vshll.u32 %v2961_v41, 16  ;;  %2934 = vmatprep.mubr.msk.bf16.mxu0 %vm545_vm0, %v2894_v52  ;;  %v1022_v20 = vshrl.u32 %v2962_v16, 16 }
  0x7b   : > { %v4071_v13 = vmax.bf16 %v3025_v6, %v3935_v4  ;;  %v2110_v0 = vmax.bf16 %v4058_v15, %v3904_v61  ;;  %v2111_v58 = vmax.bf16 %v4061_v21, %v3907_v1  ;;  %v1024_v44 = vshll.u32 %v2962_v16, 16 }
  0x7c   : > { %v2118_v62 = vmax.bf16 %v4066_v39, %v3917_v37  ;;  %v2978_v55 = vcombine.high %v4049_v48, %v4049_v48  ;;  %v1019_v63 = vrot.slane %v1017_v3, 1  ;;  %v1127_v24 = vshrl.u32 %v2977_v54, 16 }
  0x7d   : > { %v2119_v27 = vmax.bf16 %v4071_v13, %v3926_v53  ;;  %v4085_v19 = vmax.bf16 %v2110_v0, %v3907_v1  ;;  %v4088_v61 = vmax.bf16 %v2111_v58, %v4058_v15  ;;  %v1026_v37 = vrot.slane %v1024_v44, 1 }
  0x7e   : > { %v4091_v57 = vmax.bf16 %v2118_v62, %v3926_v53  ;;  %v1020_v38 = vor.u32 %v1019_v63, %v1015_v49  ;;  %v1129_v50 = vshll.u32 %v2977_v54, 16  ;;  %v1134_v34 = vshrl.u32 %v2978_v55, 16  ;;  %v4118_v62 = vld [vmem:[%s3351_s28 + $0x88] sm:$0xff] }
  0x7f   : > { %v4094_v14 = vmax.bf16 %v2119_v27, %v4066_v39  ;;  %v1136_v60 = vshll.u32 %v2978_v55, 16  ;;  %v1587_v59 = vrot.slane %v1015_v49, 7  ;;  %v1027_v31 = vor.u32 %v1026_v37, %v1022_v20  ;;  %v4113_v49 = vld [vmem:[%s3351_s28 + $0x80] sm:$0xff]  ;;  %v4127_v27 = vld [vmem:[%s3351_s28 + $0x90] sm:$0xff] }
  0x80   : > { %v2174_v1 = vmax.bf16 %v4091_v57, %v4085_v19  ;;  %v1131_v29 = vrot.slane %v1129_v50, 1  ;;  %v1509_v40 = vsel %vm3508_vm3, %v1020_v38, %v2961_v41  ;;  %v1589_v46 = vrot.slane %v1022_v20, 7 }
  0x81   : > { %4942 = vst [vmem:[#allocation5_spill] sm:$0xff] %v4094_v14  ;;  %v2175_v53 = vmax.bf16 %v4094_v14, %v4088_v61  ;;  %v1138_v36 = vrot.slane %v1136_v60, 1  ;;  %v1588_v9 = vor.u32 %v1587_v59, %v1017_v3  ;;  %v1510_v12 = vsel %vm3508_vm3, %v1027_v31, %v2962_v16 }
  0x82   : > { %v2206_v10 = vmax.bf16 %v2174_v1, %v4085_v19  ;;  %v1132_v56 = vor.u32 %v1131_v29, %v1127_v24  ;;  %v1619_v43 = vrot.slane %v1127_v24, 7  ;;  %v1590_v5 = vor.u32 %v1589_v46, %v1024_v44 }
  0x83   : > { %v2207_v28 = vmax.bf16 %v2175_v53, %v4088_v61  ;;  %v1139_v26 = vor.u32 %v1138_v36, %v1134_v34  ;;  %v1621_v32 = vrot.slane %v1134_v34, 7  ;;  %v1768_v52 = vsel %vm3662_vm6, %v2961_v41, %v1588_v9 }
  0x84   : > { %v1525_v35 = vsel %vm3508_vm3, %v1132_v56, %v2977_v54  ;;  %v1620_v42 = vor.u32 %v1619_v43, %v1129_v50  ;;  %v2893_v6 = vcombine.low %v3893_v45, %v4040_v2  ;;  %v1769_v44 = vsel %vm3662_vm6, %v2962_v16, %v1590_v5 }
  0x85   : > { %v3049_v3 = vcombine.high %v2206_v10, %v2207_v28  ;;  %v3048_v0 = vcombine.low %v2206_v10, %v2207_v28  ;;  %v1526_v58 = vsel %vm3508_vm3, %v1139_v26, %v2978_v55  ;;  %v1622_v20 = vor.u32 %v1621_v32, %v1136_v60 }
  0x86   : > { %v1784_v63 = vsel %vm3662_vm6, %v2977_v54, %v1620_v42  ;;  %v1832_v41 = vmax.bf16 %v1768_v52, %v1509_v40  ;;  %651 = vmatmul.mubr.bf16.gmra.mrb[12].mxu0 %v2893_v6  ;;  %v2896_v45 = vcombine.high %v3385_v22, %v3395_v25  ;;  %v1833_v38 = vmax.bf16 %v1769_v44, %v1510_v12 }
  0x87   : > { %3090 = vmatprep.mubr.msk.bf16.mxu1 %vm545_vm0, %v3049_v3  ;;  %v1785_v24 = vsel %vm3662_vm6, %v2978_v55, %v1622_v20  ;;  %v1848_v37 = vmax.bf16 %v1784_v63, %v1525_v35  ;;  %v4134_v16 = vcombine.low %v4113_v49, %v4113_v49  ;;  %v4139_v22 = vcombine.high %v4113_v49, %v4113_v49 }
  0x88   : > { %2578 = vmatmul.mubr.bf16.gmra.mrb[8].mxu1 %v3048_v0  ;;  %v1849_v54 = vmax.bf16 %v1785_v24, %v1526_v58  ;;  %2935 = vmatprep.mubr.msk.bf16.mxu0 %vm545_vm0, %v2896_v45  ;;  %v4143_v25 = vcombine.low %v4118_v62, %v4118_v62  ;;  %v3018_v50 = vcombine.low %v1832_v41, %v1833_v38 }
  0x89   : > { %v4147_v55 = vcombine.high %v4118_v62, %v4118_v62  ;;  %v4151_v34 = vcombine.low %v4127_v27, %v4127_v27  ;;  %v4155_v60 = vcombine.high %v4127_v27, %v4127_v27  ;;  %v1141_v1 = vshrl.u32 %v4134_v16, 16 }
  0x8a   : > { %v3026_v59 = vcombine.low %v1848_v37, %v1849_v54  ;;  %v1143_v31 = vshll.u32 %v4134_v16, 16  ;;  %v1148_v29 = vshrl.u32 %v4139_v22, 16  ;;  %v2081_v40 = vmax.bf16 %v3018_v50, %v4040_v2 }
  0x8b   : > { %v1150_v53 = vshll.u32 %v4139_v22, 16  ;;  %v1155_v36 = vshrl.u32 %v4143_v25, 16  ;;  %v1157_v9 = vshll.u32 %v4143_v25, 16  ;;  %v1162_v56 = vshrl.u32 %v4147_v55, 16 }
  0x8c   : > { %v2089_v46 = vmax.bf16 %v3026_v59, %v4049_v48  ;;  %v1145_v10 = vrot.slane %v1143_v31, 1  ;;  %v1164_v12 = vshll.u32 %v4147_v55, 16  ;;  %v2112_v43 = vmax.bf16 %v2081_v40, %v4058_v15 }
  0x8d   : > { %v2113_v28 = vmax.bf16 %v2081_v40, %v4061_v21  ;;  %v1152_v26 = vrot.slane %v1150_v53, 1  ;;  %v1159_v5 = vrot.slane %v1157_v9, 1  ;;  %v1169_v44 = vshrl.u32 %v4151_v34, 16 }
  0x8e   : > { %v2120_v2 = vmax.bf16 %v2089_v46, %v4066_v39  ;;  %v2121_v32 = vmax.bf16 %v2089_v46, %v4071_v13  ;;  %v1146_v35 = vor.u32 %v1145_v10, %v1141_v1  ;;  %v1166_v42 = vrot.slane %v1164_v12, 1 }
  0x8f   : > { %v4172_v52 = vmax.bf16 %v2112_v43, %v4061_v21  ;;  %v4174_v6 = vmax.bf16 %v2113_v28, %v2081_v40  ;;  %v1153_v3 = vor.u32 %v1152_v26, %v1148_v29  ;;  %v1160_v0 = vor.u32 %v1159_v5, %v1155_v36 }
  0x90   : > { %v4177_v58 = vmax.bf16 %v2120_v2, %v4071_v13  ;;  %v4179_v15 = vmax.bf16 %v2121_v32, %v2089_v46  ;;  %v1167_v20 = vor.u32 %v1166_v42, %v1162_v56  ;;  %v1171_v39 = vshll.u32 %v4151_v34, 16 }
  0x91   : > { %v1176_v63 = vshrl.u32 %v4155_v60, 16  ;;  %v1178_v41 = vshll.u32 %v4155_v60, 16  ;;  %v1527_v21 = vsel %vm3508_vm3, %v1146_v35, %v4134_v16  ;;  %v1528_v24 = vsel %vm3508_vm3, %v1153_v3, %v4139_v22 }
  0x92   : > { %v2176_v45 = vmax.bf16 %v4177_v58, %v4172_v52  ;;  %v2177_v13 = vmax.bf16 %v4179_v15, %v4174_v6  ;;  %v1529_v38 = vsel %vm3508_vm3, %v1160_v0, %v4143_v25  ;;  %v1173_v37 = vrot.slane %v1171_v39, 1 }
  0x93   : > { %v1180_v54 = vrot.slane %v1178_v41, 1  ;;  %v1530_v50 = vsel %vm3508_vm3, %v1167_v20, %v4147_v55  ;;  %v1623_v59 = vrot.slane %v1141_v1, 7  ;;  %v1625_v10 = vrot.slane %v1148_v29, 7 }
  0x94   : > { %v2208_v40 = vmax.bf16 %v2176_v45, %v4172_v52  ;;  %v2209_v46 = vmax.bf16 %v2177_v13, %v4174_v6  ;;  %v1627_v43 = vrot.slane %v1155_v36, 7  ;;  %v1174_v28 = vor.u32 %v1173_v37, %v1169_v44 }
  0x95   : > { %v1181_v26 = vor.u32 %v1180_v54, %v1176_v63  ;;  %v1624_v5 = vor.u32 %v1623_v59, %v1143_v31  ;;  %v1629_v2 = vrot.slane %v1162_v56, 7  ;;  %v1626_v42 = vor.u32 %v1625_v10, %v1150_v53  ;;  %v4220_v56 = vld [vmem:[%s3351_s28 + $0x98] sm:$0xff]  ;;  %v3238_v54 = vld [vmem:[%s3351_s28 + $0x40] sm:$0xff] }
  0x96   : > { %v3051_v32 = vcombine.high %v2208_v40, %v2209_v46  ;;  %v3050_v35 = vcombine.low %v2208_v40, %v2209_v46  ;;  %v1628_v3 = vor.u32 %v1627_v43, %v1157_v9  ;;  %v1531_v0 = vsel %vm3508_vm3, %v1174_v28, %v4151_v34  ;;  %v4228_v40 = vld [vmem:[%s3351_s28 + $0xa0] sm:$0xff] }
  0x97   : > { %v1532_v1 = vsel %vm3508_vm3, %v1181_v26, %v4155_v60  ;;  %v1630_v20 = vor.u32 %v1629_v2, %v1164_v12  ;;  %v1631_v29 = vrot.slane %v1169_v44, 7  ;;  %v1633_v31 = vrot.slane %v1176_v63, 7 }
  0x98   : > { %3091 = vmatprep.mubr.msk.bf16.mxu1 %vm545_vm0, %v3051_v32  ;;  %v1786_v53 = vsel %vm3662_vm6, %v4134_v16, %v1624_v5  ;;  %v1787_v36 = vsel %vm3662_vm6, %v4139_v22, %v1626_v42  ;;  %v1788_v9 = vsel %vm3662_vm6, %v4143_v25, %v1628_v3  ;;  %v3239_v22 = vld [vmem:[%s3351_s28 + $0x48] sm:$0xff]  ;;  %v2987_v43 = vcombine.low %v4228_v40, %v4228_v40 }
  0x99   : > { %2586 = vmatmul.mubr.bf16.gmra.mrb[12].mxu1 %v3050_v35  ;;  %v1632_v12 = vor.u32 %v1631_v29, %v1171_v39  ;;  %v1789_v44 = vsel %vm3662_vm6, %v4147_v55, %v1630_v20  ;;  %v1850_v63 = vmax.bf16 %v1786_v53, %v1527_v21  ;;  %v1851_v45 = vmax.bf16 %v1787_v36, %v1528_v24  ;;  %v4234_v39 = vld [vmem:[%s3351_s28 + $0x50] sm:$0xff] }
  0x9a   : > { %v1634_v16 = vor.u32 %v1633_v31, %v1178_v41  ;;  %v1852_v13 = vmax.bf16 %v1788_v9, %v1529_v38  ;;  %v1853_v37 = vmax.bf16 %v1789_v44, %v1530_v50  ;;  %v2895_v59 = vcombine.low %v3238_v54, %v3239_v22 }
  0x9b   : > { %v1790_v25 = vsel %vm3662_vm6, %v4151_v34, %v1632_v12  ;;  %v3027_v46 = vcombine.low %v1850_v63, %v1851_v45  ;;  %v2898_v55 = vcombine.high %v4234_v39, %v3773_v51  ;;  %v2985_v41 = vcombine.low %v4220_v56, %v4220_v56 }
  0x9c   : > { %v1791_v21 = vsel %vm3662_vm6, %v4155_v60, %v1634_v16  ;;  %v1854_v24 = vmax.bf16 %v1790_v25, %v1531_v0  ;;  %v3028_v38 = vcombine.low %v1852_v13, %v1853_v37  ;;  %659 = vmatmul.mubr.bf16.gmra.mrb[16].mxu0 %v2895_v59  ;;  %v2986_v50 = vcombine.high %v4220_v56, %v4220_v56 }
  0x9d   : > { %v1855_v34 = vmax.bf16 %v1791_v21, %v1532_v1  ;;  %v2090_v10 = vmax.bf16 %v3027_v46, %v4113_v49  ;;  %2936 = vmatprep.mubr.msk.bf16.mxu0 %vm545_vm0, %v2898_v55  ;;  %v2988_v28 = vcombine.high %v4228_v40, %v4228_v40  ;;  %v1183_v60 = vshrl.u32 %v2985_v41, 16 }
  0x9e   : > { %v4252_v26 = vmax.bf16 %v3028_v38, %v4118_v62  ;;  %v1185_v5 = vshll.u32 %v2985_v41, 16  ;;  %v1190_v2 = vshrl.u32 %v2986_v50, 16  ;;  %v1192_v35 = vshll.u32 %v2986_v50, 16 }
  0x9f   : > { %v3029_v32 = vcombine.low %v1854_v24, %v1855_v34  ;;  %v1197_v42 = vshrl.u32 %v2987_v43, 16  ;;  %v1199_v3 = vshll.u32 %v2987_v43, 16  ;;  %v1204_v20 = vshrl.u32 %v2988_v28, 16 }
  0xa0   : > { %v2122_v0 = vmax.bf16 %v4252_v26, %v2090_v10  ;;  %v1187_v1 = vrot.slane %v1185_v5, 1  ;;  %v1206_v29 = vshll.u32 %v2988_v28, 16  ;;  %v1194_v53 = vrot.slane %v1192_v35, 1 }
  0xa1   : > { %v4256_v31 = vmax.bf16 %v3029_v32, %v4127_v27  ;;  %v1201_v36 = vrot.slane %v1199_v3, 1  ;;  %v1635_v9 = vrot.slane %v1183_v60, 7  ;;  %v1637_v45 = vrot.slane %v1190_v2, 7 }
  0xa2   : > { %v4258_v12 = vmax.bf16 %v2122_v0, %v2090_v10  ;;  %v1188_v44 = vor.u32 %v1187_v1, %v1183_v60  ;;  %v1208_v63 = vrot.slane %v1206_v29, 1  ;;  %v1195_v13 = vor.u32 %v1194_v53, %v1190_v2 }
  0xa3   : > { %v2123_v16 = vmax.bf16 %v4256_v31, %v2090_v10  ;;  %v1202_v37 = vor.u32 %v1201_v36, %v1197_v42  ;;  %v1636_v54 = vor.u32 %v1635_v9, %v1185_v5  ;;  %v1638_v46 = vor.u32 %v1637_v45, %v1192_v35  ;;  %v4278_v5 = vld [vmem:[%s3351_s28 + $0xa8] sm:$0xff] }
  0xa4   : > { %v2178_v22 = vmax.bf16 %v4258_v12, %v3792_v11  ;;  %v1209_v59 = vor.u32 %v1208_v63, %v1204_v20  ;;  %v1533_v25 = vsel %vm3508_vm3, %v1188_v44, %v2985_v41  ;;  %v1534_v21 = vsel %vm3508_vm3, %v1195_v13, %v2986_v50 }
  0xa5   : > { %v4266_v55 = vmax.bf16 %v2123_v16, %v4252_v26  ;;  %v1535_v24 = vsel %vm3508_vm3, %v1202_v37, %v2987_v43  ;;  %v1639_v38 = vrot.slane %v1197_v42, 7  ;;  %v1641_v10 = vrot.slane %v1204_v20, 7  ;;  %v4285_v42 = vld [vmem:[%s3351_s28 + $0xb0] sm:$0xff] }
  0xa6   : > { %v2210_v34 = vmax.bf16 %v2178_v22, %v3805_v47  ;;  %v1536_v11 = vsel %vm3508_vm3, %v1209_v59, %v2988_v28  ;;  %v1792_v60 = vsel %vm3662_vm6, %v2985_v41, %v1636_v54  ;;  %v1793_v35 = vsel %vm3662_vm6, %v2986_v50, %v1638_v46 }
  0xa7   : > { %v2179_v2 = vmax.bf16 %v4266_v55, %v3795_v18  ;;  %v1640_v32 = vor.u32 %v1639_v38, %v1199_v3  ;;  %v1856_v0 = vmax.bf16 %v1792_v60, %v1533_v25  ;;  %v1642_v1 = vor.u32 %v1641_v10, %v1206_v29 }
  0xa8   : > { %v1857_v53 = vmax.bf16 %v1793_v35, %v1534_v21  ;;  %v2897_v20 = vcombine.low %v4234_v39, %v3773_v51  ;;  %v2900_v41 = vcombine.high %v3780_v7, %v3914_v17  ;;  %v2989_v3 = vcombine.low %v4278_v5, %v4278_v5 }
  0xa9   : > { %v2211_v36 = vmax.bf16 %v2179_v2, %v3808_v30  ;;  %v1794_v18 = vsel %vm3662_vm6, %v2987_v43, %v1640_v32  ;;  %v2990_v50 = vcombine.high %v4278_v5, %v4278_v5  ;;  %v1795_v29 = vsel %vm3662_vm6, %v2988_v28, %v1642_v1 }
  0xaa   : > { %v1858_v9 = vmax.bf16 %v1794_v18, %v1535_v24  ;;  %v3030_v44 = vcombine.low %v1856_v0, %v1857_v53  ;;  %667 = vmatmul.mubr.bf16.gmra.mrb[20].mxu0 %v2897_v20  ;;  %v2991_v51 = vcombine.low %v4285_v42, %v4285_v42  ;;  %v1859_v45 = vmax.bf16 %v1795_v29, %v1536_v11 }
  0xab   : > { %v3053_v39 = vcombine.high %v2210_v34, %v2211_v36  ;;  %v3052_v63 = vcombine.low %v2210_v34, %v2211_v36  ;;  %2937 = vmatprep.mubr.msk.bf16.mxu0 %vm545_vm0, %v2900_v41  ;;  %v2992_v43 = vcombine.high %v4285_v42, %v4285_v42  ;;  %v1211_v13 = vshrl.u32 %v2989_v3, 16 }
  0xac   : > { %v4306_v16 = vmax.bf16 %v3030_v44, %v4220_v56  ;;  %v1213_v37 = vshll.u32 %v2989_v3, 16  ;;  %v1218_v28 = vshrl.u32 %v2990_v50, 16  ;;  %v3031_v54 = vcombine.low %v1858_v9, %v1859_v45 }
  0xad   : > { %3092 = vmatprep.mubr.msk.bf16.mxu1 %vm545_vm0, %v3053_v39  ;;  %v1220_v22 = vshll.u32 %v2990_v50, 16  ;;  %v1225_v59 = vshrl.u32 %v2991_v51, 16  ;;  %v1227_v25 = vshll.u32 %v2991_v51, 16  ;;  %v1232_v24 = vshrl.u32 %v2992_v43, 16 }
  0xae   : > { %2594 = vmatmul.mubr.bf16.gmra.mrb[16].mxu1 %v3052_v63  ;;  %v2124_v46 = vmax.bf16 %v4306_v16, %v4252_v26  ;;  %v1215_v21 = vrot.slane %v1213_v37, 1  ;;  %v1234_v38 = vshll.u32 %v2992_v43, 16  ;;  %v4312_v34 = vmax.bf16 %v3031_v54, %v4228_v40  ;;  %v4943_v63 = vld [vmem:[#allocation3_spill] sm:$0xff]  ;;  %v4944_v54 = vld [vmem:[#allocation2_spill] sm:$0xff] }
  0xaf   : > { %v1222_v11 = vrot.slane %v1220_v22, 1  ;;  %v1229_v10 = vrot.slane %v1227_v25, 1  ;;  %v1643_v60 = vrot.slane %v1211_v13, 7  ;;  %v1645_v0 = vrot.slane %v1218_v28, 7 }
  0xb0   : > { %v4315_v2 = vmax.bf16 %v2124_v46, %v4256_v31  ;;  %v1216_v32 = vor.u32 %v1215_v21, %v1211_v13  ;;  %v1236_v35 = vrot.slane %v1234_v38, 1  ;;  %v2125_v1 = vmax.bf16 %v4312_v34, %v4256_v31 }
  0xb1   : > { %v1223_v26 = vor.u32 %v1222_v11, %v1218_v28  ;;  %v1230_v53 = vor.u32 %v1229_v10, %v1225_v59  ;;  %v1644_v20 = vor.u32 %v1643_v60, %v1213_v37  ;;  %v1646_v29 = vor.u32 %v1645_v0, %v1220_v22  ;;  %v4336_v28 = vld [vmem:[%s3351_s28 + $0xb8] sm:$0xff] }
  0xb2   : > { %v2180_v41 = vmax.bf16 %v4315_v2, %v3951_v33  ;;  %v1237_v36 = vor.u32 %v1236_v35, %v1232_v24  ;;  %v1537_v18 = vsel %vm3508_vm3, %v1216_v32, %v2989_v3  ;;  %v4324_v9 = vmax.bf16 %v2125_v1, %v4306_v16  ;;  %v4358_v1 = vld [vmem:[%s3351_s28 + $0xc0] sm:$0xff] }
  0xb3   : > { %v1538_v44 = vsel %vm3508_vm3, %v1223_v26, %v2990_v50  ;;  %v1539_v31 = vsel %vm3508_vm3, %v1230_v53, %v2991_v51  ;;  %v1647_v39 = vrot.slane %v1225_v59, 7  ;;  %v1649_v13 = vrot.slane %v1232_v24, 7 }
  0xb4   : > { %v2212_v45 = vmax.bf16 %v2180_v41, %v4943_v63  ;;  %v1540_v33 = vsel %vm3508_vm3, %v1237_v36, %v2992_v43  ;;  %v1796_v37 = vsel %vm3662_vm6, %v2989_v3, %v1644_v20  ;;  %v2181_v22 = vmax.bf16 %v4324_v9, %v4944_v54  ;;  %v4945_v3 = vld [vmem:[#allocation4_spill] sm:$0xff] }
  0xb5   : > { %v1648_v46 = vor.u32 %v1647_v39, %v1227_v25  ;;  %v1797_v21 = vsel %vm3662_vm6, %v2990_v50, %v1646_v29  ;;  %v1860_v59 = vmax.bf16 %v1796_v37, %v1537_v18  ;;  %v1650_v11 = vor.u32 %v1649_v13, %v1234_v38  ;;  %v4365_v29 = vld [vmem:[%s3351_s28 + $0xc8] sm:$0xff]  ;;  %v4377_v37 = vld [vmem:[%s3351_s28 + $0xd0] sm:$0xff] }
  0xb6   : > { %v1861_v10 = vmax.bf16 %v1797_v21, %v1538_v44  ;;  %v2899_v60 = vcombine.low %v3780_v7, %v3914_v17  ;;  %v2902_v24 = vcombine.high %v3935_v4, %v4049_v48  ;;  %v2213_v32 = vmax.bf16 %v2181_v22, %v4945_v3 }
  0xb7   : > { %v1798_v35 = vsel %vm3662_vm6, %v2991_v51, %v1648_v46  ;;  %v2993_v25 = vcombine.low %v4336_v28, %v4336_v28  ;;  %v2994_v50 = vcombine.high %v4336_v28, %v4336_v28  ;;  %v1799_v38 = vsel %vm3662_vm6, %v2992_v43, %v1650_v11 }
  0xb8   : > { %v1862_v0 = vmax.bf16 %v1798_v35, %v1539_v31  ;;  %v3032_v7 = vcombine.low %v1860_v59, %v1861_v10  ;;  %675 = vmatmul.mubr.bf16.gmra.mrb[24].mxu0 %v2899_v60  ;;  %v2901_v17 = vcombine.low %v3935_v4, %v4049_v48  ;;  %v3055_v26 = vcombine.high %v2212_v45, %v2213_v32 }
  0xb9   : > { %v3054_v51 = vcombine.low %v2212_v45, %v2213_v32  ;;  %v1863_v53 = vmax.bf16 %v1799_v38, %v1540_v33  ;;  %2938 = vmatprep.mubr.msk.bf16.mxu0 %vm545_vm0, %v2902_v24  ;;  %v1239_v20 = vshrl.u32 %v2993_v25, 16  ;;  %v1241_v36 = vshll.u32 %v2993_v25, 16 }
  0xba   : > { %v4362_v41 = vmax.bf16 %v3032_v7, %v4278_v5  ;;  %v1246_v43 = vshrl.u32 %v2994_v50, 16  ;;  %v1248_v18 = vshll.u32 %v2994_v50, 16  ;;  %3093 = vmatprep.mubr.msk.bf16.mxu1 %vm545_vm0, %v3055_v26  ;;  %v2904_v44 = vcombine.high %v4113_v49, %v4118_v62 }
  0xbb   : > { %v3033_v4 = vcombine.low %v1862_v0, %v1863_v53  ;;  %v1651_v48 = vrot.slane %v1239_v20, 7  ;;  %v4372_v31 = vcombine.low %v4358_v1, %v4358_v1  ;;  %2602 = vmatmul.mubr.bf16.gmra.mrb[20].mxu1 %v3054_v51  ;;  %v1243_v45 = vrot.slane %v1241_v36, 1 }
  0xbc   : > { %v2126_v39 = vmax.bf16 %v4362_v41, %v4306_v16  ;;  %v1250_v33 = vrot.slane %v1248_v18, 1  ;;  %v1653_v13 = vrot.slane %v1246_v43, 7  ;;  %v4382_v46 = vcombine.high %v4358_v1, %v4358_v1 }
  0xbd   : > { %v2096_v54 = vmax.bf16 %v3033_v4, %v4285_v42  ;;  %v1652_v22 = vor.u32 %v1651_v48, %v1241_v36  ;;  %v4386_v21 = vcombine.low %v4365_v29, %v4365_v29  ;;  %v1244_v16 = vor.u32 %v1243_v45, %v1239_v20 }
  0xbe   : > { %v4389_v59 = vmax.bf16 %v2126_v39, %v4312_v34  ;;  %v1251_v11 = vor.u32 %v1250_v33, %v1246_v43  ;;  %v1654_v10 = vor.u32 %v1653_v13, %v1248_v18  ;;  %v4396_v32 = vcombine.high %v4365_v29, %v4365_v29 }
  0xbf   : > { %v2127_v60 = vmax.bf16 %v2096_v54, %v4312_v34  ;;  %v1800_v24 = vsel %vm3662_vm6, %v2993_v25, %v1652_v22  ;;  %v4400_v35 = vcombine.low %v4377_v37, %v4377_v37  ;;  %v1541_v0 = vsel %vm3508_vm3, %v1244_v16, %v2993_v25 }
  0xc0   : > { %4946 = vst [vmem:[#allocation3_spill] sm:$0xff] %v4389_v59  ;;  %v2182_v38 = vmax.bf16 %v4389_v59, %v4085_v19  ;;  %v1542_v34 = vsel %vm3508_vm3, %v1251_v11, %v2994_v50  ;;  %v1801_v7 = vsel %vm3662_vm6, %v2994_v50, %v1654_v10  ;;  %683 = vmatmul.mubr.bf16.gmra.mrb[28].mxu0 %v2901_v17  ;;  %v1253_v20 = vshrl.u32 %v4372_v31, 16 }
  0xc1   : > { %v4411_v26 = vmax.bf16 %v2127_v60, %v4362_v41  ;;  %v1864_v51 = vmax.bf16 %v1800_v24, %v1541_v0  ;;  %v1865_v53 = vmax.bf16 %v1801_v7, %v1542_v34  ;;  %2939 = vmatprep.mubr.msk.bf16.mxu0 %vm545_vm0, %v2904_v44  ;;  %v4416_v19 = vcombine.high %v4377_v37, %v4377_v37 }
  0xc2   : > { %v2214_v25 = vmax.bf16 %v2182_v38, %v4091_v57  ;;  %v1255_v36 = vshll.u32 %v4372_v31, 16  ;;  %v1260_v50 = vshrl.u32 %v4382_v46, 16  ;;  %v1262_v18 = vshll.u32 %v4382_v46, 16 }
  0xc3   : > { %4947 = vst [vmem:[#allocation2_spill] sm:$0xff] %v4411_v26  ;;  %v2183_v17 = vmax.bf16 %v4411_v26, %v4088_v61  ;;  %v3034_v43 = vcombine.low %v1864_v51, %v1865_v53  ;;  %v1267_v4 = vshrl.u32 %v4386_v21, 16  ;;  %v1269_v44 = vshll.u32 %v4386_v21, 16 }
  0xc4   : > { %v1257_v48 = vrot.slane %v1255_v36, 1  ;;  %v1274_v39 = vshrl.u32 %v4396_v32, 16  ;;  %v1276_v45 = vshll.u32 %v4396_v32, 16  ;;  %v1264_v22 = vrot.slane %v1262_v18, 1 }
  0xc5   : > { %v2215_v33 = vmax.bf16 %v2183_v17, %v4094_v14  ;;  %v2097_v13 = vmax.bf16 %v3034_v43, %v4336_v28  ;;  %v1281_v16 = vshrl.u32 %v4400_v35, 16  ;;  %v1271_v11 = vrot.slane %v1269_v44, 1 }
  0xc6   : > { %v1258_v61 = vor.u32 %v1257_v48, %v1253_v20  ;;  %v1278_v10 = vrot.slane %v1276_v45, 1  ;;  %v1283_v60 = vshll.u32 %v4400_v35, 16  ;;  %v1265_v7 = vor.u32 %v1264_v22, %v1260_v50 }
  0xc7   : > { %v3057_v24 = vcombine.high %v2214_v25, %v2215_v33  ;;  %v3056_v38 = vcombine.low %v2214_v25, %v2215_v33  ;;  %v2128_v0 = vmax.bf16 %v2097_v13, %v4362_v41  ;;  %v2129_v34 = vmax.bf16 %v2097_v13, %v2096_v54 }
  0xc8   : > { %v1272_v51 = vor.u32 %v1271_v11, %v1267_v4  ;;  %v1279_v53 = vor.u32 %v1278_v10, %v1274_v39  ;;  %v1285_v26 = vrot.slane %v1283_v60, 1  ;;  %v1288_v48 = vshrl.u32 %v4416_v19, 16 }
  0xc9   : > { %3094 = vmatprep.mubr.msk.bf16.mxu1 %vm545_vm0, %v3057_v24  ;;  %v4435_v17 = vmax.bf16 %v2128_v0, %v2096_v54  ;;  %v4437_v43 = vmax.bf16 %v2129_v34, %v2097_v13  ;;  %v1290_v59 = vshll.u32 %v4416_v19, 16  ;;  %v1543_v41 = vsel %vm3508_vm3, %v1258_v61, %v4372_v31 }
  0xca   : > { %2610 = vmatmul.mubr.bf16.gmra.mrb[24].mxu1 %v3056_v38  ;;  %v1286_v14 = vor.u32 %v1285_v26, %v1281_v16  ;;  %v1544_v25 = vsel %vm3508_vm3, %v1265_v7, %v4382_v46  ;;  %v1545_v54 = vsel %vm3508_vm3, %v1272_v51, %v4386_v21  ;;  %v1546_v26 = vsel %vm3508_vm3, %v1279_v53, %v4396_v32 }
  0xcb   : > { %4948 = vst [vmem:[#allocation4_spill] sm:$0xff] %v4435_v17  ;;  %4949 = vst [vmem:[#allocation6_spill] sm:$0xff] %v4437_v43  ;;  %v2184_v33 = vmax.bf16 %v4435_v17, %v4172_v52  ;;  %v2185_v13 = vmax.bf16 %v4437_v43, %v4174_v6  ;;  %v1292_v22 = vrot.slane %v1290_v59, 1  ;;  %v1655_v11 = vrot.slane %v1253_v20, 7 }
  0xcc   : > { %v1547_v61 = vsel %vm3508_vm3, %v1286_v14, %v4400_v35  ;;  %v1657_v10 = vrot.slane %v1260_v50, 7  ;;  %v1659_v24 = vrot.slane %v1267_v4, 7  ;;  %v1661_v34 = vrot.slane %v1274_v39, 7 }
  0xcd   : > { %v2216_v38 = vmax.bf16 %v2184_v33, %v4177_v58  ;;  %v2217_v0 = vmax.bf16 %v2185_v13, %v4179_v15  ;;  %v1293_v52 = vor.u32 %v1292_v22, %v1288_v48  ;;  %v1656_v7 = vor.u32 %v1655_v11, %v1255_v36 }
  0xce   : > { %v1658_v6 = vor.u32 %v1657_v10, %v1262_v18  ;;  %v1660_v51 = vor.u32 %v1659_v24, %v1269_v44  ;;  %v1663_v43 = vrot.slane %v1281_v16, 7  ;;  %v1662_v20 = vor.u32 %v1661_v34, %v1276_v45  ;;  %v4479_v16 = vld [vmem:[%s3351_s28 + $0xd8] sm:$0xff] }
  0xcf   : > { %v3059_v17 = vcombine.high %v2216_v38, %v2217_v0  ;;  %v3058_v53 = vcombine.low %v2216_v38, %v2217_v0  ;;  %v1548_v14 = vsel %vm3508_vm3, %v1293_v52, %v4416_v19  ;;  %v1665_v4 = vrot.slane %v1288_v48, 7 }
  0xd0   : > { %v1664_v50 = vor.u32 %v1663_v43, %v1283_v60  ;;  %v1802_v33 = vsel %vm3662_vm6, %v4372_v31, %v1656_v7  ;;  %v1803_v36 = vsel %vm3662_vm6, %v4382_v46, %v1658_v6  ;;  %v1804_v18 = vsel %vm3662_vm6, %v4386_v21, %v1660_v51  ;;  %v4485_v43 = vld [vmem:[%s3351_s28 + $0xe0] sm:$0xff] }
  0xd1   : > { %3095 = vmatprep.mubr.msk.bf16.mxu1 %vm545_vm0, %v3059_v17  ;;  %v1805_v44 = vsel %vm3662_vm6, %v4396_v32, %v1662_v20  ;;  %v1866_v39 = vmax.bf16 %v1802_v33, %v1543_v41  ;;  %v1867_v45 = vmax.bf16 %v1803_v36, %v1544_v25  ;;  %v1666_v31 = vor.u32 %v1665_v4, %v1290_v59 }
  0xd2   : > { %2618 = vmatmul.mubr.bf16.gmra.mrb[28].mxu1 %v3058_v53  ;;  %v1806_v46 = vsel %vm3662_vm6, %v4400_v35, %v1664_v50  ;;  %v1868_v60 = vmax.bf16 %v1804_v18, %v1545_v54  ;;  %v1869_v17 = vmax.bf16 %v1805_v44, %v1546_v26  ;;  %v2903_v13 = vcombine.low %v4113_v49, %v4118_v62 }
  0xd3   : > { %v1870_v48 = vmax.bf16 %v1806_v46, %v1547_v61  ;;  %v3035_v21 = vcombine.low %v1866_v39, %v1867_v45  ;;  %v2906_v32 = vcombine.high %v4127_v27, %v4220_v56  ;;  %v1807_v59 = vsel %vm3662_vm6, %v4416_v19, %v1666_v31 }
  0xd4   : > { %v3036_v41 = vcombine.low %v1868_v60, %v1869_v17  ;;  %v3001_v35 = vcombine.low %v4479_v16, %v4479_v16  ;;  %v3002_v25 = vcombine.high %v4479_v16, %v4479_v16  ;;  %v1871_v54 = vmax.bf16 %v1807_v59, %v1548_v14  ;;  %691 = vmatmul.mubr.bf16.gmra.mrb[32].mxu0 %v2903_v13 }
  0xd5   : > { %v2098_v22 = vmax.bf16 %v3035_v21, %v4358_v1  ;;  %v3003_v49 = vcombine.low %v4485_v43, %v4485_v43  ;;  %v3004_v62 = vcombine.high %v4485_v43, %v4485_v43  ;;  %2940 = vmatprep.mubr.msk.bf16.mxu0 %vm545_vm0, %v2906_v32 }
  0xd6   : > { %v4504_v26 = vmax.bf16 %v3036_v41, %v4365_v29  ;;  %v1295_v19 = vshrl.u32 %v3001_v35, 16  ;;  %v1297_v61 = vshll.u32 %v3001_v35, 16  ;;  %v1302_v11 = vshrl.u32 %v3002_v25, 16 }
  0xd7   : > { %v3037_v10 = vcombine.low %v1870_v48, %v1871_v54  ;;  %v1304_v24 = vshll.u32 %v3002_v25, 16  ;;  %v1309_v38 = vshrl.u32 %v3003_v49, 16  ;;  %v1311_v0 = vshll.u32 %v3003_v49, 16 }
  0xd8   : > { %v2130_v52 = vmax.bf16 %v4504_v26, %v2098_v22  ;;  %v1299_v34 = vrot.slane %v1297_v61, 1  ;;  %v1316_v7 = vshrl.u32 %v3004_v62, 16  ;;  %v1318_v6 = vshll.u32 %v3004_v62, 16 }
  0xd9   : > { %v4509_v51 = vmax.bf16 %v3037_v10, %v4377_v37  ;;  %v1306_v53 = vrot.slane %v1304_v24, 1  ;;  %v1313_v14 = vrot.slane %v1311_v0, 1  ;;  %v1667_v20 = vrot.slane %v1295_v19, 7 }
  0xda   : > { %v4511_v50 = vmax.bf16 %v2130_v52, %v2098_v22  ;;  %v1300_v4 = vor.u32 %v1299_v34, %v1295_v19  ;;  %v1320_v33 = vrot.slane %v1318_v6, 1  ;;  %v1669_v36 = vrot.slane %v1302_v11, 7 }
  0xdb   : > { %v2131_v18 = vmax.bf16 %v4509_v51, %v2098_v22  ;;  %v1307_v44 = vor.u32 %v1306_v53, %v1302_v11  ;;  %v1314_v39 = vor.u32 %v1313_v14, %v1309_v38  ;;  %v1668_v45 = vor.u32 %v1667_v20, %v1297_v61  ;;  %v4531_v22 = vld [vmem:[%s3351_s28 + $0xe8] sm:$0xff] }
  0xdc   : > { %v2186_v31 = vmax.bf16 %v4511_v50, %v3805_v47  ;;  %v1321_v46 = vor.u32 %v1320_v33, %v1316_v7  ;;  %v1549_v60 = vsel %vm3508_vm3, %v1300_v4, %v3001_v35  ;;  %v1670_v17 = vor.u32 %v1669_v36, %v1304_v24  ;;  %v4538_v24 = vld [vmem:[%s3351_s28 + $0xf0] sm:$0xff] }
  0xdd   : > { %v4519_v48 = vmax.bf16 %v2131_v18, %v4504_v26  ;;  %v1550_v21 = vsel %vm3508_vm3, %v1307_v44, %v3002_v25  ;;  %v1551_v13 = vsel %vm3508_vm3, %v1314_v39, %v3003_v49  ;;  %v1671_v32 = vrot.slane %v1309_v38, 7 }
  0xde   : > { %v2218_v59 = vmax.bf16 %v2186_v31, %v4258_v12  ;;  %v1552_v47 = vsel %vm3508_vm3, %v1321_v46, %v3004_v62  ;;  %v1673_v41 = vrot.slane %v1316_v7, 7  ;;  %v1808_v54 = vsel %vm3662_vm6, %v3001_v35, %v1668_v45 }
  0xdf   : > { %v2187_v19 = vmax.bf16 %v4519_v48, %v3808_v30  ;;  %v1672_v61 = vor.u32 %v1671_v32, %v1311_v0  ;;  %v1809_v11 = vsel %vm3662_vm6, %v3002_v25, %v1670_v17  ;;  %v1872_v10 = vmax.bf16 %v1808_v54, %v1549_v60 }
  0xe0   : > { %v1674_v38 = vor.u32 %v1673_v41, %v1318_v6  ;;  %v1873_v52 = vmax.bf16 %v1809_v11, %v1550_v21  ;;  %v2905_v34 = vcombine.low %v4127_v27, %v4220_v56  ;;  %v2908_v35 = vcombine.high %v4228_v40, %v4278_v5 }
  0xe1   : > { %v2219_v7 = vmax.bf16 %v2187_v19, %v4266_v55  ;;  %v1810_v30 = vsel %vm3662_vm6, %v3003_v49, %v1672_v61  ;;  %v3005_v0 = vcombine.low %v4531_v22, %v4531_v22  ;;  %v3006_v25 = vcombine.high %v4531_v22, %v4531_v22 }
  0xe2   : > { %v1811_v6 = vsel %vm3662_vm6, %v3004_v62, %v1674_v38  ;;  %v1874_v53 = vmax.bf16 %v1810_v30, %v1551_v13  ;;  %v3038_v14 = vcombine.low %v1872_v10, %v1873_v52  ;;  %699 = vmatmul.mubr.bf16.gmra.mrb[36].mxu0 %v2905_v34  ;;  %v3007_v27 = vcombine.low %v4538_v24, %v4538_v24 }
  0xe3   : > { %v3061_v56 = vcombine.high %v2218_v59, %v2219_v7  ;;  %v3060_v20 = vcombine.low %v2218_v59, %v2219_v7  ;;  %v1875_v4 = vmax.bf16 %v1811_v6, %v1552_v47  ;;  %2941 = vmatprep.mubr.msk.bf16.mxu0 %vm545_vm0, %v2908_v35  ;;  %v3008_v49 = vcombine.high %v4538_v24, %v4538_v24 }
  0xe4   : > { %v4559_v33 = vmax.bf16 %v3038_v14, %v4479_v16  ;;  %v1323_v36 = vshrl.u32 %v3005_v0, 16  ;;  %v1325_v18 = vshll.u32 %v3005_v0, 16  ;;  %v1330_v62 = vshrl.u32 %v3006_v25, 16 }
  0xe5   : > { %3096 = vmatprep.mubr.msk.bf16.mxu1 %vm545_vm0, %v3061_v56  ;;  %v3039_v44 = vcombine.low %v1874_v53, %v1875_v4  ;;  %v1332_v39 = vshll.u32 %v3006_v25, 16  ;;  %v1337_v45 = vshrl.u32 %v3007_v27, 16  ;;  %v1339_v31 = vshll.u32 %v3007_v27, 16  ;;  %v4589_v4 = vld [vmem:[%s3351_s28 + $0xf8] sm:$0xff] }
  0xe6   : > { %2626 = vmatmul.mubr.bf16.gmra.mrb[32].mxu1 %v3060_v20  ;;  %v2132_v46 = vmax.bf16 %v4559_v33, %v4504_v26  ;;  %v1327_v60 = vrot.slane %v1325_v18, 1  ;;  %v1344_v17 = vshrl.u32 %v3008_v49, 16  ;;  %v1346_v21 = vshll.u32 %v3008_v49, 16 }
  0xe7   : > { %v4565_v13 = vmax.bf16 %v3039_v44, %v4485_v43  ;;  %v1334_v32 = vrot.slane %v1332_v39, 1  ;;  %v1341_v59 = vrot.slane %v1339_v31, 1  ;;  %v1675_v47 = vrot.slane %v1323_v36, 7 }
  0xe8   : > { %v4568_v41 = vmax.bf16 %v2132_v46, %v4509_v51  ;;  %v1328_v54 = vor.u32 %v1327_v60, %v1323_v36  ;;  %v1348_v19 = vrot.slane %v1346_v21, 1  ;;  %v1677_v61 = vrot.slane %v1330_v62, 7 }
  0xe9   : > { %v2133_v11 = vmax.bf16 %v4565_v13, %v4509_v51  ;;  %v1335_v26 = vor.u32 %v1334_v32, %v1330_v62  ;;  %v1342_v10 = vor.u32 %v1341_v59, %v1337_v45  ;;  %v1676_v38 = vor.u32 %v1675_v47, %v1325_v18 }
  0xea   : > { %v2188_v52 = vmax.bf16 %v4568_v41, %v4943_v63  ;;  %v1349_v34 = vor.u32 %v1348_v19, %v1344_v17  ;;  %v1553_v35 = vsel %vm3508_vm3, %v1328_v54, %v3005_v0  ;;  %v1678_v7 = vor.u32 %v1677_v61, %v1332_v39 }
  0xeb   : > { %v4577_v30 = vmax.bf16 %v2133_v11, %v4559_v33  ;;  %v1554_v6 = vsel %vm3508_vm3, %v1335_v26, %v3006_v25  ;;  %v1555_v51 = vsel %vm3508_vm3, %v1342_v10, %v3007_v27  ;;  %v1679_v53 = vrot.slane %v1337_v45, 7 }
  0xec   : > { %v2220_v14 = vmax.bf16 %v2188_v52, %v4315_v2  ;;  %v1556_v63 = vsel %vm3508_vm3, %v1349_v34, %v3008_v49  ;;  %v1681_v56 = vrot.slane %v1344_v17, 7  ;;  %v1812_v20 = vsel %vm3662_vm6, %v3005_v0, %v1676_v38 }
  0xed   : > { %v2189_v36 = vmax.bf16 %v4577_v30, %v4945_v3  ;;  %v1680_v18 = vor.u32 %v1679_v53, %v1339_v31  ;;  %v1813_v62 = vsel %vm3662_vm6, %v3006_v25, %v1678_v7  ;;  %v1876_v44 = vmax.bf16 %v1812_v20, %v1553_v35 }
  0xee   : > { %v1682_v39 = vor.u32 %v1681_v56, %v1346_v21  ;;  %v1877_v45 = vmax.bf16 %v1813_v62, %v1554_v6  ;;  %v2907_v46 = vcombine.low %v4228_v40, %v4278_v5  ;;  %v2910_v60 = vcombine.high %v4285_v42, %v4336_v28 }
  0xef   : > { %v2221_v0 = vmax.bf16 %v2189_v36, %v4324_v9  ;;  %v1814_v17 = vsel %vm3662_vm6, %v3007_v27, %v1680_v18  ;;  %v3009_v3 = vcombine.low %v4589_v4, %v4589_v4  ;;  %v3010_v25 = vcombine.high %v4589_v4, %v4589_v4 }
  0xf0   : > { %v1815_v31 = vsel %vm3662_vm6, %v3008_v49, %v1682_v39  ;;  %v1878_v21 = vmax.bf16 %v1814_v17, %v1555_v51  ;;  %v3040_v32 = vcombine.low %v1876_v44, %v1877_v45  ;;  %707 = vmatmul.mubr.bf16.gmra.mrb[40].mxu0 %v2907_v46  ;;  %v2909_v49 = vcombine.low %v4285_v42, %v4336_v28  ;;  %v4951_v45 = vld [vmem:[#allocation3_spill] sm:$0xff] }
  0xf1   : > { %v3063_v40 = vcombine.high %v2220_v14, %v2221_v0  ;;  %v3062_v5 = vcombine.low %v2220_v14, %v2221_v0  ;;  %v1879_v59 = vmax.bf16 %v1815_v31, %v1556_v63  ;;  %2942 = vmatprep.mubr.msk.bf16.mxu0 %vm545_vm0, %v2910_v60  ;;  %v1351_v47 = vshrl.u32 %v3009_v3, 16  ;;  %v4952_v0 = vld [vmem:[#allocation2_spill] sm:$0xff] }
  0xf2   : > { %v2103_v27 = vmax.bf16 %v3040_v32, %v4531_v22  ;;  %v1353_v54 = vshll.u32 %v3009_v3, 16  ;;  %v1358_v19 = vshrl.u32 %v3010_v25, 16  ;;  %v1360_v61 = vshll.u32 %v3010_v25, 16 }
  0xf3   : > { %3097 = vmatprep.mubr.msk.bf16.mxu1 %vm545_vm0, %v3063_v40  ;;  %v3041_v11 = vcombine.low %v1878_v21, %v1879_v59  ;;  %v1683_v26 = vrot.slane %v1351_v47, 7  ;;  %v2912_v6 = vcombine.high %v4358_v1, %v4365_v29  ;;  %v2911_v60 = vcombine.low %v4358_v1, %v4365_v29 }
  0xf4   : > { %2634 = vmatmul.mubr.bf16.gmra.mrb[36].mxu1 %v3062_v5  ;;  %v2134_v10 = vmax.bf16 %v2103_v27, %v4559_v33  ;;  %v1355_v38 = vrot.slane %v1353_v54, 1  ;;  %v1362_v52 = vrot.slane %v1360_v61, 1  ;;  %v1685_v34 = vrot.slane %v1358_v19, 7 }
  0xf5   : > { %v2104_v35 = vmax.bf16 %v3041_v11, %v4538_v24  ;;  %v1684_v7 = vor.u32 %v1683_v26, %v1353_v54  ;;  %v2194_v31 = vmax.bf16 %v4511_v50, %v4258_v12  ;;  %v2195_v21 = vmax.bf16 %v4519_v48, %v4266_v55  ;;  %v4953_v26 = vld [vmem:[#allocation4_spill] sm:$0xff] }
  0xf6   : > { %v2166_v51 = vmax.bf16 %v2134_v10, %v4565_v13  ;;  %v1356_v53 = vor.u32 %v1355_v38, %v1351_v47  ;;  %v1363_v14 = vor.u32 %v1362_v52, %v1358_v19  ;;  %v1686_v63 = vor.u32 %v1685_v34, %v1360_v61  ;;  %v4954_v10 = vld [vmem:[#allocation6_spill] sm:$0xff] }
  0xf7   : > { %v2135_v56 = vmax.bf16 %v2104_v35, %v4565_v13  ;;  %v1816_v42 = vsel %vm3662_vm6, %v3009_v3, %v1684_v7  ;;  %v4950_v13 = vld [vmem:[#allocation5_spill] sm:$0xff]  ;;  %v2226_v55 = vmax.bf16 %v2194_v31, %v4511_v50  ;;  %v2227_v61 = vmax.bf16 %v2195_v21, %v4519_v48 }
  0xf8   : > { %v2190_v28 = vmax.bf16 %v2166_v51, %v4091_v57  ;;  %v1557_v33 = vsel %vm3508_vm3, %v1356_v53, %v3009_v3  ;;  %v1558_v20 = vsel %vm3508_vm3, %v1363_v14, %v3010_v25  ;;  %v1817_v36 = vsel %vm3662_vm6, %v3010_v25, %v1686_v63  ;;  %715 = vmatmul.mubr.bf16.gmra.mrb[44].mxu0 %v2909_v49 }
  0xf9   : > { %v2167_v18 = vmax.bf16 %v2135_v56, %v2103_v27  ;;  %v1880_v62 = vmax.bf16 %v1816_v42, %v1557_v33  ;;  %v1881_v44 = vmax.bf16 %v1817_v36, %v1558_v20  ;;  %2943 = vmatprep.mubr.msk.bf16.mxu0 %vm545_vm0, %v2912_v6  ;;  %v2198_v8 = vmax.bf16 %v2166_v51, %v4951_v45  ;;  %v4681_v42 = vld [vmem:[%s4906_s2] ss:$0 sm:$0xff] }
  0xfa   : > { %v2222_v46 = vmax.bf16 %v2190_v28, %v4951_v45  ;;  %v2914_v25 = vcombine.high %v4377_v37, %v4479_v16  ;;  %v2913_v52 = vcombine.low %v4377_v37, %v4479_v16  ;;  %v2916_v34 = vcombine.high %v4485_v43, %v4531_v22 }
  0xfb   : > { %v2191_v39 = vmax.bf16 %v2167_v18, %v4950_v13  ;;  %v3042_v57 = vcombine.low %v1880_v62, %v1881_v44  ;;  %v2199_v17 = vmax.bf16 %v2167_v18, %v4952_v0  ;;  %v4643_v32 = vmax.bf16 %v2198_v8, %v2166_v51 }
  0xfc   : > { %v3069_v6 = vcombine.high %v2226_v55, %v2227_v61  ;;  %v2918_v63 = vcombine.high %v4538_v24, %v4589_v4  ;;  %v3068_v56 = vcombine.low %v2226_v55, %v2227_v61 }
  0xfd   : > { %v2223_v23 = vmax.bf16 %v2191_v39, %v4952_v0  ;;  %v2105_v3 = vmax.bf16 %v3042_v57, %v4589_v4  ;;  %v4645_v1 = vmax.bf16 %v2199_v17, %v2167_v18  ;;  %v2917_v18 = vcombine.low %v4538_v24, %v4589_v4  ;;  %v4706_v24 = vld [vmem:[%s4908_s4] ss:$0 sm:$0xff] }
  0xff   : > { %v3065_v29 = vcombine.high %v2222_v46, %v2223_v23  ;;  %v3064_v40 = vcombine.low %v2222_v46, %v2223_v23  ;;  %v2136_v5 = vmax.bf16 %v2105_v3, %v2103_v27  ;;  %v2137_v59 = vmax.bf16 %v2105_v3, %v2104_v35 }
 0x100   : > { %723 = vmatmul.mubr.bf16.gmra.mrb[48].mxu0 %v2911_v60  ;;  %v3073_v47 = vcombine.high %v4643_v32, %v4645_v1  ;;  %v3072_v54 = vcombine.low %v4643_v32, %v4645_v1 }
 0x101   : > { %3098 = vmatprep.mubr.msk.bf16.mxu1 %vm545_vm0, %v3065_v29  ;;  %v2168_v12 = vmax.bf16 %v2136_v5, %v2104_v35  ;;  %v2169_v19 = vmax.bf16 %v2137_v59, %v2105_v3  ;;  %2944 = vmatprep.mubr.msk.bf16.mxu0 %vm545_vm0, %v2914_v25 }
 0x102   : > { %2642 = vmatmul.mubr.bf16.gmra.mrb[40].mxu1 %v3064_v40 }
 0x103   : > { %v2192_v27 = vmax.bf16 %v2168_v12, %v4177_v58  ;;  %v2193_v11 = vmax.bf16 %v2169_v19, %v4179_v15  ;;  %v2200_v49 = vmax.bf16 %v2168_v12, %v4953_v26  ;;  %v2201_v38 = vmax.bf16 %v2169_v19, %v4954_v10 }
 0x104   : > { %v2196_v58 = vmax.bf16 %v4568_v41, %v4315_v2  ;;  %v2197_v15 = vmax.bf16 %v4577_v30, %v4324_v9  ;;  %v2915_v9 = vcombine.low %v4485_v43, %v4531_v22 }
 0x105   : > { %v2224_v35 = vmax.bf16 %v2192_v27, %v4953_v26  ;;  %v2225_v50 = vmax.bf16 %v2193_v11, %v4954_v10  ;;  %v2232_v7 = vmax.bf16 %v2200_v49, %v2168_v12  ;;  %v2233_v48 = vmax.bf16 %v2201_v38, %v2169_v19 }
 0x106   : > { %v2228_v16 = vmax.bf16 %v2196_v58, %v4568_v41  ;;  %v2229_v2 = vmax.bf16 %v2197_v15, %v4577_v30 }
 0x107   : > { %v3067_v51 = vcombine.high %v2224_v35, %v2225_v50  ;;  %v3066_v53 = vcombine.low %v2224_v35, %v2225_v50  ;;  %v3075_v14 = vcombine.high %v2232_v7, %v2233_v48  ;;  %v3074_v37 = vcombine.low %v2232_v7, %v2233_v48 }
 0x108   : > { %731 = vmatmul.mubr.bf16.gmra.mrb[52].mxu0 %v2913_v52  ;;  %v3071_v28 = vcombine.high %v2228_v16, %v2229_v2  ;;  %v3070_v13 = vcombine.low %v2228_v16, %v2229_v2 }
 0x109   : > { %3099 = vmatprep.mubr.msk.bf16.mxu1 %vm545_vm0, %v3067_v51  ;;  %2945 = vmatprep.mubr.msk.bf16.mxu0 %vm545_vm0, %v2916_v34 }
 0x10a   : > { %2650 = vmatmul.mubr.bf16.gmra.mrb[44].mxu1 %v3066_v53 }
 0x10b   : > { %3100 = vmatprep.mubr.msk.bf16.mxu1 %vm545_vm0, %v3069_v6 }
 0x110   : > { %739 = vmatmul.mubr.bf16.gmra.mrb[56].mxu0 %v2915_v9 }
 0x111   : > { %v628_v33 = vpop.f32.mrb[0].mxu0  ;;  %2946 = vmatprep.mubr.msk.bf16.mxu0 %vm545_vm0, %v2918_v63 }
 0x112   : > { %v629_v41 = vadd.f32 %v4681_v42, %v628_v33  ;;  %v630_v30 = vpop.f32.mrb[1].mxu0  ;;  %2658 = vmatmul.mubr.bf16.gmra.mrb[48].mxu1 %v3068_v56 }
 0x113   : > { %v631_v43 = vpop.f32.mrb[2].mxu0  ;;  %3101 = vmatprep.mubr.msk.bf16.mxu1 %vm545_vm0, %v3071_v28 }
 0x114   : > { %v755_v22 = vmax.f32 %v629_v41, 0.0  ;;  %v632_v20 = vadd.f32 %v4681_v42, %v631_v43  ;;  %v633_v36 = vpop.f32.mrb[3].mxu0 }
 0x116   : > { %v787_v62 = vpack.c.bf16 %v755_v22, %v755_v22  ;;  %v756_v44 = vmax.f32 %v632_v20, 0.0 }
 0x118   : > { %820 = vst.msk [vmem:[%s4695_s12] sm:$0xf] %vm819_vm7, %v787_v62  ;;  %v788_v39 = vpack.c.bf16 %v756_v44, %v756_v44  ;;  %747 = vmatmul.mubr.bf16.gmra.mrb[60].mxu0 %v2917_v18 }
 0x11a   : > { %821 = vst.msk [vmem:[%s4695_s12 + $0x4] sm:$0xf] %vm819_vm7, %v788_v39  ;;  %2666 = vmatmul.mubr.bf16.gmra.mrb[52].mxu1 %v3070_v13 }
 0x11b   : > { %3102 = vmatprep.mubr.msk.bf16.mxu1 %vm545_vm0, %v3073_v47 }
 0x122   : > { %2674 = vmatmul.mubr.bf16.gmra.mrb[56].mxu1 %v3072_v54 }
 0x123   : > { %3103 = vmatprep.mubr.msk.bf16.mxu1 %vm545_vm0, %v3075_v14 }
 0x126   : > { %v2563_v4 = vpop.f32.mrb[0].mxu1 }
 0x127   : > { %v2564_v45 = vadd.f32 %v4706_v24, %v2563_v4  ;;  %v2565_v46 = vpop.f32.mrb[1].mxu1 }
 0x128   : > { %v2566_v57 = vpop.f32.mrb[2].mxu1 }
 0x129   : > { %v2690_v60 = vmax.f32 %v2564_v45, 0.0  ;;  %v2567_v8 = vadd.f32 %v4706_v24, %v2566_v57  ;;  %v2568_v0 = vpop.f32.mrb[3].mxu1 }
 0x12a   : > { %2682 = vmatmul.mubr.bf16.gmra.mrb[60].mxu1 %v3074_v37 }
 0x12b   : > { %v2722_v17 = vpack.c.bf16 %v2690_v60, %v2690_v60  ;;  %v2691_v23 = vmax.f32 %v2567_v8, 0.0 }
 0x12d   : > { %2755 = vst.msk [vmem:[%s4715_s17] sm:$0xf] %vm2754_vm8, %v2722_v17  ;;  %v2723_v3 = vpack.c.bf16 %v2691_v23, %v2691_v23 }
 0x12f   : > { %2756 = vst.msk [vmem:[%s4715_s17 + $0x4] sm:$0xf] %vm2754_vm8, %v2723_v3 }
 0x132   : > { %v636_v25 = vpop.f32.mrb[4].mxu0 }
 0x133   : > { %v637_v31 = vadd.f32 %v4681_v42, %v636_v25  ;;  %v638_v21 = vpop.f32.mrb[5].mxu0 }
 0x134   : > { %v639_v32 = vpop.f32.mrb[6].mxu0 }
 0x135   : > { %v757_v1 = vmax.f32 %v637_v31, 0.0  ;;  %v640_v29 = vadd.f32 %v4681_v42, %v639_v32  ;;  %v641_v40 = vpop.f32.mrb[7].mxu0 }
 0x137   : > { %v789_v5 = vpack.c.bf16 %v757_v1, %v757_v1  ;;  %v758_v59 = vmax.f32 %v640_v29, 0.0 }
 0x139   : > { %822 = vst.msk [vmem:[%s4695_s12 + $0x8] sm:$0xf] %vm819_vm7, %v789_v5  ;;  %v790_v47 = vpack.c.bf16 %v758_v59, %v758_v59 }
 0x13b   : > { %823 = vst.msk [vmem:[%s4695_s12 + $0xc] sm:$0xf] %vm819_vm7, %v790_v47 }
 0x141   : > { %v2571_v54 = vpop.f32.mrb[4].mxu1 }
 0x142   : > { %v2572_v12 = vadd.f32 %v4706_v24, %v2571_v54  ;;  %v2573_v19 = vpop.f32.mrb[5].mxu1 }
 0x143   : > { %v2574_v55 = vpop.f32.mrb[6].mxu1 }
 0x144   : > { %v2692_v61 = vmax.f32 %v2572_v12, 0.0  ;;  %v2575_v27 = vadd.f32 %v4706_v24, %v2574_v55  ;;  %v2576_v11 = vpop.f32.mrb[7].mxu1 }
 0x146   : > { %v2724_v26 = vpack.c.bf16 %v2692_v61, %v2692_v61  ;;  %v2693_v49 = vmax.f32 %v2575_v27, 0.0 }
 0x148   : > { %2757 = vst.msk [vmem:[%s4715_s17 + $0x8] sm:$0xf] %vm2754_vm8, %v2724_v26  ;;  %v2725_v10 = vpack.c.bf16 %v2693_v49, %v2693_v49 }
 0x14a   : > { %2758 = vst.msk [vmem:[%s4715_s17 + $0xc] sm:$0xf] %vm2754_vm8, %v2725_v10 }
 0x14b   : > { %v644_v38 = vpop.f32.mrb[8].mxu0 }
 0x14c   : > { %v645_v52 = vadd.f32 %v4681_v42, %v644_v38  ;;  %v646_v34 = vpop.f32.mrb[9].mxu0 }
 0x14d   : > { %v647_v35 = vpop.f32.mrb[10].mxu0 }
 0x14e   : > { %v759_v50 = vmax.f32 %v645_v52, 0.0  ;;  %v648_v7 = vadd.f32 %v4681_v42, %v647_v35  ;;  %v649_v48 = vpop.f32.mrb[11].mxu0 }
 0x150   : > { %v791_v6 = vpack.c.bf16 %v759_v50, %v759_v50  ;;  %v760_v58 = vmax.f32 %v648_v7, 0.0 }
 0x152   : > { %824 = vst.msk [vmem:[%s4695_s12 + $0x10] sm:$0xf] %vm819_vm7, %v791_v6  ;;  %v792_v15 = vpack.c.bf16 %v760_v58, %v760_v58 }
 0x154   : > { %825 = vst.msk [vmem:[%s4695_s12 + $0x14] sm:$0xf] %vm819_vm7, %v792_v15 }
 0x159   : > { %v652_v51 = vpop.f32.mrb[12].mxu0 }
 0x15a   : > { %v653_v53 = vadd.f32 %v4681_v42, %v652_v51  ;;  %v654_v14 = vpop.f32.mrb[13].mxu0 }
 0x15b   : > { %v2579_v37 = vpop.f32.mrb[8].mxu1  ;;  %v655_v16 = vpop.f32.mrb[14].mxu0 }
 0x15c   : > { %v2580_v2 = vadd.f32 %v4706_v24, %v2579_v37  ;;  %v2581_v9 = vpop.f32.mrb[9].mxu1  ;;  %v761_v63 = vmax.f32 %v653_v53, 0.0  ;;  %v656_v56 = vadd.f32 %v4681_v42, %v655_v16  ;;  %v657_v28 = vpop.f32.mrb[15].mxu0 }
 0x15d   : > { %v2582_v33 = vpop.f32.mrb[10].mxu1 }
 0x15e   : > { %v2694_v41 = vmax.f32 %v2580_v2, 0.0  ;;  %v2583_v30 = vadd.f32 %v4706_v24, %v2582_v33  ;;  %v2584_v43 = vpop.f32.mrb[11].mxu1  ;;  %v793_v22 = vpack.c.bf16 %v761_v63, %v761_v63  ;;  %v762_v20 = vmax.f32 %v656_v56, 0.0 }
 0x160   : > { %v2726_v36 = vpack.c.bf16 %v2694_v41, %v2694_v41  ;;  %v2695_v18 = vmax.f32 %v2583_v30, 0.0  ;;  %826 = vst.msk [vmem:[%s4695_s12 + $0x18] sm:$0xf] %vm819_vm7, %v793_v22  ;;  %v794_v62 = vpack.c.bf16 %v762_v20, %v762_v20 }
 0x162   : > { %2759 = vst.msk [vmem:[%s4715_s17 + $0x10] sm:$0xf] %vm2754_vm8, %v2726_v36  ;;  %v2727_v44 = vpack.c.bf16 %v2695_v18, %v2695_v18 }
 0x163   : > { %827 = vst.msk [vmem:[%s4695_s12 + $0x1c] sm:$0xf] %vm819_vm7, %v794_v62 }
 0x164   : > { %2760 = vst.msk [vmem:[%s4715_s17 + $0x14] sm:$0xf] %vm2754_vm8, %v2727_v44 }
 0x16c   : > { %v2587_v13 = vpop.f32.mrb[12].mxu1 }
 0x16d   : > { %v2588_v39 = vadd.f32 %v4706_v24, %v2587_v13  ;;  %v2589_v4 = vpop.f32.mrb[13].mxu1 }
 0x16e   : > { %v2590_v45 = vpop.f32.mrb[14].mxu1 }
 0x16f   : > { %v2696_v46 = vmax.f32 %v2588_v39, 0.0  ;;  %v2591_v57 = vadd.f32 %v4706_v24, %v2590_v45  ;;  %v2592_v60 = vpop.f32.mrb[15].mxu1  ;;  %v660_v8 = vpop.f32.mrb[16].mxu0 }
 0x170   : > { %v661_v0 = vadd.f32 %v4681_v42, %v660_v8  ;;  %v662_v17 = vpop.f32.mrb[17].mxu0 }
 0x171   : > { %v2728_v23 = vpack.c.bf16 %v2696_v46, %v2696_v46  ;;  %v2697_v3 = vmax.f32 %v2591_v57, 0.0  ;;  %v663_v25 = vpop.f32.mrb[18].mxu0 }
 0x172   : > { %v763_v31 = vmax.f32 %v661_v0, 0.0  ;;  %v664_v21 = vadd.f32 %v4681_v42, %v663_v25  ;;  %v665_v32 = vpop.f32.mrb[19].mxu0 }
 0x173   : > { %2761 = vst.msk [vmem:[%s4715_s17 + $0x18] sm:$0xf] %vm2754_vm8, %v2728_v23  ;;  %v2729_v1 = vpack.c.bf16 %v2697_v3, %v2697_v3 }
 0x174   : > { %v795_v29 = vpack.c.bf16 %v763_v31, %v763_v31  ;;  %v764_v40 = vmax.f32 %v664_v21, 0.0 }
 0x175   : > { %2762 = vst.msk [vmem:[%s4715_s17 + $0x1c] sm:$0xf] %vm2754_vm8, %v2729_v1 }
 0x176   : > { %828 = vst.msk [vmem:[%s4695_s12 + $0x20] sm:$0xf] %vm819_vm7, %v795_v29  ;;  %v796_v5 = vpack.c.bf16 %v764_v40, %v764_v40 }
 0x178   : > { %829 = vst.msk [vmem:[%s4695_s12 + $0x24] sm:$0xf] %vm819_vm7, %v796_v5 }
 0x17d   : > { %v668_v59 = vpop.f32.mrb[20].mxu0 }
 0x17e   : > { %v669_v47 = vadd.f32 %v4681_v42, %v668_v59  ;;  %v670_v54 = vpop.f32.mrb[21].mxu0 }
 0x17f   : > { %v671_v12 = vpop.f32.mrb[22].mxu0 }
 0x180   : > { %v765_v19 = vmax.f32 %v669_v47, 0.0  ;;  %v672_v55 = vadd.f32 %v4681_v42, %v671_v12  ;;  %v673_v61 = vpop.f32.mrb[23].mxu0 }
 0x181   : > { %v2595_v27 = vpop.f32.mrb[16].mxu1 }
 0x182   : > { %v2596_v11 = vadd.f32 %v4706_v24, %v2595_v27  ;;  %v2597_v26 = vpop.f32.mrb[17].mxu1  ;;  %v797_v49 = vpack.c.bf16 %v765_v19, %v765_v19  ;;  %v766_v10 = vmax.f32 %v672_v55, 0.0 }
 0x183   : > { %v2598_v38 = vpop.f32.mrb[18].mxu1 }
 0x184   : > { %v2698_v52 = vmax.f32 %v2596_v11, 0.0  ;;  %v2599_v34 = vadd.f32 %v4706_v24, %v2598_v38  ;;  %v2600_v35 = vpop.f32.mrb[19].mxu1  ;;  %830 = vst.msk [vmem:[%s4695_s12 + $0x28] sm:$0xf] %vm819_vm7, %v797_v49  ;;  %v798_v50 = vpack.c.bf16 %v766_v10, %v766_v10 }
 0x186   : > { %v2730_v7 = vpack.c.bf16 %v2698_v52, %v2698_v52  ;;  %v2699_v48 = vmax.f32 %v2599_v34, 0.0  ;;  %831 = vst.msk [vmem:[%s4695_s12 + $0x2c] sm:$0xf] %vm819_vm7, %v798_v50 }
 0x188   : > { %2763 = vst.msk [vmem:[%s4715_s17 + $0x20] sm:$0xf] %vm2754_vm8, %v2730_v7  ;;  %v2731_v6 = vpack.c.bf16 %v2699_v48, %v2699_v48 }
 0x18a   : > { %2764 = vst.msk [vmem:[%s4715_s17 + $0x24] sm:$0xf] %vm2754_vm8, %v2731_v6 }
 0x18b   : > { %v676_v58 = vpop.f32.mrb[24].mxu0 }
 0x18c   : > { %v677_v15 = vadd.f32 %v4681_v42, %v676_v58  ;;  %v678_v51 = vpop.f32.mrb[25].mxu0 }
 0x18d   : > { %v679_v53 = vpop.f32.mrb[26].mxu0 }
 0x18e   : > { %v767_v14 = vmax.f32 %v677_v15, 0.0  ;;  %v680_v37 = vadd.f32 %v4681_v42, %v679_v53  ;;  %v681_v16 = vpop.f32.mrb[27].mxu0  ;;  %v2603_v2 = vpop.f32.mrb[20].mxu1 }
 0x18f   : > { %v2604_v9 = vadd.f32 %v4706_v24, %v2603_v2  ;;  %v2605_v63 = vpop.f32.mrb[21].mxu1 }
 0x190   : > { %v799_v56 = vpack.c.bf16 %v767_v14, %v767_v14  ;;  %v768_v28 = vmax.f32 %v680_v37, 0.0  ;;  %v2606_v33 = vpop.f32.mrb[22].mxu1 }
 0x191   : > { %v2700_v41 = vmax.f32 %v2604_v9, 0.0  ;;  %v2607_v30 = vadd.f32 %v4706_v24, %v2606_v33  ;;  %v2608_v43 = vpop.f32.mrb[23].mxu1 }
 0x192   : > { %832 = vst.msk [vmem:[%s4695_s12 + $0x30] sm:$0xf] %vm819_vm7, %v799_v56  ;;  %v800_v22 = vpack.c.bf16 %v768_v28, %v768_v28 }
 0x193   : > { %v684_v20 = vpop.f32.mrb[28].mxu0  ;;  %v2732_v36 = vpack.c.bf16 %v2700_v41, %v2700_v41  ;;  %v2701_v18 = vmax.f32 %v2607_v30, 0.0 }
 0x194   : > { %833 = vst.msk [vmem:[%s4695_s12 + $0x34] sm:$0xf] %vm819_vm7, %v800_v22  ;;  %v685_v62 = vadd.f32 %v4681_v42, %v684_v20  ;;  %v686_v44 = vpop.f32.mrb[29].mxu0 }
 0x195   : > { %v687_v13 = vpop.f32.mrb[30].mxu0  ;;  %2765 = vst.msk [vmem:[%s4715_s17 + $0x28] sm:$0xf] %vm2754_vm8, %v2732_v36  ;;  %v2733_v39 = vpack.c.bf16 %v2701_v18, %v2701_v18 }
 0x196   : > { %v769_v4 = vmax.f32 %v685_v62, 0.0  ;;  %v688_v45 = vadd.f32 %v4681_v42, %v687_v13  ;;  %v689_v46 = vpop.f32.mrb[31].mxu0 }
 0x197   : > { %2766 = vst.msk [vmem:[%s4715_s17 + $0x2c] sm:$0xf] %vm2754_vm8, %v2733_v39 }
 0x198   : > { %v801_v57 = vpack.c.bf16 %v769_v4, %v769_v4  ;;  %v770_v60 = vmax.f32 %v688_v45, 0.0 }
 0x19a   : > { %834 = vst.msk [vmem:[%s4695_s12 + $0x38] sm:$0xf] %vm819_vm7, %v801_v57  ;;  %v802_v8 = vpack.c.bf16 %v770_v60, %v770_v60 }
 0x19c   : > { %835 = vst.msk [vmem:[%s4695_s12 + $0x3c] sm:$0xf] %vm819_vm7, %v802_v8 }
 0x19d   : > { %v2611_v0 = vpop.f32.mrb[24].mxu1 }
 0x19e   : > { %v2612_v17 = vadd.f32 %v4706_v24, %v2611_v0  ;;  %v2613_v23 = vpop.f32.mrb[25].mxu1 }
 0x19f   : > { %v2614_v3 = vpop.f32.mrb[26].mxu1 }
 0x1a0   : > { %v2702_v25 = vmax.f32 %v2612_v17, 0.0  ;;  %v2615_v31 = vadd.f32 %v4706_v24, %v2614_v3  ;;  %v2616_v21 = vpop.f32.mrb[27].mxu1 }
 0x1a2   : > { %v2734_v32 = vpack.c.bf16 %v2702_v25, %v2702_v25  ;;  %v2703_v1 = vmax.f32 %v2615_v31, 0.0 }
 0x1a4   : > { %2767 = vst.msk [vmem:[%s4715_s17 + $0x30] sm:$0xf] %vm2754_vm8, %v2734_v32  ;;  %v2735_v29 = vpack.c.bf16 %v2703_v1, %v2703_v1 }
 0x1a5   : > { %v2619_v40 = vpop.f32.mrb[28].mxu1 }
 0x1a6   : > { %2768 = vst.msk [vmem:[%s4715_s17 + $0x34] sm:$0xf] %vm2754_vm8, %v2735_v29  ;;  %v2620_v5 = vadd.f32 %v4706_v24, %v2619_v40  ;;  %v2621_v59 = vpop.f32.mrb[29].mxu1 }
 0x1a7   : > { %v2622_v47 = vpop.f32.mrb[30].mxu1  ;;  %v692_v55 = vpop.f32.mrb[32].mxu0 }
 0x1a8   : > { %v2704_v54 = vmax.f32 %v2620_v5, 0.0  ;;  %v2623_v12 = vadd.f32 %v4706_v24, %v2622_v47  ;;  %v2624_v19 = vpop.f32.mrb[31].mxu1  ;;  %v693_v61 = vadd.f32 %v4681_v42, %v692_v55  ;;  %v694_v27 = vpop.f32.mrb[33].mxu0 }
 0x1a9   : > { %v695_v49 = vpop.f32.mrb[34].mxu0 }
 0x1aa   : > { %v2736_v11 = vpack.c.bf16 %v2704_v54, %v2704_v54  ;;  %v2705_v26 = vmax.f32 %v2623_v12, 0.0  ;;  %v771_v10 = vmax.f32 %v693_v61, 0.0  ;;  %v696_v38 = vadd.f32 %v4681_v42, %v695_v49  ;;  %v697_v52 = vpop.f32.mrb[35].mxu0 }
 0x1ac   : > { %2769 = vst.msk [vmem:[%s4715_s17 + $0x38] sm:$0xf] %vm2754_vm8, %v2736_v11  ;;  %v2737_v34 = vpack.c.bf16 %v2705_v26, %v2705_v26  ;;  %v803_v35 = vpack.c.bf16 %v771_v10, %v771_v10  ;;  %v772_v50 = vmax.f32 %v696_v38, 0.0 }
 0x1ae   : > { %2770 = vst.msk [vmem:[%s4715_s17 + $0x3c] sm:$0xf] %vm2754_vm8, %v2737_v34  ;;  %v804_v7 = vpack.c.bf16 %v772_v50, %v772_v50 }
 0x1af   : > { %836 = vst.msk [vmem:[%s4695_s12 + $0x40] sm:$0xf] %vm819_vm7, %v803_v35 }
 0x1b0   : > { %837 = vst.msk [vmem:[%s4695_s12 + $0x44] sm:$0xf] %vm819_vm7, %v804_v7 }
 0x1b5   : > { %v700_v48 = vpop.f32.mrb[36].mxu0 }
 0x1b6   : > { %v701_v6 = vadd.f32 %v4681_v42, %v700_v48  ;;  %v702_v58 = vpop.f32.mrb[37].mxu0 }
 0x1b7   : > { %v703_v15 = vpop.f32.mrb[38].mxu0 }
 0x1b8   : > { %v773_v51 = vmax.f32 %v701_v6, 0.0  ;;  %v704_v53 = vadd.f32 %v4681_v42, %v703_v15  ;;  %v705_v14 = vpop.f32.mrb[39].mxu0 }
 0x1b9   : > { %v2627_v37 = vpop.f32.mrb[32].mxu1 }
 0x1ba   : > { %v2628_v16 = vadd.f32 %v4706_v24, %v2627_v37  ;;  %v2629_v2 = vpop.f32.mrb[33].mxu1  ;;  %v805_v9 = vpack.c.bf16 %v773_v51, %v773_v51  ;;  %v774_v63 = vmax.f32 %v704_v53, 0.0 }
 0x1bb   : > { %v2630_v56 = vpop.f32.mrb[34].mxu1 }
 0x1bc   : > { %v2706_v28 = vmax.f32 %v2628_v16, 0.0  ;;  %v2631_v33 = vadd.f32 %v4706_v24, %v2630_v56  ;;  %v2632_v41 = vpop.f32.mrb[35].mxu1  ;;  %838 = vst.msk [vmem:[%s4695_s12 + $0x48] sm:$0xf] %vm819_vm7, %v805_v9  ;;  %v806_v30 = vpack.c.bf16 %v774_v63, %v774_v63 }
 0x1be   : > { %v2738_v43 = vpack.c.bf16 %v2706_v28, %v2706_v28  ;;  %v2707_v22 = vmax.f32 %v2631_v33, 0.0  ;;  %839 = vst.msk [vmem:[%s4695_s12 + $0x4c] sm:$0xf] %vm819_vm7, %v806_v30 }
 0x1c0   : > { %2771 = vst.msk [vmem:[%s4715_s17 + $0x40] sm:$0xf] %vm2754_vm8, %v2738_v43  ;;  %v2739_v20 = vpack.c.bf16 %v2707_v22, %v2707_v22 }
 0x1c2   : > { %2772 = vst.msk [vmem:[%s4715_s17 + $0x44] sm:$0xf] %vm2754_vm8, %v2739_v20 }
 0x1c3   : > { %v708_v36 = vpop.f32.mrb[40].mxu0 }
 0x1c4   : > { %v709_v18 = vadd.f32 %v4681_v42, %v708_v36  ;;  %v710_v62 = vpop.f32.mrb[41].mxu0 }
 0x1c5   : > { %v711_v44 = vpop.f32.mrb[42].mxu0 }
 0x1c6   : > { %v775_v13 = vmax.f32 %v709_v18, 0.0  ;;  %v712_v39 = vadd.f32 %v4681_v42, %v711_v44  ;;  %v713_v4 = vpop.f32.mrb[43].mxu0 }
 0x1c7   : > { %v2635_v45 = vpop.f32.mrb[36].mxu1 }
 0x1c8   : > { %v2636_v46 = vadd.f32 %v4706_v24, %v2635_v45  ;;  %v2637_v57 = vpop.f32.mrb[37].mxu1  ;;  %v807_v60 = vpack.c.bf16 %v775_v13, %v775_v13  ;;  %v776_v8 = vmax.f32 %v712_v39, 0.0 }
 0x1c9   : > { %v2638_v0 = vpop.f32.mrb[38].mxu1 }
 0x1ca   : > { %v2708_v17 = vmax.f32 %v2636_v46, 0.0  ;;  %v2639_v23 = vadd.f32 %v4706_v24, %v2638_v0  ;;  %v2640_v3 = vpop.f32.mrb[39].mxu1  ;;  %840 = vst.msk [vmem:[%s4695_s12 + $0x50] sm:$0xf] %vm819_vm7, %v807_v60  ;;  %v808_v25 = vpack.c.bf16 %v776_v8, %v776_v8 }
 0x1cb   : > { %v716_v31 = vpop.f32.mrb[44].mxu0 }
 0x1cc   : > { %v2740_v21 = vpack.c.bf16 %v2708_v17, %v2708_v17  ;;  %v2709_v32 = vmax.f32 %v2639_v23, 0.0  ;;  %841 = vst.msk [vmem:[%s4695_s12 + $0x54] sm:$0xf] %vm819_vm7, %v808_v25  ;;  %v717_v1 = vadd.f32 %v4681_v42, %v716_v31  ;;  %v718_v29 = vpop.f32.mrb[45].mxu0 }
 0x1cd   : > { %v719_v40 = vpop.f32.mrb[46].mxu0 }
 0x1ce   : > { %2773 = vst.msk [vmem:[%s4715_s17 + $0x48] sm:$0xf] %vm2754_vm8, %v2740_v21  ;;  %v2741_v5 = vpack.c.bf16 %v2709_v32, %v2709_v32  ;;  %v777_v59 = vmax.f32 %v717_v1, 0.0  ;;  %v720_v47 = vadd.f32 %v4681_v42, %v719_v40  ;;  %v721_v54 = vpop.f32.mrb[47].mxu0 }
 0x1d0   : > { %2774 = vst.msk [vmem:[%s4715_s17 + $0x4c] sm:$0xf] %vm2754_vm8, %v2741_v5  ;;  %v809_v12 = vpack.c.bf16 %v777_v59, %v777_v59  ;;  %v778_v19 = vmax.f32 %v720_v47, 0.0 }
 0x1d2   : > { %842 = vst.msk [vmem:[%s4695_s12 + $0x58] sm:$0xf] %vm819_vm7, %v809_v12  ;;  %v810_v55 = vpack.c.bf16 %v778_v19, %v778_v19 }
 0x1d3   : > { %v724_v61 = vpop.f32.mrb[48].mxu0 }
 0x1d4   : > { %843 = vst.msk [vmem:[%s4695_s12 + $0x5c] sm:$0xf] %vm819_vm7, %v810_v55  ;;  %v725_v27 = vadd.f32 %v4681_v42, %v724_v61  ;;  %v726_v11 = vpop.f32.mrb[49].mxu0 }
 0x1d5   : > { %v2643_v26 = vpop.f32.mrb[40].mxu1  ;;  %v727_v49 = vpop.f32.mrb[50].mxu0 }
 0x1d6   : > { %v2644_v10 = vadd.f32 %v4706_v24, %v2643_v26  ;;  %v2645_v38 = vpop.f32.mrb[41].mxu1  ;;  %v779_v52 = vmax.f32 %v725_v27, 0.0  ;;  %v728_v34 = vadd.f32 %v4681_v42, %v727_v49  ;;  %v729_v35 = vpop.f32.mrb[51].mxu0 }
 0x1d7   : > { %v2646_v50 = vpop.f32.mrb[42].mxu1 }
 0x1d8   : > { %v2710_v7 = vmax.f32 %v2644_v10, 0.0  ;;  %v2647_v48 = vadd.f32 %v4706_v24, %v2646_v50  ;;  %v2648_v6 = vpop.f32.mrb[43].mxu1  ;;  %v811_v58 = vpack.c.bf16 %v779_v52, %v779_v52  ;;  %v780_v15 = vmax.f32 %v728_v34, 0.0 }
 0x1da   : > { %v2742_v51 = vpack.c.bf16 %v2710_v7, %v2710_v7  ;;  %v2711_v53 = vmax.f32 %v2647_v48, 0.0  ;;  %844 = vst.msk [vmem:[%s4695_s12 + $0x60] sm:$0xf] %vm819_vm7, %v811_v58  ;;  %v812_v14 = vpack.c.bf16 %v780_v15, %v780_v15 }
 0x1db   : > { %v732_v37 = vpop.f32.mrb[52].mxu0 }
 0x1dc   : > { %2775 = vst.msk [vmem:[%s4715_s17 + $0x50] sm:$0xf] %vm2754_vm8, %v2742_v51  ;;  %v2743_v16 = vpack.c.bf16 %v2711_v53, %v2711_v53  ;;  %v733_v2 = vadd.f32 %v4681_v42, %v732_v37  ;;  %v734_v9 = vpop.f32.mrb[53].mxu0 }
 0x1dd   : > { %845 = vst.msk [vmem:[%s4695_s12 + $0x64] sm:$0xf] %vm819_vm7, %v812_v14  ;;  %v2651_v63 = vpop.f32.mrb[44].mxu1  ;;  %v735_v56 = vpop.f32.mrb[54].mxu0 }
 0x1de   : > { %2776 = vst.msk [vmem:[%s4715_s17 + $0x54] sm:$0xf] %vm2754_vm8, %v2743_v16  ;;  %v2652_v28 = vadd.f32 %v4706_v24, %v2651_v63  ;;  %v2653_v33 = vpop.f32.mrb[45].mxu1  ;;  %v781_v41 = vmax.f32 %v733_v2, 0.0  ;;  %v736_v30 = vadd.f32 %v4681_v42, %v735_v56  ;;  %v737_v43 = vpop.f32.mrb[55].mxu0 }
 0x1df   : > { %v2654_v22 = vpop.f32.mrb[46].mxu1 }
 0x1e0   : > { %v2712_v20 = vmax.f32 %v2652_v28, 0.0  ;;  %v2655_v36 = vadd.f32 %v4706_v24, %v2654_v22  ;;  %v2656_v18 = vpop.f32.mrb[47].mxu1  ;;  %v813_v62 = vpack.c.bf16 %v781_v41, %v781_v41  ;;  %v782_v44 = vmax.f32 %v736_v30, 0.0 }
 0x1e2   : > { %v2744_v13 = vpack.c.bf16 %v2712_v20, %v2712_v20  ;;  %v2713_v39 = vmax.f32 %v2655_v36, 0.0  ;;  %846 = vst.msk [vmem:[%s4695_s12 + $0x68] sm:$0xf] %vm819_vm7, %v813_v62  ;;  %v814_v4 = vpack.c.bf16 %v782_v44, %v782_v44 }
 0x1e3   : > { %v740_v45 = vpop.f32.mrb[56].mxu0 }
 0x1e4   : > { %2777 = vst.msk [vmem:[%s4715_s17 + $0x58] sm:$0xf] %vm2754_vm8, %v2744_v13  ;;  %v2745_v46 = vpack.c.bf16 %v2713_v39, %v2713_v39  ;;  %v741_v57 = vadd.f32 %v4681_v42, %v740_v45  ;;  %v742_v60 = vpop.f32.mrb[57].mxu0 }
 0x1e5   : > { %847 = vst.msk [vmem:[%s4695_s12 + $0x6c] sm:$0xf] %vm819_vm7, %v814_v4  ;;  %v2659_v8 = vpop.f32.mrb[48].mxu1  ;;  %v743_v0 = vpop.f32.mrb[58].mxu0 }
 0x1e6   : > { %2778 = vst.msk [vmem:[%s4715_s17 + $0x5c] sm:$0xf] %vm2754_vm8, %v2745_v46  ;;  %v2660_v17 = vadd.f32 %v4706_v24, %v2659_v8  ;;  %v2661_v23 = vpop.f32.mrb[49].mxu1  ;;  %v783_v3 = vmax.f32 %v741_v57, 0.0  ;;  %v744_v25 = vadd.f32 %v4681_v42, %v743_v0  ;;  %v745_v31 = vpop.f32.mrb[59].mxu0 }
 0x1e7   : > { %v2662_v21 = vpop.f32.mrb[50].mxu1 }
 0x1e8   : > { %v2714_v32 = vmax.f32 %v2660_v17, 0.0  ;;  %v2663_v1 = vadd.f32 %v4706_v24, %v2662_v21  ;;  %v2664_v29 = vpop.f32.mrb[51].mxu1  ;;  %v815_v40 = vpack.c.bf16 %v783_v3, %v783_v3  ;;  %v784_v5 = vmax.f32 %v744_v25, 0.0 }
 0x1ea   : > { %v2746_v59 = vpack.c.bf16 %v2714_v32, %v2714_v32  ;;  %v2715_v47 = vmax.f32 %v2663_v1, 0.0  ;;  %848 = vst.msk [vmem:[%s4695_s12 + $0x70] sm:$0xf] %vm819_vm7, %v815_v40  ;;  %v816_v54 = vpack.c.bf16 %v784_v5, %v784_v5 }
 0x1eb   : > { %v748_v12 = vpop.f32.mrb[60].mxu0 }
 0x1ec   : > { %2779 = vst.msk [vmem:[%s4715_s17 + $0x60] sm:$0xf] %vm2754_vm8, %v2746_v59  ;;  %v2747_v19 = vpack.c.bf16 %v2715_v47, %v2715_v47  ;;  %v749_v55 = vadd.f32 %v4681_v42, %v748_v12  ;;  %v750_v61 = vpop.f32.mrb[61].mxu0 }
 0x1ed   : > { %849 = vst.msk [vmem:[%s4695_s12 + $0x74] sm:$0xf] %vm819_vm7, %v816_v54  ;;  %v2667_v27 = vpop.f32.mrb[52].mxu1  ;;  %v751_v11 = vpop.f32.mrb[62].mxu0 }
 0x1ee   : > { %2780 = vst.msk [vmem:[%s4715_s17 + $0x64] sm:$0xf] %vm2754_vm8, %v2747_v19  ;;  %v2668_v26 = vadd.f32 %v4706_v24, %v2667_v27  ;;  %v2669_v49 = vpop.f32.mrb[53].mxu1  ;;  %v785_v10 = vmax.f32 %v749_v55, 0.0  ;;  %v752_v38 = vadd.f32 %v4681_v42, %v751_v11  ;;  %v753_v52 = vpop.f32.mrb[63].mxu0 }
 0x1ef   : > { %v2670_v34 = vpop.f32.mrb[54].mxu1 }
 0x1f0   : > { %v2716_v35 = vmax.f32 %v2668_v26, 0.0  ;;  %v2671_v50 = vadd.f32 %v4706_v24, %v2670_v34  ;;  %v2672_v7 = vpop.f32.mrb[55].mxu1  ;;  %v817_v48 = vpack.c.bf16 %v785_v10, %v785_v10  ;;  %v786_v6 = vmax.f32 %v752_v38, 0.0 }
 0x1f2   : > { %v2748_v58 = vpack.c.bf16 %v2716_v35, %v2716_v35  ;;  %v2717_v15 = vmax.f32 %v2671_v50, 0.0  ;;  %850 = vst.msk [vmem:[%s4695_s12 + $0x78] sm:$0xf] %vm819_vm7, %v817_v48  ;;  %v818_v51 = vpack.c.bf16 %v786_v6, %v786_v6 }
 0x1f4   : > { %2781 = vst.msk [vmem:[%s4715_s17 + $0x68] sm:$0xf] %vm2754_vm8, %v2748_v58  ;;  %v2749_v53 = vpack.c.bf16 %v2717_v15, %v2717_v15 }
 0x1f5   : > { %851 = vst.msk [vmem:[%s4695_s12 + $0x7c] sm:$0xf] %vm819_vm7, %v818_v51  ;;  %v2675_v42 = vpop.f32.mrb[56].mxu1 }
 0x1f6   : > { %2782 = vst.msk [vmem:[%s4715_s17 + $0x6c] sm:$0xf] %vm2754_vm8, %v2749_v53  ;;  %v2676_v14 = vadd.f32 %v4706_v24, %v2675_v42  ;;  %v2677_v37 = vpop.f32.mrb[57].mxu1 }
 0x1f7   : > { %v2678_v16 = vpop.f32.mrb[58].mxu1 }
 0x1f8   : > { %v2718_v2 = vmax.f32 %v2676_v14, 0.0  ;;  %v2679_v9 = vadd.f32 %v4706_v24, %v2678_v16  ;;  %v2680_v63 = vpop.f32.mrb[59].mxu1 }
 0x1fa   : > { %v2750_v56 = vpack.c.bf16 %v2718_v2, %v2718_v2  ;;  %v2719_v28 = vmax.f32 %v2679_v9, 0.0 }
 0x1fc   : > { %2783 = vst.msk [vmem:[%s4715_s17 + $0x70] sm:$0xf] %vm2754_vm8, %v2750_v56  ;;  %v2751_v33 = vpack.c.bf16 %v2719_v28, %v2719_v28 }
 0x1fd   : > { %v2683_v41 = vpop.f32.mrb[60].mxu1 }
 0x1fe   : > { %2784 = vst.msk [vmem:[%s4715_s17 + $0x74] sm:$0xf] %vm2754_vm8, %v2751_v33  ;;  %v2684_v30 = vadd.f32 %v4706_v24, %v2683_v41  ;;  %v2685_v43 = vpop.f32.mrb[61].mxu1 }
 0x1ff   : > { %v2686_v22 = vpop.f32.mrb[62].mxu1 }
 0x200   : > { %v2720_v20 = vmax.f32 %v2684_v30, 0.0  ;;  %v2687_v36 = vadd.f32 %v4706_v24, %v2686_v22  ;;  %v2688_v18 = vpop.f32.mrb[63].mxu1 }
 0x202   : > { %v2752_v62 = vpack.c.bf16 %v2720_v20, %v2720_v20  ;;  %v2721_v44 = vmax.f32 %v2687_v36, 0.0 }
 0x204   : > { %2785 = vst.msk [vmem:[%s4715_s17 + $0x78] sm:$0xf] %vm2754_vm8, %v2752_v62  ;;  %v2753_v13 = vpack.c.bf16 %v2721_v44, %v2721_v44 }
 0x206   : > { %2786 = vst.msk [vmem:[%s4715_s17 + $0x7c] sm:$0xf] %vm2754_vm8, %v2753_v13 }
 0x207 PF: > { %s17_s21 = sadd.s32 1, %s3247_s21  }
 0x208   : > { %p14_p4 = scmp.ge.s32.totalorder %s17_s21, 4  }
 0x20a   :  { %16 = sbr.rel (!%p14_p4) target bundleno = 1 (0x1), region = 82 }

// kernel: mixed_3b_pallas.4
= control target key start
LH: loop header
LB: loop body
LE: loop exit
PB: predicated region body
PF: predicated region fallthrough
CT: control target
= control target key end

     0   :  { %s13060_s13 = smov 0   ;;  %s15947_s0 = inlined_call_operand.vmem [shape: bf16[8,8,8,192], index: 0, kind: input, shape index: {}]   ;;  %s15948_s1 = inlined_call_operand.vmem [shape: bf16[192,96], index: 1, kind: input, shape index: {}]   ;;  %s15949_s2 = inlined_call_operand.vmem [shape: f32[1,96], index: 2, kind: input, shape index: {}]   ;;  %s15950_s3 = inlined_call_operand.vmem [shape: bf16[9,96,128], index: 3, kind: input, shape index: {}]   ;;  %s15951_s4 = inlined_call_operand.vmem [shape: f32[1,128], index: 4, kind: input, shape index: {}]   ;;  %s15952_s5 = inlined_call_operand.vmem [shape: bf16[192,16], index: 5, kind: input, shape index: {}]   ;;  %s15953_s6 = inlined_call_operand.vmem [shape: f32[1,16], index: 6, kind: input, shape index: {}]   ;;  %s15954_s7 = inlined_call_operand.vmem [shape: bf16[9,16,32], index: 7, kind: input, shape index: {}]   ;;  %s15955_s8 = inlined_call_operand.vmem [shape: f32[1,32], index: 8, kind: input, shape index: {}]   ;;  %s15956_s9 = inlined_call_operand.vmem [shape: bf16[8,8,8,128], index: 9, kind: output, shape index: {0}]   ;;  %s15957_s10 = inlined_call_operand.vmem [shape: bf16[8,8,8,32], index: 10, kind: output, shape index: {1}]  }
   0x1 LB: > { %s9352_s14 = sadd.s32 4294967295, %s13002_s13   ;;  %p9356_p0 = scmp.ge.s32.totalorder %s13002_s13, 1  ;;  %s13002_s13 = sphi %s13060_s13, %s21_s13  }
   0x2   : > { %p317_p1 = scmp.lt.s32.totalorder %s13002_s13, 3 }
   0x4   : > { %p318_p2 = pnand %p9356_p0, %p317_p1 }
   0x6   : > { %321 = sbr.rel (%p318_p2) target bundleno = 2019 (0x7e3), region = 56 }
   0xd   : > { %v12829_v0 = vld [vmem:[%s15948_s1] sm:$0xff]   ;;  %v15958_v1 = vmov 0   ;;  %s9357_s17 = sshll.u32 %s9352_s14, 2  ;;  %v12830_v2 = vld [vmem:[%s15948_s1 + $0x8] sm:$0xff]   ;;  %v12831_v3 = vld [vmem:[%s15948_s1 + $0x10] sm:$0xff]   ;;  %vm664_vm0 = vcmask 523264  }
   0xe   : > { %713 = vmatprep.subr.bf16.mxu0 %v15958_v1  ;;  %p364_p3 = scmp.lt.s32.totalorder %s9357_s17, 7  ;;  %v12832_v4 = vld [vmem:[%s15948_s1 + $0x18] sm:$0xff]   ;;  %v12833_v6 = vld [vmem:[%s15948_s1 + $0x20] sm:$0xff]   ;;  %v12834_v7 = vld [vmem:[%s15948_s1 + $0x28] sm:$0xff]   ;;  %vm1258_vm1 = vcmask 1040384   ;;  %vm1293_vm3 = vcmask 1044480  }
   0xf   : > { %714 = vmatpush1.bf16.msra.mxu0 %v12829_v0  ;;  %v12835_v8 = vld [vmem:[%s15948_s1 + $0x30] sm:$0xff]   ;;  %v12836_v9 = vld [vmem:[%s15948_s1 + $0x38] sm:$0xff]   ;;  %v12837_v10 = vld [vmem:[%s15948_s1 + $0x40] sm:$0xff]   ;;  %vm1259_vm2 = vsmask.f32 256  ;;  %vm1389_vm7 = vcmask 785408  }
  0x10   : > { %715 = vmatprep.subr.bf16.mxu0 %v15958_v1  ;;  %s16172_s17 = smov (!%p364_p3, %s9357_s17), 7  ;;  %v12838_v11 = vld [vmem:[%s15948_s1 + $0x48] sm:$0xff]   ;;  %v12839_v12 = vld [vmem:[%s15948_s1 + $0x50] sm:$0xff]   ;;  %v12840_v13 = vld [vmem:[%s15948_s1 + $0x58] sm:$0xff]   ;;  %vm1294_vm4 = vsmask.f32 4352 }
  0x11   : > { %s10227_s22 = sshll.u32 %s16172_s17, 6  ;;  %v12889_v14 = vld [vmem:[%s15950_s3 + $0x90] sm:$0xff]   ;;  %v12890_v15 = vld [vmem:[%s15950_s3 + $0x98] sm:$0xff]   ;;  %v12891_v16 = vld [vmem:[%s15950_s3 + $0x120] sm:$0xff]   ;;  %vm4822_vm8 = vcmask 1045504   ;;  %vm3519_vm9 = vcmask 1046528  }
  0x12   : > { %s13089_s27 = scalar_lea.vmem %s15947_s0, %s10227_s22  ;;  %11028 = vmatprep.subr.bf16.mxu1 %v12889_v14  ;;  %v12892_v39 = vld [vmem:[%s15950_s3 + $0xa0] sm:$0xff]   ;;  %v12893_v41 = vld [vmem:[%s15950_s3 + $0x128] sm:$0xff]   ;;  %v12895_v44 = vld [vmem:[%s15950_s3 + $0x130] sm:$0xff]   ;;  %s10228_s29 = sshll.u32 %s16172_s17, 5  ;;  %vm5841_vm10 = vcmask 130048   ;;  %vm9225_vm11 = vcmask 257024  }
  0x13   : > { %716 = vmatpush1.bf16.msra.mxu0 %v12830_v2  ;;  %v12843_v5 = vld [vmem:[%s13089_s27 + $0x4] ss:$8 sps:$4 sm:$0xff]   ;;  %v12841_v17 = vld [vmem:[%s13089_s27] ss:$8 sps:$4 sm:$0xff]   ;;  %v12844_v18 = vld [vmem:[%s13089_s27 + $0x14] ss:$8 sps:$4 sm:$0xff]   ;;  %11029 = vmatpush3.bf16.msra.mxu1 %v12889_v14  ;;  %s14602_s12 = scalar_lea.vmem %s15956_s9, %s10228_s29  ;;  %s15760_s19 = scalar_lea.vmem %s15957_s10, %s10228_s29 }
  0x14   : > { %717 = vmatprep.subr.bf16.mxu0 %v15958_v1  ;;  %9411 = vmatprep.mubr.msk.bf16.mxu0 %vm664_vm0, %v12843_v5  ;;  %v12846_v19 = vld [vmem:[%s13089_s27 + $0x10] ss:$8 sps:$4 sm:$0xff]   ;;  %v12847_v20 = vld [vmem:[%s13089_s27 + $0x24] ss:$8 sps:$4 sm:$0xff]   ;;  %v12849_v21 = vld [vmem:[%s13089_s27 + $0x20] ss:$8 sps:$4 sm:$0xff]  }
  0x15   : > { %11030 = vmatprep.subr.bf16.mxu1 %v12890_v15  ;;  %v12850_v22 = vld [vmem:[%s13089_s27 + $0x34] ss:$8 sps:$4 sm:$0xff]   ;;  %v12852_v23 = vld [vmem:[%s13089_s27 + $0x30] ss:$8 sps:$4 sm:$0xff]   ;;  %v12853_v24 = vld [vmem:[%s13089_s27 + $0x44] ss:$8 sps:$4 sm:$0xff]  }
  0x16   : > { %v12855_v25 = vld [vmem:[%s13089_s27 + $0x40] ss:$8 sps:$4 sm:$0xff]   ;;  %v12856_v26 = vld [vmem:[%s13089_s27 + $0x54] ss:$8 sps:$4 sm:$0xff]   ;;  %v12858_v27 = vld [vmem:[%s13089_s27 + $0x50] ss:$8 sps:$4 sm:$0xff]  }
  0x17   : > { %718 = vmatpush1.bf16.msra.mxu0 %v12831_v3  ;;  %11031 = vmatpush3.bf16.msra.mxu1 %v12890_v15  ;;  %v12859_v28 = vld [vmem:[%s13089_s27 + $0x64] ss:$8 sps:$4 sm:$0xff]   ;;  %v12861_v29 = vld [vmem:[%s13089_s27 + $0x60] ss:$8 sps:$4 sm:$0xff]   ;;  %v12862_v30 = vld [vmem:[%s13089_s27 + $0x74] ss:$8 sps:$4 sm:$0xff]  }
  0x18   : > { %719 = vmatprep.subr.bf16.mxu0 %v15958_v1  ;;  %v12864_v31 = vld [vmem:[%s13089_s27 + $0x70] ss:$8 sps:$4 sm:$0xff]   ;;  %v12865_v32 = vld [vmem:[%s13089_s27 + $0x84] ss:$8 sps:$4 sm:$0xff]   ;;  %v12867_v33 = vld [vmem:[%s13089_s27 + $0x80] ss:$8 sps:$4 sm:$0xff]   ;;  %11032 = vmatprep.subr.bf16.mxu1 %v12892_v39 }
  0x19   : > { %v12868_v34 = vld [vmem:[%s13089_s27 + $0x94] ss:$8 sps:$4 sm:$0xff]   ;;  %v12870_v35 = vld [vmem:[%s13089_s27 + $0x90] ss:$8 sps:$4 sm:$0xff]   ;;  %v12871_v36 = vld [vmem:[%s13089_s27 + $0xa4] ss:$8 sps:$4 sm:$0xff]  }
  0x1a   : > { %v12873_v37 = vld [vmem:[%s13089_s27 + $0xa0] ss:$8 sps:$4 sm:$0xff]   ;;  %v12874_v38 = vld [vmem:[%s13089_s27 + $0xb4] ss:$8 sps:$4 sm:$0xff]   ;;  %v12876_v40 = vld [vmem:[%s13089_s27 + $0xb0] ss:$8 sps:$4 sm:$0xff]  }
  0x1b   : > { %720 = vmatpush1.bf16.msra.mxu0 %v12832_v4  ;;  %v12877_v42 = vld [vmem:[%s13089_s27 + $0xc4] ss:$8 sps:$4 sm:$0xff]   ;;  %11033 = vmatpush3.bf16.msra.mxu1 %v12892_v39  ;;  %v12896_v45 = vld [vmem:[%s15950_s3 + $0xb0] sm:$0xff]   ;;  %v12879_v46 = vld [vmem:[%s13089_s27 + $0xc0] ss:$8 sps:$4 sm:$0xff]   ;;  %v15993_v15 = vmov 0 }
  0x1c   : > { %721 = vmatprep.subr.bf16.mxu0 %v15958_v1  ;;  %v12894_v43 = vld [vmem:[%s15950_s3 + $0xa8] sm:$0xff]   ;;  %v12897_v47 = vld [vmem:[%s15950_s3 + $0x138] sm:$0xff]   ;;  %v12899_v50 = vld [vmem:[%s15950_s3 + $0x140] sm:$0xff]  }
  0x1d   : > { %11034 = vmatprep.subr.bf16.mxu1 %v12894_v43  ;;  %v12880_v48 = vld [vmem:[%s13089_s27 + $0xd4] ss:$8 sps:$4 sm:$0xff]   ;;  %v12882_v51 = vld [vmem:[%s13089_s27 + $0xd0] ss:$8 sps:$4 sm:$0xff]   ;;  %v12901_v52 = vld [vmem:[%s15950_s3 + $0x148] sm:$0xff]  }
  0x1e   : > { %v12898_v49 = vld [vmem:[%s15950_s3 + $0xb8] sm:$0xff]   ;;  %v12883_v53 = vld [vmem:[%s13089_s27 + $0xe4] ss:$8 sps:$4 sm:$0xff]   ;;  %v12885_v54 = vld [vmem:[%s13089_s27 + $0xe0] ss:$8 sps:$4 sm:$0xff]  }
  0x1f   : > { %722 = vmatpush1.bf16.msra.mxu0 %v12833_v6  ;;  %11035 = vmatpush3.bf16.msra.mxu1 %v12894_v43  ;;  %v12886_v55 = vld [vmem:[%s13089_s27 + $0xf4] ss:$8 sps:$4 sm:$0xff]   ;;  %v12900_v56 = vld [vmem:[%s15950_s3] sm:$0xff]   ;;  %v12888_v57 = vld [vmem:[%s13089_s27 + $0xf0] ss:$8 sps:$4 sm:$0xff]  }
  0x20   : > { %723 = vmatprep.subr.bf16.mxu0 %v15958_v1  ;;  %11036 = vmatprep.subr.bf16.mxu1 %v12896_v45  ;;  %v13214_v58 = vld [vmem:[%s15950_s3 + $0xf0] sm:$0xff]   ;;  %v13219_v59 = vld [vmem:[%s15949_s2] ss:$0 sm:$0xff]  ;;  %vm13225_vm5 = vmand %vm1258_vm1, %vm1259_vm2 }
  0x21   : > { %v15994_v15 = vsel %vm13225_vm5, 4294967295, %v15993_v15  ;;  %vm13229_vm6 = vmand %vm1293_vm3, %vm1294_vm4 }
  0x22   : > { %15995 = vst [vmem:[#allocation2_spill] sm:$0xff] %v15994_v15 }
  0x23   : > { %724 = vmatpush1.bf16.msra.mxu0 %v12834_v7  ;;  %11037 = vmatpush3.bf16.msra.mxu1 %v12896_v45 }
  0x24   : > { %725 = vmatprep.subr.bf16.mxu0 %v15958_v1  ;;  %11038 = vmatprep.subr.bf16.mxu1 %v12898_v49 }
  0x27   : > { %726 = vmatpush1.bf16.msra.mxu0 %v12835_v8  ;;  %11039 = vmatpush3.bf16.msra.mxu1 %v12898_v49 }
  0x28   : > { %727 = vmatprep.subr.bf16.mxu0 %v15958_v1  ;;  %11104 = vmatprep.subr.bf16.mxu1 %v12900_v56 }
  0x2b   : > { %728 = vmatpush1.bf16.msra.mxu0 %v12836_v9 }
  0x2c   : > { %729 = vmatprep.subr.bf16.mxu0 %v15958_v1 }
  0x2f   : > { %730 = vmatpush1.bf16.msra.mxu0 %v12837_v10 }
  0x30   : > { %731 = vmatprep.subr.bf16.mxu0 %v15958_v1 }
  0x33   : > { %732 = vmatpush1.bf16.msra.mxu0 %v12838_v11 }
  0x34   : > { %733 = vmatprep.subr.bf16.mxu0 %v15958_v1 }
  0x37   : > { %734 = vmatpush1.bf16.msra.mxu0 %v12839_v12 }
  0x38   : > { %735 = vmatprep.subr.bf16.mxu0 %v15958_v1 }
  0x3b   : > { %736 = vmatpush1.bf16.msra.mxu0 %v12840_v13 }
  0x3c   : > { %11180 = vmatprep.subr.bf16.mxu0 %v12891_v16 }
  0x3e   : > { %746 = vmatmul.mubr.bf16.vlgmr.msra.gmra.mrb[0].mxu0 %v12841_v17 }
  0x3f   : > { %9412 = vmatprep.mubr.msk.bf16.mxu0 %vm664_vm0, %v12844_v18  ;;  %11181 = vmatpush3.bf16.msra.mxu0 %v12891_v16 }
  0x40   : > { %11182 = vmatprep.subr.bf16.mxu0 %v12893_v41 }
  0x43   : > { %11183 = vmatpush3.bf16.msra.mxu0 %v12893_v41 }
  0x44   : > { %11184 = vmatprep.subr.bf16.mxu0 %v12895_v44 }
  0x46   : > { %754 = vmatmul.mubr.bf16.gmra.mrb[4].mxu0 %v12846_v19  ;;  %v15996_v19 = vmov 0 }
  0x47   : > { %9413 = vmatprep.mubr.msk.bf16.mxu0 %vm664_vm0, %v12847_v20  ;;  %11185 = vmatpush3.bf16.msra.mxu0 %v12895_v44  ;;  %v15997_v19 = vsel %vm13229_vm6, 4294967295, %v15996_v19 }
  0x48   : > { %11186 = vmatprep.subr.bf16.mxu0 %v12897_v47  ;;  %15998 = vst [vmem:[#allocation3_spill] sm:$0xff] %v15997_v19 }
  0x4b   : > { %11187 = vmatpush3.bf16.msra.mxu0 %v12897_v47 }
  0x4c   : > { %11188 = vmatprep.subr.bf16.mxu0 %v12899_v50 }
  0x4e   : > { %762 = vmatmul.mubr.bf16.gmra.mrb[8].mxu0 %v12849_v21 }
  0x4f   : > { %9414 = vmatprep.mubr.msk.bf16.mxu0 %vm664_vm0, %v12850_v22  ;;  %11189 = vmatpush3.bf16.msra.mxu0 %v12899_v50 }
  0x50   : > { %11190 = vmatprep.subr.bf16.mxu0 %v12901_v52 }
  0x53   : > { %11191 = vmatpush3.bf16.msra.mxu0 %v12901_v52  ;;  %v12908_v52 = vld [vmem:[%s15950_s3 + $0xf8] sm:$0xff]  }
  0x54   : > { %11484 = vmatprep.subr.bf16.mxu0 %v13214_v58 }
  0x56   : > { %770 = vmatmul.mubr.bf16.gmra.mrb[12].mxu0 %v12852_v23 }
  0x57   : > { %9415 = vmatprep.mubr.msk.bf16.mxu0 %vm664_vm0, %v12853_v24 }
  0x5e   : > { %778 = vmatmul.mubr.bf16.gmra.mrb[16].mxu0 %v12855_v25 }
  0x5f   : > { %9416 = vmatprep.mubr.msk.bf16.mxu0 %vm664_vm0, %v12856_v26 }
  0x66   : > { %786 = vmatmul.mubr.bf16.gmra.mrb[20].mxu0 %v12858_v27 }
  0x67   : > { %9417 = vmatprep.mubr.msk.bf16.mxu0 %vm664_vm0, %v12859_v28 }
  0x6e   : > { %794 = vmatmul.mubr.bf16.gmra.mrb[24].mxu0 %v12861_v29 }
  0x6f   : > { %9418 = vmatprep.mubr.msk.bf16.mxu0 %vm664_vm0, %v12862_v30 }
  0x76   : > { %802 = vmatmul.mubr.bf16.gmra.mrb[28].mxu0 %v12864_v31  ;;  %v12902_v31 = vld [vmem:[%s15950_s3 + $0x8] sm:$0xff]  }
  0x77   : > { %9419 = vmatprep.mubr.msk.bf16.mxu0 %vm664_vm0, %v12865_v32 }
  0x7e   : > { %810 = vmatmul.mubr.bf16.gmra.mrb[32].mxu0 %v12867_v33 }
  0x7f   : > { %9420 = vmatprep.mubr.msk.bf16.mxu0 %vm664_vm0, %v12868_v34 }
  0x86   : > { %818 = vmatmul.mubr.bf16.gmra.mrb[36].mxu0 %v12870_v35 }
  0x87   : > { %9421 = vmatprep.mubr.msk.bf16.mxu0 %vm664_vm0, %v12871_v36 }
  0x8e   : > { %826 = vmatmul.mubr.bf16.gmra.mrb[40].mxu0 %v12873_v37 }
  0x8f   : > { %9422 = vmatprep.mubr.msk.bf16.mxu0 %vm664_vm0, %v12874_v38 }
  0x96   : > { %834 = vmatmul.mubr.bf16.gmra.mrb[44].mxu0 %v12876_v40 }
  0x97   : > { %9423 = vmatprep.mubr.msk.bf16.mxu0 %vm664_vm0, %v12877_v42 }
  0x9e   : > { %842 = vmatmul.mubr.bf16.gmra.mrb[48].mxu0 %v12879_v46  ;;  %v12903_v46 = vld [vmem:[%s15950_s3 + $0x10] sm:$0xff]  }
  0x9f   : > { %9424 = vmatprep.mubr.msk.bf16.mxu0 %vm664_vm0, %v12880_v48 }
  0xa6   : > { %850 = vmatmul.mubr.bf16.gmra.mrb[52].mxu0 %v12882_v51 }
  0xa7   : > { %9425 = vmatprep.mubr.msk.bf16.mxu0 %vm664_vm0, %v12883_v53 }
  0xae   : > { %858 = vmatmul.mubr.bf16.gmra.mrb[56].mxu0 %v12885_v54 }
  0xaf   : > { %9426 = vmatprep.mubr.msk.bf16.mxu0 %vm664_vm0, %v12886_v55 }
  0xb6   : > { %866 = vmatmul.mubr.bf16.gmra.mrb[60].mxu0 %v12888_v57 }
 0x111   : > { %v747_v60 = vpop.f32.mrb[0].mxu0 }
 0x112   : > { %v748_v61 = vadd.f32 %v13219_v59, %v747_v60  ;;  %v749_v62 = vpop.f32.mrb[1].mxu0 }
 0x113   : > { %v750_v63 = vpop.f32.mrb[2].mxu0 }
 0x114   : > { %v874_v0 = vmax.f32 %v748_v61, 0.0  ;;  %v751_v2 = vadd.f32 %v13219_v59, %v750_v63  ;;  %v752_v3 = vpop.f32.mrb[3].mxu0 }
 0x115   : > { %v12909_v3 = vld [vmem:[%s15950_s3 + $0x100] sm:$0xff]  }
 0x116   : > { %v10230_v4 = vpack.c.bf16 %v874_v0, %v874_v0  ;;  %v875_v5 = vmax.f32 %v751_v2, 0.0 }
 0x118   : > { %v1003_v6 = vshrl.u32 %v10230_v4, 16  ;;  %v10231_v7 = vpack.c.bf16 %v875_v5, %v875_v5  ;;  %v1006_v10 = vshll.u32 %v10230_v4, 16 }
 0x119   : > { %v755_v8 = vpop.f32.mrb[4].mxu0 }
 0x11a   : > { %v1005_v9 = vrot.slane %v1003_v6, 7  ;;  %v1010_v11 = vshrl.u32 %v10231_v7, 16  ;;  %v756_v12 = vadd.f32 %v13219_v59, %v755_v8  ;;  %v757_v13 = vpop.f32.mrb[5].mxu0  ;;  %v1013_v14 = vshll.u32 %v10231_v7, 16 }
 0x11b   : > { %v758_v16 = vpop.f32.mrb[6].mxu0 }
 0x11c   : > { %v1008_v17 = vor.u32 %v1006_v10, %v1005_v9  ;;  %v1012_v18 = vrot.slane %v1010_v11, 7  ;;  %v876_v20 = vmax.f32 %v756_v12, 0.0  ;;  %v759_v21 = vadd.f32 %v13219_v59, %v758_v16  ;;  %v760_v22 = vpop.f32.mrb[7].mxu0  ;;  %v12905_v10 = vld [vmem:[%s15950_s3 + $0x20] sm:$0xff]  }
 0x11d   : > { %v12906_v22 = vld [vmem:[%s15950_s3 + $0x28] sm:$0xff]  }
 0x11e   : > { %v1015_v23 = vor.u32 %v1013_v14, %v1012_v18  ;;  %v10232_v24 = vpack.c.bf16 %v876_v20, %v876_v20  ;;  %v877_v25 = vmax.f32 %v759_v21, 0.0  ;;  %v1261_v26 = vsel %vm13225_vm5, 0, %v1008_v17  ;;  %v12910_v17 = vld [vmem:[%s15950_s3 + $0x108] sm:$0xff]  }
 0x11f   : > { %v13238_v27 = vsel %vm13229_vm6, %v1261_v26, 0 }
 0x120   : > { %v1262_v28 = vsel %vm13225_vm5, 0, %v1015_v23  ;;  %v1017_v29 = vshrl.u32 %v10232_v24, 16  ;;  %v10233_v30 = vpack.c.bf16 %v877_v25, %v877_v25  ;;  %11040 = vmatprep.mubr.msk.bf16.mxu1 %vm1389_vm7, %v13238_v27  ;;  %v1020_v35 = vshll.u32 %v10232_v24, 16 }
 0x121   : > { %v13249_v32 = vsel %vm13229_vm6, %v1262_v28, 0  ;;  %v763_v33 = vpop.f32.mrb[8].mxu0 }
 0x122   : > { %v1019_v34 = vrot.slane %v1017_v29, 7  ;;  %v1024_v36 = vshrl.u32 %v10233_v30, 16  ;;  %v764_v37 = vadd.f32 %v13219_v59, %v763_v33  ;;  %v765_v38 = vpop.f32.mrb[9].mxu0  ;;  %11041 = vmatmul.mubr.msk.bf16.vlgmr.msra.gmra.mrb[0].mxu1 %vm1389_vm7, %v13249_v32  ;;  %11192 = vmatprep.mubr.msk.bf16.mxu0 %vm1389_vm7, %v13249_v32  ;;  %v1027_v39 = vshll.u32 %v10233_v30, 16 }
 0x123   : > { %11105 = vmatpush3.bf16.msra.mxu1 %v12900_v56  ;;  %v766_v40 = vpop.f32.mrb[10].mxu0  ;;  %v12904_v56 = vld [vmem:[%s15950_s3 + $0x18] sm:$0xff]  }
 0x124   : > { %v1022_v41 = vor.u32 %v1020_v35, %v1019_v34  ;;  %v1026_v42 = vrot.slane %v1024_v36, 7  ;;  %v878_v43 = vmax.f32 %v764_v37, 0.0  ;;  %v767_v44 = vadd.f32 %v13219_v59, %v766_v40  ;;  %v768_v45 = vpop.f32.mrb[11].mxu0  ;;  %11106 = vmatprep.subr.bf16.mxu1 %v12902_v31  ;;  %v13329_v40 = vld [vmem:[%s15950_s3 + $0xc0] sm:$0xff]  }
 0x126   : > { %v1263_v47 = vsel %vm13225_vm5, 0, %v1022_v41  ;;  %v1029_v48 = vor.u32 %v1027_v39, %v1026_v42  ;;  %v10234_v49 = vpack.c.bf16 %v878_v43, %v878_v43  ;;  %v879_v50 = vmax.f32 %v767_v44, 0.0 }
 0x127   : > { %v13264_v51 = vsel %vm13229_vm6, %v1263_v47, 0  ;;  %11107 = vmatpush3.bf16.msra.mxu1 %v12902_v31  ;;  %v12911_v31 = vld [vmem:[%s15950_s3 + $0x110] sm:$0xff]  }
 0x128   : > { %v1264_v53 = vsel %vm13225_vm5, 0, %v1029_v48  ;;  %v1031_v54 = vshrl.u32 %v10234_v49, 16  ;;  %v10235_v55 = vpack.c.bf16 %v879_v50, %v879_v50  ;;  %11044 = vmatprep.mubr.msk.bf16.mxu1 %vm1389_vm7, %v13264_v51  ;;  %11193 = vmatmul.mubr.msk.bf16.vlgmr.msra.gmra.mrb[64].mxu0 %vm1389_vm7, %v13264_v51  ;;  %v1034_v62 = vshll.u32 %v10234_v49, 16 }
 0x129   : > { %v13280_v57 = vsel %vm13229_vm6, %v1264_v53, 0  ;;  %v771_v60 = vpop.f32.mrb[12].mxu0  ;;  %11108 = vmatprep.subr.bf16.mxu1 %v12903_v46  ;;  %11485 = vmatpush3.bf16.msra.mxu0 %v13214_v58 }
 0x12a   : > { %v1033_v61 = vrot.slane %v1031_v54, 7  ;;  %v1038_v63 = vshrl.u32 %v10235_v55, 16  ;;  %v772_v0 = vadd.f32 %v13219_v59, %v771_v60  ;;  %v773_v2 = vpop.f32.mrb[13].mxu0  ;;  %11045 = vmatmul.mubr.msk.bf16.gmra.mrb[4].mxu1 %vm1389_vm7, %v13280_v57  ;;  %11196 = vmatprep.mubr.msk.bf16.mxu0 %vm1389_vm7, %v13280_v57  ;;  %v1041_v4 = vshll.u32 %v10235_v55, 16 }
 0x12b   : > { %v774_v5 = vpop.f32.mrb[14].mxu0  ;;  %11109 = vmatpush3.bf16.msra.mxu1 %v12903_v46  ;;  %11486 = vmatprep.subr.bf16.mxu0 %v12908_v52  ;;  %v12913_v46 = vld [vmem:[%s15950_s3 + $0x118] sm:$0xff]  }
 0x12c   : > { %v1036_v58 = vor.u32 %v1034_v62, %v1033_v61  ;;  %v1040_v6 = vrot.slane %v1038_v63, 7  ;;  %v880_v7 = vmax.f32 %v772_v0, 0.0  ;;  %v775_v8 = vadd.f32 %v13219_v59, %v774_v5  ;;  %v776_v9 = vpop.f32.mrb[15].mxu0  ;;  %11110 = vmatprep.subr.bf16.mxu1 %v12904_v56 }
 0x12d   : > { %11487 = vmatpush3.bf16.msra.mxu0 %v12908_v52 }
 0x12e   : > { %v1265_v11 = vsel %vm13225_vm5, 0, %v1036_v58  ;;  %v1043_v12 = vor.u32 %v1041_v4, %v1040_v6  ;;  %v10236_v13 = vpack.c.bf16 %v880_v7, %v880_v7  ;;  %v881_v14 = vmax.f32 %v775_v8, 0.0  ;;  %11488 = vmatprep.subr.bf16.mxu0 %v12909_v3 }
 0x12f   : > { %v13299_v16 = vsel %vm13229_vm6, %v1265_v11, 0  ;;  %11111 = vmatpush3.bf16.msra.mxu1 %v12904_v56 }
 0x130   : > { %v1266_v18 = vsel %vm13225_vm5, 0, %v1043_v12  ;;  %v1045_v20 = vshrl.u32 %v10236_v13, 16  ;;  %v10237_v21 = vpack.c.bf16 %v881_v14, %v881_v14  ;;  %11048 = vmatprep.mubr.msk.bf16.mxu1 %vm1389_vm7, %v13299_v16  ;;  %11197 = vmatmul.mubr.msk.bf16.gmra.mrb[68].mxu0 %vm1389_vm7, %v13299_v16  ;;  %v1048_v26 = vshll.u32 %v10236_v13, 16 }
 0x131   : > { %v13315_v23 = vsel %vm13229_vm6, %v1266_v18, 0  ;;  %v779_v24 = vpop.f32.mrb[16].mxu0  ;;  %11112 = vmatprep.subr.bf16.mxu1 %v12905_v10  ;;  %11489 = vmatpush3.bf16.msra.mxu0 %v12909_v3 }
 0x132   : > { %v1047_v25 = vrot.slane %v1045_v20, 7  ;;  %v1052_v28 = vshrl.u32 %v10237_v21, 16  ;;  %v780_v29 = vadd.f32 %v13219_v59, %v779_v24  ;;  %v781_v30 = vpop.f32.mrb[17].mxu0  ;;  %11049 = vmatmul.mubr.msk.bf16.gmra.mrb[8].mxu1 %vm1389_vm7, %v13315_v23  ;;  %11200 = vmatprep.mubr.msk.bf16.mxu0 %vm1389_vm7, %v13315_v23  ;;  %v1055_v33 = vshll.u32 %v10237_v21, 16 }
 0x133   : > { %v782_v34 = vpop.f32.mrb[18].mxu0  ;;  %11113 = vmatpush3.bf16.msra.mxu1 %v12905_v10  ;;  %11490 = vmatprep.subr.bf16.mxu0 %v12910_v17 }
 0x134   : > { %v1050_v35 = vor.u32 %v1048_v26, %v1047_v25  ;;  %v1054_v36 = vrot.slane %v1052_v28, 7  ;;  %v882_v37 = vmax.f32 %v780_v29, 0.0  ;;  %v783_v38 = vadd.f32 %v13219_v59, %v782_v34  ;;  %v784_v39 = vpop.f32.mrb[19].mxu0  ;;  %11114 = vmatprep.subr.bf16.mxu1 %v12906_v22 }
 0x135   : > { %11491 = vmatpush3.bf16.msra.mxu0 %v12910_v17 }
 0x136   : > { %v1267_v41 = vsel %vm13225_vm5, 0, %v1050_v35  ;;  %v1057_v42 = vor.u32 %v1055_v33, %v1054_v36  ;;  %v10238_v43 = vpack.c.bf16 %v882_v37, %v882_v37  ;;  %v883_v44 = vmax.f32 %v783_v38, 0.0  ;;  %11492 = vmatprep.subr.bf16.mxu0 %v12911_v31 }
 0x137   : > { %v13335_v45 = vsel %vm13229_vm6, %v1267_v41, 0  ;;  %11115 = vmatpush3.bf16.msra.mxu1 %v12906_v22 }
 0x138   : > { %v1059_v47 = vshrl.u32 %v10238_v43, 16  ;;  %v10239_v48 = vpack.c.bf16 %v883_v44, %v883_v44  ;;  %11052 = vmatprep.mubr.msk.bf16.mxu1 %vm1389_vm7, %v13335_v45  ;;  %11201 = vmatmul.mubr.msk.bf16.gmra.mrb[72].mxu0 %vm1389_vm7, %v13335_v45  ;;  %v1268_v49 = vsel %vm13225_vm5, 0, %v1057_v42  ;;  %v1062_v54 = vshll.u32 %v10238_v43, 16 }
 0x139   : > { %v787_v50 = vpop.f32.mrb[20].mxu0  ;;  %v13348_v52 = vsel %vm13229_vm6, %v1268_v49, 0  ;;  %11256 = vmatprep.subr.bf16.mxu1 %v13329_v40  ;;  %11493 = vmatpush3.bf16.msra.mxu0 %v12911_v31 }
 0x13a   : > { %15999 = vst [vmem:[#allocation4_spill] sm:$0xff] %v13348_v52  ;;  %v1061_v53 = vrot.slane %v1059_v47, 7  ;;  %v1066_v55 = vshrl.u32 %v10239_v48, 16  ;;  %v788_v56 = vadd.f32 %v13219_v59, %v787_v50  ;;  %v789_v60 = vpop.f32.mrb[21].mxu0  ;;  %11053 = vmatmul.mubr.msk.bf16.gmra.mrb[12].mxu1 %vm1389_vm7, %v13348_v52  ;;  %11204 = vmatprep.mubr.msk.bf16.mxu0 %vm1389_vm7, %v13348_v52  ;;  %v1069_v61 = vshll.u32 %v10239_v48, 16 }
 0x13b   : > { %v790_v62 = vpop.f32.mrb[22].mxu0  ;;  %11494 = vmatprep.subr.bf16.mxu0 %v12913_v46 }
 0x13c   : > { %v1064_v63 = vor.u32 %v1062_v54, %v1061_v53  ;;  %v1068_v0 = vrot.slane %v1066_v55, 7  ;;  %v884_v2 = vmax.f32 %v788_v56, 0.0  ;;  %v791_v3 = vadd.f32 %v13219_v59, %v790_v62  ;;  %v792_v4 = vpop.f32.mrb[23].mxu0 }
 0x13d   : > { %11495 = vmatpush3.bf16.msra.mxu0 %v12913_v46 }
 0x13e   : > { %v1071_v5 = vor.u32 %v1069_v61, %v1068_v0  ;;  %v10240_v58 = vpack.c.bf16 %v884_v2, %v884_v2  ;;  %v885_v6 = vmax.f32 %v791_v3, 0.0  ;;  %v1269_v7 = vsel %vm13225_vm5, 0, %v1064_v63 }
 0x13f   : > { %v13361_v8 = vsel %vm13229_vm6, %v1269_v7, 0 }
 0x140   : > { %16000 = vst [vmem:[#allocation5_spill] sm:$0xff] %v13361_v8  ;;  %v1270_v9 = vsel %vm13225_vm5, 0, %v1071_v5  ;;  %v1073_v10 = vshrl.u32 %v10240_v58, 16  ;;  %v10241_v11 = vpack.c.bf16 %v885_v6, %v885_v6  ;;  %11056 = vmatprep.mubr.msk.bf16.mxu1 %vm1389_vm7, %v13361_v8  ;;  %11205 = vmatmul.mubr.bf16.gmra.mrb[76].mxu0 %v15958_v1  ;;  %v1076_v17 = vshll.u32 %v10240_v58, 16 }
 0x141   : > { %v13370_v12 = vsel %vm13229_vm6, %v1270_v9, 0  ;;  %v795_v13 = vpop.f32.mrb[24].mxu0 }
 0x142   : > { %v1075_v14 = vrot.slane %v1073_v10, 7  ;;  %v1080_v18 = vshrl.u32 %v10241_v11, 16  ;;  %v796_v20 = vadd.f32 %v13219_v59, %v795_v13  ;;  %v797_v21 = vpop.f32.mrb[25].mxu0  ;;  %11057 = vmatmul.mubr.msk.bf16.gmra.mrb[16].mxu1 %vm1389_vm7, %v13370_v12  ;;  %11208 = vmatprep.mubr.msk.bf16.mxu0 %vm1389_vm7, %v13370_v12  ;;  %v1083_v22 = vshll.u32 %v10241_v11, 16 }
 0x143   : > { %v798_v24 = vpop.f32.mrb[26].mxu0 }
 0x144   : > { %v1078_v25 = vor.u32 %v1076_v17, %v1075_v14  ;;  %v1082_v26 = vrot.slane %v1080_v18, 7  ;;  %v886_v28 = vmax.f32 %v796_v20, 0.0  ;;  %v799_v29 = vadd.f32 %v13219_v59, %v798_v24  ;;  %v800_v30 = vpop.f32.mrb[27].mxu0 }
 0x146   : > { %v1271_v31 = vsel %vm13225_vm5, 0, %v1078_v25  ;;  %v1085_v33 = vor.u32 %v1083_v22, %v1082_v26  ;;  %v10242_v34 = vpack.c.bf16 %v886_v28, %v886_v28  ;;  %v887_v35 = vmax.f32 %v799_v29, 0.0 }
 0x147   : > { %v13382_v36 = vsel %vm13229_vm6, %v1271_v31, 0 }
 0x148   : > { %v1272_v37 = vsel %vm13225_vm5, 0, %v1085_v33  ;;  %v1087_v38 = vshrl.u32 %v10242_v34, 16  ;;  %v10243_v39 = vpack.c.bf16 %v887_v35, %v887_v35  ;;  %11060 = vmatprep.mubr.msk.bf16.mxu1 %vm1389_vm7, %v13382_v36  ;;  %11209 = vmatmul.mubr.msk.bf16.gmra.mrb[80].mxu0 %vm1389_vm7, %v13382_v36  ;;  %v1090_v44 = vshll.u32 %v10242_v34, 16 }
 0x149   : > { %v13392_v41 = vsel %vm13229_vm6, %v1272_v37, 0  ;;  %v803_v42 = vpop.f32.mrb[28].mxu0 }
 0x14a   : > { %v1089_v43 = vrot.slane %v1087_v38, 7  ;;  %v1094_v46 = vshrl.u32 %v10243_v39, 16  ;;  %v804_v47 = vadd.f32 %v13219_v59, %v803_v42  ;;  %v805_v48 = vpop.f32.mrb[29].mxu0  ;;  %11061 = vmatmul.mubr.msk.bf16.gmra.mrb[20].mxu1 %vm1389_vm7, %v13392_v41  ;;  %11212 = vmatprep.mubr.msk.bf16.mxu0 %vm1389_vm7, %v13392_v41  ;;  %v1097_v49 = vshll.u32 %v10243_v39, 16 }
 0x14b   : > { %v806_v50 = vpop.f32.mrb[30].mxu0 }
 0x14c   : > { %v1092_v53 = vor.u32 %v1090_v44, %v1089_v43  ;;  %v1096_v54 = vrot.slane %v1094_v46, 7  ;;  %v888_v55 = vmax.f32 %v804_v47, 0.0  ;;  %v807_v56 = vadd.f32 %v13219_v59, %v806_v50  ;;  %v808_v60 = vpop.f32.mrb[31].mxu0 }
 0x14e   : > { %v1273_v61 = vsel %vm13225_vm5, 0, %v1092_v53  ;;  %v1099_v62 = vor.u32 %v1097_v49, %v1096_v54  ;;  %v10244_v63 = vpack.c.bf16 %v888_v55, %v888_v55  ;;  %v889_v0 = vmax.f32 %v807_v56, 0.0 }
 0x14f   : > { %v13404_v2 = vsel %vm13229_vm6, %v1273_v61, 0 }
 0x150   : > { %v1274_v3 = vsel %vm13225_vm5, 0, %v1099_v62  ;;  %v1101_v4 = vshrl.u32 %v10244_v63, 16  ;;  %v10245_v5 = vpack.c.bf16 %v889_v0, %v889_v0  ;;  %11064 = vmatprep.mubr.msk.bf16.mxu1 %vm1389_vm7, %v13404_v2  ;;  %11213 = vmatmul.mubr.msk.bf16.gmra.mrb[84].mxu0 %vm1389_vm7, %v13404_v2  ;;  %v1104_v9 = vshll.u32 %v10244_v63, 16 }
 0x151   : > { %v13414_v58 = vsel %vm13229_vm6, %v1274_v3, 0  ;;  %v811_v6 = vpop.f32.mrb[32].mxu0 }
 0x152   : > { %v1103_v7 = vrot.slane %v1101_v4, 7  ;;  %v1108_v10 = vshrl.u32 %v10245_v5, 16  ;;  %v812_v11 = vadd.f32 %v13219_v59, %v811_v6  ;;  %v813_v13 = vpop.f32.mrb[33].mxu0  ;;  %11065 = vmatmul.mubr.msk.bf16.gmra.mrb[24].mxu1 %vm1389_vm7, %v13414_v58  ;;  %11216 = vmatprep.mubr.msk.bf16.mxu0 %vm1389_vm7, %v13414_v58  ;;  %v1111_v14 = vshll.u32 %v10245_v5, 16 }
 0x153   : > { %v814_v17 = vpop.f32.mrb[34].mxu0 }
 0x154   : > { %v1106_v18 = vor.u32 %v1104_v9, %v1103_v7  ;;  %v1110_v20 = vrot.slane %v1108_v10, 7  ;;  %v890_v21 = vmax.f32 %v812_v11, 0.0  ;;  %v815_v22 = vadd.f32 %v13219_v59, %v814_v17  ;;  %v816_v24 = vpop.f32.mrb[35].mxu0 }
 0x156   : > { %v1275_v25 = vsel %vm13225_vm5, 0, %v1106_v18  ;;  %v1113_v26 = vor.u32 %v1111_v14, %v1110_v20  ;;  %v10246_v28 = vpack.c.bf16 %v890_v21, %v890_v21  ;;  %v891_v29 = vmax.f32 %v815_v22, 0.0 }
 0x157   : > { %v13426_v30 = vsel %vm13229_vm6, %v1275_v25, 0 }
 0x158   : > { %v1115_v31 = vshrl.u32 %v10246_v28, 16  ;;  %v10247_v33 = vpack.c.bf16 %v891_v29, %v891_v29  ;;  %11068 = vmatprep.mubr.msk.bf16.mxu1 %vm1389_vm7, %v13426_v30  ;;  %11217 = vmatmul.mubr.msk.bf16.gmra.mrb[88].mxu0 %vm1389_vm7, %v13426_v30  ;;  %v1276_v34 = vsel %vm13225_vm5, 0, %v1113_v26  ;;  %v1118_v39 = vshll.u32 %v10246_v28, 16 }
 0x159   : > { %v819_v35 = vpop.f32.mrb[36].mxu0  ;;  %v13436_v37 = vsel %vm13229_vm6, %v1276_v34, 0 }
 0x15a   : > { %16001 = vst [vmem:[#allocation6_spill] sm:$0xff] %v13436_v37  ;;  %v1117_v38 = vrot.slane %v1115_v31, 7  ;;  %v1122_v42 = vshrl.u32 %v10247_v33, 16  ;;  %v820_v43 = vadd.f32 %v13219_v59, %v819_v35  ;;  %v821_v44 = vpop.f32.mrb[37].mxu0  ;;  %11069 = vmatmul.mubr.msk.bf16.gmra.mrb[28].mxu1 %vm1389_vm7, %v13436_v37  ;;  %11220 = vmatprep.mubr.msk.bf16.mxu0 %vm1389_vm7, %v13436_v37  ;;  %v1125_v46 = vshll.u32 %v10247_v33, 16 }
 0x15b   : > { %v822_v47 = vpop.f32.mrb[38].mxu0 }
 0x15c   : > { %v1120_v48 = vor.u32 %v1118_v39, %v1117_v38  ;;  %v1124_v49 = vrot.slane %v1122_v42, 7  ;;  %v892_v50 = vmax.f32 %v820_v43, 0.0  ;;  %v823_v53 = vadd.f32 %v13219_v59, %v822_v47  ;;  %v824_v54 = vpop.f32.mrb[39].mxu0 }
 0x15e   : > { %v1127_v55 = vor.u32 %v1125_v46, %v1124_v49  ;;  %v10248_v56 = vpack.c.bf16 %v892_v50, %v892_v50  ;;  %v893_v60 = vmax.f32 %v823_v53, 0.0  ;;  %v1277_v61 = vsel %vm13225_vm5, 0, %v1120_v48 }
 0x15f   : > { %v13448_v62 = vsel %vm13229_vm6, %v1277_v61, 0 }
 0x160   : > { %16002 = vst [vmem:[#allocation7_spill] sm:$0xff] %v13448_v62  ;;  %v1278_v63 = vsel %vm13225_vm5, 0, %v1127_v55  ;;  %v1129_v0 = vshrl.u32 %v10248_v56, 16  ;;  %v10249_v3 = vpack.c.bf16 %v893_v60, %v893_v60  ;;  %11072 = vmatprep.mubr.msk.bf16.mxu1 %vm1389_vm7, %v13448_v62  ;;  %11221 = vmatmul.mubr.bf16.gmra.mrb[92].mxu0 %v15958_v1  ;;  %v1132_v7 = vshll.u32 %v10248_v56, 16 }
 0x161   : > { %v13457_v4 = vsel %vm13229_vm6, %v1278_v63, 0  ;;  %v827_v5 = vpop.f32.mrb[40].mxu0 }
 0x162   : > { %v1131_v6 = vrot.slane %v1129_v0, 7  ;;  %v1136_v9 = vshrl.u32 %v10249_v3, 16  ;;  %v828_v10 = vadd.f32 %v13219_v59, %v827_v5  ;;  %v829_v11 = vpop.f32.mrb[41].mxu0  ;;  %11073 = vmatmul.mubr.msk.bf16.gmra.mrb[32].mxu1 %vm1389_vm7, %v13457_v4  ;;  %11224 = vmatprep.mubr.msk.bf16.mxu0 %vm1389_vm7, %v13457_v4  ;;  %v1139_v13 = vshll.u32 %v10249_v3, 16 }
 0x163   : > { %v830_v14 = vpop.f32.mrb[42].mxu0 }
 0x164   : > { %v1134_v17 = vor.u32 %v1132_v7, %v1131_v6  ;;  %v1138_v18 = vrot.slane %v1136_v9, 7  ;;  %v894_v20 = vmax.f32 %v828_v10, 0.0  ;;  %v831_v21 = vadd.f32 %v13219_v59, %v830_v14  ;;  %v832_v22 = vpop.f32.mrb[43].mxu0 }
 0x166   : > { %v1279_v24 = vsel %vm13225_vm5, 0, %v1134_v17  ;;  %v1141_v25 = vor.u32 %v1139_v13, %v1138_v18  ;;  %v10250_v26 = vpack.c.bf16 %v894_v20, %v894_v20  ;;  %v895_v28 = vmax.f32 %v831_v21, 0.0 }
 0x167   : > { %v13469_v29 = vsel %vm13229_vm6, %v1279_v24, 0 }
 0x168   : > { %16003 = vst [vmem:[#allocation8_spill] sm:$0xff] %v13469_v29  ;;  %v1280_v31 = vsel %vm13225_vm5, 0, %v1141_v25  ;;  %v1143_v33 = vshrl.u32 %v10250_v26, 16  ;;  %v10251_v34 = vpack.c.bf16 %v895_v28, %v895_v28  ;;  %11076 = vmatprep.mubr.msk.bf16.mxu1 %vm1389_vm7, %v13469_v29  ;;  %11225 = vmatmul.mubr.msk.bf16.gmra.mrb[96].mxu0 %vm1389_vm7, %v13469_v29  ;;  %v1146_v42 = vshll.u32 %v10250_v26, 16 }
 0x169   : > { %v13479_v35 = vsel %vm13229_vm6, %v1280_v31, 0  ;;  %v835_v38 = vpop.f32.mrb[44].mxu0 }
 0x16a   : > { %16004 = vst [vmem:[#allocation9_spill] sm:$0xff] %v13479_v35  ;;  %v1145_v39 = vrot.slane %v1143_v33, 7  ;;  %v1150_v43 = vshrl.u32 %v10251_v34, 16  ;;  %v836_v44 = vadd.f32 %v13219_v59, %v835_v38  ;;  %v837_v46 = vpop.f32.mrb[45].mxu0  ;;  %11077 = vmatmul.mubr.msk.bf16.gmra.mrb[36].mxu1 %vm1389_vm7, %v13479_v35  ;;  %11228 = vmatprep.mubr.msk.bf16.mxu0 %vm1389_vm7, %v13479_v35  ;;  %v1153_v47 = vshll.u32 %v10251_v34, 16 }
 0x16b   : > { %v838_v48 = vpop.f32.mrb[46].mxu0 }
 0x16c   : > { %v1148_v49 = vor.u32 %v1146_v42, %v1145_v39  ;;  %v1152_v50 = vrot.slane %v1150_v43, 7  ;;  %v896_v53 = vmax.f32 %v836_v44, 0.0  ;;  %v839_v54 = vadd.f32 %v13219_v59, %v838_v48  ;;  %v840_v55 = vpop.f32.mrb[47].mxu0 }
 0x16e   : > { %v1281_v56 = vsel %vm13225_vm5, 0, %v1148_v49  ;;  %v1155_v60 = vor.u32 %v1153_v47, %v1152_v50  ;;  %v10252_v61 = vpack.c.bf16 %v896_v53, %v896_v53  ;;  %v897_v63 = vmax.f32 %v839_v54, 0.0 }
 0x16f   : > { %v13491_v0 = vsel %vm13229_vm6, %v1281_v56, 0 }
 0x170   : > { %v1282_v3 = vsel %vm13225_vm5, 0, %v1155_v60  ;;  %v1157_v5 = vshrl.u32 %v10252_v61, 16  ;;  %v10253_v6 = vpack.c.bf16 %v897_v63, %v897_v63  ;;  %11080 = vmatprep.mubr.msk.bf16.mxu1 %vm1389_vm7, %v13491_v0  ;;  %11229 = vmatmul.mubr.msk.bf16.gmra.mrb[100].mxu0 %vm1389_vm7, %v13491_v0  ;;  %v1160_v11 = vshll.u32 %v10252_v61, 16 }
 0x171   : > { %v13501_v7 = vsel %vm13229_vm6, %v1282_v3, 0  ;;  %v843_v9 = vpop.f32.mrb[48].mxu0 }
 0x172   : > { %v1159_v10 = vrot.slane %v1157_v5, 7  ;;  %v1164_v13 = vshrl.u32 %v10253_v6, 16  ;;  %v844_v14 = vadd.f32 %v13219_v59, %v843_v9  ;;  %v845_v17 = vpop.f32.mrb[49].mxu0  ;;  %11081 = vmatmul.mubr.msk.bf16.gmra.mrb[40].mxu1 %vm1389_vm7, %v13501_v7  ;;  %11232 = vmatprep.mubr.msk.bf16.mxu0 %vm1389_vm7, %v13501_v7  ;;  %v1167_v18 = vshll.u32 %v10253_v6, 16 }
 0x173   : > { %v846_v20 = vpop.f32.mrb[50].mxu0 }
 0x174   : > { %v1162_v21 = vor.u32 %v1160_v11, %v1159_v10  ;;  %v1166_v22 = vrot.slane %v1164_v13, 7  ;;  %v898_v24 = vmax.f32 %v844_v14, 0.0  ;;  %v847_v25 = vadd.f32 %v13219_v59, %v846_v20  ;;  %v848_v26 = vpop.f32.mrb[51].mxu0 }
 0x176   : > { %v1283_v28 = vsel %vm13225_vm5, 0, %v1162_v21  ;;  %v1169_v31 = vor.u32 %v1167_v18, %v1166_v22  ;;  %v10254_v33 = vpack.c.bf16 %v898_v24, %v898_v24  ;;  %v899_v34 = vmax.f32 %v847_v25, 0.0 }
 0x177   : > { %v13513_v38 = vsel %vm13229_vm6, %v1283_v28, 0 }
 0x178   : > { %v1171_v39 = vshrl.u32 %v10254_v33, 16  ;;  %v10255_v42 = vpack.c.bf16 %v899_v34, %v899_v34  ;;  %11084 = vmatprep.mubr.msk.bf16.mxu1 %vm1389_vm7, %v13513_v38  ;;  %11233 = vmatmul.mubr.msk.bf16.gmra.mrb[104].mxu0 %vm1389_vm7, %v13513_v38  ;;  %v1284_v43 = vsel %vm13225_vm5, 0, %v1169_v31  ;;  %v1174_v48 = vshll.u32 %v10254_v33, 16 }
 0x179   : > { %v851_v44 = vpop.f32.mrb[52].mxu0  ;;  %v13523_v46 = vsel %vm13229_vm6, %v1284_v43, 0 }
 0x17a   : > { %v1173_v47 = vrot.slane %v1171_v39, 7  ;;  %v1178_v49 = vshrl.u32 %v10255_v42, 16  ;;  %v852_v50 = vadd.f32 %v13219_v59, %v851_v44  ;;  %v853_v53 = vpop.f32.mrb[53].mxu0  ;;  %11085 = vmatmul.mubr.msk.bf16.gmra.mrb[44].mxu1 %vm1389_vm7, %v13523_v46  ;;  %11236 = vmatprep.mubr.msk.bf16.mxu0 %vm1389_vm7, %v13523_v46  ;;  %v1181_v54 = vshll.u32 %v10255_v42, 16 }
 0x17b   : > { %v854_v55 = vpop.f32.mrb[54].mxu0 }
 0x17c   : > { %v1176_v56 = vor.u32 %v1174_v48, %v1173_v47  ;;  %v1180_v60 = vrot.slane %v1178_v49, 7  ;;  %v900_v61 = vmax.f32 %v852_v50, 0.0  ;;  %v855_v63 = vadd.f32 %v13219_v59, %v854_v55  ;;  %v856_v3 = vpop.f32.mrb[55].mxu0 }
 0x17e   : > { %v1183_v5 = vor.u32 %v1181_v54, %v1180_v60  ;;  %v10256_v6 = vpack.c.bf16 %v900_v61, %v900_v61  ;;  %v901_v9 = vmax.f32 %v855_v63, 0.0  ;;  %v1285_v10 = vsel %vm13225_vm5, 0, %v1176_v56 }
 0x17f   : > { %v13535_v11 = vsel %vm13229_vm6, %v1285_v10, 0 }
 0x180   : > { %v1286_v13 = vsel %vm13225_vm5, 0, %v1183_v5  ;;  %v1185_v14 = vshrl.u32 %v10256_v6, 16  ;;  %v10257_v17 = vpack.c.bf16 %v901_v9, %v901_v9  ;;  %11088 = vmatprep.mubr.msk.bf16.mxu1 %vm1389_vm7, %v13535_v11  ;;  %11237 = vmatmul.mubr.bf16.gmra.mrb[108].mxu0 %v15958_v1  ;;  %v1188_v22 = vshll.u32 %v10256_v6, 16 }
 0x181   : > { %v13544_v18 = vsel %vm13229_vm6, %v1286_v13, 0  ;;  %v859_v20 = vpop.f32.mrb[56].mxu0 }
 0x182   : > { %v1187_v21 = vrot.slane %v1185_v14, 7  ;;  %v1192_v24 = vshrl.u32 %v10257_v17, 16  ;;  %v860_v25 = vadd.f32 %v13219_v59, %v859_v20  ;;  %v861_v26 = vpop.f32.mrb[57].mxu0  ;;  %11089 = vmatmul.mubr.msk.bf16.gmra.mrb[48].mxu1 %vm1389_vm7, %v13544_v18  ;;  %11240 = vmatprep.mubr.msk.bf16.mxu0 %vm1389_vm7, %v13544_v18  ;;  %v1195_v28 = vshll.u32 %v10257_v17, 16 }
 0x183   : > { %v862_v31 = vpop.f32.mrb[58].mxu0 }
 0x184   : > { %v1190_v33 = vor.u32 %v1188_v22, %v1187_v21  ;;  %v1194_v34 = vrot.slane %v1192_v24, 7  ;;  %v902_v39 = vmax.f32 %v860_v25, 0.0  ;;  %v863_v42 = vadd.f32 %v13219_v59, %v862_v31  ;;  %v864_v43 = vpop.f32.mrb[59].mxu0 }
 0x186   : > { %v1287_v44 = vsel %vm13225_vm5, 0, %v1190_v33  ;;  %v1197_v47 = vor.u32 %v1195_v28, %v1194_v34  ;;  %v10258_v48 = vpack.c.bf16 %v902_v39, %v902_v39  ;;  %v903_v49 = vmax.f32 %v863_v42, 0.0  ;;  %v12919_v28 = vld [vmem:[%s15950_s3 + $0x60] sm:$0xff]  }
 0x187   : > { %v13556_v50 = vsel %vm13229_vm6, %v1287_v44, 0  ;;  %11560 = vmatprep.subr.bf16.mxu0 %v12919_v28 }
 0x188   : > { %v1288_v53 = vsel %vm13225_vm5, 0, %v1197_v47  ;;  %v1199_v54 = vshrl.u32 %v10258_v48, 16  ;;  %v10259_v55 = vpack.c.bf16 %v903_v49, %v903_v49  ;;  %11092 = vmatprep.mubr.msk.bf16.mxu1 %vm1389_vm7, %v13556_v50  ;;  %11241 = vmatmul.mubr.msk.bf16.gmra.mrb[112].mxu0 %vm1389_vm7, %v13556_v50  ;;  %v1202_v63 = vshll.u32 %v10258_v48, 16 }
 0x189   : > { %v13566_v56 = vsel %vm13229_vm6, %v1288_v53, 0  ;;  %v867_v60 = vpop.f32.mrb[60].mxu0 }
 0x18a   : > { %v1201_v61 = vrot.slane %v1199_v54, 7  ;;  %v1206_v3 = vshrl.u32 %v10259_v55, 16  ;;  %v868_v5 = vadd.f32 %v13219_v59, %v867_v60  ;;  %v869_v6 = vpop.f32.mrb[61].mxu0  ;;  %11093 = vmatmul.mubr.msk.bf16.gmra.mrb[52].mxu1 %vm1389_vm7, %v13566_v56  ;;  %11244 = vmatprep.mubr.msk.bf16.mxu0 %vm1389_vm7, %v13566_v56  ;;  %v1209_v9 = vshll.u32 %v10259_v55, 16 }
 0x18b   : > { %v870_v10 = vpop.f32.mrb[62].mxu0  ;;  %v12921_v6 = vld [vmem:[%s15950_s3 + $0x70] sm:$0xff]  }
 0x18c   : > { %v1204_v13 = vor.u32 %v1202_v63, %v1201_v61  ;;  %v1208_v14 = vrot.slane %v1206_v3, 7  ;;  %v904_v17 = vmax.f32 %v868_v5, 0.0  ;;  %v871_v20 = vadd.f32 %v13219_v59, %v870_v10  ;;  %v872_v21 = vpop.f32.mrb[63].mxu0  ;;  %v12914_v63 = vld [vmem:[%s15950_s3 + $0xc8] sm:$0xff]   ;;  %v12915_v3 = vld [vmem:[%s15950_s3 + $0xd0] sm:$0xff]   ;;  %v12922_v10 = vld [vmem:[%s15950_s3 + $0x78] sm:$0xff]  }
 0x18d   : > { %v12920_v5 = vld [vmem:[%s15950_s3 + $0x68] sm:$0xff]  }
 0x18e   : > { %v1289_v22 = vsel %vm13225_vm5, 0, %v1204_v13  ;;  %v1211_v24 = vor.u32 %v1209_v9, %v1208_v14  ;;  %v10260_v25 = vpack.c.bf16 %v904_v17, %v904_v17  ;;  %v905_v26 = vmax.f32 %v871_v20, 0.0  ;;  %v12917_v9 = vld [vmem:[%s15950_s3 + $0xe0] sm:$0xff]   ;;  %v12918_v13 = vld [vmem:[%s15950_s3 + $0xe8] sm:$0xff]   ;;  %v13672_v17 = vld [vmem:[%s15950_s3 + $0x30] sm:$0xff]  }
 0x18f   : > { %v13581_v31 = vsel %vm13229_vm6, %v1289_v22, 0  ;;  %v12923_v14 = vld [vmem:[%s15950_s3 + $0x80] sm:$0xff]   ;;  %v12925_v20 = vld [vmem:[%s15950_s3 + $0x88] sm:$0xff]  }
 0x190   : > { %v1290_v33 = vsel %vm13225_vm5, 0, %v1211_v24  ;;  %v1213_v34 = vshrl.u32 %v10260_v25, 16  ;;  %v10261_v59 = vpack.c.bf16 %v905_v26, %v905_v26  ;;  %11096 = vmatprep.mubr.msk.bf16.mxu1 %vm1389_vm7, %v13581_v31  ;;  %11245 = vmatmul.mubr.msk.bf16.gmra.mrb[116].mxu0 %vm1389_vm7, %v13581_v31  ;;  %v1216_v43 = vshll.u32 %v10260_v25, 16 }
 0x191   : > { %v13591_v39 = vsel %vm13229_vm6, %v1290_v33, 0 }
 0x192   : > { %v1215_v42 = vrot.slane %v1213_v34, 7  ;;  %v1220_v44 = vshrl.u32 %v10261_v59, 16  ;;  %11097 = vmatmul.mubr.msk.bf16.gmra.mrb[56].mxu1 %vm1389_vm7, %v13591_v39  ;;  %11248 = vmatprep.mubr.msk.bf16.mxu0 %vm1389_vm7, %v13591_v39  ;;  %v1223_v49 = vshll.u32 %v10261_v59, 16 }
 0x194   : > { %v1218_v47 = vor.u32 %v1216_v43, %v1215_v42  ;;  %v1222_v48 = vrot.slane %v1220_v44, 7 }
 0x196   : > { %v1291_v53 = vsel %vm13225_vm5, 0, %v1218_v47  ;;  %v1225_v54 = vor.u32 %v1223_v49, %v1222_v48 }
 0x197   : > { %v13601_v55 = vsel %vm13229_vm6, %v1291_v53, 0 }
 0x198   : > { %11100 = vmatprep.mubr.msk.bf16.mxu1 %vm1389_vm7, %v13601_v55  ;;  %11249 = vmatmul.mubr.msk.bf16.gmra.mrb[120].mxu0 %vm1389_vm7, %v13601_v55  ;;  %v1292_v60 = vsel %vm13225_vm5, 0, %v1225_v54 }
 0x199   : > { %v13611_v61 = vsel %vm13229_vm6, %v1292_v60, 0 }
 0x19a   : > { %11101 = vmatmul.mubr.msk.bf16.gmra.mrb[60].mxu1 %vm1389_vm7, %v13611_v61  ;;  %11252 = vmatprep.mubr.msk.bf16.mxu0 %vm1389_vm7, %v13611_v61 }
 0x19b   : > { %11116 = vmatprep.mubr.bf16.mxu1 %v15958_v1 }
 0x1a0   : > { %11253 = vmatmul.mubr.bf16.gmra.mrb[124].mxu0 %v15958_v1 }
 0x1a1   : > { %11496 = vmatprep.mubr.msk.bf16.mxu0 %vm1389_vm7, %v13238_v27 }
 0x1a2   : > { %11117 = vmatmul.mubr.msk.bf16.vlgmr.msra.gmra.mrb[64].mxu1 %vm1389_vm7, %v13238_v27 }
 0x1a3   : > { %11257 = vmatpush3.bf16.msra.mxu1 %v13329_v40  ;;  %11120 = vmatprep.mubr.msk.bf16.mxu1 %vm1389_vm7, %v13249_v32  ;;  %v12916_v40 = vld [vmem:[%s15950_s3 + $0xd8] sm:$0xff]  }
 0x1a4   : > { %11258 = vmatprep.subr.bf16.mxu1 %v12914_v63 }
 0x1a7   : > { %11259 = vmatpush3.bf16.msra.mxu1 %v12914_v63 }
 0x1a8   : > { %11497 = vmatmul.mubr.msk.bf16.vlgmr.msra.gmra.mrb[128].mxu0 %vm1389_vm7, %v13249_v32  ;;  %11260 = vmatprep.subr.bf16.mxu1 %v12915_v3 }
 0x1a9   : > { %11500 = vmatprep.mubr.msk.bf16.mxu0 %vm1389_vm7, %v13264_v51  ;;  %11561 = vmatpush3.bf16.msra.mxu0 %v12919_v28 }
 0x1aa   : > { %11121 = vmatmul.mubr.msk.bf16.gmra.mrb[68].mxu1 %vm1389_vm7, %v13264_v51  ;;  %11562 = vmatprep.subr.bf16.mxu0 %v12920_v5 }
 0x1ab   : > { %11124 = vmatprep.mubr.msk.bf16.mxu1 %vm1389_vm7, %v13280_v57  ;;  %11261 = vmatpush3.bf16.msra.mxu1 %v12915_v3 }
 0x1ac   : > { %11262 = vmatprep.subr.bf16.mxu1 %v12916_v40 }
 0x1ad   : > { %11563 = vmatpush3.bf16.msra.mxu0 %v12920_v5 }
 0x1ae   : > { %11564 = vmatprep.subr.bf16.mxu0 %v12921_v6 }
 0x1af   : > { %11263 = vmatpush3.bf16.msra.mxu1 %v12916_v40 }
 0x1b0   : > { %11501 = vmatmul.mubr.msk.bf16.gmra.mrb[132].mxu0 %vm1389_vm7, %v13280_v57  ;;  %11264 = vmatprep.subr.bf16.mxu1 %v12917_v9 }
 0x1b1   : > { %11504 = vmatprep.mubr.msk.bf16.mxu0 %vm1389_vm7, %v13299_v16  ;;  %11565 = vmatpush3.bf16.msra.mxu0 %v12921_v6 }
 0x1b2   : > { %11125 = vmatmul.mubr.msk.bf16.gmra.mrb[72].mxu1 %vm1389_vm7, %v13299_v16  ;;  %11566 = vmatprep.subr.bf16.mxu0 %v12922_v10 }
 0x1b3   : > { %11128 = vmatprep.mubr.msk.bf16.mxu1 %vm1389_vm7, %v13315_v23  ;;  %11265 = vmatpush3.bf16.msra.mxu1 %v12917_v9 }
 0x1b4   : > { %11266 = vmatprep.subr.bf16.mxu1 %v12918_v13 }
 0x1b5   : > { %11567 = vmatpush3.bf16.msra.mxu0 %v12922_v10 }
 0x1b6   : > { %11568 = vmatprep.subr.bf16.mxu0 %v12923_v14 }
 0x1b7   : > { %11267 = vmatpush3.bf16.msra.mxu1 %v12918_v13 }
 0x1b8   : > { %11505 = vmatmul.mubr.msk.bf16.gmra.mrb[136].mxu0 %vm1389_vm7, %v13315_v23  ;;  %11332 = vmatprep.subr.bf16.mxu1 %v13672_v17 }
 0x1b9   : > { %11508 = vmatprep.mubr.msk.bf16.mxu0 %vm1389_vm7, %v13335_v45  ;;  %11569 = vmatpush3.bf16.msra.mxu0 %v12923_v14  ;;  %v12931_v14 = vld [vmem:[%s15950_s3 + $0x180] sm:$0xff]  }
 0x1ba   : > { %11129 = vmatmul.mubr.msk.bf16.gmra.mrb[76].mxu1 %vm1389_vm7, %v13335_v45  ;;  %11570 = vmatprep.subr.bf16.mxu0 %v12925_v20 }
 0x1bb   : > { %11132 = vmatprep.mubr.bf16.mxu1 %v15958_v1 }
 0x1bd   : > { %11571 = vmatpush3.bf16.msra.mxu0 %v12925_v20 }
 0x1be   : > { %11636 = vmatprep.subr.bf16.mxu0 %v12931_v14 }
 0x1c0   : > { %11509 = vmatmul.mubr.msk.bf16.gmra.mrb[140].mxu0 %vm1389_vm7, %v13348_v52 }
 0x1c1   : > { %11512 = vmatprep.mubr.msk.bf16.mxu0 %vm1389_vm7, %v13361_v8 }
 0x1c2   : > { %11133 = vmatmul.mubr.msk.bf16.gmra.mrb[80].mxu1 %vm1389_vm7, %v13361_v8 }
 0x1c3   : > { %11136 = vmatprep.mubr.msk.bf16.mxu1 %vm1389_vm7, %v13370_v12 }
 0x1c8   : > { %11513 = vmatmul.mubr.msk.bf16.gmra.mrb[144].mxu0 %vm1389_vm7, %v13370_v12 }
 0x1c9   : > { %11516 = vmatprep.mubr.msk.bf16.mxu0 %vm1389_vm7, %v13382_v36 }
 0x1ca   : > { %11137 = vmatmul.mubr.msk.bf16.gmra.mrb[84].mxu1 %vm1389_vm7, %v13382_v36 }
 0x1cb   : > { %11140 = vmatprep.mubr.msk.bf16.mxu1 %vm1389_vm7, %v13392_v41 }
 0x1d0   : > { %11517 = vmatmul.mubr.msk.bf16.gmra.mrb[148].mxu0 %vm1389_vm7, %v13392_v41 }
 0x1d1   : > { %11520 = vmatprep.mubr.msk.bf16.mxu0 %vm1389_vm7, %v13404_v2 }
 0x1d2   : > { %11141 = vmatmul.mubr.msk.bf16.gmra.mrb[88].mxu1 %vm1389_vm7, %v13404_v2 }
 0x1d3   : > { %11144 = vmatprep.mubr.msk.bf16.mxu1 %vm1389_vm7, %v13414_v58 }
 0x1d8   : > { %11521 = vmatmul.mubr.msk.bf16.gmra.mrb[152].mxu0 %vm1389_vm7, %v13414_v58 }
 0x1d9   : > { %11524 = vmatprep.mubr.msk.bf16.mxu0 %vm1389_vm7, %v13426_v30 }
 0x1da   : > { %11145 = vmatmul.mubr.msk.bf16.gmra.mrb[92].mxu1 %vm1389_vm7, %v13426_v30 }
 0x1db   : > { %11148 = vmatprep.mubr.bf16.mxu1 %v15958_v1 }
 0x1e0   : > { %11525 = vmatmul.mubr.msk.bf16.gmra.mrb[156].mxu0 %vm1389_vm7, %v13436_v37 }
 0x1e1   : > { %11528 = vmatprep.mubr.msk.bf16.mxu0 %vm1389_vm7, %v13448_v62 }
 0x1e2   : > { %11149 = vmatmul.mubr.msk.bf16.gmra.mrb[96].mxu1 %vm1389_vm7, %v13448_v62 }
 0x1e3   : > { %11152 = vmatprep.mubr.msk.bf16.mxu1 %vm1389_vm7, %v13457_v4 }
 0x1e8   : > { %11529 = vmatmul.mubr.msk.bf16.gmra.mrb[160].mxu0 %vm1389_vm7, %v13457_v4 }
 0x1e9   : > { %11532 = vmatprep.mubr.msk.bf16.mxu0 %vm1389_vm7, %v13469_v29 }
 0x1ea   : > { %11153 = vmatmul.mubr.msk.bf16.gmra.mrb[100].mxu1 %vm1389_vm7, %v13469_v29 }
 0x1eb   : > { %11156 = vmatprep.mubr.msk.bf16.mxu1 %vm1389_vm7, %v13479_v35 }
 0x1f0   : > { %11533 = vmatmul.mubr.msk.bf16.gmra.mrb[164].mxu0 %vm1389_vm7, %v13479_v35 }
 0x1f1   : > { %11536 = vmatprep.mubr.msk.bf16.mxu0 %vm1389_vm7, %v13491_v0 }
 0x1f2   : > { %11157 = vmatmul.mubr.msk.bf16.gmra.mrb[104].mxu1 %vm1389_vm7, %v13491_v0 }
 0x1f3   : > { %11160 = vmatprep.mubr.msk.bf16.mxu1 %vm1389_vm7, %v13501_v7 }
 0x1f5   : > { %v13740_v21 = vpop.f32.mrb[0].mxu1 }
 0x1f6   : > { %v13742_v22 = vpop.f32.mrb[1].mxu1 }
 0x1f7   : > { %v11043_v24 = vpop.f32.mrb[2].mxu1 }
 0x1f8   : > { %v1523_v25 = vpop.f32.mrb[3].mxu1  ;;  %11537 = vmatmul.mubr.msk.bf16.gmra.mrb[168].mxu0 %vm1389_vm7, %v13501_v7 }
 0x1f9   : > { %11540 = vmatprep.mubr.msk.bf16.mxu0 %vm1389_vm7, %v13513_v38 }
 0x1fa   : > { %11161 = vmatmul.mubr.msk.bf16.gmra.mrb[108].mxu1 %vm1389_vm7, %v13513_v38 }
 0x1fb   : > { %v13750_v26 = vpop.f32.mrb[64].mxu0  ;;  %11164 = vmatprep.mubr.bf16.mxu1 %v15958_v1 }
 0x1fc   : > { %v13753_v28 = vpop.f32.mrb[65].mxu0 }
 0x1fd   : > { %v13755_v33 = vpop.f32.mrb[4].mxu1  ;;  %v11195_v34 = vpop.f32.mrb[66].mxu0 }
 0x1fe   : > { %v13757_v59 = vpop.f32.mrb[5].mxu1  ;;  %v2125_v42 = vpop.f32.mrb[67].mxu0 }
 0x1ff   : > { %v11047_v43 = vpop.f32.mrb[6].mxu1 }
 0x200   : > { %v1537_v44 = vpop.f32.mrb[7].mxu1  ;;  %11541 = vmatmul.mubr.msk.bf16.gmra.mrb[172].mxu0 %vm1389_vm7, %v13523_v46 }
 0x201   : > { %11544 = vmatprep.mubr.msk.bf16.mxu0 %vm1389_vm7, %v13535_v11 }
 0x202   : > { %11165 = vmatmul.mubr.msk.bf16.gmra.mrb[112].mxu1 %vm1389_vm7, %v13535_v11 }
 0x203   : > { %11168 = vmatprep.mubr.msk.bf16.mxu1 %vm1389_vm7, %v13544_v18  ;;  %v13767_v47 = vpop.f32.mrb[68].mxu0 }
 0x204   : > { %v13769_v48 = vpop.f32.mrb[69].mxu0 }
 0x205   : > { %v13771_v49 = vpop.f32.mrb[8].mxu1  ;;  %v11199_v53 = vpop.f32.mrb[70].mxu0 }
 0x206   : > { %v13773_v54 = vpop.f32.mrb[9].mxu1  ;;  %v2139_v60 = vpop.f32.mrb[71].mxu0 }
 0x207   : > { %v11051_v63 = vpop.f32.mrb[10].mxu1 }
 0x208   : > { %v1551_v3 = vpop.f32.mrb[11].mxu1  ;;  %11545 = vmatmul.mubr.msk.bf16.gmra.mrb[176].mxu0 %vm1389_vm7, %v13544_v18 }
 0x209   : > { %11548 = vmatprep.mubr.msk.bf16.mxu0 %vm1389_vm7, %v13556_v50 }
 0x20a   : > { %11169 = vmatmul.mubr.msk.bf16.gmra.mrb[116].mxu1 %vm1389_vm7, %v13556_v50 }
 0x20b   : > { %11172 = vmatprep.mubr.msk.bf16.mxu1 %vm1389_vm7, %v13566_v56  ;;  %v13783_v5 = vpop.f32.mrb[72].mxu0 }
 0x20c   : > { %v13785_v40 = vpop.f32.mrb[73].mxu0 }
 0x20d   : > { %v13787_v6 = vpop.f32.mrb[12].mxu1  ;;  %v11203_v9 = vpop.f32.mrb[74].mxu0 }
 0x20e   : > { %v13789_v10 = vpop.f32.mrb[13].mxu1  ;;  %v2153_v13 = vpop.f32.mrb[75].mxu0 }
 0x20f   : > { %v11055_v20 = vpop.f32.mrb[14].mxu1 }
 0x210   : > { %v1565_v24 = vpop.f32.mrb[15].mxu1  ;;  %11549 = vmatmul.mubr.msk.bf16.gmra.mrb[180].mxu0 %vm1389_vm7, %v13566_v56 }
 0x211   : > { %11552 = vmatprep.mubr.msk.bf16.mxu0 %vm1389_vm7, %v13581_v31 }
 0x212   : > { %11173 = vmatmul.mubr.msk.bf16.gmra.mrb[120].mxu1 %vm1389_vm7, %v13581_v31 }
 0x213   : > { %11176 = vmatprep.mubr.msk.bf16.mxu1 %vm1389_vm7, %v13591_v39  ;;  %v13802_v25 = vpop.f32.mrb[76].mxu0 }
 0x214   : > { %v13804_v34 = vpop.f32.mrb[77].mxu0 }
 0x215   : > { %v13806_v42 = vpop.f32.mrb[16].mxu1  ;;  %v11207_v43 = vpop.f32.mrb[78].mxu0 }
 0x216   : > { %v13808_v44 = vpop.f32.mrb[17].mxu1  ;;  %v2167_v53 = vpop.f32.mrb[79].mxu0 }
 0x217   : > { %v11059_v60 = vpop.f32.mrb[18].mxu1 }
 0x218   : > { %v1579_v63 = vpop.f32.mrb[19].mxu1  ;;  %11553 = vmatmul.mubr.msk.bf16.gmra.mrb[184].mxu0 %vm1389_vm7, %v13591_v39 }
 0x219   : > { %11556 = vmatprep.mubr.msk.bf16.mxu0 %vm1389_vm7, %v13601_v55  ;;  %v12926_v63 = vld [vmem:[%s15950_s3 + $0x38] sm:$0xff]  }
 0x21a   : > { %11177 = vmatmul.mubr.msk.bf16.gmra.mrb[124].mxu1 %vm1389_vm7, %v13601_v55 }
 0x21b   : > { %v13816_v3 = vpop.f32.mrb[80].mxu0  ;;  %11268 = vmatprep.mubr.msk.bf16.mxu1 %vm1389_vm7, %v13238_v27 }
 0x21c   : > { %v13820_v9 = vpop.f32.mrb[81].mxu0 }
 0x21d   : > { %v13822_v13 = vpop.f32.mrb[20].mxu1  ;;  %v11211_v20 = vpop.f32.mrb[82].mxu0 }
 0x21e   : > { %v13824_v24 = vpop.f32.mrb[21].mxu1  ;;  %v2181_v43 = vpop.f32.mrb[83].mxu0 }
 0x21f   : > { %16005 = vst [vmem:[#allocation10_spill] sm:$0xff] %v13824_v24  ;;  %v11063_v53 = vpop.f32.mrb[22].mxu1 }
 0x220   : > { %v1593_v60 = vpop.f32.mrb[23].mxu1  ;;  %11557 = vmatmul.mubr.msk.bf16.gmra.mrb[188].mxu0 %vm1389_vm7, %v13611_v61  ;;  %v12927_v53 = vld [vmem:[%s15950_s3 + $0x40] sm:$0xff]  }
 0x221   : > { %11572 = vmatprep.mubr.bf16.mxu0 %v15958_v1 }
 0x222   : > { %11269 = vmatmul.mubr.msk.bf16.vlgmr.msra.gmra.mrb[128].mxu1 %vm1389_vm7, %v13249_v32 }
 0x223   : > { %11333 = vmatpush3.bf16.msra.mxu1 %v13672_v17  ;;  %v13835_v20 = vpop.f32.mrb[84].mxu0  ;;  %11272 = vmatprep.mubr.msk.bf16.mxu1 %vm1389_vm7, %v13264_v51  ;;  %v12932_v17 = vld [vmem:[%s15950_s3 + $0x188] sm:$0xff]  }
 0x224   : > { %16006 = vst [vmem:[#allocation11_spill] sm:$0xff] %v13835_v20  ;;  %v13839_v43 = vpop.f32.mrb[85].mxu0  ;;  %11334 = vmatprep.subr.bf16.mxu1 %v12926_v63 }
 0x225   : > { %16007 = vst [vmem:[#allocation12_spill] sm:$0xff] %v13839_v43  ;;  %v13844_v60 = vpop.f32.mrb[24].mxu1  ;;  %v11215_v1 = vpop.f32.mrb[86].mxu0  ;;  %v12928_v43 = vld [vmem:[%s15950_s3 + $0x48] sm:$0xff]  }
 0x226   : > { %16008 = vst [vmem:[#allocation13_spill] sm:$0xff] %v13844_v60  ;;  %v13846_v19 = vpop.f32.mrb[25].mxu1  ;;  %v2195_v15 = vpop.f32.mrb[87].mxu0  ;;  %v12933_v1 = vld [vmem:[%s15950_s3 + $0x190] sm:$0xff]  }
 0x227   : > { %16009 = vst [vmem:[#allocation14_spill] sm:$0xff] %v13846_v19  ;;  %v11067_v20 = vpop.f32.mrb[26].mxu1  ;;  %11335 = vmatpush3.bf16.msra.mxu1 %v12926_v63 }
 0x228   : > { %v1607_v24 = vpop.f32.mrb[27].mxu1  ;;  %11573 = vmatmul.mubr.msk.bf16.vlgmr.msra.gmra.mrb[128].mxu0 %vm1389_vm7, %v13238_v27  ;;  %11336 = vmatprep.subr.bf16.mxu1 %v12927_v53 }
 0x229   : > { %11576 = vmatprep.mubr.msk.bf16.mxu0 %vm1389_vm7, %v13249_v32  ;;  %11637 = vmatpush3.bf16.msra.mxu0 %v12931_v14  ;;  %v12929_v14 = vld [vmem:[%s15950_s3 + $0x50] sm:$0xff]  }
 0x22a   : > { %11273 = vmatmul.mubr.msk.bf16.gmra.mrb[132].mxu1 %vm1389_vm7, %v13280_v57  ;;  %11638 = vmatprep.subr.bf16.mxu0 %v12932_v17 }
 0x22b   : > { %v13863_v15 = vpop.f32.mrb[88].mxu0  ;;  %11276 = vmatprep.mubr.msk.bf16.mxu1 %vm1389_vm7, %v13299_v16  ;;  %11337 = vmatpush3.bf16.msra.mxu1 %v12927_v53 }
 0x22c   : > { %16010 = vst [vmem:[#allocation15_spill] sm:$0xff] %v13863_v15  ;;  %v13867_v24 = vpop.f32.mrb[89].mxu0  ;;  %11338 = vmatprep.subr.bf16.mxu1 %v12928_v43  ;;  %v12934_v15 = vld [vmem:[%s15950_s3 + $0x198] sm:$0xff]  }
 0x22d   : > { %16011 = vst [vmem:[#allocation16_spill] sm:$0xff] %v13867_v24  ;;  %v13872_v63 = vpop.f32.mrb[28].mxu1  ;;  %v11219_v20 = vpop.f32.mrb[90].mxu0  ;;  %11639 = vmatpush3.bf16.msra.mxu0 %v12932_v17 }
 0x22e   : > { %16012 = vst [vmem:[#allocation17_spill] sm:$0xff] %v13872_v63  ;;  %v13874_v19 = vpop.f32.mrb[29].mxu1  ;;  %v2209_v60 = vpop.f32.mrb[91].mxu0  ;;  %11640 = vmatprep.subr.bf16.mxu0 %v12933_v1  ;;  %v12930_v20 = vld [vmem:[%s15950_s3 + $0x58] sm:$0xff]  }
 0x22f   : > { %16013 = vst [vmem:[#allocation18_spill] sm:$0xff] %v13874_v19  ;;  %v11071_v53 = vpop.f32.mrb[30].mxu1  ;;  %11339 = vmatpush3.bf16.msra.mxu1 %v12928_v43  ;;  %v12935_v43 = vld [vmem:[%s15950_s3 + $0x1a0] sm:$0xff]  }
 0x230   : > { %v1621_v24 = vpop.f32.mrb[31].mxu1  ;;  %11577 = vmatmul.mubr.msk.bf16.gmra.mrb[132].mxu0 %vm1389_vm7, %v13264_v51  ;;  %11340 = vmatprep.subr.bf16.mxu1 %v12929_v14 }
 0x231   : > { %11580 = vmatprep.mubr.msk.bf16.mxu0 %vm1389_vm7, %v13280_v57  ;;  %11641 = vmatpush3.bf16.msra.mxu0 %v12933_v1  ;;  %v13900_v1 = vld [vmem:[%s15950_s3 + $0x150] sm:$0xff]  }
 0x232   : > { %11277 = vmatmul.mubr.msk.bf16.gmra.mrb[136].mxu1 %vm1389_vm7, %v13315_v23  ;;  %11642 = vmatprep.subr.bf16.mxu0 %v12934_v15 }
 0x233   : > { %11280 = vmatprep.mubr.msk.bf16.mxu1 %vm1389_vm7, %v13335_v45  ;;  %v13893_v60 = vpop.f32.mrb[92].mxu0  ;;  %11341 = vmatpush3.bf16.msra.mxu1 %v12929_v14  ;;  %v12937_v14 = vld [vmem:[%s15950_s3 + $0x1a8] sm:$0xff]  }
 0x234   : > { %16014 = vst [vmem:[#allocation19_spill] sm:$0xff] %v13893_v60  ;;  %v13895_v17 = vpop.f32.mrb[93].mxu0  ;;  %11342 = vmatprep.subr.bf16.mxu1 %v12930_v20 }
 0x235   : > { %16015 = vst [vmem:[#allocation20_spill] sm:$0xff] %v13895_v17  ;;  %v13902_v24 = vpop.f32.mrb[32].mxu1  ;;  %v11223_v53 = vpop.f32.mrb[94].mxu0  ;;  %11643 = vmatpush3.bf16.msra.mxu0 %v12934_v15 }
 0x236   : > { %v13904_v19 = vpop.f32.mrb[33].mxu1  ;;  %v2223_v63 = vpop.f32.mrb[95].mxu0  ;;  %11644 = vmatprep.subr.bf16.mxu0 %v12935_v43 }
 0x237   : > { %16016 = vst [vmem:[#allocation21_spill] sm:$0xff] %v13904_v19  ;;  %v11075_v60 = vpop.f32.mrb[34].mxu1  ;;  %11343 = vmatpush3.bf16.msra.mxu1 %v12930_v20 }
 0x238   : > { %v1635_v17 = vpop.f32.mrb[35].mxu1  ;;  %11581 = vmatmul.mubr.msk.bf16.gmra.mrb[136].mxu0 %vm1389_vm7, %v13299_v16  ;;  %11408 = vmatprep.subr.bf16.mxu1 %v13900_v1 }
 0x239   : > { %11584 = vmatprep.mubr.msk.bf16.mxu0 %vm1389_vm7, %v13315_v23  ;;  %11645 = vmatpush3.bf16.msra.mxu0 %v12935_v43 }
 0x23a   : > { %11281 = vmatmul.mubr.msk.bf16.gmra.mrb[140].mxu1 %vm1389_vm7, %v13348_v52  ;;  %11646 = vmatprep.subr.bf16.mxu0 %v12937_v14  ;;  %v16020_v52 = vmov 0  }
 0x23b   : > { %v13916_v15 = vpop.f32.mrb[96].mxu0  ;;  %11284 = vmatprep.mubr.msk.bf16.mxu1 %vm1389_vm7, %v13361_v8 }
 0x23c   : > { %16017 = vst [vmem:[#allocation22_spill] sm:$0xff] %v13916_v15  ;;  %v13920_v63 = vpop.f32.mrb[97].mxu0 }
 0x23d   : > { %v13922_v20 = vpop.f32.mrb[36].mxu1  ;;  %v11227_v60 = vpop.f32.mrb[98].mxu0  ;;  %11647 = vmatpush3.bf16.msra.mxu0 %v12937_v14 }
 0x23e   : > { %16018 = vst [vmem:[#allocation23_spill] sm:$0xff] %v13922_v20  ;;  %v13924_v17 = vpop.f32.mrb[37].mxu1  ;;  %v2237_v53 = vpop.f32.mrb[99].mxu0 }
 0x23f   : > { %16019 = vst [vmem:[#allocation24_spill] sm:$0xff] %v13924_v17  ;;  %v11079_v19 = vpop.f32.mrb[38].mxu1 }
 0x240   : > { %v1649_v43 = vpop.f32.mrb[39].mxu1  ;;  %11585 = vmatmul.mubr.msk.bf16.gmra.mrb[140].mxu0 %vm1389_vm7, %v13335_v45 }
 0x241   : > { %11588 = vmatprep.mubr.bf16.mxu0 %v16020_v52 }
 0x242   : > { %11285 = vmatmul.mubr.msk.bf16.gmra.mrb[144].mxu1 %vm1389_vm7, %v13370_v12 }
 0x243   : > { %v13931_v15 = vpop.f32.mrb[100].mxu0  ;;  %11288 = vmatprep.mubr.msk.bf16.mxu1 %vm1389_vm7, %v13382_v36 }
 0x244   : > { %16021 = vst [vmem:[#allocation25_spill] sm:$0xff] %v13931_v15  ;;  %v13935_v60 = vpop.f32.mrb[101].mxu0 }
 0x245   : > { %v13937_v14 = vpop.f32.mrb[40].mxu1  ;;  %v11231_v53 = vpop.f32.mrb[102].mxu0 }
 0x246   : > { %16022 = vst [vmem:[#allocation26_spill] sm:$0xff] %v13937_v14  ;;  %v13939_v19 = vpop.f32.mrb[41].mxu1  ;;  %v2251_v43 = vpop.f32.mrb[103].mxu0 }
 0x247   : > { %16023 = vst [vmem:[#allocation27_spill] sm:$0xff] %v13939_v19  ;;  %v11083_v17 = vpop.f32.mrb[42].mxu1 }
 0x248   : > { %v1663_v20 = vpop.f32.mrb[43].mxu1  ;;  %11589 = vmatmul.mubr.msk.bf16.gmra.mrb[144].mxu0 %vm1389_vm7, %v13361_v8 }
 0x249   : > { %11592 = vmatprep.mubr.msk.bf16.mxu0 %vm1389_vm7, %v13370_v12 }
 0x24a   : > { %11289 = vmatmul.mubr.msk.bf16.gmra.mrb[148].mxu1 %vm1389_vm7, %v13392_v41 }
 0x24b   : > { %v13947_v15 = vpop.f32.mrb[104].mxu0  ;;  %11292 = vmatprep.mubr.msk.bf16.mxu1 %vm1389_vm7, %v13404_v2 }
 0x24c   : > { %16024 = vst [vmem:[#allocation28_spill] sm:$0xff] %v13947_v15  ;;  %v13951_v53 = vpop.f32.mrb[105].mxu0 }
 0x24d   : > { %16025 = vst [vmem:[#allocation29_spill] sm:$0xff] %v13951_v53  ;;  %v13953_v19 = vpop.f32.mrb[44].mxu1  ;;  %v11235_v17 = vpop.f32.mrb[106].mxu0 }
 0x24e   : > { %16026 = vst [vmem:[#allocation30_spill] sm:$0xff] %v13953_v19  ;;  %v13955_v20 = vpop.f32.mrb[45].mxu1  ;;  %v2265_v43 = vpop.f32.mrb[107].mxu0 }
 0x24f   : > { %16027 = vst [vmem:[#allocation31_spill] sm:$0xff] %v13955_v20  ;;  %v11087_v14 = vpop.f32.mrb[46].mxu1 }
 0x250   : > { %v1677_v8 = vpop.f32.mrb[47].mxu1  ;;  %11593 = vmatmul.mubr.msk.bf16.gmra.mrb[148].mxu0 %vm1389_vm7, %v13382_v36 }
 0x251   : > { %11596 = vmatprep.mubr.msk.bf16.mxu0 %vm1389_vm7, %v13392_v41 }
 0x252   : > { %11293 = vmatmul.mubr.msk.bf16.gmra.mrb[152].mxu1 %vm1389_vm7, %v13414_v58 }
 0x253   : > { %11296 = vmatprep.mubr.msk.bf16.mxu1 %vm1389_vm7, %v13426_v30  ;;  %v13965_v53 = vpop.f32.mrb[108].mxu0 }
 0x254   : > { %16028 = vst [vmem:[#allocation32_spill] sm:$0xff] %v13965_v53  ;;  %v13967_v17 = vpop.f32.mrb[109].mxu0 }
 0x255   : > { %16029 = vst [vmem:[#allocation33_spill] sm:$0xff] %v13967_v17  ;;  %v13969_v20 = vpop.f32.mrb[48].mxu1  ;;  %v11239_v14 = vpop.f32.mrb[110].mxu0 }
 0x256   : > { %16030 = vst [vmem:[#allocation34_spill] sm:$0xff] %v13969_v20  ;;  %v13971_v8 = vpop.f32.mrb[49].mxu1  ;;  %v2279_v43 = vpop.f32.mrb[111].mxu0 }
 0x257   : > { %16031 = vst [vmem:[#allocation35_spill] sm:$0xff] %v13971_v8  ;;  %v11091_v19 = vpop.f32.mrb[50].mxu1 }
 0x258   : > { %v1691_v15 = vpop.f32.mrb[51].mxu1  ;;  %11597 = vmatmul.mubr.msk.bf16.gmra.mrb[152].mxu0 %vm1389_vm7, %v13404_v2 }
 0x259   : > { %11600 = vmatprep.mubr.msk.bf16.mxu0 %vm1389_vm7, %v13414_v58 }
 0x25a   : > { %11297 = vmatmul.mubr.msk.bf16.gmra.mrb[156].mxu1 %vm1389_vm7, %v13436_v37 }
 0x25b   : > { %v13979_v53 = vpop.f32.mrb[112].mxu0  ;;  %11300 = vmatprep.mubr.msk.bf16.mxu1 %vm1389_vm7, %v13448_v62 }
 0x25c   : > { %v13983_v14 = vpop.f32.mrb[113].mxu0 }
 0x25d   : > { %16032 = vst [vmem:[#allocation36_spill] sm:$0xff] %v13983_v14  ;;  %v13985_v8 = vpop.f32.mrb[52].mxu1  ;;  %v11243_v19 = vpop.f32.mrb[114].mxu0 }
 0x25e   : > { %16033 = vst [vmem:[#allocation37_spill] sm:$0xff] %v13985_v8  ;;  %v13987_v15 = vpop.f32.mrb[53].mxu1  ;;  %v2293_v43 = vpop.f32.mrb[115].mxu0 }
 0x25f   : > { %16034 = vst [vmem:[#allocation38_spill] sm:$0xff] %v13987_v15  ;;  %v11095_v20 = vpop.f32.mrb[54].mxu1 }
 0x260   : > { %v1705_v17 = vpop.f32.mrb[55].mxu1  ;;  %11601 = vmatmul.mubr.msk.bf16.gmra.mrb[156].mxu0 %vm1389_vm7, %v13426_v30 }
 0x261   : > { %11604 = vmatprep.mubr.bf16.mxu0 %v16020_v52 }
 0x262   : > { %11301 = vmatmul.mubr.msk.bf16.gmra.mrb[160].mxu1 %vm1389_vm7, %v13457_v4 }
 0x263   : > { %v13994_v37 = vpop.f32.mrb[116].mxu0  ;;  %11304 = vmatprep.mubr.msk.bf16.mxu1 %vm1389_vm7, %v13469_v29 }
 0x264   : > { %16035 = vst [vmem:[#allocation39_spill] sm:$0xff] %v13994_v37  ;;  %v13998_v8 = vpop.f32.mrb[117].mxu0 }
 0x265   : > { %16036 = vst [vmem:[#allocation40_spill] sm:$0xff] %v13998_v8  ;;  %v14000_v19 = vpop.f32.mrb[56].mxu1  ;;  %v11247_v43 = vpop.f32.mrb[118].mxu0 }
 0x266   : > { %16037 = vst [vmem:[#allocation41_spill] sm:$0xff] %v14000_v19  ;;  %v14002_v20 = vpop.f32.mrb[57].mxu1  ;;  %v2307_v17 = vpop.f32.mrb[119].mxu0 }
 0x267   : > { %16038 = vst [vmem:[#allocation42_spill] sm:$0xff] %v14002_v20  ;;  %v11099_v15 = vpop.f32.mrb[58].mxu1 }
 0x268   : > { %v1719_v14 = vpop.f32.mrb[59].mxu1  ;;  %11605 = vmatmul.mubr.msk.bf16.gmra.mrb[160].mxu0 %vm1389_vm7, %v13448_v62 }
 0x269   : > { %11608 = vmatprep.mubr.msk.bf16.mxu0 %vm1389_vm7, %v13457_v4 }
 0x26a   : > { %11305 = vmatmul.mubr.msk.bf16.gmra.mrb[164].mxu1 %vm1389_vm7, %v13479_v35 }
 0x26b   : > { %v14010_v37 = vpop.f32.mrb[120].mxu0  ;;  %11308 = vmatprep.mubr.msk.bf16.mxu1 %vm1389_vm7, %v13491_v0 }
 0x26c   : > { %16039 = vst [vmem:[#allocation43_spill] sm:$0xff] %v14010_v37  ;;  %v14014_v43 = vpop.f32.mrb[121].mxu0 }
 0x26d   : > { %16040 = vst [vmem:[#allocation44_spill] sm:$0xff] %v14014_v43  ;;  %v14016_v20 = vpop.f32.mrb[60].mxu1  ;;  %v11251_v15 = vpop.f32.mrb[122].mxu0 }
 0x26e   : > { %16041 = vst [vmem:[#allocation45_spill] sm:$0xff] %v14016_v20  ;;  %v14018_v14 = vpop.f32.mrb[61].mxu1  ;;  %v2321_v17 = vpop.f32.mrb[123].mxu0 }
 0x26f   : > { %16042 = vst [vmem:[#allocation46_spill] sm:$0xff] %v14018_v14  ;;  %v11103_v19 = vpop.f32.mrb[62].mxu1 }
 0x270   : > { %v1733_v62 = vpop.f32.mrb[63].mxu1  ;;  %11609 = vmatmul.mubr.msk.bf16.gmra.mrb[164].mxu0 %vm1389_vm7, %v13469_v29 }
 0x271   : > { %11612 = vmatprep.mubr.msk.bf16.mxu0 %vm1389_vm7, %v13479_v35 }
 0x272   : > { %11309 = vmatmul.mubr.msk.bf16.gmra.mrb[168].mxu1 %vm1389_vm7, %v13501_v7 }
 0x273   : > { %11312 = vmatprep.mubr.msk.bf16.mxu1 %vm1389_vm7, %v13513_v38  ;;  %v14028_v43 = vpop.f32.mrb[124].mxu0 }
 0x274   : > { %16043 = vst [vmem:[#allocation47_spill] sm:$0xff] %v14028_v43  ;;  %v14030_v15 = vpop.f32.mrb[125].mxu0 }
 0x275   : > { %v11118_v14 = vpop.f32.mrb[64].mxu1  ;;  %v11255_v17 = vpop.f32.mrb[126].mxu0 }
 0x276   : > { %v1824_v62 = vadd.f32 %v11118_v14, %v13740_v21  ;;  %v1816_v19 = vpop.f32.mrb[65].mxu1  ;;  %v2335_v20 = vpop.f32.mrb[127].mxu0 }
 0x277   : > { %v1817_v37 = vadd.f32 %v1816_v19, %v13742_v22  ;;  %v11119_v29 = vpop.f32.mrb[66].mxu1 }
 0x278   : > { %v14035_v35 = vadd.f32 %v13750_v26, %v1824_v62  ;;  %v1819_v8 = vpop.f32.mrb[67].mxu1  ;;  %11613 = vmatmul.mubr.msk.bf16.gmra.mrb[168].mxu0 %vm1389_vm7, %v13491_v0 }
 0x279   : > { %v14040_v43 = vadd.f32 %v13753_v28, %v1817_v37  ;;  %11616 = vmatprep.mubr.msk.bf16.mxu0 %vm1389_vm7, %v13501_v7 }
 0x27a   : > { %11313 = vmatmul.mubr.msk.bf16.gmra.mrb[172].mxu1 %vm1389_vm7, %v13523_v46 }
 0x27b   : > { %11316 = vmatprep.mubr.msk.bf16.mxu1 %vm1389_vm7, %v13535_v11 }
 0x27d   : > { %v11122_v29 = vpop.f32.mrb[68].mxu1 }
 0x27e   : > { %v1838_v21 = vadd.f32 %v11122_v29, %v13755_v33  ;;  %v1830_v22 = vpop.f32.mrb[69].mxu1 }
 0x27f   : > { %v1831_v26 = vadd.f32 %v1830_v22, %v13757_v59  ;;  %v11123_v8 = vpop.f32.mrb[70].mxu1 }
 0x280   : > { %v1833_v20 = vpop.f32.mrb[71].mxu1  ;;  %11617 = vmatmul.mubr.msk.bf16.gmra.mrb[172].mxu0 %vm1389_vm7, %v13513_v38  ;;  %v14053_v37 = vadd.f32 %v13767_v47, %v1838_v21 }
 0x281   : > { %11620 = vmatprep.mubr.bf16.mxu0 %v16020_v52  ;;  %v14057_v28 = vadd.f32 %v13769_v48, %v1831_v26 }
 0x282   : > { %11317 = vmatmul.mubr.msk.bf16.gmra.mrb[176].mxu1 %vm1389_vm7, %v13544_v18 }
 0x283   : > { %11320 = vmatprep.mubr.msk.bf16.mxu1 %vm1389_vm7, %v13556_v50 }
 0x285   : > { %v11126_v33 = vpop.f32.mrb[72].mxu1 }
 0x286   : > { %v1852_v59 = vadd.f32 %v11126_v33, %v13771_v49  ;;  %v1844_v14 = vpop.f32.mrb[73].mxu1 }
 0x287   : > { %v1845_v17 = vadd.f32 %v1844_v14, %v13773_v54  ;;  %v11127_v62 = vpop.f32.mrb[74].mxu1 }
 0x288   : > { %v1847_v47 = vpop.f32.mrb[75].mxu1  ;;  %11621 = vmatmul.mubr.msk.bf16.gmra.mrb[176].mxu0 %vm1389_vm7, %v13535_v11  ;;  %v14068_v48 = vadd.f32 %v13783_v5, %v1852_v59 }
 0x289   : > { %11624 = vmatprep.mubr.msk.bf16.mxu0 %vm1389_vm7, %v13544_v18  ;;  %v14073_v19 = vadd.f32 %v13785_v40, %v1845_v17  ;;  %v16044_v17 = vld [vmem:[#allocation10_spill] sm:$0xff] }
 0x28a   : > { %11321 = vmatmul.mubr.msk.bf16.gmra.mrb[180].mxu1 %vm1389_vm7, %v13566_v56 }
 0x28b   : > { %11324 = vmatprep.mubr.msk.bf16.mxu1 %vm1389_vm7, %v13581_v31 }
 0x28d   : > { %v11130_v49 = vpop.f32.mrb[76].mxu1 }
 0x28e   : > { %v1866_v54 = vadd.f32 %v11130_v49, %v13787_v6  ;;  %v1858_v29 = vpop.f32.mrb[77].mxu1  ;;  %v16045_v49 = vld [vmem:[#allocation11_spill] sm:$0xff] }
 0x28f   : > { %v1859_v21 = vadd.f32 %v1858_v29, %v13789_v10  ;;  %v11131_v5 = vpop.f32.mrb[78].mxu1  ;;  %v16046_v29 = vld [vmem:[#allocation12_spill] sm:$0xff] }
 0x290   : > { %v1861_v22 = vpop.f32.mrb[79].mxu1  ;;  %11625 = vmatmul.mubr.msk.bf16.gmra.mrb[180].mxu0 %vm1389_vm7, %v13556_v50  ;;  %v14084_v40 = vadd.f32 %v13802_v25, %v1866_v54 }
 0x291   : > { %11628 = vmatprep.mubr.msk.bf16.mxu0 %vm1389_vm7, %v13566_v56  ;;  %v14089_v26 = vadd.f32 %v13804_v34, %v1859_v21  ;;  %v12939_v21 = vld [vmem:[%s15950_s3 + $0x160] sm:$0xff]   ;;  %v16047_v22 = vld [vmem:[#allocation13_spill] sm:$0xff] }
 0x292   : > { %11325 = vmatmul.mubr.msk.bf16.gmra.mrb[184].mxu1 %vm1389_vm7, %v13591_v39 }
 0x293   : > { %11328 = vmatprep.mubr.msk.bf16.mxu1 %vm1389_vm7, %v13601_v55 }
 0x295   : > { %v11134_v6 = vpop.f32.mrb[80].mxu1 }
 0x296   : > { %v1880_v10 = vadd.f32 %v11134_v6, %v13806_v42  ;;  %v1872_v8 = vpop.f32.mrb[81].mxu1 }
 0x297   : > { %v1873_v20 = vadd.f32 %v1872_v8, %v13808_v44  ;;  %v11135_v25 = vpop.f32.mrb[82].mxu1  ;;  %v16048_v8 = vld [vmem:[#allocation14_spill] sm:$0xff] }
 0x298   : > { %v1875_v33 = vpop.f32.mrb[83].mxu1  ;;  %11629 = vmatmul.mubr.msk.bf16.gmra.mrb[184].mxu0 %vm1389_vm7, %v13581_v31  ;;  %v14100_v34 = vadd.f32 %v13816_v3, %v1880_v10 }
 0x299   : > { %11632 = vmatprep.mubr.msk.bf16.mxu0 %vm1389_vm7, %v13591_v39  ;;  %v14105_v59 = vadd.f32 %v13820_v9, %v1873_v20  ;;  %v12938_v9 = vld [vmem:[%s15950_s3 + $0x158] sm:$0xff]  }
 0x29a   : > { %11329 = vmatmul.mubr.msk.bf16.gmra.mrb[188].mxu1 %vm1389_vm7, %v13611_v61 }
 0x29b   : > { %11344 = vmatprep.mubr.bf16.mxu1 %v16020_v52 }
 0x29d   : > { %v11138_v42 = vpop.f32.mrb[84].mxu1 }
 0x29e   : > { %v1894_v44 = vadd.f32 %v11138_v42, %v13822_v13  ;;  %v1886_v14 = vpop.f32.mrb[85].mxu1 }
 0x29f   : > { %v1887_v62 = vadd.f32 %v1886_v14, %v16044_v17  ;;  %v11139_v47 = vpop.f32.mrb[86].mxu1  ;;  %v12941_v17 = vld [vmem:[%s15950_s3 + $0x170] sm:$0xff]  }
 0x2a0   : > { %v1889_v3 = vpop.f32.mrb[87].mxu1  ;;  %11633 = vmatmul.mubr.msk.bf16.gmra.mrb[188].mxu0 %vm1389_vm7, %v13601_v55  ;;  %v14118_v54 = vadd.f32 %v16045_v49, %v1894_v44  ;;  %v16050_v44 = vld [vmem:[#allocation16_spill] sm:$0xff]  ;;  %v16051_v47 = vld [vmem:[#allocation17_spill] sm:$0xff]  ;;  %v16052_v49 = vld [vmem:[#allocation18_spill] sm:$0xff] }
 0x2a1   : > { %11648 = vmatprep.mubr.msk.bf16.mxu0 %vm1389_vm7, %v13249_v32  ;;  %v14123_v13 = vadd.f32 %v16046_v29, %v1887_v62 }
 0x2a2   : > { %11345 = vmatmul.mubr.msk.bf16.vlgmr.msra.gmra.mrb[128].mxu1 %vm1389_vm7, %v13238_v27  ;;  %v12940_v27 = vld [vmem:[%s15950_s3 + $0x168] sm:$0xff]  }
 0x2a3   : > { %11409 = vmatpush3.bf16.msra.mxu1 %v13900_v1  ;;  %11348 = vmatprep.mubr.msk.bf16.mxu1 %vm1389_vm7, %v13249_v32  ;;  %v16049_v1 = vld [vmem:[#allocation15_spill] sm:$0xff] }
 0x2a4   : > { %11410 = vmatprep.subr.bf16.mxu1 %v12938_v9 }
 0x2a5   : > { %v11142_v5 = vpop.f32.mrb[88].mxu1 }
 0x2a6   : > { %v1908_v6 = vadd.f32 %v11142_v5, %v16047_v22  ;;  %v1900_v10 = vpop.f32.mrb[89].mxu1 }
 0x2a7   : > { %v1901_v20 = vadd.f32 %v1900_v10, %v16048_v8  ;;  %v11143_v25 = vpop.f32.mrb[90].mxu1  ;;  %11411 = vmatpush3.bf16.msra.mxu1 %v12938_v9  ;;  %v16054_v8 = vld [vmem:[#allocation20_spill] sm:$0xff] }
 0x2a8   : > { %v1903_v33 = vpop.f32.mrb[91].mxu1  ;;  %11649 = vmatmul.mubr.msk.bf16.vlgmr.msra.gmra.mrb[128].mxu0 %vm1389_vm7, %v13264_v51  ;;  %11412 = vmatprep.subr.bf16.mxu1 %v12939_v21  ;;  %v14141_v42 = vadd.f32 %v16049_v1, %v1908_v6  ;;  %v16053_v6 = vld [vmem:[#allocation19_spill] sm:$0xff]  ;;  %v16055_v1 = vld [vmem:[#allocation21_spill] sm:$0xff] }
 0x2a9   : > { %11652 = vmatprep.mubr.msk.bf16.mxu0 %vm1389_vm7, %v13280_v57  ;;  %v14146_v14 = vadd.f32 %v16050_v44, %v1901_v20 }
 0x2aa   : > { %11349 = vmatmul.mubr.msk.bf16.gmra.mrb[132].mxu1 %vm1389_vm7, %v13264_v51 }
 0x2ab   : > { %11352 = vmatprep.mubr.msk.bf16.mxu1 %vm1389_vm7, %v13280_v57  ;;  %11413 = vmatpush3.bf16.msra.mxu1 %v12939_v21  ;;  %v12942_v21 = vld [vmem:[%s15950_s3 + $0x178] sm:$0xff]  }
 0x2ac   : > { %11414 = vmatprep.subr.bf16.mxu1 %v12940_v27 }
 0x2ad   : > { %v11146_v62 = vpop.f32.mrb[92].mxu1 }
 0x2ae   : > { %v1922_v3 = vadd.f32 %v11146_v62, %v16051_v47  ;;  %v1914_v9 = vpop.f32.mrb[93].mxu1 }
 0x2af   : > { %v1915_v29 = vadd.f32 %v1914_v9, %v16052_v49  ;;  %v11147_v5 = vpop.f32.mrb[94].mxu1  ;;  %11415 = vmatpush3.bf16.msra.mxu1 %v12940_v27  ;;  %v16057_v49 = vld [vmem:[#allocation4_spill] sm:$0xff] }
 0x2b0   : > { %v1917_v22 = vpop.f32.mrb[95].mxu1  ;;  %11653 = vmatmul.mubr.msk.bf16.gmra.mrb[132].mxu0 %vm1389_vm7, %v13299_v16  ;;  %11416 = vmatprep.subr.bf16.mxu1 %v12941_v17  ;;  %v14163_v10 = vadd.f32 %v16053_v6, %v1922_v3  ;;  %v16056_v3 = vld [vmem:[#allocation22_spill] sm:$0xff] }
 0x2b1   : > { %11656 = vmatprep.mubr.msk.bf16.mxu0 %vm1389_vm7, %v13315_v23  ;;  %v14168_v20 = vadd.f32 %v16054_v8, %v1915_v29  ;;  %v16058_v29 = vld [vmem:[#allocation23_spill] sm:$0xff] }
 0x2b2   : > { %11353 = vmatmul.mubr.msk.bf16.gmra.mrb[136].mxu1 %vm1389_vm7, %v13299_v16 }
 0x2b3   : > { %11356 = vmatprep.mubr.msk.bf16.mxu1 %vm1389_vm7, %v13315_v23  ;;  %11417 = vmatpush3.bf16.msra.mxu1 %v12941_v17 }
 0x2b4   : > { %11418 = vmatprep.subr.bf16.mxu1 %v12942_v21 }
 0x2b5   : > { %v11150_v25 = vpop.f32.mrb[96].mxu1 }
 0x2b6   : > { %v1936_v33 = vadd.f32 %v11150_v25, %v13902_v24  ;;  %v1928_v27 = vpop.f32.mrb[97].mxu1 }
 0x2b7   : > { %v1929_v44 = vadd.f32 %v1928_v27, %v16055_v1  ;;  %v11151_v62 = vpop.f32.mrb[98].mxu1  ;;  %11419 = vmatpush3.bf16.msra.mxu1 %v12942_v21  ;;  %v16059_v21 = vld [vmem:[#allocation24_spill] sm:$0xff]  ;;  %v16061_v1 = vld [vmem:[#allocation5_spill] sm:$0xff] }
 0x2b8   : > { %v1931_v47 = vpop.f32.mrb[99].mxu1  ;;  %11657 = vmatmul.mubr.msk.bf16.gmra.mrb[136].mxu0 %vm1389_vm7, %v13335_v45  ;;  %5221 = vmatprep.subr.bf16.mxu1 %v16020_v52  ;;  %v14180_v9 = vadd.f32 %v16056_v3, %v1936_v33  ;;  %v16060_v33 = vld [vmem:[#allocation25_spill] sm:$0xff]  ;;  %v16062_v62 = vld [vmem:[#allocation26_spill] sm:$0xff] }
 0x2b9   : > { %11660 = vmatprep.mubr.msk.bf16.mxu0 %vm1389_vm7, %v16057_v49  ;;  %v14185_v17 = vadd.f32 %v13920_v63, %v1929_v44 }
 0x2ba   : > { %11357 = vmatmul.mubr.msk.bf16.gmra.mrb[140].mxu1 %vm1389_vm7, %v13335_v45 }
 0x2bb   : > { %11360 = vmatprep.mubr.bf16.mxu1 %v16020_v52 }
 0x2bd   : > { %v11154_v24 = vpop.f32.mrb[100].mxu1 }
 0x2be   : > { %v1950_v5 = vadd.f32 %v11154_v24, %v16058_v29  ;;  %v1942_v22 = vpop.f32.mrb[101].mxu1  ;;  %v16063_v24 = vld [vmem:[#allocation27_spill] sm:$0xff] }
 0x2bf   : > { %v1943_v6 = vadd.f32 %v1942_v22, %v16059_v21  ;;  %v11155_v8 = vpop.f32.mrb[102].mxu1  ;;  %v16064_v21 = vld [vmem:[#allocation28_spill] sm:$0xff] }
 0x2c0   : > { %v1945_v25 = vpop.f32.mrb[103].mxu1  ;;  %11661 = vmatmul.mubr.bf16.gmra.mrb[140].mxu0 %v16020_v52  ;;  %v14194_v27 = vadd.f32 %v16060_v33, %v1950_v5  ;;  %v16068_v33 = vld [vmem:[#allocation30_spill] sm:$0xff] }
 0x2c1   : > { %11664 = vmatprep.mubr.msk.bf16.mxu0 %vm1389_vm7, %v13370_v12  ;;  %v14199_v63 = vadd.f32 %v13935_v60, %v1943_v6  ;;  %v16066_v6 = vld [vmem:[#allocation29_spill] sm:$0xff] }
 0x2c2   : > { %11361 = vmatmul.mubr.msk.bf16.gmra.mrb[144].mxu1 %vm1389_vm7, %v16061_v1 }
 0x2c3   : > { %11364 = vmatprep.mubr.msk.bf16.mxu1 %vm1389_vm7, %v13370_v12 }
 0x2c5   : > { %v11158_v44 = vpop.f32.mrb[104].mxu1 }
 0x2c6   : > { %v1964_v47 = vadd.f32 %v11158_v44, %v16062_v62  ;;  %v1956_v3 = vpop.f32.mrb[105].mxu1  ;;  %v16069_v62 = vld [vmem:[#allocation31_spill] sm:$0xff] }
 0x2c7   : > { %v1957_v29 = vadd.f32 %v1956_v3, %v16063_v24  ;;  %v11159_v5 = vpop.f32.mrb[106].mxu1 }
 0x2c8   : > { %v1959_v22 = vpop.f32.mrb[107].mxu1  ;;  %11665 = vmatmul.mubr.msk.bf16.gmra.mrb[144].mxu0 %vm1389_vm7, %v13382_v36  ;;  %v14210_v60 = vadd.f32 %v16064_v21, %v1964_v47  ;;  %v16070_v5 = vld [vmem:[#allocation32_spill] sm:$0xff] }
 0x2c9   : > { %11668 = vmatprep.mubr.msk.bf16.mxu0 %vm1389_vm7, %v13392_v41  ;;  %v14215_v8 = vadd.f32 %v16066_v6, %v1957_v29  ;;  %v16072_v22 = vld [vmem:[#allocation33_spill] sm:$0xff] }
 0x2ca   : > { %16065 = vst [vmem:[#allocation10_spill] sm:$0xff] %v14210_v60  ;;  %11365 = vmatmul.mubr.msk.bf16.gmra.mrb[148].mxu1 %vm1389_vm7, %v13382_v36 }
 0x2cb   : > { %16067 = vst [vmem:[#allocation11_spill] sm:$0xff] %v14215_v8  ;;  %11368 = vmatprep.mubr.msk.bf16.mxu1 %vm1389_vm7, %v13392_v41  ;;  %v16090_v8 = vld [vmem:[#allocation43_spill] sm:$0xff] }
 0x2cd   : > { %v11162_v25 = vpop.f32.mrb[108].mxu1 }
 0x2ce   : > { %v1978_v1 = vadd.f32 %v11162_v25, %v16068_v33  ;;  %v1970_v44 = vpop.f32.mrb[109].mxu1  ;;  %v16074_v25 = vld [vmem:[#allocation34_spill] sm:$0xff] }
 0x2cf   : > { %v1971_v3 = vadd.f32 %v1970_v44, %v16069_v62  ;;  %v11163_v47 = vpop.f32.mrb[110].mxu1  ;;  %v16075_v62 = vld [vmem:[#allocation35_spill] sm:$0xff] }
 0x2d0   : > { %v1973_v24 = vpop.f32.mrb[111].mxu1  ;;  %11669 = vmatmul.mubr.msk.bf16.gmra.mrb[148].mxu0 %vm1389_vm7, %v13404_v2  ;;  %v14226_v29 = vadd.f32 %v16070_v5, %v1978_v1  ;;  %v16077_v5 = vld [vmem:[#allocation6_spill] sm:$0xff] }
 0x2d1   : > { %11672 = vmatprep.mubr.msk.bf16.mxu0 %vm1389_vm7, %v13414_v58  ;;  %v14231_v21 = vadd.f32 %v16072_v22, %v1971_v3  ;;  %v16078_v22 = vld [vmem:[#allocation36_spill] sm:$0xff] }
 0x2d2   : > { %16071 = vst [vmem:[#allocation12_spill] sm:$0xff] %v14226_v29  ;;  %11369 = vmatmul.mubr.msk.bf16.gmra.mrb[152].mxu1 %vm1389_vm7, %v13404_v2 }
 0x2d3   : > { %16073 = vst [vmem:[#allocation13_spill] sm:$0xff] %v14231_v21  ;;  %11372 = vmatprep.mubr.msk.bf16.mxu1 %vm1389_vm7, %v13414_v58 }
 0x2d5   : > { %v11166_v6 = vpop.f32.mrb[112].mxu1 }
 0x2d6   : > { %v1992_v33 = vadd.f32 %v11166_v6, %v16074_v25  ;;  %v1984_v44 = vpop.f32.mrb[113].mxu1  ;;  %v16080_v25 = vld [vmem:[#allocation37_spill] sm:$0xff] }
 0x2d7   : > { %v1985_v47 = vadd.f32 %v1984_v44, %v16075_v62  ;;  %v11167_v1 = vpop.f32.mrb[114].mxu1 }
 0x2d8   : > { %v1987_v24 = vpop.f32.mrb[115].mxu1  ;;  %11673 = vmatmul.mubr.msk.bf16.gmra.mrb[152].mxu0 %vm1389_vm7, %v13426_v30  ;;  %v14242_v3 = vadd.f32 %v13979_v53, %v1992_v33  ;;  %v16081_v1 = vld [vmem:[#allocation38_spill] sm:$0xff]  ;;  %v16082_v33 = vld [vmem:[#allocation39_spill] sm:$0xff] }
 0x2d9   : > { %11676 = vmatprep.mubr.msk.bf16.mxu0 %vm1389_vm7, %v16077_v5  ;;  %v14247_v21 = vadd.f32 %v16078_v22, %v1985_v47  ;;  %v16084_v47 = vld [vmem:[#allocation40_spill] sm:$0xff] }
 0x2da   : > { %16076 = vst [vmem:[#allocation14_spill] sm:$0xff] %v14242_v3  ;;  %11373 = vmatmul.mubr.msk.bf16.gmra.mrb[156].mxu1 %vm1389_vm7, %v13426_v30 }
 0x2db   : > { %16079 = vst [vmem:[#allocation15_spill] sm:$0xff] %v14247_v21  ;;  %11376 = vmatprep.mubr.bf16.mxu1 %v16020_v52  ;;  %v16086_v21 = vld [vmem:[#allocation7_spill] sm:$0xff] }
 0x2dd   : > { %v11170_v6 = vpop.f32.mrb[116].mxu1 }
 0x2de   : > { %v2006_v44 = vadd.f32 %v11170_v6, %v16080_v25  ;;  %v1998_v62 = vpop.f32.mrb[117].mxu1 }
 0x2df   : > { %v1999_v24 = vadd.f32 %v1998_v62, %v16081_v1  ;;  %v11171_v29 = vpop.f32.mrb[118].mxu1  ;;  %v16088_v1 = vld [vmem:[#allocation42_spill] sm:$0xff] }
 0x2e0   : > { %v2001_v53 = vpop.f32.mrb[119].mxu1  ;;  %11677 = vmatmul.mubr.bf16.gmra.mrb[156].mxu0 %v16020_v52  ;;  %v14256_v3 = vadd.f32 %v16082_v33, %v2006_v44  ;;  %v16087_v29 = vld [vmem:[#allocation41_spill] sm:$0xff] }
 0x2e1   : > { %11680 = vmatprep.mubr.msk.bf16.mxu0 %vm1389_vm7, %v13457_v4  ;;  %v14261_v22 = vadd.f32 %v16084_v47, %v1999_v24  ;;  %v16092_v47 = vld [vmem:[#allocation9_spill] sm:$0xff] }
 0x2e2   : > { %16083 = vst [vmem:[#allocation16_spill] sm:$0xff] %v14256_v3  ;;  %11377 = vmatmul.mubr.msk.bf16.gmra.mrb[160].mxu1 %vm1389_vm7, %v16086_v21  ;;  %v16089_v3 = vld [vmem:[#allocation8_spill] sm:$0xff] }
 0x2e3   : > { %16085 = vst [vmem:[#allocation17_spill] sm:$0xff] %v14261_v22  ;;  %11380 = vmatprep.mubr.msk.bf16.mxu1 %vm1389_vm7, %v13457_v4  ;;  %v16093_v21 = vld [vmem:[#allocation44_spill] sm:$0xff] }
 0x2e5   : > { %v11174_v6 = vpop.f32.mrb[120].mxu1 }
 0x2e6   : > { %v2020_v25 = vadd.f32 %v11174_v6, %v16087_v29  ;;  %v2012_v62 = vpop.f32.mrb[121].mxu1 }
 0x2e7   : > { %v2013_v53 = vadd.f32 %v2012_v62, %v16088_v1  ;;  %v11175_v44 = vpop.f32.mrb[122].mxu1  ;;  %v16095_v62 = vld [vmem:[#allocation45_spill] sm:$0xff] }
 0x2e8   : > { %v2015_v33 = vpop.f32.mrb[123].mxu1  ;;  %11681 = vmatmul.mubr.msk.bf16.gmra.mrb[160].mxu0 %vm1389_vm7, %v16089_v3  ;;  %v14272_v24 = vadd.f32 %v16090_v8, %v2020_v25  ;;  %v16097_v25 = vld [vmem:[#allocation47_spill] sm:$0xff] }
 0x2e9   : > { %11684 = vmatprep.mubr.msk.bf16.mxu0 %vm1389_vm7, %v16092_v47  ;;  %v14277_v22 = vadd.f32 %v16093_v21, %v2013_v53  ;;  %v16096_v33 = vld [vmem:[#allocation46_spill] sm:$0xff] }
 0x2ea   : > { %16091 = vst [vmem:[#allocation18_spill] sm:$0xff] %v14272_v24  ;;  %11381 = vmatmul.mubr.msk.bf16.gmra.mrb[164].mxu1 %vm1389_vm7, %v16089_v3 }
 0x2eb   : > { %16094 = vst [vmem:[#allocation19_spill] sm:$0xff] %v14277_v22  ;;  %11384 = vmatprep.mubr.msk.bf16.mxu1 %vm1389_vm7, %v16092_v47 }
 0x2ed   : > { %v11178_v6 = vpop.f32.mrb[124].mxu1 }
 0x2ee   : > { %v2026_v29 = vpop.f32.mrb[125].mxu1  ;;  %v2034_v1 = vadd.f32 %v11178_v6, %v16095_v62 }
 0x2ef   : > { %v11179_v44 = vpop.f32.mrb[126].mxu1  ;;  %v2027_v8 = vadd.f32 %v2026_v29, %v16096_v33 }
 0x2f0   : > { %v14286_v24 = vadd.f32 %v16097_v25, %v2034_v1  ;;  %v2029_v60 = vpop.f32.mrb[127].mxu1  ;;  %11685 = vmatmul.mubr.msk.bf16.gmra.mrb[164].mxu0 %vm1389_vm7, %v13491_v0 }
 0x2f1   : > { %v14291_v53 = vadd.f32 %v14030_v15, %v2027_v8  ;;  %11688 = vmatprep.mubr.msk.bf16.mxu0 %vm1389_vm7, %v13501_v7  ;;  %v12944_v15 = vld [vmem:[%s15952_s5 + $0x8] sm:$0xff]   ;;  %v12953_v60 = vld [vmem:[%s15952_s5 + $0x50] sm:$0xff]  }
 0x2f2   : > { %16098 = vst [vmem:[#allocation20_spill] sm:$0xff] %v14286_v24  ;;  %11385 = vmatmul.mubr.msk.bf16.gmra.mrb[168].mxu1 %vm1389_vm7, %v13491_v0 }
 0x2f3   : > { %16099 = vst [vmem:[#allocation21_spill] sm:$0xff] %v14291_v53  ;;  %11388 = vmatprep.mubr.msk.bf16.mxu1 %vm1389_vm7, %v13501_v7 }
 0x2f8   : > { %11689 = vmatmul.mubr.msk.bf16.gmra.mrb[168].mxu0 %vm1389_vm7, %v13513_v38 }
 0x2f9   : > { %11692 = vmatprep.mubr.msk.bf16.mxu0 %vm1389_vm7, %v13523_v46 }
 0x2fa   : > { %11389 = vmatmul.mubr.msk.bf16.gmra.mrb[172].mxu1 %vm1389_vm7, %v13513_v38 }
 0x2fb   : > { %11392 = vmatprep.mubr.bf16.mxu1 %v16020_v52 }
 0x300   : > { %11693 = vmatmul.mubr.bf16.gmra.mrb[172].mxu0 %v16020_v52 }
 0x301   : > { %11696 = vmatprep.mubr.msk.bf16.mxu0 %vm1389_vm7, %v13544_v18 }
 0x302   : > { %11393 = vmatmul.mubr.msk.bf16.gmra.mrb[176].mxu1 %vm1389_vm7, %v13535_v11  ;;  %v12943_v11 = vld [vmem:[%s15952_s5] sm:$0xff]  }
 0x303   : > { %11396 = vmatprep.mubr.msk.bf16.mxu1 %vm1389_vm7, %v13544_v18 }
 0x308   : > { %11697 = vmatmul.mubr.msk.bf16.gmra.mrb[176].mxu0 %vm1389_vm7, %v13556_v50 }
 0x309   : > { %11700 = vmatprep.mubr.msk.bf16.mxu0 %vm1389_vm7, %v13566_v56 }
 0x30a   : > { %11397 = vmatmul.mubr.msk.bf16.gmra.mrb[180].mxu1 %vm1389_vm7, %v13556_v50 }
 0x30b   : > { %11400 = vmatprep.mubr.msk.bf16.mxu1 %vm1389_vm7, %v13566_v56 }
 0x310   : > { %11701 = vmatmul.mubr.msk.bf16.gmra.mrb[180].mxu0 %vm1389_vm7, %v13581_v31 }
 0x311   : > { %11704 = vmatprep.mubr.msk.bf16.mxu0 %vm1389_vm7, %v13591_v39 }
 0x312   : > { %11401 = vmatmul.mubr.msk.bf16.gmra.mrb[184].mxu1 %vm1389_vm7, %v13581_v31 }
 0x313   : > { %11404 = vmatprep.mubr.msk.bf16.mxu1 %vm1389_vm7, %v13591_v39 }
 0x318   : > { %11705 = vmatmul.mubr.msk.bf16.gmra.mrb[184].mxu0 %vm1389_vm7, %v13601_v55 }
 0x319   : > { %11708 = vmatprep.mubr.msk.bf16.mxu0 %vm1389_vm7, %v13611_v61 }
 0x31a   : > { %11405 = vmatmul.mubr.msk.bf16.gmra.mrb[188].mxu1 %vm1389_vm7, %v13601_v55 }
 0x31b   : > { %11420 = vmatprep.mubr.msk.bf16.mxu1 %vm1389_vm7, %v13249_v32  ;;  %v12945_v32 = vld [vmem:[%s15952_s5 + $0x10] sm:$0xff]  }
 0x320   : > { %11709 = vmatmul.mubr.bf16.gmra.mrb[188].mxu0 %v16020_v52 }
 0x322   : > { %11421 = vmatmul.mubr.msk.bf16.vlgmr.msra.gmra.mrb[128].mxu1 %vm1389_vm7, %v13264_v51  ;;  %v12946_v51 = vld [vmem:[%s15952_s5 + $0x18] sm:$0xff]  }
 0x323   : > { %5222 = vmatpush1.bf16.msra.mxu1 %v12943_v11  ;;  %11424 = vmatprep.mubr.msk.bf16.mxu1 %vm1389_vm7, %v13280_v57  ;;  %v12947_v57 = vld [vmem:[%s15952_s5 + $0x20] sm:$0xff]  }
 0x324   : > { %5223 = vmatprep.subr.bf16.mxu1 %v16020_v52 }
 0x327   : > { %5224 = vmatpush1.bf16.msra.mxu1 %v12944_v15 }
 0x328   : > { %5225 = vmatprep.subr.bf16.mxu1 %v16020_v52 }
 0x32a   : > { %11425 = vmatmul.mubr.msk.bf16.gmra.mrb[132].mxu1 %vm1389_vm7, %v13299_v16  ;;  %v12948_v16 = vld [vmem:[%s15952_s5 + $0x28] sm:$0xff]  }
 0x32b   : > { %11428 = vmatprep.mubr.msk.bf16.mxu1 %vm1389_vm7, %v13315_v23  ;;  %5226 = vmatpush1.bf16.msra.mxu1 %v12945_v32  ;;  %v12949_v23 = vld [vmem:[%s15952_s5 + $0x30] sm:$0xff]  }
 0x32c   : > { %5227 = vmatprep.subr.bf16.mxu1 %v16020_v52 }
 0x32f   : > { %5228 = vmatpush1.bf16.msra.mxu1 %v12946_v51 }
 0x330   : > { %5229 = vmatprep.subr.bf16.mxu1 %v16020_v52 }
 0x332   : > { %11429 = vmatmul.mubr.msk.bf16.gmra.mrb[136].mxu1 %vm1389_vm7, %v13335_v45  ;;  %v12950_v45 = vld [vmem:[%s15952_s5 + $0x38] sm:$0xff]  }
 0x333   : > { %11432 = vmatprep.mubr.msk.bf16.mxu1 %vm1389_vm7, %v16057_v49  ;;  %5230 = vmatpush1.bf16.msra.mxu1 %v12947_v57  ;;  %v12951_v49 = vld [vmem:[%s15952_s5 + $0x40] sm:$0xff]  }
 0x334   : > { %5231 = vmatprep.subr.bf16.mxu1 %v16020_v52 }
 0x337   : > { %5232 = vmatpush1.bf16.msra.mxu1 %v12948_v16 }
 0x338   : > { %5233 = vmatprep.subr.bf16.mxu1 %v16020_v52 }
 0x33a   : > { %11433 = vmatmul.mubr.bf16.gmra.mrb[140].mxu1 %v16020_v52 }
 0x33b   : > { %11436 = vmatprep.mubr.msk.bf16.mxu1 %vm1389_vm7, %v13370_v12  ;;  %5234 = vmatpush1.bf16.msra.mxu1 %v12949_v23  ;;  %v12952_v12 = vld [vmem:[%s15952_s5 + $0x48] sm:$0xff]  }
 0x33c   : > { %5235 = vmatprep.subr.bf16.mxu1 %v16020_v52 }
 0x33f   : > { %5236 = vmatpush1.bf16.msra.mxu1 %v12950_v45 }
 0x340   : > { %5237 = vmatprep.subr.bf16.mxu1 %v16020_v52 }
 0x342   : > { %11437 = vmatmul.mubr.msk.bf16.gmra.mrb[144].mxu1 %vm1389_vm7, %v13382_v36  ;;  %v12954_v36 = vld [vmem:[%s15952_s5 + $0x58] sm:$0xff]  }
 0x343   : > { %11440 = vmatprep.mubr.msk.bf16.mxu1 %vm1389_vm7, %v13392_v41  ;;  %5238 = vmatpush1.bf16.msra.mxu1 %v12951_v49 }
 0x344   : > { %5239 = vmatprep.subr.bf16.mxu1 %v16020_v52 }
 0x347   : > { %5240 = vmatpush1.bf16.msra.mxu1 %v12952_v12 }
 0x348   : > { %5241 = vmatprep.subr.bf16.mxu1 %v16020_v52 }
 0x34a   : > { %11441 = vmatmul.mubr.msk.bf16.gmra.mrb[148].mxu1 %vm1389_vm7, %v13404_v2 }
 0x34b   : > { %11444 = vmatprep.mubr.msk.bf16.mxu1 %vm1389_vm7, %v13414_v58  ;;  %5242 = vmatpush1.bf16.msra.mxu1 %v12953_v60 }
 0x34c   : > { %5243 = vmatprep.subr.bf16.mxu1 %v16020_v52 }
 0x34f   : > { %5244 = vmatpush1.bf16.msra.mxu1 %v12954_v36 }
 0x352   : > { %11445 = vmatmul.mubr.msk.bf16.gmra.mrb[152].mxu1 %vm1389_vm7, %v13426_v30 }
 0x353   : > { %11448 = vmatprep.mubr.msk.bf16.mxu1 %vm1389_vm7, %v16077_v5 }
 0x35a   : > { %11449 = vmatmul.mubr.bf16.gmra.mrb[156].mxu1 %v16020_v52 }
 0x35b   : > { %11452 = vmatprep.mubr.msk.bf16.mxu1 %vm1389_vm7, %v13457_v4 }
 0x362   : > { %11453 = vmatmul.mubr.msk.bf16.gmra.mrb[160].mxu1 %vm1389_vm7, %v16089_v3 }
 0x363   : > { %11456 = vmatprep.mubr.msk.bf16.mxu1 %vm1389_vm7, %v16092_v47 }
 0x36a   : > { %11457 = vmatmul.mubr.msk.bf16.gmra.mrb[164].mxu1 %vm1389_vm7, %v13491_v0 }
 0x36b   : > { %11460 = vmatprep.mubr.msk.bf16.mxu1 %vm1389_vm7, %v13501_v7 }
 0x372   : > { %11461 = vmatmul.mubr.msk.bf16.gmra.mrb[168].mxu1 %vm1389_vm7, %v13513_v38 }
 0x373   : > { %11464 = vmatprep.mubr.msk.bf16.mxu1 %vm1389_vm7, %v13523_v46 }
 0x37a   : > { %11465 = vmatmul.mubr.bf16.gmra.mrb[172].mxu1 %v16020_v52 }
 0x37b   : > { %11468 = vmatprep.mubr.msk.bf16.mxu1 %vm1389_vm7, %v13544_v18  ;;  %v11650_v41 = vpop.f32.mrb[128].mxu0 }
 0x37c   : > { %v4439_v2 = vpop.f32.mrb[129].mxu0  ;;  %v4826_v30 = vrot.slane %v11650_v41, 2 }
 0x37d   : > { %v11651_v58 = vpop.f32.mrb[130].mxu0  ;;  %v4823_v3 = vrot.slane %v4439_v2, 2 }
 0x37e   : > { %v4827_v4 = vrot.slane %v11651_v58, 2  ;;  %v4442_v0 = vpop.f32.mrb[131].mxu0  ;;  %v12964_v58 = vld [vmem:[%s13089_s27 + $0x4] ss:$8 sps:$4 sm:$0xff]  }
 0x37f   : > { %v4824_v7 = vrot.slane %v4442_v0, 2 }
 0x380   : > { %v14431_v5 = vsel %vm4822_vm8, %v4826_v30, %v4827_v4 }
 0x381   : > { %v14434_v38 = vsel %vm4822_vm8, %v4823_v3, %v4824_v7 }
 0x382   : > { %11469 = vmatmul.mubr.msk.bf16.gmra.mrb[176].mxu1 %vm1389_vm7, %v13556_v50 }
 0x383   : > { %11472 = vmatprep.mubr.msk.bf16.mxu1 %vm1389_vm7, %v13566_v56  ;;  %v11654_v46 = vpop.f32.mrb[132].mxu0 }
 0x384   : > { %v4455_v18 = vpop.f32.mrb[133].mxu0  ;;  %v4832_v21 = vrot.slane %v11654_v46, 2 }
 0x385   : > { %v11655_v47 = vpop.f32.mrb[134].mxu0  ;;  %v4829_v62 = vrot.slane %v4455_v18, 2 }
 0x386   : > { %v4833_v6 = vrot.slane %v11655_v47, 2  ;;  %v4458_v29 = vpop.f32.mrb[135].mxu0 }
 0x387   : > { %v4830_v1 = vrot.slane %v4458_v29, 2 }
 0x388   : > { %v14441_v44 = vsel %vm4822_vm8, %v4832_v21, %v4833_v6  ;;  %v12965_v6 = vld [vmem:[%s13089_s27] ss:$8 sps:$4 sm:$0xff]  }
 0x389   : > { %v14444_v33 = vsel %vm4822_vm8, %v4829_v62, %v4830_v1  ;;  %v12966_v62 = vld [vmem:[%s13089_s27 + $0x14] ss:$8 sps:$4 sm:$0xff]  }
 0x38a   : > { %11473 = vmatmul.mubr.msk.bf16.gmra.mrb[180].mxu1 %vm1389_vm7, %v13581_v31 }
 0x38b   : > { %11476 = vmatprep.mubr.msk.bf16.mxu1 %vm1389_vm7, %v13591_v39  ;;  %v11658_v50 = vpop.f32.mrb[136].mxu0 }
 0x38c   : > { %v4471_v56 = vpop.f32.mrb[137].mxu0  ;;  %v4838_v25 = vrot.slane %v11658_v50, 2 }
 0x38d   : > { %v11659_v8 = vpop.f32.mrb[138].mxu0  ;;  %v4835_v32 = vrot.slane %v4471_v56, 2 }
 0x38e   : > { %v4839_v11 = vrot.slane %v11659_v8, 2  ;;  %v4474_v15 = vpop.f32.mrb[139].mxu0 }
 0x38f   : > { %v4836_v51 = vrot.slane %v4474_v15, 2 }
 0x390   : > { %v14451_v57 = vsel %vm4822_vm8, %v4838_v25, %v4839_v11 }
 0x391   : > { %v14454_v16 = vsel %vm4822_vm8, %v4835_v32, %v4836_v51 }
 0x392   : > { %11477 = vmatmul.mubr.msk.bf16.gmra.mrb[184].mxu1 %vm1389_vm7, %v13601_v55  ;;  %v12955_v55 = vld [vmem:[%s15954_s7 + $0x18] sm:$0xff]  }
 0x393   : > { %11480 = vmatprep.mubr.msk.bf16.mxu1 %vm1389_vm7, %v13611_v61  ;;  %v11662_v31 = vpop.f32.mrb[140].mxu0  ;;  %11712 = vmatprep.subr.bf16.mxu0 %v12955_v55 }
 0x394   : > { %v4487_v39 = vpop.f32.mrb[141].mxu0  ;;  %v4844_v45 = vrot.slane %v11662_v31, 2  ;;  %11713 = vmatpush3.bf16.msra.mxu0 %v12955_v55  ;;  %12306 = vmatprep.subr.bf16.mxu1 %v12955_v55  ;;  %v12967_v31 = vld [vmem:[%s13089_s27 + $0x10] ss:$8 sps:$4 sm:$0xff]  }
 0x395   : > { %v11663_v23 = vpop.f32.mrb[142].mxu0  ;;  %v4841_v60 = vrot.slane %v4487_v39, 2 }
 0x396   : > { %v4845_v49 = vrot.slane %v11663_v23, 2  ;;  %v4490_v12 = vpop.f32.mrb[143].mxu0  ;;  %v12968_v23 = vld [vmem:[%s13089_s27 + $0x24] ss:$8 sps:$4 sm:$0xff]  }
 0x397   : > { %v4842_v36 = vrot.slane %v4490_v12, 2 }
 0x398   : > { %v14461_v41 = vsel %vm4822_vm8, %v4844_v45, %v4845_v49 }
 0x399   : > { %v14464_v2 = vsel %vm4822_vm8, %v4841_v60, %v4842_v36 }
 0x39a   : > { %11481 = vmatmul.mubr.bf16.gmra.mrb[188].mxu1 %v16020_v52 }
 0x39b   : > { %v11666_v61 = vpop.f32.mrb[144].mxu0  ;;  %9887 = vmatprep.mubr.msk.bf16.mxu1 %vm664_vm0, %v12964_v58 }
 0x39c   : > { %v4503_v30 = vpop.f32.mrb[145].mxu0  ;;  %v4850_v0 = vrot.slane %v11666_v61, 2 }
 0x39d   : > { %v11667_v4 = vpop.f32.mrb[146].mxu0  ;;  %v4847_v46 = vrot.slane %v4503_v30, 2 }
 0x39e   : > { %v4851_v3 = vrot.slane %v11667_v4, 2  ;;  %v4506_v7 = vpop.f32.mrb[147].mxu0  ;;  %v12969_v4 = vld [vmem:[%s13089_s27 + $0x20] ss:$8 sps:$4 sm:$0xff]  }
 0x39f   : > { %v4848_v18 = vrot.slane %v4506_v7, 2 }
 0x3a0   : > { %v14473_v47 = vsel %vm4822_vm8, %v4850_v0, %v4851_v3  ;;  %v12970_v3 = vld [vmem:[%s13089_s27 + $0x34] ss:$8 sps:$4 sm:$0xff]  }
 0x3a1   : > { %v14476_v21 = vsel %vm4822_vm8, %v4847_v46, %v4848_v18 }
 0x3a2   : > { %5254 = vmatmul.mubr.bf16.vlgmr.msra.gmra.mrb[192].mxu1 %v12965_v6 }
 0x3a3   : > { %v11670_v29 = vpop.f32.mrb[148].mxu0  ;;  %9888 = vmatprep.mubr.msk.bf16.mxu1 %vm664_vm0, %v12966_v62  ;;  %12307 = vmatpush3.bf16.msra.mxu1 %v12955_v55 }
 0x3a4   : > { %v4519_v1 = vpop.f32.mrb[149].mxu0  ;;  %v4856_v56 = vrot.slane %v11670_v29, 2 }
 0x3a5   : > { %v11671_v50 = vpop.f32.mrb[150].mxu0  ;;  %v4853_v11 = vrot.slane %v4519_v1, 2 }
 0x3a6   : > { %v4857_v8 = vrot.slane %v11671_v50, 2  ;;  %v4522_v25 = vpop.f32.mrb[151].mxu0 }
 0x3a7   : > { %v4854_v15 = vrot.slane %v4522_v25, 2 }
 0x3a8   : > { %v14482_v32 = vsel %vm4822_vm8, %v4856_v56, %v4857_v8  ;;  %v12971_v8 = vld [vmem:[%s13089_s27 + $0x30] ss:$8 sps:$4 sm:$0xff]  }
 0x3a9   : > { %v14485_v51 = vsel %vm4822_vm8, %v4853_v11, %v4854_v15  ;;  %v12972_v11 = vld [vmem:[%s13089_s27 + $0x44] ss:$8 sps:$4 sm:$0xff]  }
 0x3aa   : > { %5262 = vmatmul.mubr.bf16.gmra.mrb[196].mxu1 %v12967_v31 }
 0x3ab   : > { %v11674_v39 = vpop.f32.mrb[152].mxu0  ;;  %9889 = vmatprep.mubr.msk.bf16.mxu1 %vm664_vm0, %v12968_v23 }
 0x3ac   : > { %v4535_v45 = vpop.f32.mrb[153].mxu0  ;;  %v4862_v12 = vrot.slane %v11674_v39, 2 }
 0x3ad   : > { %v11675_v49 = vpop.f32.mrb[154].mxu0  ;;  %v4859_v55 = vrot.slane %v4535_v45, 2 }
 0x3ae   : > { %v4863_v60 = vrot.slane %v11675_v49, 2  ;;  %v4538_v36 = vpop.f32.mrb[155].mxu0 }
 0x3af   : > { %v4860_v61 = vrot.slane %v4538_v36, 2 }
 0x3b0   : > { %v14491_v58 = vsel %vm4822_vm8, %v4862_v12, %v4863_v60 }
 0x3b1   : > { %v14494_v30 = vsel %vm4822_vm8, %v4859_v55, %v4860_v61  ;;  %v12973_v55 = vld [vmem:[%s13089_s27 + $0x40] ss:$8 sps:$4 sm:$0xff]  }
 0x3b2   : > { %5270 = vmatmul.mubr.bf16.gmra.mrb[200].mxu1 %v12969_v4  ;;  %v12974_v4 = vld [vmem:[%s13089_s27 + $0x54] ss:$8 sps:$4 sm:$0xff]  }
 0x3b3   : > { %v11678_v0 = vpop.f32.mrb[156].mxu0  ;;  %9890 = vmatprep.mubr.msk.bf16.mxu1 %vm664_vm0, %v12970_v3 }
 0x3b4   : > { %v4551_v7 = vpop.f32.mrb[157].mxu0  ;;  %v4868_v18 = vrot.slane %v11678_v0, 2 }
 0x3b5   : > { %v11679_v46 = vpop.f32.mrb[158].mxu0  ;;  %v4865_v62 = vrot.slane %v4551_v7, 2 }
 0x3b6   : > { %v4869_v6 = vrot.slane %v11679_v46, 2  ;;  %v4554_v29 = vpop.f32.mrb[159].mxu0 }
 0x3b7   : > { %v4866_v1 = vrot.slane %v4554_v29, 2 }
 0x3b8   : > { %v14500_v50 = vsel %vm4822_vm8, %v4868_v18, %v4869_v6 }
 0x3b9   : > { %v14503_v56 = vsel %vm4822_vm8, %v4865_v62, %v4866_v1 }
 0x3ba   : > { %5278 = vmatmul.mubr.bf16.gmra.mrb[204].mxu1 %v12971_v8  ;;  %v12975_v8 = vld [vmem:[%s13089_s27 + $0x50] ss:$8 sps:$4 sm:$0xff]  }
 0x3bb   : > { %v11682_v25 = vpop.f32.mrb[160].mxu0  ;;  %9891 = vmatprep.mubr.msk.bf16.mxu1 %vm664_vm0, %v12972_v11  ;;  %v12976_v11 = vld [vmem:[%s13089_s27 + $0x64] ss:$8 sps:$4 sm:$0xff]  }
 0x3bc   : > { %v4567_v15 = vpop.f32.mrb[161].mxu0  ;;  %v4874_v39 = vrot.slane %v11682_v25, 2 }
 0x3bd   : > { %v11683_v31 = vpop.f32.mrb[162].mxu0  ;;  %v4871_v49 = vrot.slane %v4567_v15, 2 }
 0x3be   : > { %v4875_v23 = vrot.slane %v11683_v31, 2  ;;  %v4570_v45 = vpop.f32.mrb[163].mxu0 }
 0x3bf   : > { %v4872_v12 = vrot.slane %v4570_v45, 2 }
 0x3c0   : > { %v14509_v60 = vsel %vm4822_vm8, %v4874_v39, %v4875_v23 }
 0x3c1   : > { %v14512_v36 = vsel %vm4822_vm8, %v4871_v49, %v4872_v12 }
 0x3c2   : > { %5286 = vmatmul.mubr.bf16.gmra.mrb[208].mxu1 %v12973_v55 }
 0x3c3   : > { %v11686_v61 = vpop.f32.mrb[164].mxu0  ;;  %9892 = vmatprep.mubr.msk.bf16.mxu1 %vm664_vm0, %v12974_v4  ;;  %v12977_v4 = vld [vmem:[%s13089_s27 + $0x60] ss:$8 sps:$4 sm:$0xff]  }
 0x3c4   : > { %v4583_v0 = vpop.f32.mrb[165].mxu0  ;;  %v4880_v7 = vrot.slane %v11686_v61, 2 }
 0x3c5   : > { %v11687_v3 = vpop.f32.mrb[166].mxu0  ;;  %v4877_v6 = vrot.slane %v4583_v0, 2 }
 0x3c6   : > { %v4881_v46 = vrot.slane %v11687_v3, 2  ;;  %v4586_v18 = vpop.f32.mrb[167].mxu0  ;;  %v12978_v3 = vld [vmem:[%s13089_s27 + $0x74] ss:$8 sps:$4 sm:$0xff]  }
 0x3c7   : > { %v4878_v29 = vrot.slane %v4586_v18, 2 }
 0x3c8   : > { %v14518_v62 = vsel %vm4822_vm8, %v4880_v7, %v4881_v46 }
 0x3c9   : > { %v14521_v1 = vsel %vm4822_vm8, %v4877_v6, %v4878_v29 }
 0x3ca   : > { %5294 = vmatmul.mubr.bf16.gmra.mrb[212].mxu1 %v12975_v8 }
 0x3cb   : > { %v11690_v25 = vpop.f32.mrb[168].mxu0  ;;  %9893 = vmatprep.mubr.msk.bf16.mxu1 %vm664_vm0, %v12976_v11 }
 0x3cc   : > { %v4599_v15 = vpop.f32.mrb[169].mxu0  ;;  %v4886_v39 = vrot.slane %v11690_v25, 2 }
 0x3cd   : > { %v11691_v31 = vpop.f32.mrb[170].mxu0  ;;  %v4883_v49 = vrot.slane %v4599_v15, 2 }
 0x3ce   : > { %v4887_v23 = vrot.slane %v11691_v31, 2  ;;  %v4602_v45 = vpop.f32.mrb[171].mxu0  ;;  %v12979_v31 = vld [vmem:[%s13089_s27 + $0x70] ss:$8 sps:$4 sm:$0xff]  }
 0x3cf   : > { %v4884_v12 = vrot.slane %v4602_v45, 2 }
 0x3d0   : > { %v14527_v55 = vsel %vm4822_vm8, %v4886_v39, %v4887_v23  ;;  %v12980_v23 = vld [vmem:[%s13089_s27 + $0x84] ss:$8 sps:$4 sm:$0xff]  }
 0x3d1   : > { %v14530_v61 = vsel %vm4822_vm8, %v4883_v49, %v4884_v12 }
 0x3d2   : > { %5302 = vmatmul.mubr.bf16.gmra.mrb[216].mxu1 %v12977_v4 }
 0x3d3   : > { %v11694_v0 = vpop.f32.mrb[172].mxu0  ;;  %9894 = vmatprep.mubr.msk.bf16.mxu1 %vm664_vm0, %v12978_v3 }
 0x3d4   : > { %v4615_v7 = vpop.f32.mrb[173].mxu0  ;;  %v4892_v18 = vrot.slane %v11694_v0, 2 }
 0x3d5   : > { %v11695_v46 = vpop.f32.mrb[174].mxu0  ;;  %v4889_v8 = vrot.slane %v4615_v7, 2 }
 0x3d6   : > { %v4893_v6 = vrot.slane %v11695_v46, 2  ;;  %v4618_v29 = vpop.f32.mrb[175].mxu0 }
 0x3d7   : > { %v4890_v25 = vrot.slane %v4618_v29, 2 }
 0x3d8   : > { %v14536_v11 = vsel %vm4822_vm8, %v4892_v18, %v4893_v6  ;;  %v12981_v6 = vld [vmem:[%s13089_s27 + $0x80] ss:$8 sps:$4 sm:$0xff]  }
 0x3d9   : > { %v14539_v15 = vsel %vm4822_vm8, %v4889_v8, %v4890_v25  ;;  %v12982_v8 = vld [vmem:[%s13089_s27 + $0x94] ss:$8 sps:$4 sm:$0xff]  }
 0x3da   : > { %5310 = vmatmul.mubr.bf16.gmra.mrb[220].mxu1 %v12979_v31 }
 0x3db   : > { %v11698_v39 = vpop.f32.mrb[176].mxu0  ;;  %9895 = vmatprep.mubr.msk.bf16.mxu1 %vm664_vm0, %v12980_v23 }
 0x3dc   : > { %v4631_v45 = vpop.f32.mrb[177].mxu0  ;;  %v4898_v12 = vrot.slane %v11698_v39, 2 }
 0x3dd   : > { %v11699_v49 = vpop.f32.mrb[178].mxu0  ;;  %v4895_v3 = vrot.slane %v4631_v45, 2 }
 0x3de   : > { %v4899_v4 = vrot.slane %v11699_v49, 2  ;;  %v4634_v0 = vpop.f32.mrb[179].mxu0 }
 0x3df   : > { %v4896_v7 = vrot.slane %v4634_v0, 2 }
 0x3e0   : > { %v14545_v46 = vsel %vm4822_vm8, %v4898_v12, %v4899_v4 }
 0x3e1   : > { %v14548_v18 = vsel %vm4822_vm8, %v4895_v3, %v4896_v7  ;;  %v12983_v3 = vld [vmem:[%s13089_s27 + $0x90] ss:$8 sps:$4 sm:$0xff]  }
 0x3e2   : > { %5318 = vmatmul.mubr.bf16.gmra.mrb[224].mxu1 %v12981_v6  ;;  %v12984_v6 = vld [vmem:[%s13089_s27 + $0xa4] ss:$8 sps:$4 sm:$0xff]  }
 0x3e3   : > { %v11702_v29 = vpop.f32.mrb[180].mxu0  ;;  %9896 = vmatprep.mubr.msk.bf16.mxu1 %vm664_vm0, %v12982_v8 }
 0x3e4   : > { %v4647_v25 = vpop.f32.mrb[181].mxu0  ;;  %v4904_v39 = vrot.slane %v11702_v29, 2 }
 0x3e5   : > { %v11703_v31 = vpop.f32.mrb[182].mxu0  ;;  %v4901_v49 = vrot.slane %v4647_v25, 2 }
 0x3e6   : > { %v4905_v23 = vrot.slane %v11703_v31, 2  ;;  %v4650_v45 = vpop.f32.mrb[183].mxu0 }
 0x3e7   : > { %v4902_v0 = vrot.slane %v4650_v45, 2 }
 0x3e8   : > { %v14554_v12 = vsel %vm4822_vm8, %v4904_v39, %v4905_v23 }
 0x3e9   : > { %16100 = vst [vmem:[#allocation22_spill] sm:$0xff] %v14554_v12  ;;  %v14557_v4 = vsel %vm4822_vm8, %v4901_v49, %v4902_v0  ;;  %v12985_v49 = vld [vmem:[%s13089_s27 + $0xa0] ss:$8 sps:$4 sm:$0xff]   ;;  %v12987_v12 = vld [vmem:[%s13089_s27 + $0xb0] ss:$8 sps:$4 sm:$0xff]  }
 0x3ea   : > { %16101 = vst [vmem:[#allocation4_spill] sm:$0xff] %v14557_v4  ;;  %5326 = vmatmul.mubr.bf16.gmra.mrb[228].mxu1 %v12983_v3  ;;  %v12986_v3 = vld [vmem:[%s13089_s27 + $0xb4] ss:$8 sps:$4 sm:$0xff]  }
 0x3eb   : > { %v11706_v7 = vpop.f32.mrb[184].mxu0  ;;  %9897 = vmatprep.mubr.msk.bf16.mxu1 %vm664_vm0, %v12984_v6 }
 0x3ec   : > { %v4663_v8 = vpop.f32.mrb[185].mxu0  ;;  %v4910_v31 = vrot.slane %v11706_v7, 2 }
 0x3ed   : > { %v11707_v29 = vpop.f32.mrb[186].mxu0  ;;  %v4907_v45 = vrot.slane %v4663_v8, 2 }
 0x3ee   : > { %v4911_v52 = vrot.slane %v11707_v29, 2  ;;  %v4666_v25 = vpop.f32.mrb[187].mxu0 }
 0x3ef   : > { %v4908_v53 = vrot.slane %v4666_v25, 2 }
 0x3f0   : > { %v14563_v39 = vsel %vm4822_vm8, %v4910_v31, %v4911_v52 }
 0x3f1   : > { %16102 = vst [vmem:[#allocation23_spill] sm:$0xff] %v14563_v39  ;;  %v14566_v23 = vsel %vm4822_vm8, %v4907_v45, %v4908_v53 }
 0x3f2   : > { %16103 = vst [vmem:[#allocation24_spill] sm:$0xff] %v14566_v23  ;;  %5334 = vmatmul.mubr.bf16.gmra.mrb[232].mxu1 %v12985_v49 }
 0x3f3   : > { %v11710_v0 = vpop.f32.mrb[188].mxu0  ;;  %9898 = vmatprep.mubr.msk.bf16.mxu1 %vm664_vm0, %v12986_v3 }
 0x3f4   : > { %v4679_v6 = vpop.f32.mrb[189].mxu0  ;;  %v4916_v7 = vrot.slane %v11710_v0, 2 }
 0x3f5   : > { %v11422_v24 = vpop.f32.mrb[128].mxu1  ;;  %v11711_v22 = vpop.f32.mrb[190].mxu0  ;;  %v4913_v4 = vrot.slane %v4679_v6, 2 }
 0x3f6   : > { %v4917_v29 = vrot.slane %v11711_v22, 2  ;;  %v3136_v8 = vpop.f32.mrb[129].mxu1  ;;  %v4682_v25 = vpop.f32.mrb[191].mxu0  ;;  %v3523_v53 = vrot.slane %v11422_v24, 1  ;;  %v12988_v24 = vld [vmem:[%s13089_s27 + $0xc4] ss:$8 sps:$4 sm:$0xff]  }
 0x3f7   : > { %v4914_v52 = vrot.slane %v4682_v25, 2  ;;  %v11423_v31 = vpop.f32.mrb[130].mxu1  ;;  %v3520_v3 = vrot.slane %v3136_v8, 1 }
 0x3f8   : > { %v14572_v45 = vsel %vm4822_vm8, %v4916_v7, %v4917_v29  ;;  %v3524_v49 = vrot.slane %v11423_v31, 1  ;;  %v3139_v23 = vpop.f32.mrb[131].mxu1  ;;  %v14586_v7 = vld [vmem:[%s15951_s4] ss:$0 sm:$0xff] }
 0x3f9   : > { %v14575_v39 = vsel %vm4822_vm8, %v4913_v4, %v4914_v52  ;;  %v3521_v0 = vrot.slane %v3139_v23, 1 }
 0x3fa   : > { %v3525_v22 = vsel %vm3519_vm9, %v3523_v53, %v3524_v49  ;;  %5342 = vmatmul.mubr.bf16.gmra.mrb[236].mxu1 %v12987_v12 }
 0x3fb   : > { %v3649_v6 = vadd.f32 %v3525_v22, %v14035_v35  ;;  %v3522_v25 = vsel %vm3519_vm9, %v3520_v3, %v3521_v0  ;;  %9899 = vmatprep.mubr.msk.bf16.mxu1 %vm664_vm0, %v12988_v24 }
 0x3fc   : > { %v3648_v4 = vadd.f32 %v3522_v25, %v14040_v43  ;;  %v12989_v25 = vld [vmem:[%s13089_s27 + $0xc0] ss:$8 sps:$4 sm:$0xff]  }
 0x3fd   : > { %v4952_v23 = vadd.f32 %v14431_v5, %v3649_v6  ;;  %v11426_v29 = vpop.f32.mrb[132].mxu1 }
 0x3fe   : > { %v4951_v12 = vadd.f32 %v14434_v38, %v3648_v4  ;;  %v3152_v8 = vpop.f32.mrb[133].mxu1  ;;  %v3529_v53 = vrot.slane %v11426_v29, 1  ;;  %v12990_v4 = vld [vmem:[%s13089_s27 + $0xd4] ss:$8 sps:$4 sm:$0xff]  }
 0x3ff   : > { %v4991_v35 = vadd.f32 %v14586_v7, %v4952_v23  ;;  %v11427_v52 = vpop.f32.mrb[134].mxu1  ;;  %v3526_v43 = vrot.slane %v3152_v8, 1 }
 0x400   : > { %v4990_v31 = vadd.f32 %v14586_v7, %v4951_v12  ;;  %v3530_v49 = vrot.slane %v11427_v52, 1  ;;  %v3155_v3 = vpop.f32.mrb[135].mxu1 }
 0x401   : > { %v5023_v0 = vmax.f32 %v4991_v35, 0.0  ;;  %v3527_v22 = vrot.slane %v3155_v3, 1 }
 0x402   : > { %v5022_v5 = vmax.f32 %v4990_v31, 0.0  ;;  %v3531_v6 = vsel %vm3519_vm9, %v3529_v53, %v3530_v49  ;;  %5350 = vmatmul.mubr.bf16.gmra.mrb[240].mxu1 %v12989_v25 }
 0x403   : > { %v3651_v38 = vadd.f32 %v3531_v6, %v14053_v37  ;;  %v3528_v24 = vsel %vm3519_vm9, %v3526_v43, %v3527_v22  ;;  %9900 = vmatprep.mubr.msk.bf16.mxu1 %vm664_vm0, %v12990_v4  ;;  %v12991_v6 = vld [vmem:[%s13089_s27 + $0xd0] ss:$8 sps:$4 sm:$0xff]  }
 0x404   : > { %v10297_v23 = vpack.c.bf16 %v5023_v0, %v5022_v5  ;;  %v3650_v29 = vadd.f32 %v3528_v24, %v14057_v28 }
 0x405   : > { %v4954_v12 = vadd.f32 %v14441_v44, %v3651_v38  ;;  %v11430_v8 = vpop.f32.mrb[136].mxu1  ;;  %v12992_v38 = vld [vmem:[%s13089_s27 + $0xe4] ss:$8 sps:$4 sm:$0xff]  }
 0x406   : > { %v4953_v37 = vadd.f32 %v14444_v33, %v3650_v29  ;;  %10298 = vst [vmem:[%s14602_s12] sm:$0xff] %v10297_v23   ;;  %v3168_v35 = vpop.f32.mrb[137].mxu1  ;;  %v3535_v49 = vrot.slane %v11430_v8, 1 }
 0x407   : > { %v4993_v52 = vadd.f32 %v14586_v7, %v4954_v12  ;;  %v11431_v31 = vpop.f32.mrb[138].mxu1  ;;  %v3532_v28 = vrot.slane %v3168_v35, 1 }
 0x408   : > { %v4992_v53 = vadd.f32 %v14586_v7, %v4953_v37  ;;  %v3536_v3 = vrot.slane %v11431_v31, 1  ;;  %v3171_v43 = vpop.f32.mrb[139].mxu1 }
 0x409   : > { %v5025_v0 = vmax.f32 %v4993_v52, 0.0  ;;  %v3533_v22 = vrot.slane %v3171_v43, 1 }
 0x40a   : > { %v5024_v44 = vmax.f32 %v4992_v53, 0.0  ;;  %v3537_v5 = vsel %vm3519_vm9, %v3535_v49, %v3536_v3  ;;  %5358 = vmatmul.mubr.bf16.gmra.mrb[244].mxu1 %v12991_v6 }
 0x40b   : > { %v3653_v33 = vadd.f32 %v3537_v5, %v14068_v48  ;;  %v3534_v25 = vsel %vm3519_vm9, %v3532_v28, %v3533_v22  ;;  %9901 = vmatprep.mubr.msk.bf16.mxu1 %vm664_vm0, %v12992_v38  ;;  %v12994_v22 = vld [vmem:[%s13089_s27 + $0xf4] ss:$8 sps:$4 sm:$0xff]  }
 0x40c   : > { %v10302_v24 = vpack.c.bf16 %v5025_v0, %v5024_v44  ;;  %v3652_v4 = vadd.f32 %v3534_v25, %v14073_v19  ;;  %v12993_v0 = vld [vmem:[%s13089_s27 + $0xe0] ss:$8 sps:$4 sm:$0xff]  }
 0x40d   : > { %v4956_v23 = vadd.f32 %v14451_v57, %v3653_v33  ;;  %v11434_v29 = vpop.f32.mrb[140].mxu1 }
 0x40e   : > { %10374 = vst [vmem:[%s14602_s12 + $0x8] sm:$0xff] %v10302_v24   ;;  %v4955_v12 = vadd.f32 %v14454_v16, %v3652_v4  ;;  %v3184_v8 = vpop.f32.mrb[141].mxu1  ;;  %v3541_v52 = vrot.slane %v11434_v29, 1 }
 0x40f   : > { %v4995_v37 = vadd.f32 %v14586_v7, %v4956_v23  ;;  %v11435_v48 = vpop.f32.mrb[142].mxu1  ;;  %v3538_v19 = vrot.slane %v3184_v8, 1 }
 0x410   : > { %v4994_v35 = vadd.f32 %v14586_v7, %v4955_v12  ;;  %v3542_v31 = vrot.slane %v11435_v48, 1  ;;  %v3187_v53 = vpop.f32.mrb[143].mxu1 }
 0x411   : > { %v5027_v49 = vmax.f32 %v4995_v37, 0.0  ;;  %v3539_v3 = vrot.slane %v3187_v53, 1 }
 0x412   : > { %v5026_v57 = vmax.f32 %v4994_v35, 0.0  ;;  %v3543_v43 = vsel %vm3519_vm9, %v3541_v52, %v3542_v31  ;;  %5366 = vmatmul.mubr.bf16.gmra.mrb[248].mxu1 %v12993_v0  ;;  %v12995_v35 = vld [vmem:[%s13089_s27 + $0xf0] ss:$8 sps:$4 sm:$0xff]  }
 0x413   : > { %v3655_v16 = vadd.f32 %v3543_v43, %v14084_v40  ;;  %v3540_v28 = vsel %vm3519_vm9, %v3538_v19, %v3539_v3  ;;  %9902 = vmatprep.mubr.msk.bf16.mxu1 %vm664_vm0, %v12994_v22 }
 0x414   : > { %v10307_v44 = vpack.c.bf16 %v5027_v49, %v5026_v57  ;;  %v3654_v5 = vadd.f32 %v3540_v28, %v14089_v26  ;;  %v14645_v49 = vld [vmem:[%s15954_s7 + $0x30] sm:$0xff]  }
 0x415   : > { %v4958_v6 = vadd.f32 %v14461_v41, %v3655_v16  ;;  %v11438_v33 = vpop.f32.mrb[144].mxu1  ;;  %11844 = vmatprep.subr.bf16.mxu0 %v14645_v49 }
 0x416   : > { %10375 = vst [vmem:[%s14602_s12 + $0x10] sm:$0xff] %v10307_v44   ;;  %v4957_v25 = vadd.f32 %v14464_v2, %v3654_v5  ;;  %v3200_v38 = vpop.f32.mrb[145].mxu1  ;;  %v3547_v23 = vrot.slane %v11438_v33, 1 }
 0x417   : > { %v4997_v24 = vadd.f32 %v14586_v7, %v4958_v6  ;;  %v11439_v4 = vpop.f32.mrb[146].mxu1  ;;  %v3544_v37 = vrot.slane %v3200_v38, 1 }
 0x418   : > { %v4996_v40 = vadd.f32 %v14586_v7, %v4957_v25  ;;  %v3548_v29 = vrot.slane %v11439_v4, 1  ;;  %v3203_v12 = vpop.f32.mrb[147].mxu1 }
 0x419   : > { %v5029_v8 = vmax.f32 %v4997_v24, 0.0  ;;  %v3545_v26 = vrot.slane %v3203_v12, 1 }
 0x41a   : > { %v5028_v48 = vmax.f32 %v4996_v40, 0.0  ;;  %v3549_v41 = vsel %vm3519_vm9, %v3547_v23, %v3548_v29  ;;  %5374 = vmatmul.mubr.bf16.gmra.mrb[252].mxu1 %v12995_v35 }
 0x41b   : > { %v3657_v2 = vadd.f32 %v3549_v41, %v14100_v34  ;;  %v3546_v52 = vsel %vm3519_vm9, %v3544_v37, %v3545_v26 }
 0x41c   : > { %v10312_v31 = vpack.c.bf16 %v5029_v8, %v5028_v48  ;;  %v3656_v53 = vadd.f32 %v3546_v52, %v14105_v59 }
 0x41d   : > { %v4960_v19 = vadd.f32 %v14473_v47, %v3657_v2  ;;  %v11442_v3 = vpop.f32.mrb[148].mxu1 }
 0x41e   : > { %10376 = vst [vmem:[%s14602_s12 + $0x18] sm:$0xff] %v10312_v31   ;;  %v4959_v57 = vadd.f32 %v14476_v21, %v3656_v53  ;;  %v3216_v43 = vpop.f32.mrb[149].mxu1  ;;  %v3553_v16 = vrot.slane %v11442_v3, 1 }
 0x41f   : > { %v4999_v34 = vadd.f32 %v14586_v7, %v4960_v19  ;;  %v11443_v0 = vpop.f32.mrb[150].mxu1  ;;  %v3550_v5 = vrot.slane %v3216_v43, 1 }
 0x420   : > { %v4998_v59 = vadd.f32 %v14586_v7, %v4959_v57  ;;  %v3554_v28 = vrot.slane %v11443_v0, 1  ;;  %v3219_v22 = vpop.f32.mrb[151].mxu1 }
 0x421   : > { %v5031_v44 = vmax.f32 %v4999_v34, 0.0  ;;  %v3551_v6 = vrot.slane %v3219_v22, 1 }
 0x422   : > { %v5030_v47 = vmax.f32 %v4998_v59, 0.0  ;;  %v3555_v33 = vsel %vm3519_vm9, %v3553_v16, %v3554_v28 }
 0x423   : > { %v3659_v21 = vadd.f32 %v3555_v33, %v14118_v54  ;;  %v3552_v25 = vsel %vm3519_vm9, %v3550_v5, %v3551_v6 }
 0x424   : > { %v10317_v38 = vpack.c.bf16 %v5031_v44, %v5030_v47  ;;  %v3658_v24 = vadd.f32 %v3552_v25, %v14123_v13 }
 0x425   : > { %v4962_v4 = vadd.f32 %v14482_v32, %v3659_v21  ;;  %v11446_v40 = vpop.f32.mrb[152].mxu1 }
 0x426   : > { %10377 = vst [vmem:[%s14602_s12 + $0x20] sm:$0xff] %v10317_v38   ;;  %v4961_v23 = vadd.f32 %v14485_v51, %v3658_v24  ;;  %v3232_v29 = vpop.f32.mrb[153].mxu1  ;;  %v3559_v26 = vrot.slane %v11446_v40, 1 }
 0x427   : > { %v5001_v12 = vadd.f32 %v14586_v7, %v4962_v4  ;;  %v11447_v8 = vpop.f32.mrb[154].mxu1  ;;  %v3556_v35 = vrot.slane %v3232_v29, 1 }
 0x428   : > { %v5000_v37 = vadd.f32 %v14586_v7, %v4961_v23  ;;  %v3560_v54 = vrot.slane %v11447_v8, 1  ;;  %v3235_v48 = vpop.f32.mrb[155].mxu1 }
 0x429   : > { %v5033_v41 = vmax.f32 %v5001_v12, 0.0  ;;  %v3557_v2 = vrot.slane %v3235_v48, 1 }
 0x42a   : > { %v5032_v13 = vmax.f32 %v5000_v37, 0.0  ;;  %v3561_v32 = vsel %vm3519_vm9, %v3559_v26, %v3560_v54 }
 0x42b   : > { %v3661_v52 = vadd.f32 %v3561_v32, %v14141_v42  ;;  %v3558_v51 = vsel %vm3519_vm9, %v3556_v35, %v3557_v2 }
 0x42c   : > { %v10322_v31 = vpack.c.bf16 %v5033_v41, %v5032_v13  ;;  %v3660_v53 = vadd.f32 %v3558_v51, %v14146_v14 }
 0x42d   : > { %v4964_v19 = vadd.f32 %v14491_v58, %v3661_v52  ;;  %v11450_v3 = vpop.f32.mrb[156].mxu1 }
 0x42e   : > { %10378 = vst [vmem:[%s14602_s12 + $0x28] sm:$0xff] %v10322_v31   ;;  %v4963_v57 = vadd.f32 %v14494_v30, %v3660_v53  ;;  %v3248_v43 = vpop.f32.mrb[157].mxu1  ;;  %v3565_v16 = vrot.slane %v11450_v3, 1 }
 0x42f   : > { %v5003_v34 = vadd.f32 %v14586_v7, %v4964_v19  ;;  %v11451_v0 = vpop.f32.mrb[158].mxu1  ;;  %v3562_v44 = vrot.slane %v3248_v43, 1 }
 0x430   : > { %v5002_v59 = vadd.f32 %v14586_v7, %v4963_v57  ;;  %v3566_v42 = vrot.slane %v11451_v0, 1  ;;  %v3251_v28 = vpop.f32.mrb[159].mxu1 }
 0x431   : > { %v5035_v22 = vmax.f32 %v5003_v34, 0.0  ;;  %v3563_v5 = vrot.slane %v3251_v28, 1 }
 0x432   : > { %v5034_v14 = vmax.f32 %v5002_v59, 0.0  ;;  %v3567_v58 = vsel %vm3519_vm9, %v3565_v16, %v3566_v42 }
 0x433   : > { %v3663_v6 = vadd.f32 %v3567_v58, %v14163_v10  ;;  %v3564_v30 = vsel %vm3519_vm9, %v3562_v44, %v3563_v5 }
 0x434   : > { %v10327_v47 = vpack.c.bf16 %v5035_v22, %v5034_v14  ;;  %v3662_v33 = vadd.f32 %v3564_v30, %v14168_v20 }
 0x435   : > { %v4966_v21 = vadd.f32 %v14500_v50, %v3663_v6  ;;  %v11454_v25 = vpop.f32.mrb[160].mxu1 }
 0x436   : > { %10379 = vst [vmem:[%s14602_s12 + $0x30] sm:$0xff] %v10327_v47   ;;  %v4965_v38 = vadd.f32 %v14503_v56, %v3662_v33  ;;  %v3264_v24 = vpop.f32.mrb[161].mxu1  ;;  %v3571_v29 = vrot.slane %v11454_v25, 1 }
 0x437   : > { %v5005_v4 = vadd.f32 %v14586_v7, %v4966_v21  ;;  %v11455_v40 = vpop.f32.mrb[162].mxu1  ;;  %v3568_v37 = vrot.slane %v3264_v24, 1  ;;  %v16104_v21 = vld [vmem:[#allocation10_spill] sm:$0xff]  ;;  %v16105_v24 = vld [vmem:[#allocation11_spill] sm:$0xff] }
 0x438   : > { %v5004_v23 = vadd.f32 %v14586_v7, %v4965_v38  ;;  %v3572_v10 = vrot.slane %v11455_v40, 1  ;;  %v3267_v12 = vpop.f32.mrb[163].mxu1 }
 0x439   : > { %v5037_v8 = vmax.f32 %v5005_v4, 0.0  ;;  %v3569_v26 = vrot.slane %v3267_v12, 1 }
 0x43a   : > { %v5036_v20 = vmax.f32 %v5004_v23, 0.0  ;;  %v3573_v50 = vsel %vm3519_vm9, %v3571_v29, %v3572_v10 }
 0x43b   : > { %v3665_v54 = vadd.f32 %v3573_v50, %v14180_v9  ;;  %v3570_v56 = vsel %vm3519_vm9, %v3568_v37, %v3569_v26 }
 0x43c   : > { %v10332_v48 = vpack.c.bf16 %v5037_v8, %v5036_v20  ;;  %v3664_v41 = vadd.f32 %v3570_v56, %v14185_v17 }
 0x43d   : > { %v4968_v35 = vadd.f32 %v14509_v60, %v3665_v54  ;;  %v11458_v2 = vpop.f32.mrb[164].mxu1 }
 0x43e   : > { %10380 = vst [vmem:[%s14602_s12 + $0x38] sm:$0xff] %v10332_v48   ;;  %v4967_v13 = vadd.f32 %v14512_v36, %v3664_v41  ;;  %v3280_v32 = vpop.f32.mrb[165].mxu1  ;;  %v3577_v53 = vrot.slane %v11458_v2, 1 }
 0x43f   : > { %v5007_v52 = vadd.f32 %v14586_v7, %v4968_v35  ;;  %v11459_v51 = vpop.f32.mrb[166].mxu1  ;;  %v3574_v57 = vrot.slane %v3280_v32, 1  ;;  %v16106_v35 = vld [vmem:[#allocation12_spill] sm:$0xff]  ;;  %v16107_v32 = vld [vmem:[#allocation13_spill] sm:$0xff] }
 0x440   : > { %v5006_v31 = vadd.f32 %v14586_v7, %v4967_v13  ;;  %v3578_v9 = vrot.slane %v11459_v51, 1  ;;  %v3283_v19 = vpop.f32.mrb[167].mxu1 }
 0x441   : > { %v5039_v3 = vmax.f32 %v5007_v52, 0.0  ;;  %v3575_v43 = vrot.slane %v3283_v19, 1 }
 0x442   : > { %v5038_v17 = vmax.f32 %v5006_v31, 0.0  ;;  %v3579_v60 = vsel %vm3519_vm9, %v3577_v53, %v3578_v9 }
 0x443   : > { %v3667_v34 = vadd.f32 %v3579_v60, %v14194_v27  ;;  %v3576_v36 = vsel %vm3519_vm9, %v3574_v57, %v3575_v43 }
 0x444   : > { %v10337_v0 = vpack.c.bf16 %v5039_v3, %v5038_v17  ;;  %v3666_v59 = vadd.f32 %v3576_v36, %v14199_v63 }
 0x445   : > { %v4970_v16 = vadd.f32 %v14518_v62, %v3667_v34  ;;  %v11462_v42 = vpop.f32.mrb[168].mxu1 }
 0x446   : > { %10381 = vst [vmem:[%s14602_s12 + $0x40] sm:$0xff] %v10337_v0   ;;  %v4969_v28 = vadd.f32 %v14521_v1, %v3666_v59  ;;  %v3296_v22 = vpop.f32.mrb[169].mxu1  ;;  %v3583_v58 = vrot.slane %v11462_v42, 1 }
 0x447   : > { %v5009_v44 = vadd.f32 %v14586_v7, %v4970_v16  ;;  %v11463_v5 = vpop.f32.mrb[170].mxu1  ;;  %v3580_v47 = vrot.slane %v3296_v22, 1  ;;  %v16108_v16 = vld [vmem:[#allocation14_spill] sm:$0xff]  ;;  %v16109_v22 = vld [vmem:[#allocation15_spill] sm:$0xff] }
 0x448   : > { %v5008_v14 = vadd.f32 %v14586_v7, %v4969_v28  ;;  %v3584_v27 = vrot.slane %v11463_v5, 1  ;;  %v3299_v6 = vpop.f32.mrb[171].mxu1 }
 0x449   : > { %v5041_v30 = vmax.f32 %v5009_v44, 0.0  ;;  %v3581_v33 = vrot.slane %v3299_v6, 1 }
 0x44a   : > { %v5040_v63 = vmax.f32 %v5008_v14, 0.0  ;;  %v3585_v62 = vsel %vm3519_vm9, %v3583_v58, %v3584_v27 }
 0x44b   : > { %v3669_v25 = vadd.f32 %v3585_v62, %v16104_v21  ;;  %v3582_v1 = vsel %vm3519_vm9, %v3580_v47, %v3581_v33 }
 0x44c   : > { %v10342_v38 = vpack.c.bf16 %v5041_v30, %v5040_v63  ;;  %v3668_v4 = vadd.f32 %v3582_v1, %v16105_v24  ;;  %v16110_v24 = vld [vmem:[#allocation16_spill] sm:$0xff] }
 0x44d   : > { %v4972_v40 = vadd.f32 %v14527_v55, %v3669_v25  ;;  %v11466_v23 = vpop.f32.mrb[172].mxu1 }
 0x44e   : > { %10382 = vst [vmem:[%s14602_s12 + $0x48] sm:$0xff] %v10342_v38   ;;  %v4971_v29 = vadd.f32 %v14530_v61, %v3668_v4  ;;  %v3312_v10 = vpop.f32.mrb[173].mxu1  ;;  %v3589_v26 = vrot.slane %v11466_v23, 1  ;;  %v16111_v23 = vld [vmem:[#allocation17_spill] sm:$0xff] }
 0x44f   : > { %v5011_v12 = vadd.f32 %v14586_v7, %v4972_v40  ;;  %v11467_v8 = vpop.f32.mrb[174].mxu1  ;;  %v3586_v56 = vrot.slane %v3312_v10, 1  ;;  %v16112_v10 = vld [vmem:[#allocation22_spill] sm:$0xff] }
 0x450   : > { %v5010_v37 = vadd.f32 %v14586_v7, %v4971_v29  ;;  %v3590_v20 = vrot.slane %v11467_v8, 1  ;;  %v3315_v50 = vpop.f32.mrb[175].mxu1 }
 0x451   : > { %v5043_v54 = vmax.f32 %v5011_v12, 0.0  ;;  %v3587_v48 = vrot.slane %v3315_v50, 1 }
 0x452   : > { %v5042_v41 = vmax.f32 %v5010_v37, 0.0  ;;  %v3591_v55 = vsel %vm3519_vm9, %v3589_v26, %v3590_v20  ;;  %v16113_v37 = vld [vmem:[#allocation4_spill] sm:$0xff] }
 0x453   : > { %v3671_v2 = vadd.f32 %v3591_v55, %v16106_v35  ;;  %v3588_v61 = vsel %vm3519_vm9, %v3586_v56, %v3587_v48 }
 0x454   : > { %v10347_v13 = vpack.c.bf16 %v5043_v54, %v5042_v41  ;;  %v3670_v52 = vadd.f32 %v3588_v61, %v16107_v32 }
 0x455   : > { %v4974_v51 = vadd.f32 %v14536_v11, %v3671_v2  ;;  %v11470_v31 = vpop.f32.mrb[176].mxu1 }
 0x456   : > { %10383 = vst [vmem:[%s14602_s12 + $0x50] sm:$0xff] %v10347_v13   ;;  %v4973_v53 = vadd.f32 %v14539_v15, %v3670_v52  ;;  %v3328_v9 = vpop.f32.mrb[177].mxu1  ;;  %v3595_v43 = vrot.slane %v11470_v31, 1  ;;  %v16114_v52 = vld [vmem:[#allocation18_spill] sm:$0xff] }
 0x457   : > { %v5013_v19 = vadd.f32 %v14586_v7, %v4974_v51  ;;  %v11471_v3 = vpop.f32.mrb[178].mxu1  ;;  %v3592_v36 = vrot.slane %v3328_v9, 1  ;;  %v16115_v9 = vld [vmem:[#allocation19_spill] sm:$0xff] }
 0x458   : > { %v5012_v57 = vadd.f32 %v14586_v7, %v4973_v53  ;;  %v3596_v17 = vrot.slane %v11471_v3, 1  ;;  %v3331_v60 = vpop.f32.mrb[179].mxu1  ;;  %v16116_v3 = vld [vmem:[#allocation23_spill] sm:$0xff] }
 0x459   : > { %v5045_v34 = vmax.f32 %v5013_v19, 0.0  ;;  %v3593_v0 = vrot.slane %v3331_v60, 1 }
 0x45a   : > { %v5044_v59 = vmax.f32 %v5012_v57, 0.0  ;;  %v3597_v11 = vsel %vm3519_vm9, %v3595_v43, %v3596_v17  ;;  %v16117_v17 = vld [vmem:[#allocation24_spill] sm:$0xff] }
 0x45b   : > { %v3673_v42 = vadd.f32 %v3597_v11, %v16108_v16  ;;  %v3594_v15 = vsel %vm3519_vm9, %v3592_v36, %v3593_v0 }
 0x45c   : > { %v10352_v28 = vpack.c.bf16 %v5045_v34, %v5044_v59  ;;  %v3672_v44 = vadd.f32 %v3594_v15, %v16109_v22 }
 0x45d   : > { %v4976_v5 = vadd.f32 %v14545_v46, %v3673_v42  ;;  %v11474_v14 = vpop.f32.mrb[180].mxu1 }
 0x45e   : > { %10384 = vst [vmem:[%s14602_s12 + $0x58] sm:$0xff] %v10352_v28   ;;  %v4975_v58 = vadd.f32 %v14548_v18, %v3672_v44  ;;  %v3344_v27 = vpop.f32.mrb[181].mxu1  ;;  %v3601_v33 = vrot.slane %v11474_v14, 1  ;;  %v16118_v14 = vld [vmem:[#allocation20_spill] sm:$0xff] }
 0x45f   : > { %v5015_v6 = vadd.f32 %v14586_v7, %v4976_v5  ;;  %v11475_v30 = vpop.f32.mrb[182].mxu1  ;;  %v3598_v25 = vrot.slane %v3344_v27, 1 }
 0x460   : > { %v5014_v47 = vadd.f32 %v14586_v7, %v4975_v58  ;;  %v3602_v63 = vrot.slane %v11475_v30, 1  ;;  %v3347_v62 = vpop.f32.mrb[183].mxu1 }
 0x461   : > { %v5047_v21 = vmax.f32 %v5015_v6, 0.0  ;;  %v3599_v1 = vrot.slane %v3347_v62, 1  ;;  %v14749_v6 = vld [vmem:[%s15953_s6] ss:$0 sm:$0xff] }
 0x462   : > { %v5046_v38 = vmax.f32 %v5014_v47, 0.0  ;;  %v3603_v46 = vsel %vm3519_vm9, %v3601_v33, %v3602_v63  ;;  %v16119_v47 = vld [vmem:[#allocation21_spill] sm:$0xff] }
 0x463   : > { %v3675_v4 = vadd.f32 %v3603_v46, %v16110_v24  ;;  %v3600_v18 = vsel %vm3519_vm9, %v3598_v25, %v3599_v1 }
 0x464   : > { %v10357_v40 = vpack.c.bf16 %v5047_v21, %v5046_v38  ;;  %v3674_v29 = vadd.f32 %v3600_v18, %v16111_v23 }
 0x465   : > { %v4978_v12 = vadd.f32 %v16112_v10, %v3675_v4  ;;  %v11478_v8 = vpop.f32.mrb[184].mxu1 }
 0x466   : > { %10385 = vst [vmem:[%s14602_s12 + $0x60] sm:$0xff] %v10357_v40   ;;  %v4977_v26 = vadd.f32 %v16113_v37, %v3674_v29  ;;  %v3360_v20 = vpop.f32.mrb[185].mxu1  ;;  %v3607_v48 = vrot.slane %v11478_v8, 1 }
 0x467   : > { %v5017_v50 = vadd.f32 %v14586_v7, %v4978_v12  ;;  %v11479_v54 = vpop.f32.mrb[186].mxu1  ;;  %v3604_v2 = vrot.slane %v3360_v20, 1 }
 0x468   : > { %v5016_v56 = vadd.f32 %v14586_v7, %v4977_v26  ;;  %v3608_v41 = vrot.slane %v11479_v54, 1  ;;  %v3363_v55 = vpop.f32.mrb[187].mxu1  ;;  %v14762_v26 = vld [vmem:[%s15954_s7] sm:$0xff]  }
 0x469   : > { %v5049_v35 = vmax.f32 %v5017_v50, 0.0  ;;  %v3605_v61 = vrot.slane %v3363_v55, 1  ;;  %11778 = vmatprep.subr.bf16.mxu1 %v14762_v26 }
 0x46a   : > { %v5048_v13 = vmax.f32 %v5016_v56, 0.0  ;;  %v3609_v32 = vsel %vm3519_vm9, %v3607_v48, %v3608_v41 }
 0x46b   : > { %v3677_v51 = vadd.f32 %v3609_v32, %v16114_v52  ;;  %v3606_v31 = vsel %vm3519_vm9, %v3604_v2, %v3605_v61  ;;  %v16131_v32 = vmov 0  }
 0x46c   : > { %v10362_v53 = vpack.c.bf16 %v5049_v35, %v5048_v13  ;;  %v3676_v19 = vadd.f32 %v3606_v31, %v16115_v9  ;;  %v15074_v9 = vld [vmem:[%s15954_s7 + $0x8] sm:$0xff]  }
 0x46d   : > { %v4980_v57 = vadd.f32 %v16116_v3, %v3677_v51  ;;  %v11482_v43 = vpop.f32.mrb[188].mxu1 }
 0x46e   : > { %10386 = vst [vmem:[%s14602_s12 + $0x68] sm:$0xff] %v10362_v53   ;;  %v4979_v60 = vadd.f32 %v16117_v17, %v3676_v19  ;;  %v3376_v34 = vpop.f32.mrb[189].mxu1  ;;  %v3613_v11 = vrot.slane %v11482_v43, 1 }
 0x46f   : > { %v5019_v36 = vadd.f32 %v14586_v7, %v4980_v57  ;;  %v11483_v0 = vpop.f32.mrb[190].mxu1  ;;  %v3610_v28 = vrot.slane %v3376_v34, 1 }
 0x470   : > { %v5018_v59 = vadd.f32 %v14586_v7, %v4979_v60  ;;  %v3614_v16 = vrot.slane %v11483_v0, 1  ;;  %v3379_v42 = vpop.f32.mrb[191].mxu1 }
 0x471   : > { %v5051_v15 = vmax.f32 %v5019_v36, 0.0  ;;  %v3611_v22 = vrot.slane %v3379_v42, 1 }
 0x472   : > { %v5050_v44 = vmax.f32 %v5018_v59, 0.0  ;;  %v3615_v5 = vsel %vm3519_vm9, %v3613_v11, %v3614_v16 }
 0x473   : > { %v3679_v58 = vadd.f32 %v3615_v5, %v16118_v14  ;;  %v3612_v27 = vsel %vm3519_vm9, %v3610_v28, %v3611_v22  ;;  %v14790_v14 = vld [vmem:[%s15954_s7 + $0x28] sm:$0xff]  }
 0x474   : > { %v10367_v30 = vpack.c.bf16 %v5051_v15, %v5050_v44  ;;  %v3678_v33 = vadd.f32 %v3612_v27, %v16119_v47 }
 0x475   : > { %v4982_v63 = vadd.f32 %v14572_v45, %v3679_v58  ;;  %v5255_v62 = vpop.f32.mrb[192].mxu1 }
 0x476   : > { %10387 = vst [vmem:[%s14602_s12 + $0x70] sm:$0xff] %v10367_v30   ;;  %v4981_v21 = vadd.f32 %v14575_v39, %v3678_v33  ;;  %v5256_v25 = vadd.f32 %v14749_v6, %v5255_v62  ;;  %v5257_v1 = vpop.f32.mrb[193].mxu1 }
 0x477   : > { %v5021_v38 = vadd.f32 %v14586_v7, %v4982_v63  ;;  %v5258_v46 = vpop.f32.mrb[194].mxu1 }
 0x478   : > { %v5020_v24 = vadd.f32 %v14586_v7, %v4981_v21  ;;  %v5382_v4 = vmax.f32 %v5256_v25, 0.0  ;;  %v5259_v18 = vadd.f32 %v14749_v6, %v5258_v46  ;;  %v5260_v40 = vpop.f32.mrb[195].mxu1 }
 0x479   : > { %v5053_v23 = vmax.f32 %v5021_v38, 0.0 }
 0x47a   : > { %v5052_v29 = vmax.f32 %v5020_v24, 0.0  ;;  %v10262_v45 = vpack.c.bf16 %v5382_v4, %v5382_v4  ;;  %v5383_v10 = vmax.f32 %v5259_v18, 0.0 }
 0x47c   : > { %v10372_v12 = vpack.c.bf16 %v5053_v23, %v5052_v29  ;;  %v5511_v8 = vshrl.u32 %v10262_v45, 16  ;;  %v10263_v39 = vpack.c.bf16 %v5383_v10, %v5383_v10  ;;  %v5514_v7 = vshll.u32 %v10262_v45, 16 }
 0x47d   : > { %v5263_v37 = vpop.f32.mrb[196].mxu1 }
 0x47e   : > { %10388 = vst [vmem:[%s14602_s12 + $0x78] sm:$0xff] %v10372_v12   ;;  %v5513_v20 = vrot.slane %v5511_v8, 7  ;;  %v5518_v50 = vshrl.u32 %v10263_v39, 16  ;;  %v5264_v54 = vadd.f32 %v14749_v6, %v5263_v37  ;;  %v5265_v56 = vpop.f32.mrb[197].mxu1  ;;  %v5521_v48 = vshll.u32 %v10263_v39, 16 }
 0x47f   : > { %v5266_v41 = vpop.f32.mrb[198].mxu1 }
 0x480   : > { %v5516_v55 = vor.u32 %v5514_v7, %v5513_v20  ;;  %v5520_v35 = vrot.slane %v5518_v50, 7  ;;  %v5384_v2 = vmax.f32 %v5264_v54, 0.0  ;;  %v5267_v61 = vadd.f32 %v14749_v6, %v5266_v41  ;;  %v5268_v13 = vpop.f32.mrb[199].mxu1 }
 0x482   : > { %v5766_v52 = vsel %vm13225_vm5, 0, %v5516_v55  ;;  %v5523_v51 = vor.u32 %v5521_v48, %v5520_v35  ;;  %v10264_v31 = vpack.c.bf16 %v5384_v2, %v5384_v2  ;;  %v5385_v53 = vmax.f32 %v5267_v61, 0.0 }
 0x483   : > { %v14772_v19 = vsel %vm13229_vm6, %v5766_v52, 0 }
 0x484   : > { %v5767_v3 = vsel %vm13225_vm5, 0, %v5523_v51  ;;  %v5525_v57 = vshrl.u32 %v10264_v31, 16  ;;  %v10265_v43 = vpack.c.bf16 %v5385_v53, %v5385_v53  ;;  %11714 = vmatprep.mubr.msk.bf16.mxu0 %vm5841_vm10, %v14772_v19  ;;  %v5528_v36 = vshll.u32 %v10264_v31, 16 }
 0x485   : > { %v14780_v17 = vsel %vm13229_vm6, %v5767_v3, 0  ;;  %v5271_v60 = vpop.f32.mrb[200].mxu1 }
 0x486   : > { %v5527_v34 = vrot.slane %v5525_v57, 7  ;;  %v5532_v0 = vshrl.u32 %v10265_v43, 16  ;;  %v5272_v59 = vadd.f32 %v14749_v6, %v5271_v60  ;;  %v5273_v11 = vpop.f32.mrb[201].mxu1  ;;  %11715 = vmatmul.mubr.msk.bf16.vlgmr.msra.gmra.mrb[192].mxu0 %vm5841_vm10, %v14780_v17  ;;  %v5535_v16 = vshll.u32 %v10265_v43, 16 }
 0x487   : > { %v5274_v42 = vpop.f32.mrb[202].mxu1  ;;  %11845 = vmatpush3.bf16.msra.mxu0 %v14645_v49 }
 0x488   : > { %v5530_v15 = vor.u32 %v5528_v36, %v5527_v34  ;;  %v5534_v28 = vrot.slane %v5532_v0, 7  ;;  %v5386_v22 = vmax.f32 %v5272_v59, 0.0  ;;  %v5275_v44 = vadd.f32 %v14749_v6, %v5274_v42  ;;  %v5276_v5 = vpop.f32.mrb[203].mxu1  ;;  %12108 = vmatprep.subr.bf16.mxu0 %v14790_v14 }
 0x48a   : > { %v5768_v58 = vsel %vm13225_vm5, 0, %v5530_v15  ;;  %v5537_v27 = vor.u32 %v5535_v16, %v5534_v28  ;;  %v10266_v30 = vpack.c.bf16 %v5386_v22, %v5386_v22  ;;  %v5387_v47 = vmax.f32 %v5275_v44, 0.0 }
 0x48b   : > { %v14797_v49 = vsel %vm13229_vm6, %v5768_v58, 0 }
 0x48c   : > { %v5769_v33 = vsel %vm13225_vm5, 0, %v5537_v27  ;;  %v5539_v63 = vshrl.u32 %v10266_v30, 16  ;;  %v10267_v62 = vpack.c.bf16 %v5387_v47, %v5387_v47  ;;  %11718 = vmatprep.mubr.msk.bf16.mxu0 %vm5841_vm10, %v14797_v49  ;;  %v5542_v38 = vshll.u32 %v10266_v30, 16 }
 0x48d   : > { %v14805_v21 = vsel %vm13229_vm6, %v5769_v33, 0  ;;  %v5279_v25 = vpop.f32.mrb[204].mxu1 }
 0x48e   : > { %v5541_v1 = vrot.slane %v5539_v63, 7  ;;  %v5546_v46 = vshrl.u32 %v10267_v62, 16  ;;  %v5280_v24 = vadd.f32 %v14749_v6, %v5279_v25  ;;  %v5281_v4 = vpop.f32.mrb[205].mxu1  ;;  %11719 = vmatmul.mubr.msk.bf16.gmra.mrb[196].mxu0 %vm5841_vm10, %v14805_v21  ;;  %v5549_v18 = vshll.u32 %v10267_v62, 16 }
 0x48f   : > { %v5282_v40 = vpop.f32.mrb[206].mxu1 }
 0x490   : > { %v5544_v23 = vor.u32 %v5542_v38, %v5541_v1  ;;  %v5548_v29 = vrot.slane %v5546_v46, 7  ;;  %v5388_v45 = vmax.f32 %v5280_v24, 0.0  ;;  %v5283_v10 = vadd.f32 %v14749_v6, %v5282_v40  ;;  %v5284_v12 = vpop.f32.mrb[207].mxu1 }
 0x492   : > { %v5770_v8 = vsel %vm13225_vm5, 0, %v5544_v23  ;;  %v5551_v39 = vor.u32 %v5549_v18, %v5548_v29  ;;  %v10268_v37 = vpack.c.bf16 %v5388_v45, %v5388_v45  ;;  %v5389_v20 = vmax.f32 %v5283_v10, 0.0 }
 0x493   : > { %v14815_v7 = vsel %vm13229_vm6, %v5770_v8, 0 }
 0x494   : > { %v5771_v50 = vsel %vm13225_vm5, 0, %v5551_v39  ;;  %v5553_v54 = vshrl.u32 %v10268_v37, 16  ;;  %v10269_v56 = vpack.c.bf16 %v5389_v20, %v5389_v20  ;;  %11722 = vmatprep.mubr.msk.bf16.mxu0 %vm5841_vm10, %v14815_v7  ;;  %v5556_v35 = vshll.u32 %v10268_v37, 16 }
 0x495   : > { %v14823_v48 = vsel %vm13229_vm6, %v5771_v50, 0  ;;  %v5287_v41 = vpop.f32.mrb[208].mxu1 }
 0x496   : > { %v5555_v55 = vrot.slane %v5553_v54, 7  ;;  %v5560_v2 = vshrl.u32 %v10269_v56, 16  ;;  %v5288_v61 = vadd.f32 %v14749_v6, %v5287_v41  ;;  %v5289_v13 = vpop.f32.mrb[209].mxu1  ;;  %11723 = vmatmul.mubr.msk.bf16.gmra.mrb[200].mxu0 %vm5841_vm10, %v14823_v48  ;;  %v5563_v52 = vshll.u32 %v10269_v56, 16 }
 0x497   : > { %v5290_v51 = vpop.f32.mrb[210].mxu1 }
 0x498   : > { %v5558_v31 = vor.u32 %v5556_v35, %v5555_v55  ;;  %v5562_v53 = vrot.slane %v5560_v2, 7  ;;  %v5390_v3 = vmax.f32 %v5288_v61, 0.0  ;;  %v5291_v57 = vadd.f32 %v14749_v6, %v5290_v51  ;;  %v5292_v43 = vpop.f32.mrb[211].mxu1 }
 0x49a   : > { %v5772_v60 = vsel %vm13225_vm5, 0, %v5558_v31  ;;  %v5565_v34 = vor.u32 %v5563_v52, %v5562_v53  ;;  %v10270_v36 = vpack.c.bf16 %v5390_v3, %v5390_v3  ;;  %v5391_v0 = vmax.f32 %v5291_v57, 0.0 }
 0x49b   : > { %v14833_v59 = vsel %vm13229_vm6, %v5772_v60, 0 }
 0x49c   : > { %v5773_v11 = vsel %vm13225_vm5, 0, %v5565_v34  ;;  %v5567_v16 = vshrl.u32 %v10270_v36, 16  ;;  %v10271_v42 = vpack.c.bf16 %v5391_v0, %v5391_v0  ;;  %11726 = vmatprep.mubr.msk.bf16.mxu0 %vm5841_vm10, %v14833_v59  ;;  %v5570_v44 = vshll.u32 %v10270_v36, 16 }
 0x49d   : > { %v5295_v15 = vpop.f32.mrb[212].mxu1  ;;  %v14841_v28 = vsel %vm13229_vm6, %v5773_v11, 0 }
 0x49e   : > { %16122 = vst [vmem:[#allocation25_spill] sm:$0xff] %v14841_v28  ;;  %v5569_v22 = vrot.slane %v5567_v16, 7  ;;  %v5574_v5 = vshrl.u32 %v10271_v42, 16  ;;  %v5296_v58 = vadd.f32 %v14749_v6, %v5295_v15  ;;  %v5297_v27 = vpop.f32.mrb[213].mxu1  ;;  %11727 = vmatmul.mubr.msk.bf16.gmra.mrb[204].mxu0 %vm5841_vm10, %v14841_v28  ;;  %v5577_v30 = vshll.u32 %v10271_v42, 16 }
 0x49f   : > { %v5298_v47 = vpop.f32.mrb[214].mxu1 }
 0x4a0   : > { %v5572_v33 = vor.u32 %v5570_v44, %v5569_v22  ;;  %v5576_v63 = vrot.slane %v5574_v5, 7  ;;  %v5392_v62 = vmax.f32 %v5296_v58, 0.0  ;;  %v5299_v25 = vadd.f32 %v14749_v6, %v5298_v47  ;;  %v5300_v1 = vpop.f32.mrb[215].mxu1 }
 0x4a2   : > { %v5774_v38 = vsel %vm13225_vm5, 0, %v5572_v33  ;;  %v5579_v46 = vor.u32 %v5577_v30, %v5576_v63  ;;  %v10272_v24 = vpack.c.bf16 %v5392_v62, %v5392_v62  ;;  %v5393_v4 = vmax.f32 %v5299_v25, 0.0 }
 0x4a3   : > { %v14851_v18 = vsel %vm13229_vm6, %v5774_v38, 0 }
 0x4a4   : > { %v5775_v40 = vsel %vm13225_vm5, 0, %v5579_v46  ;;  %v5581_v23 = vshrl.u32 %v10272_v24, 16  ;;  %v10273_v29 = vpack.c.bf16 %v5393_v4, %v5393_v4  ;;  %11730 = vmatprep.mubr.msk.bf16.mxu0 %vm5841_vm10, %v14851_v18  ;;  %v5584_v8 = vshll.u32 %v10272_v24, 16 }
 0x4a5   : > { %v14859_v45 = vsel %vm13229_vm6, %v5775_v40, 0  ;;  %v5303_v10 = vpop.f32.mrb[216].mxu1 }
 0x4a6   : > { %v5583_v12 = vrot.slane %v5581_v23, 7  ;;  %v5588_v39 = vshrl.u32 %v10273_v29, 16  ;;  %v5304_v37 = vadd.f32 %v14749_v6, %v5303_v10  ;;  %v5305_v20 = vpop.f32.mrb[217].mxu1  ;;  %11731 = vmatmul.mubr.msk.bf16.gmra.mrb[208].mxu0 %vm5841_vm10, %v14859_v45  ;;  %v5591_v50 = vshll.u32 %v10273_v29, 16 }
 0x4a7   : > { %v5306_v54 = vpop.f32.mrb[218].mxu1 }
 0x4a8   : > { %v5586_v56 = vor.u32 %v5584_v8, %v5583_v12  ;;  %v5590_v41 = vrot.slane %v5588_v39, 7  ;;  %v5394_v55 = vmax.f32 %v5304_v37, 0.0  ;;  %v5307_v35 = vadd.f32 %v14749_v6, %v5306_v54  ;;  %v5308_v2 = vpop.f32.mrb[219].mxu1 }
 0x4aa   : > { %v5776_v61 = vsel %vm13225_vm5, 0, %v5586_v56  ;;  %v5593_v13 = vor.u32 %v5591_v50, %v5590_v41  ;;  %v10274_v52 = vpack.c.bf16 %v5394_v55, %v5394_v55  ;;  %v5395_v51 = vmax.f32 %v5307_v35, 0.0 }
 0x4ab   : > { %v14869_v31 = vsel %vm13229_vm6, %v5776_v61, 0 }
 0x4ac   : > { %v5777_v53 = vsel %vm13225_vm5, 0, %v5593_v13  ;;  %v5595_v3 = vshrl.u32 %v10274_v52, 16  ;;  %v10275_v57 = vpack.c.bf16 %v5395_v51, %v5395_v51  ;;  %11734 = vmatprep.mubr.msk.bf16.mxu0 %vm5841_vm10, %v14869_v31  ;;  %v5598_v36 = vshll.u32 %v10274_v52, 16 }
 0x4ad   : > { %v14877_v43 = vsel %vm13229_vm6, %v5777_v53, 0  ;;  %v5311_v60 = vpop.f32.mrb[220].mxu1 }
 0x4ae   : > { %v5597_v34 = vrot.slane %v5595_v3, 7  ;;  %v5602_v0 = vshrl.u32 %v10275_v57, 16  ;;  %v5312_v11 = vadd.f32 %v14749_v6, %v5311_v60  ;;  %v5313_v16 = vpop.f32.mrb[221].mxu1  ;;  %11735 = vmatmul.mubr.msk.bf16.gmra.mrb[212].mxu0 %vm5841_vm10, %v14877_v43  ;;  %v5605_v42 = vshll.u32 %v10275_v57, 16 }
 0x4af   : > { %v5314_v15 = vpop.f32.mrb[222].mxu1 }
 0x4b0   : > { %v5600_v22 = vor.u32 %v5598_v36, %v5597_v34  ;;  %v5604_v44 = vrot.slane %v5602_v0, 7  ;;  %v5396_v5 = vmax.f32 %v5312_v11, 0.0  ;;  %v5315_v58 = vadd.f32 %v14749_v6, %v5314_v15  ;;  %v5316_v27 = vpop.f32.mrb[223].mxu1 }
 0x4b2   : > { %v5778_v30 = vsel %vm13225_vm5, 0, %v5600_v22  ;;  %v5607_v47 = vor.u32 %v5605_v42, %v5604_v44  ;;  %v10276_v33 = vpack.c.bf16 %v5396_v5, %v5396_v5  ;;  %v5397_v63 = vmax.f32 %v5315_v58, 0.0 }
 0x4b3   : > { %v14887_v62 = vsel %vm13229_vm6, %v5778_v30, 0 }
 0x4b4   : > { %v5779_v25 = vsel %vm13225_vm5, 0, %v5607_v47  ;;  %v5609_v1 = vshrl.u32 %v10276_v33, 16  ;;  %v10277_v38 = vpack.c.bf16 %v5397_v63, %v5397_v63  ;;  %11738 = vmatprep.mubr.msk.bf16.mxu0 %vm5841_vm10, %v14887_v62  ;;  %v5612_v40 = vshll.u32 %v10276_v33, 16 }
 0x4b5   : > { %v14895_v46 = vsel %vm13229_vm6, %v5779_v25, 0  ;;  %v5319_v24 = vpop.f32.mrb[224].mxu1 }
 0x4b6   : > { %v5611_v4 = vrot.slane %v5609_v1, 7  ;;  %v5616_v23 = vshrl.u32 %v10277_v38, 16  ;;  %v5320_v29 = vadd.f32 %v14749_v6, %v5319_v24  ;;  %v5321_v10 = vpop.f32.mrb[225].mxu1  ;;  %11739 = vmatmul.mubr.msk.bf16.gmra.mrb[216].mxu0 %vm5841_vm10, %v14895_v46  ;;  %v5619_v12 = vshll.u32 %v10277_v38, 16 }
 0x4b7   : > { %v5322_v8 = vpop.f32.mrb[226].mxu1 }
 0x4b8   : > { %v5614_v39 = vor.u32 %v5612_v40, %v5611_v4  ;;  %v5618_v37 = vrot.slane %v5616_v23, 7  ;;  %v5398_v20 = vmax.f32 %v5320_v29, 0.0  ;;  %v5323_v50 = vadd.f32 %v14749_v6, %v5322_v8  ;;  %v5324_v54 = vpop.f32.mrb[227].mxu1 }
 0x4ba   : > { %v5780_v56 = vsel %vm13225_vm5, 0, %v5614_v39  ;;  %v5621_v41 = vor.u32 %v5619_v12, %v5618_v37  ;;  %v10278_v55 = vpack.c.bf16 %v5398_v20, %v5398_v20  ;;  %v5399_v35 = vmax.f32 %v5323_v50, 0.0 }
 0x4bb   : > { %v14905_v2 = vsel %vm13229_vm6, %v5780_v56, 0 }
 0x4bc   : > { %16123 = vst [vmem:[#allocation5_spill] sm:$0xff] %v14905_v2  ;;  %v5781_v61 = vsel %vm13225_vm5, 0, %v5621_v41  ;;  %v5623_v13 = vshrl.u32 %v10278_v55, 16  ;;  %v10279_v52 = vpack.c.bf16 %v5399_v35, %v5399_v35  ;;  %11742 = vmatprep.mubr.msk.bf16.mxu0 %vm5841_vm10, %v14905_v2  ;;  %v5626_v57 = vshll.u32 %v10278_v55, 16 }
 0x4bd   : > { %v5327_v51 = vpop.f32.mrb[228].mxu1  ;;  %v14913_v53 = vsel %vm13229_vm6, %v5781_v61, 0 }
 0x4be   : > { %16124 = vst [vmem:[#allocation26_spill] sm:$0xff] %v14913_v53  ;;  %v5625_v3 = vrot.slane %v5623_v13, 7  ;;  %v5630_v60 = vshrl.u32 %v10279_v52, 16  ;;  %v5328_v34 = vadd.f32 %v14749_v6, %v5327_v51  ;;  %v5329_v36 = vpop.f32.mrb[229].mxu1  ;;  %11743 = vmatmul.mubr.msk.bf16.gmra.mrb[220].mxu0 %vm5841_vm10, %v14913_v53  ;;  %v5633_v0 = vshll.u32 %v10279_v52, 16 }
 0x4bf   : > { %v5330_v11 = vpop.f32.mrb[230].mxu1 }
 0x4c0   : > { %v5628_v16 = vor.u32 %v5626_v57, %v5625_v3  ;;  %v5632_v42 = vrot.slane %v5630_v60, 7  ;;  %v5400_v15 = vmax.f32 %v5328_v34, 0.0  ;;  %v5331_v22 = vadd.f32 %v14749_v6, %v5330_v11  ;;  %v5332_v44 = vpop.f32.mrb[231].mxu1 }
 0x4c2   : > { %v5782_v5 = vsel %vm13225_vm5, 0, %v5628_v16  ;;  %v5635_v58 = vor.u32 %v5633_v0, %v5632_v42  ;;  %v10280_v27 = vpack.c.bf16 %v5400_v15, %v5400_v15  ;;  %v5401_v30 = vmax.f32 %v5331_v22, 0.0 }
 0x4c3   : > { %v14923_v47 = vsel %vm13229_vm6, %v5782_v5, 0 }
 0x4c4   : > { %16125 = vst [vmem:[#allocation27_spill] sm:$0xff] %v14923_v47  ;;  %v5783_v33 = vsel %vm13225_vm5, 0, %v5635_v58  ;;  %v5637_v63 = vshrl.u32 %v10280_v27, 16  ;;  %v10281_v25 = vpack.c.bf16 %v5401_v30, %v5401_v30  ;;  %11746 = vmatprep.mubr.msk.bf16.mxu0 %vm5841_vm10, %v14923_v47  ;;  %v5640_v4 = vshll.u32 %v10280_v27, 16 }
 0x4c5   : > { %v14931_v1 = vsel %vm13229_vm6, %v5783_v33, 0  ;;  %v5335_v38 = vpop.f32.mrb[232].mxu1 }
 0x4c6   : > { %16126 = vst [vmem:[#allocation28_spill] sm:$0xff] %v14931_v1  ;;  %v5639_v24 = vrot.slane %v5637_v63, 7  ;;  %v5644_v40 = vshrl.u32 %v10281_v25, 16  ;;  %v5336_v23 = vadd.f32 %v14749_v6, %v5335_v38  ;;  %v5337_v29 = vpop.f32.mrb[233].mxu1  ;;  %11747 = vmatmul.mubr.msk.bf16.gmra.mrb[224].mxu0 %vm5841_vm10, %v14931_v1  ;;  %v5647_v10 = vshll.u32 %v10281_v25, 16 }
 0x4c7   : > { %v5338_v12 = vpop.f32.mrb[234].mxu1 }
 0x4c8   : > { %v5642_v8 = vor.u32 %v5640_v4, %v5639_v24  ;;  %v5646_v39 = vrot.slane %v5644_v40, 7  ;;  %v5402_v37 = vmax.f32 %v5336_v23, 0.0  ;;  %v5339_v20 = vadd.f32 %v14749_v6, %v5338_v12  ;;  %v5340_v50 = vpop.f32.mrb[235].mxu1 }
 0x4ca   : > { %v5784_v54 = vsel %vm13225_vm5, 0, %v5642_v8  ;;  %v5649_v56 = vor.u32 %v5647_v10, %v5646_v39  ;;  %v10282_v41 = vpack.c.bf16 %v5402_v37, %v5402_v37  ;;  %v5403_v55 = vmax.f32 %v5339_v20, 0.0 }
 0x4cb   : > { %v14941_v35 = vsel %vm13229_vm6, %v5784_v54, 0 }
 0x4cc   : > { %16127 = vst [vmem:[#allocation29_spill] sm:$0xff] %v14941_v35  ;;  %v5785_v61 = vsel %vm13225_vm5, 0, %v5649_v56  ;;  %v5651_v13 = vshrl.u32 %v10282_v41, 16  ;;  %v10283_v52 = vpack.c.bf16 %v5403_v55, %v5403_v55  ;;  %11750 = vmatprep.mubr.msk.bf16.mxu0 %vm5841_vm10, %v14941_v35  ;;  %v5654_v60 = vshll.u32 %v10282_v41, 16 }
 0x4cd   : > { %v14949_v51 = vsel %vm13229_vm6, %v5785_v61, 0  ;;  %v5343_v3 = vpop.f32.mrb[236].mxu1 }
 0x4ce   : > { %16128 = vst [vmem:[#allocation30_spill] sm:$0xff] %v14949_v51  ;;  %v5653_v57 = vrot.slane %v5651_v13, 7  ;;  %v5658_v34 = vshrl.u32 %v10283_v52, 16  ;;  %v5344_v36 = vadd.f32 %v14749_v6, %v5343_v3  ;;  %v5345_v0 = vpop.f32.mrb[237].mxu1  ;;  %11751 = vmatmul.mubr.msk.bf16.gmra.mrb[228].mxu0 %vm5841_vm10, %v14949_v51  ;;  %v5661_v11 = vshll.u32 %v10283_v52, 16 }
 0x4cf   : > { %v5346_v16 = vpop.f32.mrb[238].mxu1 }
 0x4d0   : > { %v5656_v42 = vor.u32 %v5654_v60, %v5653_v57  ;;  %v5660_v15 = vrot.slane %v5658_v34, 7  ;;  %v5404_v22 = vmax.f32 %v5344_v36, 0.0  ;;  %v5347_v44 = vadd.f32 %v14749_v6, %v5346_v16  ;;  %v5348_v5 = vpop.f32.mrb[239].mxu1 }
 0x4d2   : > { %v5786_v58 = vsel %vm13225_vm5, 0, %v5656_v42  ;;  %v5663_v27 = vor.u32 %v5661_v11, %v5660_v15  ;;  %v10284_v30 = vpack.c.bf16 %v5404_v22, %v5404_v22  ;;  %v5405_v33 = vmax.f32 %v5347_v44, 0.0 }
 0x4d3   : > { %v14959_v63 = vsel %vm13229_vm6, %v5786_v58, 0 }
 0x4d4   : > { %16129 = vst [vmem:[#allocation31_spill] sm:$0xff] %v14959_v63  ;;  %v5787_v25 = vsel %vm13225_vm5, 0, %v5663_v27  ;;  %v5665_v38 = vshrl.u32 %v10284_v30, 16  ;;  %v10285_v24 = vpack.c.bf16 %v5405_v33, %v5405_v33  ;;  %11754 = vmatprep.mubr.msk.bf16.mxu0 %vm5841_vm10, %v14959_v63  ;;  %v5668_v29 = vshll.u32 %v10284_v30, 16 }
 0x4d5   : > { %v14967_v4 = vsel %vm13229_vm6, %v5787_v25, 0  ;;  %v5351_v40 = vpop.f32.mrb[240].mxu1 }
 0x4d6   : > { %16130 = vst [vmem:[#allocation32_spill] sm:$0xff] %v14967_v4  ;;  %v5667_v23 = vrot.slane %v5665_v38, 7  ;;  %v5672_v10 = vshrl.u32 %v10285_v24, 16  ;;  %v5352_v12 = vadd.f32 %v14749_v6, %v5351_v40  ;;  %v5353_v8 = vpop.f32.mrb[241].mxu1  ;;  %11755 = vmatmul.mubr.msk.bf16.gmra.mrb[232].mxu0 %vm5841_vm10, %v14967_v4  ;;  %v5675_v39 = vshll.u32 %v10285_v24, 16 }
 0x4d7   : > { %v5354_v37 = vpop.f32.mrb[242].mxu1 }
 0x4d8   : > { %v5670_v20 = vor.u32 %v5668_v29, %v5667_v23  ;;  %v5674_v50 = vrot.slane %v5672_v10, 7  ;;  %v5406_v54 = vmax.f32 %v5352_v12, 0.0  ;;  %v5355_v56 = vadd.f32 %v14749_v6, %v5354_v37  ;;  %v5356_v41 = vpop.f32.mrb[243].mxu1 }
 0x4da   : > { %v5788_v55 = vsel %vm13225_vm5, 0, %v5670_v20  ;;  %v5677_v61 = vor.u32 %v5675_v39, %v5674_v50  ;;  %v10286_v13 = vpack.c.bf16 %v5406_v54, %v5406_v54  ;;  %v5407_v52 = vmax.f32 %v5355_v56, 0.0 }
 0x4db   : > { %v14977_v3 = vsel %vm13229_vm6, %v5788_v55, 0 }
 0x4dc   : > { %v5789_v57 = vsel %vm13225_vm5, 0, %v5677_v61  ;;  %v5679_v60 = vshrl.u32 %v10286_v13, 16  ;;  %v10287_v34 = vpack.c.bf16 %v5407_v52, %v5407_v52  ;;  %11758 = vmatprep.mubr.msk.bf16.mxu0 %vm5841_vm10, %v14977_v3  ;;  %v5682_v16 = vshll.u32 %v10286_v13, 16 }
 0x4dd   : > { %v5359_v36 = vpop.f32.mrb[244].mxu1  ;;  %v14985_v0 = vsel %vm13229_vm6, %v5789_v57, 0 }
 0x4de   : > { %v5681_v11 = vrot.slane %v5679_v60, 7  ;;  %v5686_v42 = vshrl.u32 %v10287_v34, 16  ;;  %v5360_v15 = vadd.f32 %v14749_v6, %v5359_v36  ;;  %v5361_v22 = vpop.f32.mrb[245].mxu1  ;;  %11759 = vmatmul.mubr.msk.bf16.gmra.mrb[236].mxu0 %vm5841_vm10, %v14985_v0  ;;  %v5689_v44 = vshll.u32 %v10287_v34, 16 }
 0x4df   : > { %v5362_v5 = vpop.f32.mrb[246].mxu1 }
 0x4e0   : > { %v5684_v58 = vor.u32 %v5682_v16, %v5681_v11  ;;  %v5688_v27 = vrot.slane %v5686_v42, 7  ;;  %v5408_v30 = vmax.f32 %v5360_v15, 0.0  ;;  %v5363_v33 = vadd.f32 %v14749_v6, %v5362_v5  ;;  %v5364_v25 = vpop.f32.mrb[247].mxu1 }
 0x4e2   : > { %v5790_v38 = vsel %vm13225_vm5, 0, %v5684_v58  ;;  %v5691_v24 = vor.u32 %v5689_v44, %v5688_v27  ;;  %v10288_v40 = vpack.c.bf16 %v5408_v30, %v5408_v30  ;;  %v5409_v23 = vmax.f32 %v5363_v33, 0.0 }
 0x4e3   : > { %v14995_v29 = vsel %vm13229_vm6, %v5790_v38, 0 }
 0x4e4   : > { %v5791_v10 = vsel %vm13225_vm5, 0, %v5691_v24  ;;  %v5693_v12 = vshrl.u32 %v10288_v40, 16  ;;  %v10289_v8 = vpack.c.bf16 %v5409_v23, %v5409_v23  ;;  %11762 = vmatprep.mubr.msk.bf16.mxu0 %vm5841_vm10, %v14995_v29  ;;  %v5696_v50 = vshll.u32 %v10288_v40, 16 }
 0x4e5   : > { %v15003_v39 = vsel %vm13229_vm6, %v5791_v10, 0  ;;  %v5367_v37 = vpop.f32.mrb[248].mxu1 }
 0x4e6   : > { %v5695_v20 = vrot.slane %v5693_v12, 7  ;;  %v5700_v54 = vshrl.u32 %v10289_v8, 16  ;;  %v5368_v56 = vadd.f32 %v14749_v6, %v5367_v37  ;;  %v5369_v41 = vpop.f32.mrb[249].mxu1  ;;  %11763 = vmatmul.mubr.msk.bf16.gmra.mrb[240].mxu0 %vm5841_vm10, %v15003_v39  ;;  %v5703_v55 = vshll.u32 %v10289_v8, 16 }
 0x4e7   : > { %v5370_v61 = vpop.f32.mrb[250].mxu1 }
 0x4e8   : > { %v5698_v13 = vor.u32 %v5696_v50, %v5695_v20  ;;  %v5702_v52 = vrot.slane %v5700_v54, 7  ;;  %v5410_v57 = vmax.f32 %v5368_v56, 0.0  ;;  %v5371_v60 = vadd.f32 %v14749_v6, %v5370_v61  ;;  %v5372_v34 = vpop.f32.mrb[251].mxu1 }
 0x4ea   : > { %v5792_v36 = vsel %vm13225_vm5, 0, %v5698_v13  ;;  %v5705_v11 = vor.u32 %v5703_v55, %v5702_v52  ;;  %v10290_v16 = vpack.c.bf16 %v5410_v57, %v5410_v57  ;;  %v5411_v42 = vmax.f32 %v5371_v60, 0.0 }
 0x4eb   : > { %v15013_v15 = vsel %vm13229_vm6, %v5792_v36, 0 }
 0x4ec   : > { %v5793_v22 = vsel %vm13225_vm5, 0, %v5705_v11  ;;  %v5707_v44 = vshrl.u32 %v10290_v16, 16  ;;  %v10291_v5 = vpack.c.bf16 %v5411_v42, %v5411_v42  ;;  %11766 = vmatprep.mubr.msk.bf16.mxu0 %vm5841_vm10, %v15013_v15  ;;  %v5710_v33 = vshll.u32 %v10290_v16, 16 }
 0x4ed   : > { %v15021_v58 = vsel %vm13229_vm6, %v5793_v22, 0  ;;  %v5375_v27 = vpop.f32.mrb[252].mxu1 }
 0x4ee   : > { %v5709_v30 = vrot.slane %v5707_v44, 7  ;;  %v5714_v25 = vshrl.u32 %v10291_v5, 16  ;;  %v5376_v38 = vadd.f32 %v14749_v6, %v5375_v27  ;;  %v5377_v24 = vpop.f32.mrb[253].mxu1  ;;  %11767 = vmatmul.mubr.msk.bf16.gmra.mrb[244].mxu0 %vm5841_vm10, %v15021_v58  ;;  %v5717_v40 = vshll.u32 %v10291_v5, 16  ;;  %v12958_v27 = vld [vmem:[%s15954_s7 + $0x20] sm:$0xff]  }
 0x4ef   : > { %v5378_v23 = vpop.f32.mrb[254].mxu1 }
 0x4f0   : > { %v5712_v10 = vor.u32 %v5710_v33, %v5709_v30  ;;  %v5716_v12 = vrot.slane %v5714_v25, 7  ;;  %v5412_v8 = vmax.f32 %v5376_v38, 0.0  ;;  %v5379_v37 = vadd.f32 %v14749_v6, %v5378_v23  ;;  %v5380_v20 = vpop.f32.mrb[255].mxu1 }
 0x4f2   : > { %v5794_v50 = vsel %vm13225_vm5, 0, %v5712_v10  ;;  %v5719_v54 = vor.u32 %v5717_v40, %v5716_v12  ;;  %v10292_v56 = vpack.c.bf16 %v5412_v8, %v5412_v8  ;;  %v5413_v41 = vmax.f32 %v5379_v37, 0.0 }
 0x4f3   : > { %v15031_v55 = vsel %vm13229_vm6, %v5794_v50, 0 }
 0x4f4   : > { %v5795_v61 = vsel %vm13225_vm5, 0, %v5719_v54  ;;  %v5721_v13 = vshrl.u32 %v10292_v56, 16  ;;  %v10293_v52 = vpack.c.bf16 %v5413_v41, %v5413_v41  ;;  %11770 = vmatprep.mubr.msk.bf16.mxu0 %vm5841_vm10, %v15031_v55  ;;  %v5724_v60 = vshll.u32 %v10292_v56, 16 }
 0x4f5   : > { %v15039_v6 = vsel %vm13229_vm6, %v5795_v61, 0 }
 0x4f6   : > { %v5723_v57 = vrot.slane %v5721_v13, 7  ;;  %v5728_v34 = vshrl.u32 %v10293_v52, 16  ;;  %11771 = vmatmul.mubr.msk.bf16.gmra.mrb[248].mxu0 %vm5841_vm10, %v15039_v6  ;;  %v5731_v16 = vshll.u32 %v10293_v52, 16 }
 0x4f7   : > { %11846 = vmatprep.mubr.msk.bf16.mxu0 %vm5841_vm10, %v14780_v17 }
 0x4f8   : > { %v5726_v36 = vor.u32 %v5724_v60, %v5723_v57  ;;  %v5730_v11 = vrot.slane %v5728_v34, 7 }
 0x4fa   : > { %v5796_v42 = vsel %vm13225_vm5, 0, %v5726_v36  ;;  %v5733_v22 = vor.u32 %v5731_v16, %v5730_v11  ;;  %v15232_v16 = vld [vmem:[%s15954_s7 + $0x38] sm:$0xff]  }
 0x4fb   : > { %v15049_v44 = vsel %vm13229_vm6, %v5796_v42, 0  ;;  %v15247_v42 = vld [vmem:[%s15954_s7 + $0x40] sm:$0xff]  }
 0x4fc   : > { %v5797_v5 = vsel %vm13225_vm5, 0, %v5733_v22  ;;  %11774 = vmatprep.mubr.msk.bf16.mxu1 %vm5841_vm10, %v15049_v44 }
 0x4fd   : > { %v15060_v30 = vsel %vm13229_vm6, %v5797_v5, 0 }
 0x4fe   : > { %11775 = vmatmul.mubr.msk.bf16.vlgmr.msra.gmra.mrb[0].mxu1 %vm5841_vm10, %v15060_v30  ;;  %11847 = vmatmul.mubr.msk.bf16.vlgmr.msra.gmra.mrb[252].mxu0 %vm5841_vm10, %v14797_v49 }
 0x4ff   : > { %11779 = vmatpush3.bf16.msra.mxu1 %v14762_v26  ;;  %11850 = vmatprep.mubr.msk.bf16.mxu0 %vm5841_vm10, %v14805_v21  ;;  %v15088_v26 = vld [vmem:[%s15954_s7 + $0x10] sm:$0xff]  }
 0x500   : > { %11780 = vmatprep.mubr.bf16.mxu1 %v16131_v32  ;;  %11910 = vmatprep.subr.bf16.mxu1 %v12958_v27 }
 0x501   : > { %12109 = vmatpush3.bf16.msra.mxu0 %v14790_v14 }
 0x502   : > { %12174 = vmatprep.subr.bf16.mxu0 %v15088_v26 }
 0x506   : > { %11781 = vmatmul.mubr.msk.bf16.vlgmr.msra.gmra.mrb[4].mxu1 %vm5841_vm10, %v14772_v19  ;;  %11851 = vmatmul.mubr.msk.bf16.gmra.mrb[0].mxu0 %vm5841_vm10, %v14815_v7 }
 0x507   : > { %11911 = vmatpush3.bf16.msra.mxu1 %v12958_v27  ;;  %11784 = vmatprep.mubr.msk.bf16.mxu1 %vm5841_vm10, %v14780_v17 }
 0x508   : > { %11854 = vmatprep.mubr.msk.bf16.mxu0 %vm5841_vm10, %v14823_v48  ;;  %11976 = vmatprep.subr.bf16.mxu1 %v15074_v9 }
 0x50e   : > { %11785 = vmatmul.mubr.msk.bf16.gmra.mrb[8].mxu1 %vm5841_vm10, %v14797_v49  ;;  %11855 = vmatmul.mubr.msk.bf16.gmra.mrb[4].mxu0 %vm5841_vm10, %v14833_v59 }
 0x50f   : > { %11788 = vmatprep.mubr.msk.bf16.mxu1 %vm5841_vm10, %v14805_v21  ;;  %11858 = vmatprep.mubr.msk.bf16.mxu0 %vm5841_vm10, %v14841_v28 }
 0x516   : > { %11789 = vmatmul.mubr.msk.bf16.gmra.mrb[12].mxu1 %vm5841_vm10, %v14815_v7  ;;  %11859 = vmatmul.mubr.bf16.gmra.mrb[8].mxu0 %v16131_v32 }
 0x517   : > { %11792 = vmatprep.mubr.msk.bf16.mxu1 %vm5841_vm10, %v14823_v48  ;;  %11862 = vmatprep.mubr.msk.bf16.mxu0 %vm5841_vm10, %v14859_v45 }
 0x51e   : > { %11793 = vmatmul.mubr.msk.bf16.gmra.mrb[16].mxu1 %vm5841_vm10, %v14833_v59  ;;  %11863 = vmatmul.mubr.msk.bf16.gmra.mrb[12].mxu0 %vm5841_vm10, %v14869_v31 }
 0x51f   : > { %11866 = vmatprep.mubr.msk.bf16.mxu0 %vm5841_vm10, %v14877_v43  ;;  %11796 = vmatprep.mubr.bf16.mxu1 %v16131_v32 }
 0x526   : > { %11797 = vmatmul.mubr.msk.bf16.gmra.mrb[20].mxu1 %vm5841_vm10, %v14851_v18  ;;  %11867 = vmatmul.mubr.msk.bf16.gmra.mrb[16].mxu0 %vm5841_vm10, %v14887_v62 }
 0x527   : > { %11800 = vmatprep.mubr.msk.bf16.mxu1 %vm5841_vm10, %v14859_v45  ;;  %11870 = vmatprep.mubr.msk.bf16.mxu0 %vm5841_vm10, %v14895_v46 }
 0x52e   : > { %11801 = vmatmul.mubr.msk.bf16.gmra.mrb[24].mxu1 %vm5841_vm10, %v14869_v31  ;;  %11871 = vmatmul.mubr.msk.bf16.gmra.mrb[20].mxu0 %vm5841_vm10, %v14905_v2 }
 0x52f   : > { %11804 = vmatprep.mubr.msk.bf16.mxu1 %vm5841_vm10, %v14877_v43  ;;  %11874 = vmatprep.mubr.msk.bf16.mxu0 %vm5841_vm10, %v14913_v53 }
 0x536   : > { %11805 = vmatmul.mubr.msk.bf16.gmra.mrb[28].mxu1 %vm5841_vm10, %v14887_v62  ;;  %11875 = vmatmul.mubr.bf16.gmra.mrb[24].mxu0 %v16131_v32 }
 0x537   : > { %11808 = vmatprep.mubr.msk.bf16.mxu1 %vm5841_vm10, %v14895_v46  ;;  %11878 = vmatprep.mubr.msk.bf16.mxu0 %vm5841_vm10, %v14931_v1 }
 0x53e   : > { %11809 = vmatmul.mubr.msk.bf16.gmra.mrb[32].mxu1 %vm5841_vm10, %v14905_v2  ;;  %11879 = vmatmul.mubr.msk.bf16.gmra.mrb[28].mxu0 %vm5841_vm10, %v14941_v35 }
 0x53f   : > { %11882 = vmatprep.mubr.msk.bf16.mxu0 %vm5841_vm10, %v14949_v51  ;;  %11812 = vmatprep.mubr.bf16.mxu1 %v16131_v32 }
 0x546   : > { %11813 = vmatmul.mubr.msk.bf16.gmra.mrb[36].mxu1 %vm5841_vm10, %v14923_v47  ;;  %11883 = vmatmul.mubr.msk.bf16.gmra.mrb[32].mxu0 %vm5841_vm10, %v14959_v63 }
 0x547   : > { %11816 = vmatprep.mubr.msk.bf16.mxu1 %vm5841_vm10, %v14931_v1  ;;  %11886 = vmatprep.mubr.msk.bf16.mxu0 %vm5841_vm10, %v14967_v4 }
 0x54e   : > { %11817 = vmatmul.mubr.msk.bf16.gmra.mrb[40].mxu1 %vm5841_vm10, %v14941_v35  ;;  %11887 = vmatmul.mubr.msk.bf16.gmra.mrb[36].mxu0 %vm5841_vm10, %v14977_v3 }
 0x54f   : > { %11820 = vmatprep.mubr.msk.bf16.mxu1 %vm5841_vm10, %v14949_v51  ;;  %11890 = vmatprep.mubr.msk.bf16.mxu0 %vm5841_vm10, %v14985_v0 }
 0x556   : > { %11821 = vmatmul.mubr.msk.bf16.gmra.mrb[44].mxu1 %vm5841_vm10, %v14959_v63  ;;  %11891 = vmatmul.mubr.bf16.gmra.mrb[40].mxu0 %v16131_v32 }
 0x557   : > { %11824 = vmatprep.mubr.msk.bf16.mxu1 %vm5841_vm10, %v14967_v4  ;;  %11894 = vmatprep.mubr.msk.bf16.mxu0 %vm5841_vm10, %v15003_v39 }
 0x559   : > { %v15166_v14 = vpop.f32.mrb[192].mxu0 }
 0x55a   : > { %v15168_v33 = vpop.f32.mrb[193].mxu0 }
 0x55b   : > { %v11717_v25 = vpop.f32.mrb[194].mxu0 }
 0x55c   : > { %v5975_v38 = vpop.f32.mrb[195].mxu0 }
 0x55e   : > { %11825 = vmatmul.mubr.msk.bf16.gmra.mrb[48].mxu1 %vm5841_vm10, %v14977_v3  ;;  %11895 = vmatmul.mubr.msk.bf16.gmra.mrb[44].mxu0 %vm5841_vm10, %v15013_v15 }
 0x55f   : > { %11898 = vmatprep.mubr.msk.bf16.mxu0 %vm5841_vm10, %v15021_v58  ;;  %11828 = vmatprep.mubr.bf16.mxu1 %v16131_v32 }
 0x561   : > { %v15177_v24 = vpop.f32.mrb[196].mxu0 }
 0x562   : > { %v15179_v40 = vpop.f32.mrb[197].mxu0 }
 0x563   : > { %v11721_v23 = vpop.f32.mrb[198].mxu0 }
 0x564   : > { %v5989_v10 = vpop.f32.mrb[199].mxu0 }
 0x566   : > { %11829 = vmatmul.mubr.msk.bf16.gmra.mrb[52].mxu1 %vm5841_vm10, %v14995_v29  ;;  %11899 = vmatmul.mubr.msk.bf16.gmra.mrb[48].mxu0 %vm5841_vm10, %v15031_v55 }
 0x567   : > { %11832 = vmatprep.mubr.msk.bf16.mxu1 %vm5841_vm10, %v15003_v39  ;;  %11902 = vmatprep.mubr.msk.bf16.mxu0 %vm5841_vm10, %v15039_v6 }
 0x569   : > { %v15189_v12 = vpop.f32.mrb[200].mxu0 }
 0x56a   : > { %v15191_v8 = vpop.f32.mrb[201].mxu0 }
 0x56b   : > { %v11725_v37 = vpop.f32.mrb[202].mxu0 }
 0x56c   : > { %v6003_v20 = vpop.f32.mrb[203].mxu0 }
 0x56e   : > { %11833 = vmatmul.mubr.msk.bf16.gmra.mrb[56].mxu1 %vm5841_vm10, %v15013_v15  ;;  %11903 = vmatmul.mubr.msk.bf16.gmra.mrb[52].mxu0 %vm5841_vm10, %v15049_v44 }
 0x56f   : > { %11836 = vmatprep.mubr.msk.bf16.mxu1 %vm5841_vm10, %v15021_v58  ;;  %11906 = vmatprep.mubr.msk.bf16.mxu0 %vm5841_vm10, %v15060_v30 }
 0x571   : > { %v15201_v50 = vpop.f32.mrb[204].mxu0 }
 0x572   : > { %v15203_v54 = vpop.f32.mrb[205].mxu0 }
 0x573   : > { %v11729_v56 = vpop.f32.mrb[206].mxu0 }
 0x574   : > { %v6017_v41 = vpop.f32.mrb[207].mxu0 }
 0x576   : > { %11837 = vmatmul.mubr.msk.bf16.gmra.mrb[60].mxu1 %vm5841_vm10, %v15031_v55  ;;  %11907 = vmatmul.mubr.bf16.gmra.mrb[56].mxu0 %v16131_v32 }
 0x577   : > { %11840 = vmatprep.mubr.msk.bf16.mxu1 %vm5841_vm10, %v15039_v6  ;;  %12110 = vmatprep.mubr.msk.bf16.mxu0 %vm5841_vm10, %v14772_v19 }
 0x579   : > { %v15212_v61 = vpop.f32.mrb[208].mxu0 }
 0x57a   : > { %v15214_v13 = vpop.f32.mrb[209].mxu0 }
 0x57b   : > { %v11733_v52 = vpop.f32.mrb[210].mxu0 }
 0x57c   : > { %v6031_v57 = vpop.f32.mrb[211].mxu0 }
 0x57e   : > { %11841 = vmatmul.mubr.msk.bf16.gmra.mrb[64].mxu1 %vm5841_vm10, %v15049_v44  ;;  %12111 = vmatmul.mubr.msk.bf16.vlgmr.msra.gmra.mrb[60].mxu0 %vm5841_vm10, %v14780_v17 }
 0x57f   : > { %11912 = vmatprep.mubr.msk.bf16.mxu1 %vm5841_vm10, %v14772_v19  ;;  %12114 = vmatprep.mubr.msk.bf16.mxu0 %vm5841_vm10, %v14797_v49 }
 0x580   : > { %12175 = vmatpush3.bf16.msra.mxu0 %v15088_v26 }
 0x581   : > { %v15225_v60 = vpop.f32.mrb[212].mxu0  ;;  %12240 = vmatprep.subr.bf16.mxu0 %v15247_v42 }
 0x582   : > { %v15227_v34 = vpop.f32.mrb[213].mxu0 }
 0x583   : > { %v11737_v36 = vpop.f32.mrb[214].mxu0 }
 0x584   : > { %v6045_v11 = vpop.f32.mrb[215].mxu0 }
 0x586   : > { %11913 = vmatmul.mubr.msk.bf16.vlgmr.msra.gmra.mrb[68].mxu1 %vm5841_vm10, %v14780_v17  ;;  %12115 = vmatmul.mubr.msk.bf16.gmra.mrb[64].mxu0 %vm5841_vm10, %v14805_v21 }
 0x587   : > { %11977 = vmatpush3.bf16.msra.mxu1 %v15074_v9  ;;  %11916 = vmatprep.mubr.msk.bf16.mxu1 %vm5841_vm10, %v14797_v49 }
 0x588   : > { %12118 = vmatprep.mubr.msk.bf16.mxu0 %vm5841_vm10, %v14815_v7  ;;  %12042 = vmatprep.subr.bf16.mxu1 %v15232_v16 }
 0x589   : > { %v15249_v22 = vpop.f32.mrb[216].mxu0 }
 0x58a   : > { %v15251_v5 = vpop.f32.mrb[217].mxu0 }
 0x58b   : > { %v11741_v27 = vpop.f32.mrb[218].mxu0 }
 0x58c   : > { %v6059_v9 = vpop.f32.mrb[219].mxu0 }
 0x58e   : > { %11917 = vmatmul.mubr.msk.bf16.gmra.mrb[72].mxu1 %vm5841_vm10, %v14805_v21  ;;  %12119 = vmatmul.mubr.msk.bf16.gmra.mrb[68].mxu0 %vm5841_vm10, %v14823_v48 }
 0x58f   : > { %11920 = vmatprep.mubr.msk.bf16.mxu1 %vm5841_vm10, %v14815_v7  ;;  %12122 = vmatprep.mubr.msk.bf16.mxu0 %vm5841_vm10, %v14833_v59 }
 0x591   : > { %v15262_v26 = vpop.f32.mrb[220].mxu0 }
 0x592   : > { %v15264_v25 = vpop.f32.mrb[221].mxu0 }
 0x593   : > { %v11745_v38 = vpop.f32.mrb[222].mxu0 }
 0x594   : > { %v6073_v23 = vpop.f32.mrb[223].mxu0 }
 0x596   : > { %11921 = vmatmul.mubr.msk.bf16.gmra.mrb[76].mxu1 %vm5841_vm10, %v14823_v48  ;;  %12123 = vmatmul.mubr.msk.bf16.gmra.mrb[72].mxu0 %vm5841_vm10, %v14841_v28 }
 0x597   : > { %11924 = vmatprep.mubr.msk.bf16.mxu1 %vm5841_vm10, %v14833_v59  ;;  %12126 = vmatprep.mubr.msk.bf16.mxu0 %vm5841_vm10, %v14851_v18 }
 0x599   : > { %v15274_v10 = vpop.f32.mrb[224].mxu0 }
 0x59a   : > { %v15276_v37 = vpop.f32.mrb[225].mxu0 }
 0x59b   : > { %v11749_v20 = vpop.f32.mrb[226].mxu0 }
 0x59c   : > { %v6087_v56 = vpop.f32.mrb[227].mxu0 }
 0x59e   : > { %11925 = vmatmul.mubr.msk.bf16.gmra.mrb[80].mxu1 %vm5841_vm10, %v14841_v28  ;;  %12127 = vmatmul.mubr.msk.bf16.gmra.mrb[76].mxu0 %vm5841_vm10, %v14859_v45 }
 0x59f   : > { %11928 = vmatprep.mubr.msk.bf16.mxu1 %vm5841_vm10, %v14851_v18  ;;  %12130 = vmatprep.mubr.msk.bf16.mxu0 %vm5841_vm10, %v14869_v31 }
 0x5a1   : > { %v15286_v41 = vpop.f32.mrb[228].mxu0 }
 0x5a2   : > { %v15288_v52 = vpop.f32.mrb[229].mxu0 }
 0x5a3   : > { %v11753_v57 = vpop.f32.mrb[230].mxu0 }
 0x5a4   : > { %v6101_v36 = vpop.f32.mrb[231].mxu0 }
 0x5a6   : > { %11929 = vmatmul.mubr.msk.bf16.gmra.mrb[84].mxu1 %vm5841_vm10, %v14859_v45  ;;  %12131 = vmatmul.mubr.msk.bf16.gmra.mrb[80].mxu0 %vm5841_vm10, %v14877_v43 }
 0x5a7   : > { %11932 = vmatprep.mubr.msk.bf16.mxu1 %vm5841_vm10, %v14869_v31  ;;  %12134 = vmatprep.mubr.msk.bf16.mxu0 %vm5841_vm10, %v14887_v62 }
 0x5a9   : > { %v15298_v11 = vpop.f32.mrb[232].mxu0 }
 0x5aa   : > { %v15300_v27 = vpop.f32.mrb[233].mxu0 }
 0x5ab   : > { %v11757_v9 = vpop.f32.mrb[234].mxu0 }
 0x5ac   : > { %v6115_v38 = vpop.f32.mrb[235].mxu0 }
 0x5ae   : > { %11933 = vmatmul.mubr.msk.bf16.gmra.mrb[88].mxu1 %vm5841_vm10, %v14877_v43  ;;  %12135 = vmatmul.mubr.msk.bf16.gmra.mrb[84].mxu0 %vm5841_vm10, %v14895_v46 }
 0x5af   : > { %11936 = vmatprep.mubr.msk.bf16.mxu1 %vm5841_vm10, %v14887_v62  ;;  %12138 = vmatprep.mubr.msk.bf16.mxu0 %vm5841_vm10, %v14905_v2 }
 0x5b1   : > { %v15310_v23 = vpop.f32.mrb[236].mxu0 }
 0x5b2   : > { %v15312_v20 = vpop.f32.mrb[237].mxu0 }
 0x5b3   : > { %v11761_v56 = vpop.f32.mrb[238].mxu0 }
 0x5b4   : > { %v6129_v57 = vpop.f32.mrb[239].mxu0 }
 0x5b6   : > { %11937 = vmatmul.mubr.msk.bf16.gmra.mrb[92].mxu1 %vm5841_vm10, %v14895_v46  ;;  %12139 = vmatmul.mubr.msk.bf16.gmra.mrb[88].mxu0 %vm5841_vm10, %v14913_v53 }
 0x5b7   : > { %11940 = vmatprep.mubr.msk.bf16.mxu1 %vm5841_vm10, %v14905_v2  ;;  %12142 = vmatprep.mubr.msk.bf16.mxu0 %vm5841_vm10, %v14923_v47 }
 0x5b9   : > { %v15322_v36 = vpop.f32.mrb[240].mxu0 }
 0x5ba   : > { %16132 = vst [vmem:[#allocation33_spill] sm:$0xff] %v15322_v36  ;;  %v15324_v9 = vpop.f32.mrb[241].mxu0 }
 0x5bb   : > { %16133 = vst [vmem:[#allocation34_spill] sm:$0xff] %v15324_v9  ;;  %v11765_v38 = vpop.f32.mrb[242].mxu0 }
 0x5bc   : > { %v6143_v28 = vpop.f32.mrb[243].mxu0 }
 0x5be   : > { %11941 = vmatmul.mubr.msk.bf16.gmra.mrb[96].mxu1 %vm5841_vm10, %v14913_v53  ;;  %12143 = vmatmul.mubr.msk.bf16.gmra.mrb[92].mxu0 %vm5841_vm10, %v14931_v1 }
 0x5bf   : > { %11944 = vmatprep.mubr.msk.bf16.mxu1 %vm5841_vm10, %v14923_v47  ;;  %12146 = vmatprep.mubr.msk.bf16.mxu0 %vm5841_vm10, %v14941_v35 }
 0x5c1   : > { %v15334_v56 = vpop.f32.mrb[244].mxu0 }
 0x5c2   : > { %16134 = vst [vmem:[#allocation35_spill] sm:$0xff] %v15334_v56  ;;  %v15336_v57 = vpop.f32.mrb[245].mxu0 }
 0x5c3   : > { %16135 = vst [vmem:[#allocation6_spill] sm:$0xff] %v15336_v57  ;;  %v11769_v36 = vpop.f32.mrb[246].mxu0 }
 0x5c4   : > { %v6157_v9 = vpop.f32.mrb[247].mxu0 }
 0x5c6   : > { %11945 = vmatmul.mubr.msk.bf16.gmra.mrb[100].mxu1 %vm5841_vm10, %v14931_v1  ;;  %12147 = vmatmul.mubr.msk.bf16.gmra.mrb[96].mxu0 %vm5841_vm10, %v14949_v51 }
 0x5c7   : > { %11948 = vmatprep.mubr.msk.bf16.mxu1 %vm5841_vm10, %v14941_v35  ;;  %12150 = vmatprep.mubr.msk.bf16.mxu0 %vm5841_vm10, %v14959_v63 }
 0x5c9   : > { %v15346_v28 = vpop.f32.mrb[248].mxu0 }
 0x5ca   : > { %16136 = vst [vmem:[#allocation36_spill] sm:$0xff] %v15346_v28  ;;  %v15348_v38 = vpop.f32.mrb[249].mxu0 }
 0x5cb   : > { %16137 = vst [vmem:[#allocation37_spill] sm:$0xff] %v15348_v38  ;;  %v11773_v53 = vpop.f32.mrb[250].mxu0 }
 0x5cc   : > { %v6171_v57 = vpop.f32.mrb[251].mxu0 }
 0x5ce   : > { %11949 = vmatmul.mubr.msk.bf16.gmra.mrb[104].mxu1 %vm5841_vm10, %v14949_v51  ;;  %12151 = vmatmul.mubr.msk.bf16.gmra.mrb[100].mxu0 %vm5841_vm10, %v14967_v4 }
 0x5cf   : > { %11952 = vmatprep.mubr.msk.bf16.mxu1 %vm5841_vm10, %v14959_v63  ;;  %12154 = vmatprep.mubr.msk.bf16.mxu0 %vm5841_vm10, %v14977_v3 }
 0x5d1   : > { %v15358_v36 = vpop.f32.mrb[0].mxu1  ;;  %v11848_v9 = vpop.f32.mrb[252].mxu0 }
 0x5d2   : > { %16138 = vst [vmem:[#allocation38_spill] sm:$0xff] %v15358_v36  ;;  %v15360_v28 = vpop.f32.mrb[1].mxu1  ;;  %v6503_v38 = vpop.f32.mrb[253].mxu0 }
 0x5d3   : > { %16139 = vst [vmem:[#allocation39_spill] sm:$0xff] %v15360_v28  ;;  %v11777_v53 = vpop.f32.mrb[2].mxu1  ;;  %v11849_v57 = vpop.f32.mrb[254].mxu0 }
 0x5d4   : > { %v6185_v35 = vpop.f32.mrb[3].mxu1  ;;  %v6506_v56 = vpop.f32.mrb[255].mxu0 }
 0x5d6   : > { %11953 = vmatmul.mubr.msk.bf16.gmra.mrb[108].mxu1 %vm5841_vm10, %v14967_v4  ;;  %12155 = vmatmul.mubr.msk.bf16.gmra.mrb[104].mxu0 %vm5841_vm10, %v14985_v0 }
 0x5d7   : > { %11956 = vmatprep.mubr.msk.bf16.mxu1 %vm5841_vm10, %v14977_v3  ;;  %12158 = vmatprep.mubr.msk.bf16.mxu0 %vm5841_vm10, %v14995_v29 }
 0x5d9   : > { %v11782_v36 = vpop.f32.mrb[4].mxu1  ;;  %v11852_v63 = vpop.f32.mrb[0].mxu0 }
 0x5da   : > { %v6245_v28 = vadd.f32 %v11782_v36, %v15166_v14  ;;  %v6237_v53 = vpop.f32.mrb[5].mxu1  ;;  %v6517_v57 = vpop.f32.mrb[1].mxu0 }
 0x5db   : > { %v6238_v35 = vadd.f32 %v6237_v53, %v15168_v33  ;;  %v11783_v56 = vpop.f32.mrb[6].mxu1  ;;  %v11853_v51 = vpop.f32.mrb[2].mxu0 }
 0x5dc   : > { %v15372_v4 = vadd.f32 %v11848_v9, %v6245_v28  ;;  %v6240_v1 = vpop.f32.mrb[7].mxu1  ;;  %v6520_v47 = vpop.f32.mrb[3].mxu0 }
 0x5dd   : > { %v15374_v2 = vadd.f32 %v6503_v38, %v6238_v35 }
 0x5de   : > { %11957 = vmatmul.mubr.msk.bf16.gmra.mrb[112].mxu1 %vm5841_vm10, %v14985_v0  ;;  %12159 = vmatmul.mubr.msk.bf16.gmra.mrb[108].mxu0 %vm5841_vm10, %v15003_v39 }
 0x5df   : > { %11960 = vmatprep.mubr.msk.bf16.mxu1 %vm5841_vm10, %v14995_v29  ;;  %12162 = vmatprep.mubr.msk.bf16.mxu0 %vm5841_vm10, %v15013_v15 }
 0x5e1   : > { %v11786_v14 = vpop.f32.mrb[8].mxu1  ;;  %v11856_v51 = vpop.f32.mrb[4].mxu0 }
 0x5e2   : > { %v6259_v33 = vadd.f32 %v11786_v14, %v15177_v24  ;;  %v6251_v1 = vpop.f32.mrb[9].mxu1  ;;  %v6531_v47 = vpop.f32.mrb[5].mxu0 }
 0x5e3   : > { %v6252_v28 = vadd.f32 %v6251_v1, %v15179_v40  ;;  %v11787_v38 = vpop.f32.mrb[10].mxu1  ;;  %v11857_v36 = vpop.f32.mrb[6].mxu0 }
 0x5e4   : > { %v15386_v9 = vadd.f32 %v11852_v63, %v6259_v33  ;;  %v6254_v53 = vpop.f32.mrb[11].mxu1  ;;  %v6534_v35 = vpop.f32.mrb[7].mxu0 }
 0x5e5   : > { %v15388_v56 = vadd.f32 %v6517_v57, %v6252_v28 }
 0x5e6   : > { %11961 = vmatmul.mubr.msk.bf16.gmra.mrb[116].mxu1 %vm5841_vm10, %v15003_v39  ;;  %12163 = vmatmul.mubr.msk.bf16.gmra.mrb[112].mxu0 %vm5841_vm10, %v15021_v58 }
 0x5e7   : > { %11964 = vmatprep.mubr.msk.bf16.mxu1 %vm5841_vm10, %v15013_v15  ;;  %12166 = vmatprep.mubr.msk.bf16.mxu0 %vm5841_vm10, %v15031_v55 }
 0x5e9   : > { %v11790_v24 = vpop.f32.mrb[12].mxu1  ;;  %v11860_v40 = vpop.f32.mrb[8].mxu0 }
 0x5ea   : > { %v6273_v63 = vadd.f32 %v11790_v24, %v15189_v12  ;;  %v6265_v14 = vpop.f32.mrb[13].mxu1  ;;  %v6545_v33 = vpop.f32.mrb[9].mxu0 }
 0x5eb   : > { %v6266_v57 = vadd.f32 %v6265_v14, %v15191_v8  ;;  %v11791_v1 = vpop.f32.mrb[14].mxu1  ;;  %v11861_v28 = vpop.f32.mrb[10].mxu0 }
 0x5ec   : > { %v15400_v38 = vadd.f32 %v11856_v51, %v6273_v63  ;;  %v6268_v36 = vpop.f32.mrb[15].mxu1  ;;  %v6548_v53 = vpop.f32.mrb[11].mxu0 }
 0x5ed   : > { %v15402_v35 = vadd.f32 %v6531_v47, %v6266_v57 }
 0x5ee   : > { %11965 = vmatmul.mubr.msk.bf16.gmra.mrb[120].mxu1 %vm5841_vm10, %v15021_v58  ;;  %12167 = vmatmul.mubr.msk.bf16.gmra.mrb[116].mxu0 %vm5841_vm10, %v15039_v6 }
 0x5ef   : > { %11968 = vmatprep.mubr.msk.bf16.mxu1 %vm5841_vm10, %v15031_v55  ;;  %12170 = vmatprep.mubr.msk.bf16.mxu0 %vm5841_vm10, %v15049_v44 }
 0x5f1   : > { %v11794_v12 = vpop.f32.mrb[16].mxu1  ;;  %v11864_v8 = vpop.f32.mrb[12].mxu0 }
 0x5f2   : > { %v6287_v51 = vadd.f32 %v11794_v12, %v15201_v50  ;;  %v6279_v24 = vpop.f32.mrb[17].mxu1  ;;  %v6559_v63 = vpop.f32.mrb[13].mxu0 }
 0x5f3   : > { %v6280_v47 = vadd.f32 %v6279_v24, %v15203_v54  ;;  %v11795_v14 = vpop.f32.mrb[18].mxu1  ;;  %v11865_v57 = vpop.f32.mrb[14].mxu0 }
 0x5f4   : > { %v15414_v1 = vadd.f32 %v11860_v40, %v6287_v51  ;;  %v6282_v28 = vpop.f32.mrb[19].mxu1  ;;  %v6562_v36 = vpop.f32.mrb[15].mxu0 }
 0x5f5   : > { %v15416_v53 = vadd.f32 %v6545_v33, %v6280_v47 }
 0x5f6   : > { %11969 = vmatmul.mubr.msk.bf16.gmra.mrb[124].mxu1 %vm5841_vm10, %v15039_v6  ;;  %12171 = vmatmul.mubr.msk.bf16.gmra.mrb[120].mxu0 %vm5841_vm10, %v15060_v30 }
 0x5f7   : > { %11972 = vmatprep.mubr.msk.bf16.mxu1 %vm5841_vm10, %v15049_v44  ;;  %12176 = vmatprep.mubr.bf16.mxu0 %v16131_v32 }
 0x5f9   : > { %v11798_v50 = vpop.f32.mrb[20].mxu1  ;;  %v11868_v54 = vpop.f32.mrb[16].mxu0 }
 0x5fa   : > { %v6301_v40 = vadd.f32 %v11798_v50, %v15212_v61  ;;  %v6293_v12 = vpop.f32.mrb[21].mxu1  ;;  %v6573_v51 = vpop.f32.mrb[17].mxu0 }
 0x5fb   : > { %v6294_v33 = vadd.f32 %v6293_v12, %v15214_v13  ;;  %v11799_v24 = vpop.f32.mrb[22].mxu1  ;;  %v11869_v47 = vpop.f32.mrb[18].mxu0 }
 0x5fc   : > { %v15427_v14 = vadd.f32 %v11864_v8, %v6301_v40  ;;  %v6296_v57 = vpop.f32.mrb[23].mxu1  ;;  %v6576_v28 = vpop.f32.mrb[19].mxu0 }
 0x5fd   : > { %v15429_v36 = vadd.f32 %v6559_v63, %v6294_v33 }
 0x5fe   : > { %11973 = vmatmul.mubr.msk.bf16.gmra.mrb[128].mxu1 %vm5841_vm10, %v15060_v30  ;;  %12177 = vmatmul.mubr.msk.bf16.vlgmr.msra.gmra.mrb[60].mxu0 %vm5841_vm10, %v14772_v19 }
 0x5ff   : > { %12180 = vmatprep.mubr.msk.bf16.mxu0 %vm5841_vm10, %v14780_v17  ;;  %11978 = vmatprep.mubr.bf16.mxu1 %v16131_v32 }
 0x600   : > { %12241 = vmatpush3.bf16.msra.mxu0 %v15247_v42 }
 0x601   : > { %v11802_v61 = vpop.f32.mrb[24].mxu1  ;;  %v11872_v13 = vpop.f32.mrb[20].mxu0 }
 0x602   : > { %v6315_v8 = vadd.f32 %v11802_v61, %v15225_v60  ;;  %v6307_v50 = vpop.f32.mrb[25].mxu1  ;;  %v6587_v63 = vpop.f32.mrb[21].mxu0 }
 0x603   : > { %v6308_v40 = vadd.f32 %v6307_v50, %v15227_v34  ;;  %v11803_v12 = vpop.f32.mrb[26].mxu1  ;;  %v11873_v33 = vpop.f32.mrb[22].mxu0 }
 0x604   : > { %v15441_v24 = vadd.f32 %v11868_v54, %v6315_v8  ;;  %v6310_v47 = vpop.f32.mrb[27].mxu1  ;;  %v6590_v57 = vpop.f32.mrb[23].mxu0 }
 0x605   : > { %v15443_v28 = vadd.f32 %v6573_v51, %v6308_v40 }
 0x606   : > { %11979 = vmatmul.mubr.msk.bf16.vlgmr.msra.gmra.mrb[68].mxu1 %vm5841_vm10, %v14772_v19  ;;  %12181 = vmatmul.mubr.msk.bf16.gmra.mrb[64].mxu0 %vm5841_vm10, %v14797_v49 }
 0x607   : > { %12043 = vmatpush3.bf16.msra.mxu1 %v15232_v16  ;;  %11982 = vmatprep.mubr.msk.bf16.mxu1 %vm5841_vm10, %v14780_v17 }
 0x608   : > { %12184 = vmatprep.mubr.msk.bf16.mxu0 %vm5841_vm10, %v14805_v21 }
 0x609   : > { %v11806_v60 = vpop.f32.mrb[28].mxu1  ;;  %v11876_v34 = vpop.f32.mrb[24].mxu0 }
 0x60a   : > { %v6329_v42 = vadd.f32 %v11806_v60, %v15249_v22  ;;  %v6321_v54 = vpop.f32.mrb[29].mxu1  ;;  %v6601_v51 = vpop.f32.mrb[25].mxu0 }
 0x60b   : > { %v6322_v61 = vadd.f32 %v6321_v54, %v15251_v5  ;;  %v11807_v19 = vpop.f32.mrb[30].mxu1  ;;  %v11877_v8 = vpop.f32.mrb[26].mxu0 }
 0x60c   : > { %v15456_v50 = vadd.f32 %v11872_v13, %v6329_v42  ;;  %v6324_v40 = vpop.f32.mrb[31].mxu1  ;;  %v6604_v16 = vpop.f32.mrb[27].mxu0 }
 0x60d   : > { %v15458_v12 = vadd.f32 %v6587_v63, %v6322_v61 }
 0x60e   : > { %11983 = vmatmul.mubr.msk.bf16.gmra.mrb[72].mxu1 %vm5841_vm10, %v14797_v49  ;;  %12185 = vmatmul.mubr.msk.bf16.gmra.mrb[68].mxu0 %vm5841_vm10, %v14815_v7 }
 0x60f   : > { %11986 = vmatprep.mubr.msk.bf16.mxu1 %vm5841_vm10, %v14805_v21  ;;  %12188 = vmatprep.mubr.msk.bf16.mxu0 %vm5841_vm10, %v14823_v48 }
 0x611   : > { %v11810_v22 = vpop.f32.mrb[32].mxu1  ;;  %v11880_v5 = vpop.f32.mrb[28].mxu0 }
 0x612   : > { %v6343_v13 = vadd.f32 %v11810_v22, %v15262_v26  ;;  %v6335_v33 = vpop.f32.mrb[33].mxu1  ;;  %v6615_v47 = vpop.f32.mrb[29].mxu0 }
 0x613   : > { %v6336_v63 = vadd.f32 %v6335_v33, %v15264_v25  ;;  %v11811_v57 = vpop.f32.mrb[34].mxu1  ;;  %v11881_v60 = vpop.f32.mrb[30].mxu0 }
 0x614   : > { %v15470_v42 = vadd.f32 %v11876_v34, %v6343_v13  ;;  %v6338_v54 = vpop.f32.mrb[35].mxu1  ;;  %v6618_v61 = vpop.f32.mrb[31].mxu0 }
 0x615   : > { %v15472_v19 = vadd.f32 %v6601_v51, %v6336_v63 }
 0x616   : > { %11987 = vmatmul.mubr.msk.bf16.gmra.mrb[76].mxu1 %vm5841_vm10, %v14815_v7  ;;  %12189 = vmatmul.mubr.msk.bf16.gmra.mrb[72].mxu0 %vm5841_vm10, %v14833_v59 }
 0x617   : > { %11990 = vmatprep.mubr.msk.bf16.mxu1 %vm5841_vm10, %v14823_v48  ;;  %12192 = vmatprep.mubr.bf16.mxu0 %v16131_v32 }
 0x619   : > { %v11814_v26 = vpop.f32.mrb[36].mxu1  ;;  %v11884_v25 = vpop.f32.mrb[32].mxu0 }
 0x61a   : > { %v6357_v34 = vadd.f32 %v11814_v26, %v15274_v10  ;;  %v6349_v8 = vpop.f32.mrb[37].mxu1  ;;  %v6629_v40 = vpop.f32.mrb[33].mxu0 }
 0x61b   : > { %v6350_v51 = vadd.f32 %v6349_v8, %v15276_v37  ;;  %v11815_v16 = vpop.f32.mrb[38].mxu1  ;;  %v11885_v22 = vpop.f32.mrb[34].mxu0 }
 0x61c   : > { %v15483_v13 = vadd.f32 %v11880_v5, %v6357_v34  ;;  %v6352_v33 = vpop.f32.mrb[39].mxu1  ;;  %v6632_v63 = vpop.f32.mrb[35].mxu0 }
 0x61d   : > { %v15485_v57 = vadd.f32 %v6615_v47, %v6350_v51 }
 0x61e   : > { %11991 = vmatmul.mubr.msk.bf16.gmra.mrb[80].mxu1 %vm5841_vm10, %v14833_v59  ;;  %12193 = vmatmul.mubr.msk.bf16.gmra.mrb[76].mxu0 %vm5841_vm10, %v14851_v18 }
 0x61f   : > { %12196 = vmatprep.mubr.msk.bf16.mxu0 %vm5841_vm10, %v14859_v45  ;;  %11994 = vmatprep.mubr.bf16.mxu1 %v16131_v32 }
 0x621   : > { %v11818_v10 = vpop.f32.mrb[40].mxu1  ;;  %v11888_v37 = vpop.f32.mrb[36].mxu0 }
 0x622   : > { %v6371_v5 = vadd.f32 %v11818_v10, %v15286_v41  ;;  %v6363_v60 = vpop.f32.mrb[41].mxu1  ;;  %v6643_v54 = vpop.f32.mrb[37].mxu0 }
 0x623   : > { %v6364_v47 = vadd.f32 %v6363_v60, %v15288_v52  ;;  %v11819_v61 = vpop.f32.mrb[42].mxu1  ;;  %v11889_v26 = vpop.f32.mrb[38].mxu0 }
 0x624   : > { %v15496_v34 = vadd.f32 %v11884_v25, %v6371_v5  ;;  %v6366_v8 = vpop.f32.mrb[43].mxu1  ;;  %v6646_v51 = vpop.f32.mrb[39].mxu0 }
 0x625   : > { %v15498_v16 = vadd.f32 %v6629_v40, %v6364_v47 }
 0x626   : > { %11995 = vmatmul.mubr.msk.bf16.gmra.mrb[84].mxu1 %vm5841_vm10, %v14851_v18  ;;  %12197 = vmatmul.mubr.msk.bf16.gmra.mrb[80].mxu0 %vm5841_vm10, %v14869_v31 }
 0x627   : > { %11998 = vmatprep.mubr.msk.bf16.mxu1 %vm5841_vm10, %v14859_v45  ;;  %12200 = vmatprep.mubr.msk.bf16.mxu0 %vm5841_vm10, %v14877_v43 }
 0x629   : > { %v11822_v41 = vpop.f32.mrb[44].mxu1  ;;  %v11892_v52 = vpop.f32.mrb[40].mxu0 }
 0x62a   : > { %v6385_v25 = vadd.f32 %v11822_v41, %v15298_v11  ;;  %v6377_v22 = vpop.f32.mrb[45].mxu1  ;;  %v6657_v33 = vpop.f32.mrb[41].mxu0 }
 0x62b   : > { %v6378_v40 = vadd.f32 %v6377_v22, %v15300_v27  ;;  %v11823_v63 = vpop.f32.mrb[46].mxu1  ;;  %v11893_v10 = vpop.f32.mrb[42].mxu0 }
 0x62c   : > { %v15510_v18 = vadd.f32 %v11888_v37, %v6385_v25  ;;  %v6380_v5 = vpop.f32.mrb[47].mxu1  ;;  %v6660_v60 = vpop.f32.mrb[43].mxu0  ;;  %v16143_v63 = vld [vmem:[#allocation5_spill] sm:$0xff] }
 0x62d   : > { %v15512_v47 = vadd.f32 %v6643_v54, %v6378_v40  ;;  %v16144_v10 = vld [vmem:[#allocation33_spill] sm:$0xff] }
 0x62e   : > { %11999 = vmatmul.mubr.msk.bf16.gmra.mrb[88].mxu1 %vm5841_vm10, %v14869_v31  ;;  %12201 = vmatmul.mubr.msk.bf16.gmra.mrb[84].mxu0 %vm5841_vm10, %v14887_v62 }
 0x62f   : > { %16140 = vst [vmem:[#allocation40_spill] sm:$0xff] %v15512_v47  ;;  %12002 = vmatprep.mubr.msk.bf16.mxu1 %vm5841_vm10, %v14877_v43  ;;  %12204 = vmatprep.mubr.msk.bf16.mxu0 %vm5841_vm10, %v14895_v46  ;;  %v16158_v47 = vld [vmem:[#allocation31_spill] sm:$0xff] }
 0x631   : > { %v11826_v11 = vpop.f32.mrb[48].mxu1  ;;  %v11896_v27 = vpop.f32.mrb[44].mxu0 }
 0x632   : > { %v6399_v37 = vadd.f32 %v11826_v11, %v15310_v23  ;;  %v6391_v61 = vpop.f32.mrb[49].mxu1  ;;  %v6671_v26 = vpop.f32.mrb[45].mxu0  ;;  %v16145_v11 = vld [vmem:[#allocation34_spill] sm:$0xff] }
 0x633   : > { %v6392_v54 = vadd.f32 %v6391_v61, %v15312_v20  ;;  %v11827_v8 = vpop.f32.mrb[50].mxu1  ;;  %v11897_v51 = vpop.f32.mrb[46].mxu0 }
 0x634   : > { %v15524_v41 = vadd.f32 %v11892_v52, %v6399_v37  ;;  %v6394_v25 = vpop.f32.mrb[51].mxu1  ;;  %v6674_v22 = vpop.f32.mrb[47].mxu0 }
 0x635   : > { %v15526_v40 = vadd.f32 %v6657_v33, %v6392_v54  ;;  %v16148_v22 = vld [vmem:[#allocation27_spill] sm:$0xff] }
 0x636   : > { %16141 = vst [vmem:[#allocation7_spill] sm:$0xff] %v15524_v41  ;;  %12003 = vmatmul.mubr.msk.bf16.gmra.mrb[92].mxu1 %vm5841_vm10, %v14887_v62  ;;  %12205 = vmatmul.mubr.msk.bf16.gmra.mrb[88].mxu0 %vm5841_vm10, %v16143_v63  ;;  %v16154_v41 = vld [vmem:[#allocation29_spill] sm:$0xff] }
 0x637   : > { %16142 = vst [vmem:[#allocation41_spill] sm:$0xff] %v15526_v40  ;;  %12006 = vmatprep.mubr.msk.bf16.mxu1 %vm5841_vm10, %v14895_v46  ;;  %12208 = vmatprep.mubr.bf16.mxu0 %v16131_v32  ;;  %v16149_v40 = vld [vmem:[#allocation28_spill] sm:$0xff] }
 0x639   : > { %v11830_v23 = vpop.f32.mrb[52].mxu1  ;;  %v11900_v20 = vpop.f32.mrb[48].mxu0 }
 0x63a   : > { %v6413_v52 = vadd.f32 %v11830_v23, %v16144_v10  ;;  %v6405_v5 = vpop.f32.mrb[53].mxu1  ;;  %v6685_v60 = vpop.f32.mrb[49].mxu0 }
 0x63b   : > { %v6406_v33 = vadd.f32 %v6405_v5, %v16145_v11  ;;  %v11831_v37 = vpop.f32.mrb[54].mxu1  ;;  %v11901_v61 = vpop.f32.mrb[50].mxu0  ;;  %v16150_v5 = vld [vmem:[#allocation35_spill] sm:$0xff] }
 0x63c   : > { %v15537_v54 = vadd.f32 %v11896_v27, %v6413_v52  ;;  %v6408_v8 = vpop.f32.mrb[55].mxu1  ;;  %v6688_v51 = vpop.f32.mrb[51].mxu0  ;;  %v16151_v37 = vld [vmem:[#allocation6_spill] sm:$0xff] }
 0x63d   : > { %v15539_v25 = vadd.f32 %v6671_v26, %v6406_v33 }
 0x63e   : > { %16146 = vst [vmem:[#allocation42_spill] sm:$0xff] %v15537_v54  ;;  %12007 = vmatmul.mubr.msk.bf16.gmra.mrb[96].mxu1 %vm5841_vm10, %v16143_v63  ;;  %12209 = vmatmul.mubr.msk.bf16.gmra.mrb[92].mxu0 %vm5841_vm10, %v16148_v22 }
 0x63f   : > { %16147 = vst [vmem:[#allocation8_spill] sm:$0xff] %v15539_v25  ;;  %12212 = vmatprep.mubr.msk.bf16.mxu0 %vm5841_vm10, %v16149_v40  ;;  %12010 = vmatprep.mubr.bf16.mxu1 %v16131_v32 }
 0x641   : > { %v11834_v23 = vpop.f32.mrb[56].mxu1  ;;  %v11904_v10 = vpop.f32.mrb[52].mxu0 }
 0x642   : > { %v6427_v27 = vadd.f32 %v11834_v23, %v16150_v5  ;;  %v6419_v52 = vpop.f32.mrb[57].mxu1  ;;  %v6699_v11 = vpop.f32.mrb[53].mxu0  ;;  %v16155_v23 = vld [vmem:[#allocation30_spill] sm:$0xff] }
 0x643   : > { %v6420_v26 = vadd.f32 %v6419_v52, %v16151_v37  ;;  %v11835_v33 = vpop.f32.mrb[58].mxu1  ;;  %v11905_v61 = vpop.f32.mrb[54].mxu0 }
 0x644   : > { %v15550_v8 = vadd.f32 %v11900_v20, %v6427_v27  ;;  %v6422_v51 = vpop.f32.mrb[59].mxu1  ;;  %v6702_v25 = vpop.f32.mrb[55].mxu0  ;;  %v16156_v20 = vld [vmem:[#allocation36_spill] sm:$0xff] }
 0x645   : > { %v15552_v54 = vadd.f32 %v6685_v60, %v6420_v26  ;;  %v16157_v60 = vld [vmem:[#allocation37_spill] sm:$0xff] }
 0x646   : > { %16152 = vst [vmem:[#allocation43_spill] sm:$0xff] %v15550_v8  ;;  %12011 = vmatmul.mubr.msk.bf16.gmra.mrb[100].mxu1 %vm5841_vm10, %v16148_v22  ;;  %12213 = vmatmul.mubr.msk.bf16.gmra.mrb[96].mxu0 %vm5841_vm10, %v16154_v41 }
 0x647   : > { %16153 = vst [vmem:[#allocation9_spill] sm:$0xff] %v15552_v54  ;;  %12014 = vmatprep.mubr.msk.bf16.mxu1 %vm5841_vm10, %v16149_v40  ;;  %12216 = vmatprep.mubr.msk.bf16.mxu0 %vm5841_vm10, %v16155_v23 }
 0x649   : > { %v11838_v5 = vpop.f32.mrb[60].mxu1  ;;  %v11908_v52 = vpop.f32.mrb[56].mxu0 }
 0x64a   : > { %v6441_v27 = vadd.f32 %v11838_v5, %v16156_v20  ;;  %v6433_v37 = vpop.f32.mrb[61].mxu1  ;;  %v6713_v25 = vpop.f32.mrb[57].mxu0  ;;  %v16159_v5 = vld [vmem:[#allocation32_spill] sm:$0xff] }
 0x64b   : > { %v6434_v26 = vadd.f32 %v6433_v37, %v16157_v60  ;;  %v11839_v33 = vpop.f32.mrb[62].mxu1  ;;  %v11909_v61 = vpop.f32.mrb[58].mxu0  ;;  %v16160_v37 = vld [vmem:[#allocation38_spill] sm:$0xff]  ;;  %v16161_v60 = vld [vmem:[#allocation39_spill] sm:$0xff] }
 0x64c   : > { %v15564_v22 = vadd.f32 %v11904_v10, %v6441_v27  ;;  %v6436_v51 = vpop.f32.mrb[63].mxu1  ;;  %v6716_v54 = vpop.f32.mrb[59].mxu0 }
 0x64d   : > { %v15566_v8 = vadd.f32 %v6699_v11, %v6434_v26 }
 0x64e   : > { %12015 = vmatmul.mubr.msk.bf16.gmra.mrb[104].mxu1 %vm5841_vm10, %v16154_v41  ;;  %12217 = vmatmul.mubr.msk.bf16.gmra.mrb[100].mxu0 %vm5841_vm10, %v16158_v47 }
 0x64f   : > { %12018 = vmatprep.mubr.msk.bf16.mxu1 %vm5841_vm10, %v16155_v23  ;;  %12220 = vmatprep.mubr.msk.bf16.mxu0 %vm5841_vm10, %v16159_v5 }
 0x651   : > { %v11842_v20 = vpop.f32.mrb[64].mxu1 }
 0x652   : > { %v6455_v10 = vadd.f32 %v11842_v20, %v16160_v37  ;;  %v6447_v27 = vpop.f32.mrb[65].mxu1 }
 0x653   : > { %v6448_v54 = vadd.f32 %v6447_v27, %v16161_v60  ;;  %v11843_v11 = vpop.f32.mrb[66].mxu1 }
 0x654   : > { %v15578_v26 = vadd.f32 %v11908_v52, %v6455_v10  ;;  %v6450_v33 = vpop.f32.mrb[67].mxu1  ;;  %v15750_v10 = vld [vmem:[%s15955_s8] ss:$0 sm:$0xff] }
 0x655   : > { %v15580_v61 = vadd.f32 %v6713_v25, %v6448_v54 }
 0x656   : > { %12019 = vmatmul.mubr.msk.bf16.gmra.mrb[108].mxu1 %vm5841_vm10, %v16158_v47  ;;  %12221 = vmatmul.mubr.msk.bf16.gmra.mrb[104].mxu0 %vm5841_vm10, %v14977_v3 }
 0x657   : > { %12022 = vmatprep.mubr.msk.bf16.mxu1 %vm5841_vm10, %v16159_v5  ;;  %12224 = vmatprep.mubr.bf16.mxu0 %v16131_v32 }
 0x65e   : > { %12023 = vmatmul.mubr.msk.bf16.gmra.mrb[112].mxu1 %vm5841_vm10, %v14977_v3  ;;  %12225 = vmatmul.mubr.msk.bf16.gmra.mrb[108].mxu0 %vm5841_vm10, %v14995_v29 }
 0x65f   : > { %12228 = vmatprep.mubr.msk.bf16.mxu0 %vm5841_vm10, %v15003_v39  ;;  %12026 = vmatprep.mubr.bf16.mxu1 %v16131_v32 }
 0x666   : > { %12027 = vmatmul.mubr.msk.bf16.gmra.mrb[116].mxu1 %vm5841_vm10, %v14995_v29  ;;  %12229 = vmatmul.mubr.msk.bf16.gmra.mrb[112].mxu0 %vm5841_vm10, %v15013_v15 }
 0x667   : > { %12030 = vmatprep.mubr.msk.bf16.mxu1 %vm5841_vm10, %v15003_v39  ;;  %12232 = vmatprep.mubr.msk.bf16.mxu0 %vm5841_vm10, %v15021_v58 }
 0x66e   : > { %12031 = vmatmul.mubr.msk.bf16.gmra.mrb[120].mxu1 %vm5841_vm10, %v15013_v15  ;;  %12233 = vmatmul.mubr.msk.bf16.gmra.mrb[116].mxu0 %vm5841_vm10, %v15031_v55 }
 0x66f   : > { %12034 = vmatprep.mubr.msk.bf16.mxu1 %vm5841_vm10, %v15021_v58  ;;  %12236 = vmatprep.mubr.msk.bf16.mxu0 %vm5841_vm10, %v15039_v6 }
 0x676   : > { %12035 = vmatmul.mubr.msk.bf16.gmra.mrb[124].mxu1 %vm5841_vm10, %v15031_v55  ;;  %12237 = vmatmul.mubr.msk.bf16.gmra.mrb[120].mxu0 %vm5841_vm10, %v15049_v44 }
 0x677   : > { %12038 = vmatprep.mubr.msk.bf16.mxu1 %vm5841_vm10, %v15039_v6  ;;  %12242 = vmatprep.mubr.msk.bf16.mxu0 %vm5841_vm10, %v14780_v17 }
 0x67e   : > { %12039 = vmatmul.mubr.msk.bf16.gmra.mrb[128].mxu1 %vm5841_vm10, %v15049_v44  ;;  %12243 = vmatmul.mubr.msk.bf16.vlgmr.msra.gmra.mrb[60].mxu0 %vm5841_vm10, %v14797_v49 }
 0x67f   : > { %12044 = vmatprep.mubr.msk.bf16.mxu1 %vm5841_vm10, %v14780_v17  ;;  %12246 = vmatprep.mubr.msk.bf16.mxu0 %vm5841_vm10, %v14805_v21  ;;  %v16162_v17 = vld [vmem:[#allocation25_spill] sm:$0xff] }
 0x686   : > { %12045 = vmatmul.mubr.msk.bf16.vlgmr.msra.gmra.mrb[68].mxu1 %vm5841_vm10, %v14797_v49  ;;  %12247 = vmatmul.mubr.msk.bf16.gmra.mrb[64].mxu0 %vm5841_vm10, %v14815_v7  ;;  %v16163_v49 = vld [vmem:[#allocation26_spill] sm:$0xff] }
 0x687   : > { %12048 = vmatprep.mubr.msk.bf16.mxu1 %vm5841_vm10, %v14805_v21  ;;  %12250 = vmatprep.mubr.msk.bf16.mxu0 %vm5841_vm10, %v14823_v48 }
 0x68e   : > { %12049 = vmatmul.mubr.msk.bf16.gmra.mrb[72].mxu1 %vm5841_vm10, %v14815_v7  ;;  %12251 = vmatmul.mubr.msk.bf16.gmra.mrb[68].mxu0 %vm5841_vm10, %v14833_v59 }
 0x68f   : > { %12052 = vmatprep.mubr.msk.bf16.mxu1 %vm5841_vm10, %v14823_v48  ;;  %12254 = vmatprep.mubr.msk.bf16.mxu0 %vm5841_vm10, %v16162_v17 }
 0x696   : > { %12053 = vmatmul.mubr.msk.bf16.gmra.mrb[76].mxu1 %vm5841_vm10, %v14833_v59  ;;  %12255 = vmatmul.mubr.bf16.gmra.mrb[72].mxu0 %v16131_v32 }
 0x697   : > { %12056 = vmatprep.mubr.msk.bf16.mxu1 %vm5841_vm10, %v16162_v17  ;;  %12258 = vmatprep.mubr.msk.bf16.mxu0 %vm5841_vm10, %v14859_v45 }
 0x69e   : > { %12057 = vmatmul.mubr.bf16.gmra.mrb[80].mxu1 %v16131_v32  ;;  %12259 = vmatmul.mubr.msk.bf16.gmra.mrb[76].mxu0 %vm5841_vm10, %v14869_v31 }
 0x69f   : > { %12060 = vmatprep.mubr.msk.bf16.mxu1 %vm5841_vm10, %v14859_v45  ;;  %12262 = vmatprep.mubr.msk.bf16.mxu0 %vm5841_vm10, %v14877_v43 }
 0x6a6   : > { %12061 = vmatmul.mubr.msk.bf16.gmra.mrb[84].mxu1 %vm5841_vm10, %v14869_v31  ;;  %12263 = vmatmul.mubr.msk.bf16.gmra.mrb[80].mxu0 %vm5841_vm10, %v14887_v62 }
 0x6a7   : > { %12064 = vmatprep.mubr.msk.bf16.mxu1 %vm5841_vm10, %v14877_v43  ;;  %12266 = vmatprep.mubr.msk.bf16.mxu0 %vm5841_vm10, %v14895_v46 }
 0x6ae   : > { %12065 = vmatmul.mubr.msk.bf16.gmra.mrb[88].mxu1 %vm5841_vm10, %v14887_v62  ;;  %12267 = vmatmul.mubr.msk.bf16.gmra.mrb[84].mxu0 %vm5841_vm10, %v16143_v63 }
 0x6af   : > { %12068 = vmatprep.mubr.msk.bf16.mxu1 %vm5841_vm10, %v14895_v46  ;;  %12270 = vmatprep.mubr.msk.bf16.mxu0 %vm5841_vm10, %v16163_v49 }
 0x6b6   : > { %12069 = vmatmul.mubr.msk.bf16.gmra.mrb[92].mxu1 %vm5841_vm10, %v16143_v63  ;;  %12271 = vmatmul.mubr.bf16.gmra.mrb[88].mxu0 %v16131_v32 }
 0x6b7   : > { %12072 = vmatprep.mubr.msk.bf16.mxu1 %vm5841_vm10, %v16163_v49  ;;  %12274 = vmatprep.mubr.msk.bf16.mxu0 %vm5841_vm10, %v16149_v40 }
 0x6be   : > { %12073 = vmatmul.mubr.bf16.gmra.mrb[96].mxu1 %v16131_v32  ;;  %12275 = vmatmul.mubr.msk.bf16.gmra.mrb[92].mxu0 %vm5841_vm10, %v16154_v41 }
 0x6bf   : > { %12076 = vmatprep.mubr.msk.bf16.mxu1 %vm5841_vm10, %v16149_v40  ;;  %12278 = vmatprep.mubr.msk.bf16.mxu0 %vm5841_vm10, %v16155_v23 }
 0x6c6   : > { %12077 = vmatmul.mubr.msk.bf16.gmra.mrb[100].mxu1 %vm5841_vm10, %v16154_v41  ;;  %12279 = vmatmul.mubr.msk.bf16.gmra.mrb[96].mxu0 %vm5841_vm10, %v16158_v47 }
 0x6c7   : > { %12080 = vmatprep.mubr.msk.bf16.mxu1 %vm5841_vm10, %v16155_v23  ;;  %12282 = vmatprep.mubr.msk.bf16.mxu0 %vm5841_vm10, %v16159_v5 }
 0x6ce   : > { %12081 = vmatmul.mubr.msk.bf16.gmra.mrb[104].mxu1 %vm5841_vm10, %v16158_v47  ;;  %12283 = vmatmul.mubr.msk.bf16.gmra.mrb[100].mxu0 %vm5841_vm10, %v14977_v3 }
 0x6cf   : > { %12084 = vmatprep.mubr.msk.bf16.mxu1 %vm5841_vm10, %v16159_v5  ;;  %12286 = vmatprep.mubr.msk.bf16.mxu0 %vm5841_vm10, %v14985_v0 }
 0x6d6   : > { %12085 = vmatmul.mubr.msk.bf16.gmra.mrb[108].mxu1 %vm5841_vm10, %v14977_v3  ;;  %12287 = vmatmul.mubr.bf16.gmra.mrb[104].mxu0 %v16131_v32 }
 0x6d7   : > { %12088 = vmatprep.mubr.msk.bf16.mxu1 %vm5841_vm10, %v14985_v0  ;;  %12290 = vmatprep.mubr.msk.bf16.mxu0 %vm5841_vm10, %v15003_v39 }
 0x6de   : > { %12089 = vmatmul.mubr.bf16.gmra.mrb[112].mxu1 %v16131_v32  ;;  %12291 = vmatmul.mubr.msk.bf16.gmra.mrb[108].mxu0 %vm5841_vm10, %v15013_v15 }
 0x6df   : > { %12092 = vmatprep.mubr.msk.bf16.mxu1 %vm5841_vm10, %v15003_v39  ;;  %12294 = vmatprep.mubr.msk.bf16.mxu0 %vm5841_vm10, %v15021_v58 }
 0x6e6   : > { %12093 = vmatmul.mubr.msk.bf16.gmra.mrb[116].mxu1 %vm5841_vm10, %v15013_v15  ;;  %12295 = vmatmul.mubr.msk.bf16.gmra.mrb[112].mxu0 %vm5841_vm10, %v15031_v55 }
 0x6e7   : > { %12096 = vmatprep.mubr.msk.bf16.mxu1 %vm5841_vm10, %v15021_v58  ;;  %12298 = vmatprep.mubr.msk.bf16.mxu0 %vm5841_vm10, %v15039_v6 }
 0x6ee   : > { %12097 = vmatmul.mubr.msk.bf16.gmra.mrb[120].mxu1 %vm5841_vm10, %v15031_v55  ;;  %12299 = vmatmul.mubr.msk.bf16.gmra.mrb[116].mxu0 %vm5841_vm10, %v15049_v44 }
 0x6ef   : > { %12100 = vmatprep.mubr.msk.bf16.mxu1 %vm5841_vm10, %v15039_v6  ;;  %12302 = vmatprep.mubr.msk.bf16.mxu0 %vm5841_vm10, %v15060_v30 }
 0x6f6   : > { %12101 = vmatmul.mubr.msk.bf16.gmra.mrb[124].mxu1 %vm5841_vm10, %v15049_v44  ;;  %12303 = vmatmul.mubr.bf16.gmra.mrb[120].mxu0 %v16131_v32 }
 0x6f7   : > { %12104 = vmatprep.mubr.msk.bf16.mxu1 %vm5841_vm10, %v15060_v30 }
 0x6fe   : > { %12105 = vmatmul.mubr.bf16.gmra.mrb[128].mxu1 %v16131_v32 }
 0x751   : > { %v12244_v21 = vpop.f32.mrb[60].mxu0 }
 0x752   : > { %v8579_v7 = vpop.f32.mrb[61].mxu0  ;;  %v8965_v59 = vrot.slane %v12244_v21, 2 }
 0x753   : > { %v12245_v48 = vpop.f32.mrb[62].mxu0  ;;  %v8962_v43 = vrot.slane %v8579_v7, 2 }
 0x754   : > { %v8966_v45 = vrot.slane %v12245_v48, 2  ;;  %v8582_v31 = vpop.f32.mrb[63].mxu0 }
 0x755   : > { %v8963_v62 = vrot.slane %v8582_v31, 2 }
 0x756   : > { %v8967_v46 = vsel %vm4822_vm8, %v8965_v59, %v8966_v45 }
 0x757   : > { %v8964_v3 = vsel %vm4822_vm8, %v8962_v43, %v8963_v62 }
 0x759   : > { %v12046_v0 = vpop.f32.mrb[68].mxu1  ;;  %v12248_v29 = vpop.f32.mrb[64].mxu0 }
 0x75a   : > { %v7397_v39 = vpop.f32.mrb[69].mxu1  ;;  %v8595_v15 = vpop.f32.mrb[65].mxu0  ;;  %v7783_v6 = vrot.slane %v12046_v0, 1  ;;  %v8971_v44 = vrot.slane %v12248_v29, 2 }
 0x75b   : > { %v12047_v58 = vpop.f32.mrb[70].mxu1  ;;  %v12249_v55 = vpop.f32.mrb[66].mxu0  ;;  %v7780_v40 = vrot.slane %v7397_v39, 1  ;;  %v8968_v63 = vrot.slane %v8595_v15, 2 }
 0x75c   : > { %v7784_v30 = vrot.slane %v12047_v58, 1  ;;  %v8972_v32 = vrot.slane %v12249_v55, 2  ;;  %v7400_v47 = vpop.f32.mrb[71].mxu1  ;;  %v8598_v41 = vpop.f32.mrb[67].mxu0 }
 0x75d   : > { %v7781_v23 = vrot.slane %v7400_v47, 1  ;;  %v8969_v52 = vrot.slane %v8598_v41, 2 }
 0x75e   : > { %v7785_v25 = vsel %vm3519_vm9, %v7783_v6, %v7784_v30  ;;  %v8973_v51 = vsel %vm4822_vm8, %v8971_v44, %v8972_v32 }
 0x75f   : > { %v7909_v5 = vadd.f32 %v7785_v25, %v15372_v4  ;;  %v7782_v20 = vsel %vm3519_vm9, %v7780_v40, %v7781_v23  ;;  %v8970_v37 = vsel %vm4822_vm8, %v8968_v63, %v8969_v52 }
 0x760   : > { %v7908_v27 = vadd.f32 %v7782_v20, %v15374_v2 }
 0x761   : > { %v9091_v60 = vadd.f32 %v8967_v46, %v7909_v5  ;;  %v12050_v54 = vpop.f32.mrb[72].mxu1  ;;  %v12252_v11 = vpop.f32.mrb[68].mxu0 }
 0x762   : > { %v9090_v33 = vadd.f32 %v8964_v3, %v7908_v27  ;;  %v7413_v17 = vpop.f32.mrb[73].mxu1  ;;  %v8611_v49 = vpop.f32.mrb[69].mxu0  ;;  %v7789_v21 = vrot.slane %v12050_v54, 1  ;;  %v8977_v7 = vrot.slane %v12252_v11, 2 }
 0x763   : > { %v9130_v4 = vadd.f32 %v15750_v10, %v9091_v60  ;;  %v12051_v48 = vpop.f32.mrb[74].mxu1  ;;  %v12253_v59 = vpop.f32.mrb[70].mxu0  ;;  %v7786_v31 = vrot.slane %v7413_v17, 1  ;;  %v8974_v29 = vrot.slane %v8611_v49, 2 }
 0x764   : > { %v9129_v45 = vadd.f32 %v15750_v10, %v9090_v33  ;;  %v7790_v43 = vrot.slane %v12051_v48, 1  ;;  %v8978_v62 = vrot.slane %v12253_v59, 2  ;;  %v7416_v0 = vpop.f32.mrb[75].mxu1  ;;  %v8614_v2 = vpop.f32.mrb[71].mxu0 }
 0x765   : > { %v9162_v46 = vmax.f32 %v9130_v4, 0.0  ;;  %v7787_v39 = vrot.slane %v7416_v0, 1  ;;  %v8975_v3 = vrot.slane %v8614_v2, 2 }
 0x766   : > { %v9161_v15 = vmax.f32 %v9129_v45, 0.0  ;;  %v7791_v58 = vsel %vm3519_vm9, %v7789_v21, %v7790_v43  ;;  %v8979_v55 = vsel %vm4822_vm8, %v8977_v7, %v8978_v62 }
 0x767   : > { %v9194_v6 = vpack.c.bf16 %v9162_v46, %v9162_v46  ;;  %v7911_v44 = vadd.f32 %v7791_v58, %v15386_v9  ;;  %v7788_v30 = vsel %vm3519_vm9, %v7786_v31, %v7787_v39  ;;  %v8976_v32 = vsel %vm4822_vm8, %v8974_v29, %v8975_v3 }
 0x768   : > { %v9193_v47 = vpack.c.bf16 %v9161_v15, %v9161_v15  ;;  %v7910_v41 = vadd.f32 %v7788_v30, %v15388_v56 }
 0x769   : > { %9227 = vst.msk [vmem:[%s15760_s19 + $0x4] sm:$0xf] %vm9225_vm11, %v9194_v6  ;;  %v9093_v40 = vadd.f32 %v8973_v51, %v7911_v44  ;;  %v12054_v63 = vpop.f32.mrb[76].mxu1  ;;  %v12256_v23 = vpop.f32.mrb[72].mxu0 }
 0x76a   : > { %9226 = vst.msk [vmem:[%s15760_s19] sm:$0xf] %vm9225_vm11, %v9193_v47  ;;  %v9092_v52 = vadd.f32 %v8970_v37, %v7910_v41  ;;  %v7429_v25 = vpop.f32.mrb[77].mxu1  ;;  %v8627_v5 = vpop.f32.mrb[73].mxu0  ;;  %v7795_v9 = vrot.slane %v12054_v63, 1  ;;  %v8983_v27 = vrot.slane %v12256_v23, 2 }
 0x76b   : > { %v9132_v20 = vadd.f32 %v15750_v10, %v9093_v40  ;;  %v12055_v60 = vpop.f32.mrb[78].mxu1  ;;  %v12257_v54 = vpop.f32.mrb[74].mxu0  ;;  %v7792_v33 = vrot.slane %v7429_v25, 1  ;;  %v8980_v21 = vrot.slane %v8627_v5, 2 }
 0x76c   : > { %v9131_v11 = vadd.f32 %v15750_v10, %v9092_v52  ;;  %v7796_v56 = vrot.slane %v12055_v60, 1  ;;  %v8984_v17 = vrot.slane %v12257_v54, 2  ;;  %v7432_v51 = vpop.f32.mrb[79].mxu1  ;;  %v8630_v49 = vpop.f32.mrb[75].mxu0 }
 0x76d   : > { %v9164_v4 = vmax.f32 %v9132_v20, 0.0  ;;  %v7793_v37 = vrot.slane %v7432_v51, 1  ;;  %v8981_v7 = vrot.slane %v8630_v49, 2 }
 0x76e   : > { %v9163_v48 = vmax.f32 %v9131_v11, 0.0  ;;  %v7797_v59 = vsel %vm3519_vm9, %v7795_v9, %v7796_v56  ;;  %v8985_v45 = vsel %vm4822_vm8, %v8983_v27, %v8984_v17 }
 0x76f   : > { %v9196_v31 = vpack.c.bf16 %v9164_v4, %v9164_v4  ;;  %v7913_v43 = vadd.f32 %v7797_v59, %v15400_v38  ;;  %v7794_v62 = vsel %vm3519_vm9, %v7792_v33, %v7793_v37  ;;  %v8982_v0 = vsel %vm4822_vm8, %v8980_v21, %v8981_v7 }
 0x770   : > { %v9195_v2 = vpack.c.bf16 %v9163_v48, %v9163_v48  ;;  %v7912_v46 = vadd.f32 %v7794_v62, %v15402_v35 }
 0x771   : > { %9229 = vst.msk [vmem:[%s15760_s19 + $0xc] sm:$0xf] %vm9225_vm11, %v9196_v31  ;;  %v9095_v29 = vadd.f32 %v8979_v55, %v7913_v43  ;;  %v12058_v39 = vpop.f32.mrb[80].mxu1  ;;  %v12260_v3 = vpop.f32.mrb[76].mxu0 }
 0x772   : > { %9228 = vst.msk [vmem:[%s15760_s19 + $0x8] sm:$0xf] %vm9225_vm11, %v9195_v2  ;;  %v9094_v15 = vadd.f32 %v8976_v32, %v7912_v46  ;;  %v7445_v58 = vpop.f32.mrb[81].mxu1  ;;  %v8643_v6 = vpop.f32.mrb[77].mxu0  ;;  %v7801_v38 = vrot.slane %v12058_v39, 1  ;;  %v8989_v30 = vrot.slane %v12260_v3, 2 }
 0x773   : > { %v9134_v44 = vadd.f32 %v15750_v10, %v9095_v29  ;;  %v12059_v47 = vpop.f32.mrb[82].mxu1  ;;  %v12261_v41 = vpop.f32.mrb[78].mxu0  ;;  %v7798_v63 = vrot.slane %v7445_v58, 1  ;;  %v8986_v5 = vrot.slane %v8643_v6, 2 }
 0x774   : > { %v9133_v40 = vadd.f32 %v15750_v10, %v9094_v15  ;;  %v7802_v35 = vrot.slane %v12059_v47, 1  ;;  %v8990_v23 = vrot.slane %v12261_v41, 2  ;;  %v7448_v55 = vpop.f32.mrb[83].mxu1  ;;  %v8646_v52 = vpop.f32.mrb[79].mxu0 }
 0x775   : > { %v9166_v25 = vmax.f32 %v9134_v44, 0.0  ;;  %v7799_v32 = vrot.slane %v7448_v55, 1  ;;  %v8987_v20 = vrot.slane %v8646_v52, 2 }
 0x776   : > { %v9165_v9 = vmax.f32 %v9133_v40, 0.0  ;;  %v7803_v27 = vsel %vm3519_vm9, %v7801_v38, %v7802_v35  ;;  %v8991_v60 = vsel %vm4822_vm8, %v8989_v30, %v8990_v23 }
 0x777   : > { %v9198_v54 = vpack.c.bf16 %v9166_v25, %v9166_v25  ;;  %v7915_v11 = vadd.f32 %v7803_v27, %v15414_v1  ;;  %v7800_v33 = vsel %vm3519_vm9, %v7798_v63, %v7799_v32  ;;  %v8988_v56 = vsel %vm4822_vm8, %v8986_v5, %v8987_v20 }
 0x778   : > { %v9197_v17 = vpack.c.bf16 %v9165_v9, %v9165_v9  ;;  %v7914_v51 = vadd.f32 %v7800_v33, %v15416_v53 }
 0x779   : > { %9231 = vst.msk [vmem:[%s15760_s19 + $0x14] sm:$0xf] %vm9225_vm11, %v9198_v54  ;;  %v9097_v49 = vadd.f32 %v8985_v45, %v7915_v11  ;;  %v12062_v4 = vpop.f32.mrb[84].mxu1  ;;  %v12264_v21 = vpop.f32.mrb[80].mxu0 }
 0x77a   : > { %9230 = vst.msk [vmem:[%s15760_s19 + $0x10] sm:$0xf] %vm9225_vm11, %v9197_v17  ;;  %v9096_v37 = vadd.f32 %v8982_v0, %v7914_v51  ;;  %v7461_v7 = vpop.f32.mrb[85].mxu1  ;;  %v8659_v48 = vpop.f32.mrb[81].mxu0  ;;  %v7807_v1 = vrot.slane %v12062_v4, 1  ;;  %v8995_v31 = vrot.slane %v12264_v21, 2 }
 0x77b   : > { %v9136_v59 = vadd.f32 %v15750_v10, %v9097_v49  ;;  %v12063_v43 = vpop.f32.mrb[86].mxu1  ;;  %v12265_v62 = vpop.f32.mrb[82].mxu0  ;;  %v7804_v46 = vrot.slane %v7461_v7, 1  ;;  %v8992_v15 = vrot.slane %v8659_v48, 2 }
 0x77c   : > { %v9135_v2 = vadd.f32 %v15750_v10, %v9096_v37  ;;  %v7808_v53 = vrot.slane %v12063_v43, 1  ;;  %v8996_v29 = vrot.slane %v12265_v62, 2  ;;  %v7464_v45 = vpop.f32.mrb[87].mxu1  ;;  %v8662_v39 = vpop.f32.mrb[83].mxu0 }
 0x77d   : > { %v9168_v3 = vmax.f32 %v9136_v59, 0.0  ;;  %v7805_v0 = vrot.slane %v7464_v45, 1  ;;  %v8993_v58 = vrot.slane %v8662_v39, 2 }
 0x77e   : > { %v9167_v6 = vmax.f32 %v9135_v2, 0.0  ;;  %v7809_v44 = vsel %vm3519_vm9, %v7807_v1, %v7808_v53  ;;  %v8997_v38 = vsel %vm4822_vm8, %v8995_v31, %v8996_v29 }
 0x77f   : > { %v9200_v30 = vpack.c.bf16 %v9168_v3, %v9168_v3  ;;  %v7917_v47 = vadd.f32 %v7809_v44, %v15427_v14  ;;  %v7806_v41 = vsel %vm3519_vm9, %v7804_v46, %v7805_v0  ;;  %v8994_v40 = vsel %vm4822_vm8, %v8992_v15, %v8993_v58 }
 0x780   : > { %v9199_v63 = vpack.c.bf16 %v9167_v6, %v9167_v6  ;;  %v7916_v35 = vadd.f32 %v7806_v41, %v15429_v36 }
 0x781   : > { %9233 = vst.msk [vmem:[%s15760_s19 + $0x1c] sm:$0xf] %vm9225_vm11, %v9200_v30  ;;  %v9099_v23 = vadd.f32 %v8991_v60, %v7917_v47  ;;  %v12066_v55 = vpop.f32.mrb[88].mxu1  ;;  %v12268_v52 = vpop.f32.mrb[84].mxu0 }
 0x782   : > { %9232 = vst.msk [vmem:[%s15760_s19 + $0x18] sm:$0xf] %vm9225_vm11, %v9199_v63  ;;  %v9098_v25 = vadd.f32 %v8988_v56, %v7916_v35  ;;  %v7477_v5 = vpop.f32.mrb[89].mxu1  ;;  %v8675_v32 = vpop.f32.mrb[85].mxu0  ;;  %v7813_v14 = vrot.slane %v12066_v55, 1  ;;  %v9001_v9 = vrot.slane %v12268_v52, 2 }
 0x783   : > { %v9138_v20 = vadd.f32 %v15750_v10, %v9099_v23  ;;  %v12067_v27 = vpop.f32.mrb[90].mxu1  ;;  %v12269_v54 = vpop.f32.mrb[86].mxu0  ;;  %v7810_v33 = vrot.slane %v7477_v5, 1  ;;  %v8998_v4 = vrot.slane %v8675_v32, 2 }
 0x784   : > { %v9137_v11 = vadd.f32 %v15750_v10, %v9098_v25  ;;  %v7814_v36 = vrot.slane %v12067_v27, 1  ;;  %v9002_v17 = vrot.slane %v12269_v54, 2  ;;  %v7480_v60 = vpop.f32.mrb[91].mxu1  ;;  %v8678_v51 = vpop.f32.mrb[87].mxu0 }
 0x785   : > { %v9170_v49 = vmax.f32 %v9138_v20, 0.0  ;;  %v7811_v56 = vrot.slane %v7480_v60, 1  ;;  %v8999_v21 = vrot.slane %v8678_v51, 2 }
 0x786   : > { %v9169_v37 = vmax.f32 %v9137_v11, 0.0  ;;  %v7815_v7 = vsel %vm3519_vm9, %v7813_v14, %v7814_v36  ;;  %v9003_v48 = vsel %vm4822_vm8, %v9001_v9, %v9002_v17 }
 0x787   : > { %v9202_v59 = vpack.c.bf16 %v9170_v49, %v9170_v49  ;;  %v7919_v1 = vadd.f32 %v7815_v7, %v15441_v24  ;;  %v7812_v31 = vsel %vm3519_vm9, %v7810_v33, %v7811_v56  ;;  %v9000_v43 = vsel %vm4822_vm8, %v8998_v4, %v8999_v21 }
 0x788   : > { %v9201_v62 = vpack.c.bf16 %v9169_v37, %v9169_v37  ;;  %v7918_v2 = vadd.f32 %v7812_v31, %v15443_v28 }
 0x789   : > { %9235 = vst.msk [vmem:[%s15760_s19 + $0x24] sm:$0xf] %vm9225_vm11, %v9202_v59  ;;  %v9101_v46 = vadd.f32 %v8997_v38, %v7919_v1  ;;  %v12070_v53 = vpop.f32.mrb[92].mxu1  ;;  %v12272_v29 = vpop.f32.mrb[88].mxu0 }
 0x78a   : > { %9234 = vst.msk [vmem:[%s15760_s19 + $0x20] sm:$0xf] %vm9225_vm11, %v9201_v62  ;;  %v9100_v45 = vadd.f32 %v8994_v40, %v7918_v2  ;;  %v7493_v39 = vpop.f32.mrb[93].mxu1  ;;  %v8691_v3 = vpop.f32.mrb[89].mxu0  ;;  %v7819_v24 = vrot.slane %v12070_v53, 1  ;;  %v9007_v0 = vrot.slane %v12272_v29, 2 }
 0x78b   : > { %v9140_v15 = vadd.f32 %v15750_v10, %v9101_v46  ;;  %v12071_v58 = vpop.f32.mrb[94].mxu1  ;;  %v12273_v6 = vpop.f32.mrb[90].mxu0  ;;  %v7816_v30 = vrot.slane %v7493_v39, 1  ;;  %v9004_v35 = vrot.slane %v8691_v3, 2 }
 0x78c   : > { %v9139_v44 = vadd.f32 %v15750_v10, %v9100_v45  ;;  %v7820_v28 = vrot.slane %v12071_v58, 1  ;;  %v9008_v47 = vrot.slane %v12273_v6, 2  ;;  %v7496_v38 = vpop.f32.mrb[95].mxu1  ;;  %v8694_v41 = vpop.f32.mrb[91].mxu0 }
 0x78d   : > { %v9172_v63 = vmax.f32 %v9140_v15, 0.0  ;;  %v7817_v40 = vrot.slane %v7496_v38, 1  ;;  %v9005_v23 = vrot.slane %v8694_v41, 2 }
 0x78e   : > { %v9171_v55 = vmax.f32 %v9139_v44, 0.0  ;;  %v7821_v52 = vsel %vm3519_vm9, %v7819_v24, %v7820_v28  ;;  %v9009_v25 = vsel %vm4822_vm8, %v9007_v0, %v9008_v47 }
 0x78f   : > { %v9204_v5 = vpack.c.bf16 %v9172_v63, %v9172_v63  ;;  %v7921_v32 = vadd.f32 %v7821_v52, %v15456_v50  ;;  %v7818_v20 = vsel %vm3519_vm9, %v7816_v30, %v7817_v40  ;;  %v9006_v14 = vsel %vm4822_vm8, %v9004_v35, %v9005_v23 }
 0x790   : > { %v9203_v9 = vpack.c.bf16 %v9171_v55, %v9171_v55  ;;  %v7920_v27 = vadd.f32 %v7818_v20, %v15458_v12 }
 0x791   : > { %9237 = vst.msk [vmem:[%s15760_s19 + $0x2c] sm:$0xf] %vm9225_vm11, %v9204_v5  ;;  %v9103_v54 = vadd.f32 %v9003_v48, %v7921_v32  ;;  %v12074_v11 = vpop.f32.mrb[96].mxu1  ;;  %v12276_v33 = vpop.f32.mrb[92].mxu0 }
 0x792   : > { %9236 = vst.msk [vmem:[%s15760_s19 + $0x28] sm:$0xf] %vm9225_vm11, %v9203_v9  ;;  %v9102_v36 = vadd.f32 %v9000_v43, %v7920_v27  ;;  %v7509_v17 = vpop.f32.mrb[97].mxu1  ;;  %v8707_v60 = vpop.f32.mrb[93].mxu0  ;;  %v7825_v50 = vrot.slane %v12074_v11, 1  ;;  %v9013_v49 = vrot.slane %v12276_v33, 2 }
 0x793   : > { %v9142_v51 = vadd.f32 %v15750_v10, %v9103_v54  ;;  %v12075_v4 = vpop.f32.mrb[98].mxu1  ;;  %v12277_v56 = vpop.f32.mrb[94].mxu0  ;;  %v7822_v37 = vrot.slane %v7509_v17, 1  ;;  %v9010_v31 = vrot.slane %v8707_v60, 2 }
 0x794   : > { %v9141_v21 = vadd.f32 %v15750_v10, %v9102_v36  ;;  %v7826_v12 = vrot.slane %v12075_v4, 1  ;;  %v9014_v7 = vrot.slane %v12277_v56, 2  ;;  %v7512_v48 = vpop.f32.mrb[99].mxu1  ;;  %v8710_v59 = vpop.f32.mrb[95].mxu0 }
 0x795   : > { %v9174_v1 = vmax.f32 %v9142_v51, 0.0  ;;  %v7823_v43 = vrot.slane %v7512_v48, 1  ;;  %v9011_v62 = vrot.slane %v8710_v59, 2 }
 0x796   : > { %v9173_v2 = vmax.f32 %v9141_v21, 0.0  ;;  %v7827_v46 = vsel %vm3519_vm9, %v7825_v50, %v7826_v12  ;;  %v9015_v53 = vsel %vm4822_vm8, %v9013_v49, %v9014_v7 }
 0x797   : > { %v9206_v29 = vpack.c.bf16 %v9174_v1, %v9174_v1  ;;  %v7923_v45 = vadd.f32 %v7827_v46, %v15470_v42  ;;  %v7824_v39 = vsel %vm3519_vm9, %v7822_v37, %v7823_v43  ;;  %v9012_v3 = vsel %vm4822_vm8, %v9010_v31, %v9011_v62 }
 0x798   : > { %v9205_v15 = vpack.c.bf16 %v9173_v2, %v9173_v2  ;;  %v7922_v24 = vadd.f32 %v7824_v39, %v15472_v19 }
 0x799   : > { %9239 = vst.msk [vmem:[%s15760_s19 + $0x34] sm:$0xf] %vm9225_vm11, %v9206_v29  ;;  %v9105_v0 = vadd.f32 %v9009_v25, %v7923_v45  ;;  %v12078_v58 = vpop.f32.mrb[100].mxu1  ;;  %v12280_v6 = vpop.f32.mrb[96].mxu0 }
 0x79a   : > { %9238 = vst.msk [vmem:[%s15760_s19 + $0x30] sm:$0xf] %vm9225_vm11, %v9205_v15  ;;  %v9104_v44 = vadd.f32 %v9006_v14, %v7922_v24  ;;  %v7525_v30 = vpop.f32.mrb[101].mxu1  ;;  %v8723_v28 = vpop.f32.mrb[97].mxu0  ;;  %v7831_v42 = vrot.slane %v12078_v58, 1  ;;  %v9019_v38 = vrot.slane %v12280_v6, 2 }
 0x79b   : > { %v9144_v47 = vadd.f32 %v15750_v10, %v9105_v0  ;;  %v12079_v41 = vpop.f32.mrb[102].mxu1  ;;  %v12281_v63 = vpop.f32.mrb[98].mxu0  ;;  %v7828_v40 = vrot.slane %v7525_v30, 1  ;;  %v9016_v5 = vrot.slane %v8723_v28, 2 }
 0x79c   : > { %v9143_v35 = vadd.f32 %v15750_v10, %v9104_v44  ;;  %v7832_v19 = vrot.slane %v12079_v41, 1  ;;  %v9020_v23 = vrot.slane %v12281_v63, 2  ;;  %v7528_v55 = vpop.f32.mrb[103].mxu1  ;;  %v8726_v52 = vpop.f32.mrb[99].mxu0 }
 0x79d   : > { %v9176_v25 = vmax.f32 %v9144_v47, 0.0  ;;  %v7829_v32 = vrot.slane %v7528_v55, 1  ;;  %v9017_v20 = vrot.slane %v8726_v52, 2 }
 0x79e   : > { %v9175_v14 = vmax.f32 %v9143_v35, 0.0  ;;  %v7833_v9 = vsel %vm3519_vm9, %v7831_v42, %v7832_v19  ;;  %v9021_v27 = vsel %vm4822_vm8, %v9019_v38, %v9020_v23 }
 0x79f   : > { %v9208_v54 = vpack.c.bf16 %v9176_v25, %v9176_v25  ;;  %v7925_v11 = vadd.f32 %v7833_v9, %v15483_v13  ;;  %v7830_v33 = vsel %vm3519_vm9, %v7828_v40, %v7829_v32  ;;  %v9018_v36 = vsel %vm4822_vm8, %v9016_v5, %v9017_v20 }
 0x7a0   : > { %v9207_v17 = vpack.c.bf16 %v9175_v14, %v9175_v14  ;;  %v7924_v60 = vadd.f32 %v7830_v33, %v15485_v57 }
 0x7a1   : > { %9241 = vst.msk [vmem:[%s15760_s19 + $0x3c] sm:$0xf] %vm9225_vm11, %v9208_v54  ;;  %v9107_v51 = vadd.f32 %v9015_v53, %v7925_v11  ;;  %v12082_v50 = vpop.f32.mrb[104].mxu1  ;;  %v12284_v49 = vpop.f32.mrb[100].mxu0 }
 0x7a2   : > { %9240 = vst.msk [vmem:[%s15760_s19 + $0x38] sm:$0xf] %vm9225_vm11, %v9207_v17  ;;  %v9106_v4 = vadd.f32 %v9012_v3, %v7924_v60  ;;  %v7541_v56 = vpop.f32.mrb[105].mxu1  ;;  %v8739_v21 = vpop.f32.mrb[101].mxu0  ;;  %v7837_v13 = vrot.slane %v12082_v50, 1  ;;  %v9025_v12 = vrot.slane %v12284_v49, 2 }
 0x7a3   : > { %v9146_v37 = vadd.f32 %v15750_v10, %v9107_v51  ;;  %v12083_v7 = vpop.f32.mrb[106].mxu1  ;;  %v12285_v48 = vpop.f32.mrb[102].mxu0  ;;  %v7834_v1 = vrot.slane %v7541_v56, 1  ;;  %v9022_v46 = vrot.slane %v8739_v21, 2  ;;  %v16164_v50 = vld [vmem:[#allocation40_spill] sm:$0xff] }
 0x7a4   : > { %v9145_v59 = vadd.f32 %v15750_v10, %v9106_v4  ;;  %v7838_v57 = vrot.slane %v12083_v7, 1  ;;  %v9026_v31 = vrot.slane %v12285_v48, 2  ;;  %v7544_v43 = vpop.f32.mrb[107].mxu1  ;;  %v8742_v62 = vpop.f32.mrb[103].mxu0 }
 0x7a5   : > { %v9178_v2 = vmax.f32 %v9146_v37, 0.0  ;;  %v7835_v53 = vrot.slane %v7544_v43, 1  ;;  %v9023_v29 = vrot.slane %v8742_v62, 2 }
 0x7a6   : > { %v9177_v45 = vmax.f32 %v9145_v59, 0.0  ;;  %v7839_v39 = vsel %vm3519_vm9, %v7837_v13, %v7838_v57  ;;  %v9027_v3 = vsel %vm4822_vm8, %v9025_v12, %v9026_v31 }
 0x7a7   : > { %v9210_v15 = vpack.c.bf16 %v9178_v2, %v9178_v2  ;;  %v7927_v24 = vadd.f32 %v7839_v39, %v15496_v34  ;;  %v7836_v0 = vsel %vm3519_vm9, %v7834_v1, %v7835_v53  ;;  %v9024_v58 = vsel %vm4822_vm8, %v9022_v46, %v9023_v29 }
 0x7a8   : > { %v9209_v6 = vpack.c.bf16 %v9177_v45, %v9177_v45  ;;  %v7926_v44 = vadd.f32 %v7836_v0, %v15498_v16 }
 0x7a9   : > { %9243 = vst.msk [vmem:[%s15760_s19 + $0x44] sm:$0xf] %vm9225_vm11, %v9210_v15  ;;  %v9109_v30 = vadd.f32 %v9021_v27, %v7927_v24  ;;  %v12086_v28 = vpop.f32.mrb[108].mxu1  ;;  %v12288_v47 = vpop.f32.mrb[104].mxu0 }
 0x7aa   : > { %9242 = vst.msk [vmem:[%s15760_s19 + $0x40] sm:$0xf] %vm9225_vm11, %v9209_v6  ;;  %v9108_v42 = vadd.f32 %v9018_v36, %v7926_v44  ;;  %v7557_v38 = vpop.f32.mrb[109].mxu1  ;;  %v8755_v41 = vpop.f32.mrb[105].mxu0  ;;  %v7843_v34 = vrot.slane %v12086_v28, 1  ;;  %v9031_v35 = vrot.slane %v12288_v47, 2 }
 0x7ab   : > { %v9148_v63 = vadd.f32 %v15750_v10, %v9109_v30  ;;  %v12087_v40 = vpop.f32.mrb[110].mxu1  ;;  %v12289_v19 = vpop.f32.mrb[106].mxu0  ;;  %v7840_v55 = vrot.slane %v7557_v38, 1  ;;  %v9028_v20 = vrot.slane %v8755_v41, 2  ;;  %v16166_v47 = vld [vmem:[#allocation41_spill] sm:$0xff] }
 0x7ac   : > { %v9147_v23 = vadd.f32 %v15750_v10, %v9108_v42  ;;  %v7844_v16 = vrot.slane %v12087_v40, 1  ;;  %v9032_v52 = vrot.slane %v12289_v19, 2  ;;  %v7560_v25 = vpop.f32.mrb[111].mxu1  ;;  %v8758_v5 = vpop.f32.mrb[107].mxu0 }
 0x7ad   : > { %v9180_v32 = vmax.f32 %v9148_v63, 0.0  ;;  %v7841_v14 = vrot.slane %v7560_v25, 1  ;;  %v9029_v9 = vrot.slane %v8758_v5, 2 }
 0x7ae   : > { %v9179_v27 = vmax.f32 %v9147_v23, 0.0  ;;  %v7845_v54 = vsel %vm3519_vm9, %v7843_v34, %v7844_v16  ;;  %v9033_v11 = vsel %vm4822_vm8, %v9031_v35, %v9032_v52 }
 0x7af   : > { %v9212_v33 = vpack.c.bf16 %v9180_v32, %v9180_v32  ;;  %v7929_v36 = vadd.f32 %v7845_v54, %v15510_v18  ;;  %v7842_v17 = vsel %vm3519_vm9, %v7840_v55, %v7841_v14  ;;  %v9030_v60 = vsel %vm4822_vm8, %v9028_v20, %v9029_v9 }
 0x7b0   : > { %v9211_v51 = vpack.c.bf16 %v9179_v27, %v9179_v27  ;;  %v7928_v49 = vadd.f32 %v7842_v17, %v16164_v50  ;;  %v16167_v50 = vld [vmem:[#allocation42_spill] sm:$0xff] }
 0x7b1   : > { %9245 = vst.msk [vmem:[%s15760_s19 + $0x4c] sm:$0xf] %vm9225_vm11, %v9212_v33  ;;  %v9111_v4 = vadd.f32 %v9027_v3, %v7929_v36  ;;  %v12090_v56 = vpop.f32.mrb[112].mxu1  ;;  %v12292_v21 = vpop.f32.mrb[108].mxu0 }
 0x7b2   : > { %9244 = vst.msk [vmem:[%s15760_s19 + $0x48] sm:$0xf] %vm9225_vm11, %v9211_v51  ;;  %v9110_v37 = vadd.f32 %v9024_v58, %v7928_v49  ;;  %v7573_v13 = vpop.f32.mrb[113].mxu1  ;;  %v8771_v12 = vpop.f32.mrb[109].mxu0  ;;  %v7849_v18 = vrot.slane %v12090_v56, 1  ;;  %v9037_v48 = vrot.slane %v12292_v21, 2 }
 0x7b3   : > { %v9150_v7 = vadd.f32 %v15750_v10, %v9111_v4  ;;  %v12091_v59 = vpop.f32.mrb[114].mxu1  ;;  %v12293_v1 = vpop.f32.mrb[110].mxu0  ;;  %v7846_v31 = vrot.slane %v7573_v13, 1  ;;  %v9034_v29 = vrot.slane %v8771_v12, 2  ;;  %v16165_v58 = vld [vmem:[#allocation7_spill] sm:$0xff] }
 0x7b4   : > { %v9149_v57 = vadd.f32 %v15750_v10, %v9110_v37  ;;  %v7850_v43 = vrot.slane %v12091_v59, 1  ;;  %v9038_v62 = vrot.slane %v12293_v1, 2  ;;  %v7576_v2 = vpop.f32.mrb[115].mxu1  ;;  %v8774_v46 = vpop.f32.mrb[111].mxu0  ;;  %v16168_v37 = vld [vmem:[#allocation8_spill] sm:$0xff] }
 0x7b5   : > { %v9182_v53 = vmax.f32 %v9150_v7, 0.0  ;;  %v7847_v45 = vrot.slane %v7576_v2, 1  ;;  %v9035_v39 = vrot.slane %v8774_v46, 2 }
 0x7b6   : > { %v9181_v3 = vmax.f32 %v9149_v57, 0.0  ;;  %v7851_v15 = vsel %vm3519_vm9, %v7849_v18, %v7850_v43  ;;  %v9039_v24 = vsel %vm4822_vm8, %v9037_v48, %v9038_v62 }
 0x7b7   : > { %v9214_v0 = vpack.c.bf16 %v9182_v53, %v9182_v53  ;;  %v7931_v6 = vadd.f32 %v7851_v15, %v16165_v58  ;;  %v7848_v44 = vsel %vm3519_vm9, %v7846_v31, %v7847_v45  ;;  %v9036_v30 = vsel %vm4822_vm8, %v9034_v29, %v9035_v39 }
 0x7b8   : > { %v9213_v28 = vpack.c.bf16 %v9181_v3, %v9181_v3  ;;  %v7930_v42 = vadd.f32 %v7848_v44, %v16166_v47  ;;  %v16169_v47 = vld [vmem:[#allocation43_spill] sm:$0xff] }
 0x7b9   : > { %9247 = vst.msk [vmem:[%s15760_s19 + $0x54] sm:$0xf] %vm9225_vm11, %v9214_v0  ;;  %v9113_v38 = vadd.f32 %v9033_v11, %v7931_v6  ;;  %v12094_v41 = vpop.f32.mrb[116].mxu1  ;;  %v12296_v63 = vpop.f32.mrb[112].mxu0 }
 0x7ba   : > { %9246 = vst.msk [vmem:[%s15760_s19 + $0x50] sm:$0xf] %vm9225_vm11, %v9213_v28  ;;  %v9112_v34 = vadd.f32 %v9030_v60, %v7930_v42  ;;  %v7589_v35 = vpop.f32.mrb[117].mxu1  ;;  %v8787_v40 = vpop.f32.mrb[113].mxu0  ;;  %v7855_v23 = vrot.slane %v12094_v41, 1  ;;  %v9043_v55 = vrot.slane %v12296_v63, 2 }
 0x7bb   : > { %v9152_v19 = vadd.f32 %v15750_v10, %v9113_v38  ;;  %v12095_v16 = vpop.f32.mrb[118].mxu1  ;;  %v12297_v52 = vpop.f32.mrb[114].mxu0  ;;  %v7852_v5 = vrot.slane %v7589_v35, 1  ;;  %v9040_v54 = vrot.slane %v8787_v40, 2 }
 0x7bc   : > { %v9151_v25 = vadd.f32 %v15750_v10, %v9112_v34  ;;  %v7856_v32 = vrot.slane %v12095_v16, 1  ;;  %v9044_v20 = vrot.slane %v12297_v52, 2  ;;  %v7592_v14 = vpop.f32.mrb[119].mxu1  ;;  %v8790_v9 = vpop.f32.mrb[115].mxu0  ;;  %v16170_v34 = vld [vmem:[#allocation9_spill] sm:$0xff] }
 0x7bd   : > { %v9184_v27 = vmax.f32 %v9152_v19, 0.0  ;;  %v7853_v11 = vrot.slane %v7592_v14, 1  ;;  %v9041_v33 = vrot.slane %v8790_v9, 2 }
 0x7be   : > { %v9183_v36 = vmax.f32 %v9151_v25, 0.0  ;;  %v7857_v17 = vsel %vm3519_vm9, %v7855_v23, %v7856_v32  ;;  %v9045_v60 = vsel %vm4822_vm8, %v9043_v55, %v9044_v20 }
 0x7bf   : > { %v9216_v51 = vpack.c.bf16 %v9184_v27, %v9184_v27  ;;  %v7933_v49 = vadd.f32 %v7857_v17, %v16167_v50  ;;  %v7854_v4 = vsel %vm3519_vm9, %v7852_v5, %v7853_v11  ;;  %v9042_v56 = vsel %vm4822_vm8, %v9040_v54, %v9041_v33 }
 0x7c0   : > { %v9215_v21 = vpack.c.bf16 %v9183_v36, %v9183_v36  ;;  %v7932_v13 = vadd.f32 %v7854_v4, %v16168_v37 }
 0x7c1   : > { %9249 = vst.msk [vmem:[%s15760_s19 + $0x5c] sm:$0xf] %vm9225_vm11, %v9216_v51  ;;  %v9115_v12 = vadd.f32 %v9039_v24, %v7933_v49  ;;  %v12098_v7 = vpop.f32.mrb[120].mxu1  ;;  %v12300_v18 = vpop.f32.mrb[116].mxu0 }
 0x7c2   : > { %9248 = vst.msk [vmem:[%s15760_s19 + $0x58] sm:$0xf] %vm9225_vm11, %v9215_v21  ;;  %v9114_v48 = vadd.f32 %v9036_v30, %v7932_v13  ;;  %v7605_v59 = vpop.f32.mrb[121].mxu1  ;;  %v8803_v1 = vpop.f32.mrb[117].mxu0  ;;  %v7861_v31 = vrot.slane %v12098_v7, 1  ;;  %v9049_v43 = vrot.slane %v12300_v18, 2 }
 0x7c3   : > { %v9154_v57 = vadd.f32 %v15750_v10, %v9115_v12  ;;  %v12099_v62 = vpop.f32.mrb[122].mxu1  ;;  %v12301_v2 = vpop.f32.mrb[118].mxu0  ;;  %v7858_v53 = vrot.slane %v7605_v59, 1  ;;  %v9046_v24 = vrot.slane %v8803_v1, 2 }
 0x7c4   : > { %v9153_v46 = vadd.f32 %v15750_v10, %v9114_v48  ;;  %v7862_v29 = vrot.slane %v12099_v62, 1  ;;  %v9050_v45 = vrot.slane %v12301_v2, 2  ;;  %v7608_v39 = vpop.f32.mrb[123].mxu1  ;;  %v8806_v3 = vpop.f32.mrb[119].mxu0 }
 0x7c5   : > { %v9186_v15 = vmax.f32 %v9154_v57, 0.0  ;;  %v7859_v0 = vrot.slane %v7608_v39, 1  ;;  %v9047_v58 = vrot.slane %v8806_v3, 2 }
 0x7c6   : > { %v9185_v6 = vmax.f32 %v9153_v46, 0.0  ;;  %v7863_v44 = vsel %vm3519_vm9, %v7861_v31, %v7862_v29  ;;  %v9051_v30 = vsel %vm4822_vm8, %v9049_v43, %v9050_v45 }
 0x7c7   : > { %v9218_v28 = vpack.c.bf16 %v9186_v15, %v9186_v15  ;;  %v7935_v42 = vadd.f32 %v7863_v44, %v16169_v47  ;;  %v7860_v38 = vsel %vm3519_vm9, %v7858_v53, %v7859_v0  ;;  %v9048_v41 = vsel %vm4822_vm8, %v9046_v24, %v9047_v58 }
 0x7c8   : > { %v9217_v63 = vpack.c.bf16 %v9185_v6, %v9185_v6  ;;  %v7934_v35 = vadd.f32 %v7860_v38, %v16170_v34 }
 0x7c9   : > { %9251 = vst.msk [vmem:[%s15760_s19 + $0x64] sm:$0xf] %vm9225_vm11, %v9218_v28  ;;  %v9117_v40 = vadd.f32 %v9045_v60, %v7935_v42  ;;  %v12102_v19 = vpop.f32.mrb[124].mxu1  ;;  %v12304_v23 = vpop.f32.mrb[120].mxu0 }
 0x7ca   : > { %9250 = vst.msk [vmem:[%s15760_s19 + $0x60] sm:$0xf] %vm9225_vm11, %v9217_v63  ;;  %v9116_v55 = vadd.f32 %v9042_v56, %v7934_v35  ;;  %v7621_v16 = vpop.f32.mrb[125].mxu1  ;;  %v8819_v52 = vpop.f32.mrb[121].mxu0  ;;  %v7867_v5 = vrot.slane %v12102_v19, 1  ;;  %v9055_v32 = vrot.slane %v12304_v23, 2 }
 0x7cb   : > { %v9156_v25 = vadd.f32 %v15750_v10, %v9117_v40  ;;  %v12103_v20 = vpop.f32.mrb[126].mxu1  ;;  %v12305_v14 = vpop.f32.mrb[122].mxu0  ;;  %v7864_v27 = vrot.slane %v7621_v16, 1  ;;  %v9052_v60 = vrot.slane %v8819_v52, 2 }
 0x7cc   : > { %v9155_v9 = vadd.f32 %v15750_v10, %v9116_v55  ;;  %v7868_v54 = vrot.slane %v12103_v20, 1  ;;  %v9056_v11 = vrot.slane %v12305_v14, 2  ;;  %v7624_v33 = vpop.f32.mrb[127].mxu1  ;;  %v8822_v36 = vpop.f32.mrb[123].mxu0 }
 0x7cd   : > { %v9188_v17 = vmax.f32 %v9156_v25, 0.0  ;;  %v7865_v51 = vrot.slane %v7624_v33, 1  ;;  %v9053_v50 = vrot.slane %v8822_v36, 2 }
 0x7ce   : > { %v9187_v49 = vmax.f32 %v9155_v9, 0.0  ;;  %v7869_v4 = vsel %vm3519_vm9, %v7867_v5, %v7868_v54  ;;  %v9057_v56 = vsel %vm4822_vm8, %v9055_v32, %v9056_v11 }
 0x7cf   : > { %v9220_v21 = vpack.c.bf16 %v9188_v17, %v9188_v17  ;;  %v7937_v37 = vadd.f32 %v7869_v4, %v15564_v22  ;;  %v7866_v13 = vsel %vm3519_vm9, %v7864_v27, %v7865_v51  ;;  %v9054_v12 = vsel %vm4822_vm8, %v9052_v60, %v9053_v50 }
 0x7d0   : > { %v9219_v7 = vpack.c.bf16 %v9187_v49, %v9187_v49  ;;  %v7936_v18 = vadd.f32 %v7866_v13, %v15566_v8 }
 0x7d1   : > { %9253 = vst.msk [vmem:[%s15760_s19 + $0x6c] sm:$0xf] %vm9225_vm11, %v9220_v21  ;;  %v9119_v48 = vadd.f32 %v9051_v30, %v7937_v37  ;;  %v12106_v59 = vpop.f32.mrb[128].mxu1 }
 0x7d2   : > { %9252 = vst.msk [vmem:[%s15760_s19 + $0x68] sm:$0xf] %vm9225_vm11, %v9219_v7  ;;  %v9118_v1 = vadd.f32 %v9048_v41, %v7936_v18  ;;  %v7637_v57 = vpop.f32.mrb[129].mxu1  ;;  %v7873_v62 = vrot.slane %v12106_v59, 1 }
 0x7d3   : > { %v9158_v31 = vadd.f32 %v15750_v10, %v9119_v48  ;;  %v12107_v43 = vpop.f32.mrb[130].mxu1  ;;  %v7870_v8 = vrot.slane %v7637_v57, 1 }
 0x7d4   : > { %v9157_v22 = vadd.f32 %v15750_v10, %v9118_v1  ;;  %v7874_v2 = vrot.slane %v12107_v43, 1  ;;  %v7640_v46 = vpop.f32.mrb[131].mxu1 }
 0x7d5   : > { %v9190_v53 = vmax.f32 %v9158_v31, 0.0  ;;  %v7871_v29 = vrot.slane %v7640_v46, 1 }
 0x7d6   : > { %v9189_v45 = vmax.f32 %v9157_v22, 0.0  ;;  %v7875_v39 = vsel %vm3519_vm9, %v7873_v62, %v7874_v2 }
 0x7d7   : > { %v9222_v3 = vpack.c.bf16 %v9190_v53, %v9190_v53  ;;  %v7939_v15 = vadd.f32 %v7875_v39, %v15578_v26  ;;  %v7872_v24 = vsel %vm3519_vm9, %v7870_v8, %v7871_v29 }
 0x7d8   : > { %v9221_v0 = vpack.c.bf16 %v9189_v45, %v9189_v45  ;;  %v7938_v58 = vadd.f32 %v7872_v24, %v15580_v61 }
 0x7d9   : > { %9255 = vst.msk [vmem:[%s15760_s19 + $0x74] sm:$0xf] %vm9225_vm11, %v9222_v3  ;;  %v9121_v6 = vadd.f32 %v9057_v56, %v7939_v15 }
 0x7da   : > { %9254 = vst.msk [vmem:[%s15760_s19 + $0x70] sm:$0xf] %vm9225_vm11, %v9221_v0  ;;  %v9120_v44 = vadd.f32 %v9054_v12, %v7938_v58 }
 0x7db   : > { %v9160_v30 = vadd.f32 %v15750_v10, %v9121_v6 }
 0x7dc   : > { %v9159_v28 = vadd.f32 %v15750_v10, %v9120_v44 }
 0x7dd   : > { %v9192_v47 = vmax.f32 %v9160_v30, 0.0 }
 0x7de   : > { %v9191_v42 = vmax.f32 %v9159_v28, 0.0 }
 0x7df   : > { %v9224_v38 = vpack.c.bf16 %v9192_v47, %v9192_v47 }
 0x7e0   : > { %v9223_v41 = vpack.c.bf16 %v9191_v42, %v9191_v42 }
 0x7e1   : > { %9257 = vst.msk [vmem:[%s15760_s19 + $0x7c] sm:$0xf] %vm9225_vm11, %v9224_v38 }
 0x7e2   : > { %9256 = vst.msk [vmem:[%s15760_s19 + $0x78] sm:$0xf] %vm9225_vm11, %v9223_v41 }
 0x7e3 PF: > { %s21_s13 = sadd.s32 1, %s13002_s13  }
 0x7e4   : > { %p18_p4 = scmp.ge.s32.totalorder %s21_s13, 4  }
 0x7e6   :  { %20 = sbr.rel (!%p18_p4) target bundleno = 1 (0x1), region = 114 }

</bundles_post_ra>
